<compile_context>
chip_gen: v7x
topology: tpu7x:2x2x1
jax: 0.10.0
libtpu: 0.0.40
codegen_flags: <defaults>
</compile_context>

<pallas_src>
import functools

import jax
import jax.numpy as jnp
import numpy as np
from jax.experimental import pallas as pl
from jax.experimental.pallas import tpu as pltpu


def _round_up(x, m):
    return (x + m - 1) // m * m


def _vmem_capacity_bytes():
    """Per-core VMEM capacity; conservative (v7x) fallback if the query fails."""
    try:
        return int(pltpu.get_tpu_info().vmem_capacity_bytes)
    except Exception:
        return 64 << 20


def _choose_label_tile(num_labels, s, w_itemsize, vmem_cap, requested=None):
    """Lane-dense label tile sized to the chip's VMEM and TensorCore count."""
    if requested is None:
        # v5e/v6e (128 MiB VMEM): 1024-wide tiles; v7x (64 MiB): 512-wide.
        requested = 1024 if vmem_cap >= (96 << 20) else 512
    lt = _round_up(min(requested, _round_up(num_labels, 128)), 128)
    # Double-buffered weight tiles must leave headroom for x / out / bias.
    budget = int(vmem_cap * 0.45)
    while lt > 256 and 2 * s * lt * w_itemsize > budget:
        lt //= 2

    def ntiles(t):
        return _round_up(num_labels, t) // t

    # Prefer an even tile count (v7x megacore balance), but keep lt >= 256 so
    # each weight-DMA row chunk stays >= 512 B contiguous.
    if ntiles(lt) > 1 and ntiles(lt) % 2 == 1 and lt >= 512 and ntiles(lt // 2) % 2 == 0:
        lt //= 2
    return lt


def prepare_classifier_params(weight, bias, *, label_tile=None,
                              weight_dtype=jnp.bfloat16):
    """One-time weight prep (run eagerly, outside the per-call jitted path).

    weight: (L, S) f32, bias: (L,) f32.
    Returns (wT, b2, label_tile): wT is (S, L_pad) in weight_dtype, b2 is
    (1, L_pad) f32, both zero-padded to a multiple of the chosen label tile.
    """
    L, S = weight.shape
    w_itemsize = jnp.dtype(weight_dtype).itemsize
    vmem_cap = _vmem_capacity_bytes()
    lt = _choose_label_tile(L, S, w_itemsize, vmem_cap, label_tile)
    L_pad = _round_up(L, lt)

    wT = jnp.transpose(weight).astype(weight_dtype)          # (S, L)
    b2 = bias.astype(jnp.float32).reshape(1, L)
    if L_pad != L:
        wT = jnp.pad(wT, ((0, 0), (0, L_pad - L)))
        b2 = jnp.pad(b2, ((0, 0), (0, L_pad - L)))
    # Materialize now so the transpose/cast/pad never re-runs per forward call.
    wT = jax.block_until_ready(wT)
    b2 = jax.block_until_ready(b2)
    return wT, b2, lt


def _classifier_kernel(x_ref, w_ref, b_ref, o_ref):
    # Pre-pooled activations (Bp, S) bf16 x weight tile (S, lt) bf16 on the
    # MXU with f32 accumulation, plus the f32 bias tile.
    acc = jnp.dot(x_ref[...], w_ref[...], preferred_element_type=jnp.float32)
    o_ref[...] = acc + b_ref[...]


def dc_classifier_forward(x, wT, b2, *, pool_k, pool_s, pool_p, num_labels,
                          label_tile, act_dtype=jnp.bfloat16):
    """x: (B, C, H, W) NCHW f32; wT: (S, L_pad); b2: (1, L_pad). Returns (B, L)."""
    B, C, H, W = x.shape
    S, L_pad = wT.shape
    # conv=5 config: stride == kernel, no padding, spatial dims divide evenly.
    # TODO(synk): conv=1/3/4 configs (zero-padded / non-divisible pooling
    # windows) are not wired up; only the conv=5 config is implemented.
    assert pool_k == pool_s and pool_p == 0
    assert H % pool_k == 0 and W % pool_k == 0
    Ho, Wo = H // pool_k, W // pool_k
    assert C * Ho * Wo == S, (C * Ho * Wo, S)
    lt = label_tile
    assert lt % 128 == 0 and L_pad % lt == 0

    Bp = _round_up(B, 8)                      # unmasked sublane layout

    # ---- glue (tiny, fused by XLA): pool + flatten + narrow cast + pad -----
    pooled = x.reshape(B, C, Ho, pool_k, Wo, pool_k).mean(axis=(3, 5))
    pooled = pooled.reshape(B, S).astype(act_dtype)           # (B, S)
    if Bp != B:
        pooled = jnp.pad(pooled, ((0, Bp - B), (0, 0)))       # (Bp, S)

    grid = (L_pad // lt,)

    # VMEM budget: double-buffered weight tiles dominate; raise the scoped
    # limit explicitly (v5e default is 16 MiB) while staying under the
    # physical per-core capacity of the current chip.
    vmem_cap = _vmem_capacity_bytes()
    w_itemsize = jnp.dtype(wT.dtype).itemsize
    x_itemsize = jnp.dtype(act_dtype).itemsize
    vmem_bytes = (2 * S * lt * w_itemsize      # weight tiles (double-buffered)
                  + 2 * Bp * S * x_itemsize    # pooled x (resident; 2 buffers)
                  + 2 * Bp * lt * 4            # output tiles
                  + 2 * lt * 4)                # bias tiles
    vmem_limit = min(_round_up(int(vmem_bytes * 1.25) + (2 << 20), 1 << 20),
                     int(vmem_cap * 0.9))

    out = pl.pallas_call(
        _classifier_kernel,
        out_shape=jax.ShapeDtypeStruct((Bp, L_pad), jnp.float32),
        grid_spec=pltpu.PrefetchScalarGridSpec(
            num_scalar_prefetch=0,
            grid=grid,
            in_specs=[
                pl.BlockSpec((Bp, S), lambda j: (0, 0)),   # pooled x (resident)
                pl.BlockSpec((S, lt), lambda j: (0, j)),   # W^T tile (bf16 stream)
                pl.BlockSpec((1, lt), lambda j: (0, j)),   # bias tile
            ],
            out_specs=pl.BlockSpec((Bp, lt), lambda j: (0, j)),
        ),
        compiler_params=pltpu.CompilerParams(
            dimension_semantics=("parallel",),   # label tiles are independent
            vmem_limit_bytes=vmem_limit),
    )(pooled, wT, b2)
    return out[:B, :num_labels]


def _reference_forward(x, weight, bias, k):
    B, C, H, W = x.shape
    pooled = x.reshape(B, C, H // k, k, W // k, k).mean(axis=(3, 5))
    flat = pooled.reshape(B, -1)
    return flat @ weight.T + bias


if __name__ == "__main__":
    # conv=5 configuration of dc_Classifier: AvgPool2d(2, stride=2, pad=0), s=9216.
    # Input implied by the module: 256 channels, 12x12 spatial -> 256*6*6 = 9216.
    B, C, H, W = 2, 256, 12, 12
    POOL_K, POOL_S, POOL_P = 2, 2, 0
    S = C * (H // POOL_K) * (W // POOL_K)        # 9216
    NUM_LABELS = 1000                            # module default (not a multiple of 128)

    key = jax.random.PRNGKey(0)
    kx, kw, kb = jax.random.split(key, 3)
    x = jax.random.normal(kx, (B, C, H, W), dtype=jnp.float32)
    weight = jax.random.normal(kw, (NUM_LABELS, S), dtype=jnp.float32) * 0.01
    bias = jax.random.normal(kb, (NUM_LABELS,), dtype=jnp.float32) * 0.01

    # One-time weight preprocessing, hoisted out of the per-call jitted path.
    wT, b2, label_tile = prepare_classifier_params(weight, bias)

    fwd = jax.jit(functools.partial(
        dc_classifier_forward,
        pool_k=POOL_K, pool_s=POOL_S, pool_p=POOL_P,
        num_labels=NUM_LABELS, label_tile=label_tile))
    out = jax.block_until_ready(fwd(x, wT, b2))

    ref = _reference_forward(x, weight, bias, POOL_K)
    # bf16 weight/activation streaming -> looser tolerance than pure f32.
    np.testing.assert_allclose(np.asarray(out), np.asarray(ref),
                               rtol=2e-2, atol=2e-2)
    print("KERNEL_OK")
</pallas_src>

<mosaic_0001>
module attributes {stable_mosaic.version = 11 : i64} {
  func.func @_classifier_kernel(%arg0: i32, %arg1: memref<8x9216xbf16, #tpu.memory_space<vmem>>, %arg2: memref<9216x512xbf16, #tpu.memory_space<vmem>>, %arg3: memref<1x512xf32, #tpu.memory_space<vmem>>, %arg4: memref<8x512xf32, #tpu.memory_space<vmem>>) attributes {dimension_semantics = [#tpu.dimension_semantics<parallel>], iteration_bounds = array<i64: 2>, scalar_prefetch = 0 : i64, scratch_operands = 0 : i64, tpu.core_type = #tpu.core_type<tc>, window_params = [{pipeline_mode = #tpu.pipeline_mode<synchronous>, transform_indices = @transform_0, window_bounds = array<i64: 8, 9216>}, {transform_indices = @transform_1, window_bounds = array<i64: 9216, 512>}, {transform_indices = @transform_2, window_bounds = array<i64: 1, 512>}, {transform_indices = @transform_3, window_bounds = array<i64: 8, 512>}]} {
    %c0 = arith.constant 0 : index
    %c0_0 = arith.constant 0 : index
    %0 = vector.load %arg1[%c0, %c0_0] : memref<8x9216xbf16, #tpu.memory_space<vmem>>, vector<8x9216xbf16>
    %c0_1 = arith.constant 0 : index
    %c0_2 = arith.constant 0 : index
    %1 = vector.load %arg2[%c0_1, %c0_2] : memref<9216x512xbf16, #tpu.memory_space<vmem>>, vector<9216x512xbf16>
    %cst = arith.constant dense<0.000000e+00> : vector<8x512xf32>
    %2 = tpu.matmul %0, %1, %cst {dimension_numbers = #tpu.dot_dimension_numbers<[1], [0], [0], [1], [0, 0, 1, 1], [], []>} : vector<8x9216xbf16>, vector<9216x512xbf16>, vector<8x512xf32> -> vector<8x512xf32>
    %c0_3 = arith.constant 0 : index
    %c0_4 = arith.constant 0 : index
    %3 = vector.load %arg3[%c0_3, %c0_4] : memref<1x512xf32, #tpu.memory_space<vmem>>, vector<1x512xf32>
    %4 = vector.broadcast %3 : vector<1x512xf32> to vector<8x512xf32>
    %5 = arith.addf %2, %4 : vector<8x512xf32>
    %c0_5 = arith.constant 0 : index
    %c0_6 = arith.constant 0 : index
    %6 = vector.load %arg4[%c0_5, %c0_6] : memref<8x512xf32, #tpu.memory_space<vmem>>, vector<8x512xf32>
    tpu.vector_store %arg4[%c0_5, %c0_6], %5 {strides = array<i32>} : memref<8x512xf32, #tpu.memory_space<vmem>>, vector<8x512xf32>,
    return
  }
  func.func @transform_0(%arg0: i32) -> (i32, i32) {
    %c0_i32 = arith.constant 0 : i32
    %c0_i32_0 = arith.constant 0 : i32
    %c0_i32_1 = arith.constant 0 : i32
    return %c0_i32, %c0_i32_0 : i32, i32
  }
  func.func @transform_1(%arg0: i32) -> (i32, i32) {
    %c0_i32 = arith.constant 0 : i32
    %c0_i32_0 = arith.constant 0 : i32
    return %c0_i32, %arg0 : i32, i32
  }
  func.func @transform_2(%arg0: i32) -> (i32, i32) {
    %c0_i32 = arith.constant 0 : i32
    %c0_i32_0 = arith.constant 0 : i32
    return %c0_i32, %arg0 : i32, i32
  }
  func.func @transform_3(%arg0: i32) -> (i32, i32) {
    %c0_i32 = arith.constant 0 : i32
    %c0_i32_0 = arith.constant 0 : i32
    return %c0_i32, %arg0 : i32, i32
  }
}

</mosaic_0001>

<bundles_post_ra>
// kernel: dc_classifier_forward.1
= control target key start
LH: loop header
LB: loop body
LE: loop exit
PB: predicated region body
PF: predicated region fallthrough
CT: control target
= control target key end

     0   :  { %8 = vsyncpa [#allocation3], 0  ;;  %s26563_s0 = inlined_call_operand.vmem [shape: bf16[8,9216], index: 0, kind: input, shape index: {}]   ;;  %s26564_s1 = inlined_call_operand.hbm [shape: bf16[9216,1024], index: 1, kind: input, shape index: {}]   ;;  %s26565_s2 = inlined_call_operand.hbm [shape: f32[1,1024], index: 2, kind: input, shape index: {}]   ;;  %s26566_s3 = inlined_call_operand.vmem [shape: f32[8,1024], index: 3, kind: output, shape index: {}]  }
   0x1   :  { %10 = vsyncpa [#allocation3 + $0x1], 0 }
   0x2   :  { %11 = vsyncpa [#allocation5], 0 }
   0x3   :  { %13 = vsyncpa [#allocation5 + $0x1], 0  ;;  %s23791_s12 = smov 0   ;;  %s23793_s13 = smov 0  }
   0x4   :  { %s23795_s14 = smov 0   ;;  %s23797_s15 = smov 0  }
   0x5 LB: > { %s17412_s16 = sadd.s32 4294967295, %s23764_s15   ;;  %s23811_s17 = sadd.s32 1, %s23764_s15   ;;  %s23764_s15 = sphi %s23797_s15, %s26576_s15   ;;  %s23760_s14 = sphi %s23795_s14, %s26575_s14   ;;  %s23756_s13 = sphi %s23793_s13, %s26574_s13   ;;  %s23752_s12 = sphi %s23791_s12, %s26573_s12  }
   0x6   : > { %s44_s18 = ssub.s32 %s23764_s15, %s23811_s17  ;;  %s47_s19 = sadd.s32 1, %s23760_s14 }
   0x7   : > { %p45_p0 = scmp.eq.s32.totalorder %s44_s18, 0  ;;  %p54_p1 = scmp.ne.s32.totalorder %s23760_s14, %s23756_s13 }
   0x8   : > { %p55_p2 = scmp.eq.s32.totalorder %s23764_s15, 0  ;;  %p60_p3 = scmp.ne.s32.totalorder %s23756_s13, %s23752_s12 }
   0x9   : > { %s23821_s20 = scalar_select %p45_p0, %s23760_s14, %s47_s19  }
   0xa   : > { %p56_p4 = por %p55_p2, %p54_p1  ;;  %p61_p5 = scmp.eq.s32.totalorder %s17412_s16, 0 }
   0xb   : > { %p20102_p6 = scmp.lt.s32.totalorder %s23764_s15, 2  ;;  %s23831_s22 = sand.u32 1, %s23760_s14  }
   0xc   : > { %p23826_p7 = por %p61_p5, %p60_p3  ;;  %s20089_s23 = smul.u32 18432, %s23831_s22 }
   0xd   : > { %s19803_s24 = sshll.u32 %s23764_s15, 8  ;;  %p23835_p8 = pnand %p20102_p6, %p56_p4 }
   0xe   : > { %s26568_s21 = scalar_select %p23826_p7, 1, 0 }
   0xf   : > { %s23842_s28 = scalar_lea.hbm %s26564_s1, %s19803_s24  ;;  %s143_s29 = scalar_lea.vmem [#allocation2], %s20089_s23 }
  0x10   : > { %s150_s30 = sshll.u32 %s143_s29, 4  ;;  %s140_s4 = scalar_lea.sflag [#allocation3], %s23831_s22  ;;  %s23844_s30 = int_to_ptr.vmem [resolvable:$true] %s150_s30 }
  0x11   : > { %s23666_s5 = scalar_lea.hbm %s23842_s28, 294912  ;;  %p23668_p10 = pneg %p23835_p8 }
  0x12   : > { %p23667_p9 = scmp.ne.s32.totalorder %s23842_s28, %s23666_s5  ;;  %s23671_s8 = scalar_lea.hbm %s26564_s1, 589824 }
  0x13   : > { %p23672_p13 = scmp.lt.u32.totalorder %s23842_s28, %s26564_s1  ;;  %p23673_p0 = scmp.lt.u32.totalorder %s23671_s8, %s23666_s5 }
  0x14   : > { %p23669_p11 = pnand %p23668_p10, %p23667_p9  ;;  %p23675_p2 = scmp.lt.u32.totalorder %s23666_s5, %s23842_s28 }
  0x15   : > { %p23674_p1 = por %p23673_p0, %p23672_p13 }
  0x16   : > { %p23670_p12 = pneg %p23669_p11 }
  0x17   : > { %p23676_p3 = por %p23675_p2, %p23674_p1 }
  0x19   : > { %p23677_p4 = pnand %p23676_p3, %p23670_p12 }
  0x1b   : > { %23680 = shalt.err (!%p23677_p4)
}
  0x1c   : > { %s23681_s11 = scalar_lea.vmem %s23844_s30, 294912  ;;  %s23766_s12 = smov [#allocation2]  }
  0x1d   : > { %p23682_p5 = scmp.ne.s32.totalorder %s23844_s30, %s23681_s11  ;;  %s23686_s18 = sshll.u32 %s23766_s12, 4  ;;  %s23687_s18 = int_to_ptr.vmem [resolvable:$false] %s23686_s18 }
  0x1e   : > { %s23688_s19 = scalar_lea.vmem %s23687_s18, 589824  ;;  %p23689_p11 = scmp.lt.s32.totalorder %s23844_s30, %s23687_s18 }
  0x1f   : > { %p23684_p6 = pnand %p23682_p5, %p23668_p10  ;;  %p23690_p13 = scmp.lt.s32.totalorder %s23688_s19, %s23681_s11 }
  0x21   : > { %p23685_p9 = pneg %p23684_p6  ;;  %p23691_p0 = por %p23690_p13, %p23689_p11 }
  0x23   : > { %p23692_p1 = pnand %p23691_p0, %p23685_p9 }
  0x25   : > { %23695 = shalt.err (!%p23692_p1)
}
  0x26   : > { %s23767_s23 = smov 512   ;;  %s23768_s24 = smov 256  }
  0x27   : > { %s23769_s26 = smov 16   ;;  %p17421_p12 = scmp.ge.s32.totalorder %s23764_s15, 1 }
  0x28   : > { %20098 = dma.hbm_to_vmem [thread:$0]  (!%p23835_p8), %s23842_s28, 294912, %s23844_s30, %s140_s4, %s23767_s23, %s23768_s24, %s23769_s26  }
  0x29   : > { %p177_p2 = scmp.lt.s32.totalorder %s23764_s15, 3  ;;  %s17418_s27 = sshll.u32 %s23831_s22, 2 }
  0x2a   : > { %s19804_s5 = sshll.u32 %s23764_s15, 6  ;;  %s164_s6 = scalar_lea.vmem [#allocation4], %s17418_s27 }
  0x2b   : > { %p23877_p3 = pnand %p17421_p12, %p177_p2  ;;  %s172_s7 = sshll.u32 %s164_s6, 4  ;;  %s173_s7 = int_to_ptr.vmem [resolvable:$true] %s172_s7 }
  0x2c   : > { %s23885_s10 = scalar_lea.hbm %s26565_s2, %s19804_s5  ;;  %s161_s28 = scalar_lea.sflag [#allocation5], %s23831_s22 }
  0x2d   : > { %s26570_s29 = scalar_select %p23877_p3, 1, 0 }
  0x2e   : > { %s23696_s30 = scalar_lea.hbm %s23885_s10, 64  ;;  %s23701_s12 = scalar_lea.hbm %s26565_s2, 128 }
  0x2f   : > { %p23697_p4 = scmp.ne.s32.totalorder %s23885_s10, %s23696_s30  ;;  %p23702_p9 = scmp.lt.u32.totalorder %s23885_s10, %s26565_s2 }
  0x30   : > { %p23703_p11 = scmp.lt.u32.totalorder %s23701_s12, %s23696_s30  ;;  %p23705_p0 = scmp.lt.u32.totalorder %s23696_s30, %s23885_s10 }
  0x31   : > { %p23699_p5 = pnand %p23697_p4, %p23668_p10 }
  0x32   : > { %p23704_p13 = por %p23703_p11, %p23702_p9 }
  0x33   : > { %p23700_p6 = pneg %p23699_p5 }
  0x34   : > { %p23706_p1 = por %p23705_p0, %p23704_p13 }
  0x36   : > { %p23707_p12 = pnand %p23706_p1, %p23700_p6 }
  0x38   : > { %23710 = shalt.err (!%p23707_p12)
}
  0x39   : > { %s23711_s22 = scalar_lea.vmem %s173_s7, 64  ;;  %s23770_s23 = smov [#allocation4]  }
  0x3a   : > { %p23712_p2 = scmp.ne.s32.totalorder %s173_s7, %s23711_s22  ;;  %s23716_s24 = sshll.u32 %s23770_s23, 4  ;;  %s23717_s24 = int_to_ptr.vmem [resolvable:$false] %s23716_s24 }
  0x3b   : > { %s23718_s26 = scalar_lea.vmem %s23717_s24, 128  ;;  %p23719_p7 = scmp.lt.s32.totalorder %s173_s7, %s23717_s24 }
  0x3c   : > { %p23714_p4 = pnand %p23712_p2, %p23668_p10  ;;  %p23720_p3 = scmp.lt.s32.totalorder %s23718_s26, %s23711_s22 }
  0x3e   : > { %p23715_p5 = pneg %p23714_p4  ;;  %p23721_p9 = por %p23720_p3, %p23719_p7 }
  0x40   : > { %p23722_p11 = pnand %p23721_p9, %p23715_p5 }
  0x42   : > { %23725 = shalt.err (!%p23722_p11)
}
  0x43   : > { %20101 = dma.hbm_to_vmem [thread:$0]  (!%p23835_p8), %s23885_s10, 64, %s173_s7, %s161_s28  }
  0x44   : > { %p26571_p6 = scmp.ne.s32.totalorder %s26570_s29, 0 }
  0x45   : > { %s183_s27 = sand.u32 (!%p26571_p6), 1, %s23756_s13   ;;  %p26572_p10 = scmp.ne.s32.totalorder (!%p26571_p6), %s26568_s21, 0 }
  0x46   : > { %181 = sbr.rel (%p26571_p6) target bundleno = 2602 (0xa2a), region = 32  ;;  %s184_s6 = scalar_lea.sflag (!%p26571_p6), [#allocation3], %s183_s27 }
  0x47   : > { %s20090_s5 = smul.u32 (!%p26571_p6), 18432, %s183_s27 }
  0x49   : > { %s23910_s8 = scalar_lea.vmem (!%p26571_p6), [#allocation2], %s20090_s5 }
  0x4d   : > { %23743 = dma.done.wait (%p26572_p10), %s184_s6, 294912  }
  0x4e   : > { %23745 = vsyncadd (%p26572_p10), %s184_s6, 4294672384  ;;  %s17422_s9 = sshll.u32 %s183_s27, 2  ;;  %s193_s25 = scalar_lea.sflag [#allocation5], %s183_s27 }
  0x4f   : > { %s23916_s30 = scalar_lea.vmem [#allocation4], %s17422_s9 }
  0x50   : > { %23747 = dma.done.wait (%p26572_p10), %s193_s25, 64  }
  0x51   : > { %23749 = vsyncadd (%p26572_p10), %s193_s25, 4294967232  ;;  %v20138_v0 = vld [vmem:[%s23910_s8 + $0x4] ss:$16 sps:$4 sm:$0xff]   ;;  %v20140_v1 = vld [vmem:[%s23910_s8 + $0xc] ss:$16 sps:$4 sm:$0xff]   ;;  %s17423_s5 = sshll.u32 %s17412_s16, 2 }
  0x52   : > { %14366 = vmatprep.subr.bf16.mxu0 %v20138_v0  ;;  %v20142_v2 = vld [vmem:[%s23910_s8] ss:$16 sps:$4 sm:$0xff]   ;;  %v20143_v3 = vld [vmem:[%s23910_s8 + $0x8] ss:$16 sps:$4 sm:$0xff]   ;;  %15842 = vmatprep.subr.bf16.mxu1 %v20140_v1  ;;  %v20144_v4 = vld [vmem:[%s23910_s8 + $0x24] ss:$16 sps:$4 sm:$0xff]  }
  0x53   : > { %14367 = vmatpush1.bf16.msra.mxu0 %v20142_v2  ;;  %15843 = vmatpush1.bf16.msra.mxu1 %v20143_v3  ;;  %v20146_v5 = vld [vmem:[%s23910_s8 + $0x2c] ss:$16 sps:$4 sm:$0xff]   ;;  %v20148_v6 = vld [vmem:[%s23910_s8 + $0x20] ss:$16 sps:$4 sm:$0xff]   ;;  %v20149_v7 = vld [vmem:[%s23910_s8 + $0x28] ss:$16 sps:$4 sm:$0xff]  }
  0x54   : > { %14368 = vmatprep.subr.bf16.mxu0 %v20144_v4  ;;  %15844 = vmatprep.subr.bf16.mxu1 %v20146_v5  ;;  %v20150_v8 = vld [vmem:[%s23910_s8 + $0x44] ss:$16 sps:$4 sm:$0xff]   ;;  %v20152_v9 = vld [vmem:[%s23910_s8 + $0x4c] ss:$16 sps:$4 sm:$0xff]   ;;  %v20154_v10 = vld [vmem:[%s23910_s8 + $0x40] ss:$16 sps:$4 sm:$0xff]  }
  0x55   : > { %v20155_v11 = vld [vmem:[%s23910_s8 + $0x48] ss:$16 sps:$4 sm:$0xff]   ;;  %v20156_v12 = vld [vmem:[%s23910_s8 + $0x64] ss:$16 sps:$4 sm:$0xff]   ;;  %v20158_v13 = vld [vmem:[%s23910_s8 + $0x6c] ss:$16 sps:$4 sm:$0xff]  }
  0x56   : > { %v20160_v14 = vld [vmem:[%s23910_s8 + $0x60] ss:$16 sps:$4 sm:$0xff]   ;;  %v20161_v15 = vld [vmem:[%s23910_s8 + $0x68] ss:$16 sps:$4 sm:$0xff]   ;;  %v20162_v16 = vld [vmem:[%s23910_s8 + $0x84] ss:$16 sps:$4 sm:$0xff]  }
  0x57   : > { %14369 = vmatpush1.bf16.msra.mxu0 %v20148_v6  ;;  %15845 = vmatpush1.bf16.msra.mxu1 %v20149_v7  ;;  %v20164_v17 = vld [vmem:[%s23910_s8 + $0x8c] ss:$16 sps:$4 sm:$0xff]   ;;  %v20166_v18 = vld [vmem:[%s23910_s8 + $0x80] ss:$16 sps:$4 sm:$0xff]   ;;  %v20167_v19 = vld [vmem:[%s23910_s8 + $0x88] ss:$16 sps:$4 sm:$0xff]  }
  0x58   : > { %14370 = vmatprep.subr.bf16.mxu0 %v20150_v8  ;;  %15846 = vmatprep.subr.bf16.mxu1 %v20152_v9  ;;  %v20168_v20 = vld [vmem:[%s23910_s8 + $0xa4] ss:$16 sps:$4 sm:$0xff]   ;;  %v20170_v21 = vld [vmem:[%s23910_s8 + $0xac] ss:$16 sps:$4 sm:$0xff]   ;;  %v20172_v22 = vld [vmem:[%s23910_s8 + $0xa0] ss:$16 sps:$4 sm:$0xff]  }
  0x59   : > { %v20173_v23 = vld [vmem:[%s23910_s8 + $0xa8] ss:$16 sps:$4 sm:$0xff]   ;;  %v20174_v24 = vld [vmem:[%s23910_s8 + $0xc4] ss:$16 sps:$4 sm:$0xff]   ;;  %v20176_v25 = vld [vmem:[%s23910_s8 + $0xcc] ss:$16 sps:$4 sm:$0xff]  }
  0x5a   : > { %v20178_v26 = vld [vmem:[%s23910_s8 + $0xc0] ss:$16 sps:$4 sm:$0xff]   ;;  %v20179_v27 = vld [vmem:[%s23910_s8 + $0xc8] ss:$16 sps:$4 sm:$0xff]   ;;  %v20180_v28 = vld [vmem:[%s23910_s8 + $0xe4] ss:$16 sps:$4 sm:$0xff]  }
  0x5b   : > { %14371 = vmatpush1.bf16.msra.mxu0 %v20154_v10  ;;  %15847 = vmatpush1.bf16.msra.mxu1 %v20155_v11  ;;  %v20182_v29 = vld [vmem:[%s23910_s8 + $0xec] ss:$16 sps:$4 sm:$0xff]   ;;  %v20184_v30 = vld [vmem:[%s23910_s8 + $0xe0] ss:$16 sps:$4 sm:$0xff]   ;;  %v20185_v31 = vld [vmem:[%s23910_s8 + $0xe8] ss:$16 sps:$4 sm:$0xff]  }
  0x5c   : > { %14372 = vmatprep.subr.bf16.mxu0 %v20156_v12  ;;  %15848 = vmatprep.subr.bf16.mxu1 %v20158_v13  ;;  %v20186_v32 = vld [vmem:[%s23910_s8 + $0x104] ss:$16 sps:$4 sm:$0xff]   ;;  %v20188_v33 = vld [vmem:[%s23910_s8 + $0x10c] ss:$16 sps:$4 sm:$0xff]   ;;  %v20190_v34 = vld [vmem:[%s23910_s8 + $0x100] ss:$16 sps:$4 sm:$0xff]  }
  0x5d   : > { %v20191_v35 = vld [vmem:[%s23910_s8 + $0x108] ss:$16 sps:$4 sm:$0xff]   ;;  %v20192_v36 = vld [vmem:[%s23910_s8 + $0x124] ss:$16 sps:$4 sm:$0xff]   ;;  %v20194_v37 = vld [vmem:[%s23910_s8 + $0x12c] ss:$16 sps:$4 sm:$0xff]  }
  0x5e   : > { %v20196_v38 = vld [vmem:[%s23910_s8 + $0x120] ss:$16 sps:$4 sm:$0xff]   ;;  %v20197_v39 = vld [vmem:[%s23910_s8 + $0x128] ss:$16 sps:$4 sm:$0xff]   ;;  %v20198_v40 = vld [vmem:[%s23910_s8 + $0x144] ss:$16 sps:$4 sm:$0xff]  }
  0x5f   : > { %14373 = vmatpush1.bf16.msra.mxu0 %v20160_v14  ;;  %15849 = vmatpush1.bf16.msra.mxu1 %v20161_v15  ;;  %v20200_v41 = vld [vmem:[%s23910_s8 + $0x14c] ss:$16 sps:$4 sm:$0xff]   ;;  %v20202_v42 = vld [vmem:[%s23910_s8 + $0x140] ss:$16 sps:$4 sm:$0xff]   ;;  %v20203_v43 = vld [vmem:[%s23910_s8 + $0x148] ss:$16 sps:$4 sm:$0xff]  }
  0x60   : > { %14374 = vmatprep.subr.bf16.mxu0 %v20162_v16  ;;  %15850 = vmatprep.subr.bf16.mxu1 %v20164_v17  ;;  %v20204_v44 = vld [vmem:[%s23910_s8 + $0x164] ss:$16 sps:$4 sm:$0xff]   ;;  %v20206_v45 = vld [vmem:[%s23910_s8 + $0x16c] ss:$16 sps:$4 sm:$0xff]   ;;  %v20208_v47 = vld [vmem:[%s23910_s8 + $0x160] ss:$16 sps:$4 sm:$0xff]  }
  0x61   : > { %v232_v46 = vld [vmem:[%s26563_s0] sm:$0xff]  ;;  %v20209_v49 = vld [vmem:[%s23910_s8 + $0x168] ss:$16 sps:$4 sm:$0xff]   ;;  %v20212_v51 = vld [vmem:[%s23910_s8 + $0x18c] ss:$16 sps:$4 sm:$0xff]   ;;  %p227_p7 = scmp.lt.s32.totalorder %s17423_s5, 7 }
  0x62   : > { %v17426_v48 = vcombine.high %v232_v46, %v232_v46  ;;  %v20210_v50 = vld [vmem:[%s23910_s8 + $0x184] ss:$16 sps:$4 sm:$0xff]   ;;  %v20214_v52 = vld [vmem:[%s23910_s8 + $0x180] ss:$16 sps:$4 sm:$0xff]   ;;  %v20215_v53 = vld [vmem:[%s23910_s8 + $0x188] ss:$16 sps:$4 sm:$0xff]   ;;  %v17425_v4 = vcombine.low %v232_v46, %v232_v46 }
  0x63   : > { %14375 = vmatpush1.bf16.msra.mxu0 %v20166_v18  ;;  %15851 = vmatpush1.bf16.msra.mxu1 %v20167_v19  ;;  %v20216_v54 = vld [vmem:[%s23910_s8 + $0x1a4] ss:$16 sps:$4 sm:$0xff]   ;;  %v20218_v55 = vld [vmem:[%s23910_s8 + $0x1ac] ss:$16 sps:$4 sm:$0xff]   ;;  %v20220_v56 = vld [vmem:[%s23910_s8 + $0x1a0] ss:$16 sps:$4 sm:$0xff]  }
  0x64   : > { %14376 = vmatprep.subr.bf16.mxu0 %v20168_v20  ;;  %15852 = vmatprep.subr.bf16.mxu1 %v20170_v21  ;;  %v20221_v57 = vld [vmem:[%s23910_s8 + $0x1a8] ss:$16 sps:$4 sm:$0xff]   ;;  %v20222_v58 = vld [vmem:[%s23910_s8 + $0x1c4] ss:$16 sps:$4 sm:$0xff]   ;;  %v20224_v59 = vld [vmem:[%s23910_s8 + $0x1cc] ss:$16 sps:$4 sm:$0xff]  }
  0x65   : > { %14398 = vmatprep.mubr.bf16.mxu0 %v17426_v48  ;;  %15874 = vmatprep.mubr.bf16.mxu1 %v17426_v48  ;;  %v20226_v60 = vld [vmem:[%s23910_s8 + $0x1c0] ss:$16 sps:$4 sm:$0xff]   ;;  %v20227_v61 = vld [vmem:[%s23910_s8 + $0x1c8] ss:$16 sps:$4 sm:$0xff]   ;;  %v20228_v62 = vld [vmem:[%s23910_s8 + $0x1e4] ss:$16 sps:$4 sm:$0xff]  }
  0x66   : > { %v20230_v63 = vld [vmem:[%s23910_s8 + $0x1ec] ss:$16 sps:$4 sm:$0xff]   ;;  %v20232_v0 = vld [vmem:[%s23910_s8 + $0x1e0] ss:$16 sps:$4 sm:$0xff]   ;;  %v20233_v1 = vld [vmem:[%s23910_s8 + $0x1e8] ss:$16 sps:$4 sm:$0xff]  }
  0x67   : > { %14377 = vmatpush1.bf16.msra.mxu0 %v20172_v22  ;;  %15853 = vmatpush1.bf16.msra.mxu1 %v20173_v23  ;;  %v20238_v2 = vld [vmem:[%s23910_s8 + $0x204] ss:$16 sps:$4 sm:$0xff]   ;;  %v20241_v3 = vld [vmem:[%s23910_s8 + $0x20c] ss:$16 sps:$4 sm:$0xff]   ;;  %v20236_v5 = vld [vmem:[%s23910_s8 + $0x200] ss:$16 sps:$4 sm:$0xff]  }
  0x68   : > { %14378 = vmatprep.subr.bf16.mxu0 %v20174_v24  ;;  %15854 = vmatprep.subr.bf16.mxu1 %v20176_v25  ;;  %v20239_v6 = vld [vmem:[%s23910_s8 + $0x208] ss:$16 sps:$4 sm:$0xff]   ;;  %v20244_v7 = vld [vmem:[%s23910_s8 + $0x224] ss:$16 sps:$4 sm:$0xff]   ;;  %v20247_v8 = vld [vmem:[%s23910_s8 + $0x22c] ss:$16 sps:$4 sm:$0xff]  }
  0x69   : > { %v20242_v9 = vld [vmem:[%s23910_s8 + $0x220] ss:$16 sps:$4 sm:$0xff]   ;;  %v20245_v10 = vld [vmem:[%s23910_s8 + $0x228] ss:$16 sps:$4 sm:$0xff]   ;;  %v20250_v11 = vld [vmem:[%s23910_s8 + $0x244] ss:$16 sps:$4 sm:$0xff]  }
  0x6a   : > { %v20253_v12 = vld [vmem:[%s23910_s8 + $0x24c] ss:$16 sps:$4 sm:$0xff]   ;;  %v20248_v13 = vld [vmem:[%s23910_s8 + $0x240] ss:$16 sps:$4 sm:$0xff]   ;;  %v20251_v14 = vld [vmem:[%s23910_s8 + $0x248] ss:$16 sps:$4 sm:$0xff]  }
  0x6b   : > { %14379 = vmatpush1.bf16.msra.mxu0 %v20178_v26  ;;  %15855 = vmatpush1.bf16.msra.mxu1 %v20179_v27  ;;  %v20256_v15 = vld [vmem:[%s23910_s8 + $0x264] ss:$16 sps:$4 sm:$0xff]   ;;  %v20259_v16 = vld [vmem:[%s23910_s8 + $0x26c] ss:$16 sps:$4 sm:$0xff]   ;;  %v20254_v17 = vld [vmem:[%s23910_s8 + $0x260] ss:$16 sps:$4 sm:$0xff]  }
  0x6c   : > { %14380 = vmatprep.subr.bf16.mxu0 %v20180_v28  ;;  %15856 = vmatprep.subr.bf16.mxu1 %v20182_v29  ;;  %v20257_v18 = vld [vmem:[%s23910_s8 + $0x268] ss:$16 sps:$4 sm:$0xff]   ;;  %v20262_v19 = vld [vmem:[%s23910_s8 + $0x284] ss:$16 sps:$4 sm:$0xff]   ;;  %v20265_v20 = vld [vmem:[%s23910_s8 + $0x28c] ss:$16 sps:$4 sm:$0xff]  }
  0x6d   : > { %v20260_v21 = vld [vmem:[%s23910_s8 + $0x280] ss:$16 sps:$4 sm:$0xff]   ;;  %v20263_v22 = vld [vmem:[%s23910_s8 + $0x288] ss:$16 sps:$4 sm:$0xff]   ;;  %v20268_v23 = vld [vmem:[%s23910_s8 + $0x2a4] ss:$16 sps:$4 sm:$0xff]  }
  0x6e   : > { %v20271_v24 = vld [vmem:[%s23910_s8 + $0x2ac] ss:$16 sps:$4 sm:$0xff]   ;;  %v20266_v25 = vld [vmem:[%s23910_s8 + $0x2a0] ss:$16 sps:$4 sm:$0xff]   ;;  %v20269_v26 = vld [vmem:[%s23910_s8 + $0x2a8] ss:$16 sps:$4 sm:$0xff]  }
  0x6f   : > { %14381 = vmatpush1.bf16.msra.mxu0 %v20184_v30  ;;  %15857 = vmatpush1.bf16.msra.mxu1 %v20185_v31  ;;  %v20274_v27 = vld [vmem:[%s23910_s8 + $0x2c4] ss:$16 sps:$4 sm:$0xff]   ;;  %v20277_v28 = vld [vmem:[%s23910_s8 + $0x2cc] ss:$16 sps:$4 sm:$0xff]   ;;  %v20272_v31 = vld [vmem:[%s23910_s8 + $0x2c0] ss:$16 sps:$4 sm:$0xff]  }
  0x70   : > { %14382 = vmatprep.subr.bf16.mxu0 %v20186_v32  ;;  %15858 = vmatprep.subr.bf16.mxu1 %v20188_v33  ;;  %v24018_v29 = vld [vmem:[%s26563_s0 + $0x8] sm:$0xff]  ;;  %v20280_v33 = vld [vmem:[%s23910_s8 + $0x2e4] ss:$16 sps:$4 sm:$0xff]   ;;  %s26578_s5 = smov (!%p227_p7, %s17423_s5), 7 }
  0x71   : > { %v17428_v30 = vcombine.high %v24018_v29, %v24018_v29  ;;  %v20275_v32 = vld [vmem:[%s23910_s8 + $0x2c8] ss:$16 sps:$4 sm:$0xff]   ;;  %v20301_v46 = vld [vmem:[%s23910_s8 + $0x34c] ss:$16 sps:$4 sm:$0xff]  }
  0x72   : > { %v20299_v48 = vld [vmem:[%s23910_s8 + $0x348] ss:$16 sps:$4 sm:$0xff]  }
  0x73   : > { %14383 = vmatpush1.bf16.msra.mxu0 %v20190_v34  ;;  %15859 = vmatpush1.bf16.msra.mxu1 %v20191_v35  ;;  %v20283_v34 = vld [vmem:[%s23910_s8 + $0x2ec] ss:$16 sps:$4 sm:$0xff]   ;;  %v20278_v35 = vld [vmem:[%s23910_s8 + $0x2e0] ss:$16 sps:$4 sm:$0xff]  }
  0x74   : > { %14384 = vmatprep.subr.bf16.mxu0 %v20192_v36  ;;  %15860 = vmatprep.subr.bf16.mxu1 %v20194_v37  ;;  %v20281_v36 = vld [vmem:[%s23910_s8 + $0x2e8] ss:$16 sps:$4 sm:$0xff]   ;;  %v20286_v37 = vld [vmem:[%s23910_s8 + $0x304] ss:$16 sps:$4 sm:$0xff]  }
  0x77   : > { %14385 = vmatpush1.bf16.msra.mxu0 %v20196_v38  ;;  %15861 = vmatpush1.bf16.msra.mxu1 %v20197_v39  ;;  %v20289_v38 = vld [vmem:[%s23910_s8 + $0x30c] ss:$16 sps:$4 sm:$0xff]   ;;  %v20284_v39 = vld [vmem:[%s23910_s8 + $0x300] ss:$16 sps:$4 sm:$0xff]  }
  0x78   : > { %14386 = vmatprep.subr.bf16.mxu0 %v20198_v40  ;;  %15862 = vmatprep.subr.bf16.mxu1 %v20200_v41  ;;  %v20287_v40 = vld [vmem:[%s23910_s8 + $0x308] ss:$16 sps:$4 sm:$0xff]   ;;  %v20292_v41 = vld [vmem:[%s23910_s8 + $0x324] ss:$16 sps:$4 sm:$0xff]  }
  0x7b   : > { %14387 = vmatpush1.bf16.msra.mxu0 %v20202_v42  ;;  %15863 = vmatpush1.bf16.msra.mxu1 %v20203_v43  ;;  %v20295_v42 = vld [vmem:[%s23910_s8 + $0x32c] ss:$16 sps:$4 sm:$0xff]   ;;  %v20290_v43 = vld [vmem:[%s23910_s8 + $0x320] ss:$16 sps:$4 sm:$0xff]  }
  0x7c   : > { %14388 = vmatprep.subr.bf16.mxu0 %v20204_v44  ;;  %15864 = vmatprep.subr.bf16.mxu1 %v20206_v45  ;;  %v20293_v44 = vld [vmem:[%s23910_s8 + $0x328] ss:$16 sps:$4 sm:$0xff]   ;;  %v20298_v45 = vld [vmem:[%s23910_s8 + $0x344] ss:$16 sps:$4 sm:$0xff]  }
  0x7f   : > { %14389 = vmatpush1.bf16.msra.mxu0 %v20208_v47  ;;  %15865 = vmatpush1.bf16.msra.mxu1 %v20209_v49  ;;  %v20296_v47 = vld [vmem:[%s23910_s8 + $0x340] ss:$16 sps:$4 sm:$0xff]   ;;  %v20304_v49 = vld [vmem:[%s23910_s8 + $0x364] ss:$16 sps:$4 sm:$0xff]  }
  0x80   : > { %14390 = vmatprep.subr.bf16.mxu0 %v20210_v50  ;;  %15866 = vmatprep.subr.bf16.mxu1 %v20212_v51  ;;  %v20307_v50 = vld [vmem:[%s23910_s8 + $0x36c] ss:$16 sps:$4 sm:$0xff]   ;;  %v20302_v51 = vld [vmem:[%s23910_s8 + $0x360] ss:$16 sps:$4 sm:$0xff]  }
  0x83   : > { %14391 = vmatpush1.bf16.msra.mxu0 %v20214_v52  ;;  %15867 = vmatpush1.bf16.msra.mxu1 %v20215_v53  ;;  %v20305_v52 = vld [vmem:[%s23910_s8 + $0x368] ss:$16 sps:$4 sm:$0xff]   ;;  %v20310_v53 = vld [vmem:[%s23910_s8 + $0x384] ss:$16 sps:$4 sm:$0xff]  }
  0x84   : > { %14392 = vmatprep.subr.bf16.mxu0 %v20216_v54  ;;  %15868 = vmatprep.subr.bf16.mxu1 %v20218_v55  ;;  %v20313_v54 = vld [vmem:[%s23910_s8 + $0x38c] ss:$16 sps:$4 sm:$0xff]   ;;  %v20308_v55 = vld [vmem:[%s23910_s8 + $0x380] ss:$16 sps:$4 sm:$0xff]  }
  0x87   : > { %14393 = vmatpush1.bf16.msra.mxu0 %v20220_v56  ;;  %15869 = vmatpush1.bf16.msra.mxu1 %v20221_v57  ;;  %v20311_v56 = vld [vmem:[%s23910_s8 + $0x388] ss:$16 sps:$4 sm:$0xff]   ;;  %v20316_v57 = vld [vmem:[%s23910_s8 + $0x3a4] ss:$16 sps:$4 sm:$0xff]  }
  0x88   : > { %14394 = vmatprep.subr.bf16.mxu0 %v20222_v58  ;;  %15870 = vmatprep.subr.bf16.mxu1 %v20224_v59  ;;  %v20319_v58 = vld [vmem:[%s23910_s8 + $0x3ac] ss:$16 sps:$4 sm:$0xff]   ;;  %v20314_v59 = vld [vmem:[%s23910_s8 + $0x3a0] ss:$16 sps:$4 sm:$0xff]  }
  0x8b   : > { %14395 = vmatpush1.bf16.msra.mxu0 %v20226_v60  ;;  %15871 = vmatpush1.bf16.msra.mxu1 %v20227_v61  ;;  %v20317_v60 = vld [vmem:[%s23910_s8 + $0x3a8] ss:$16 sps:$4 sm:$0xff]   ;;  %v20322_v61 = vld [vmem:[%s23910_s8 + $0x3c4] ss:$16 sps:$4 sm:$0xff]  }
  0x8c   : > { %14396 = vmatprep.subr.bf16.mxu0 %v20228_v62  ;;  %15872 = vmatprep.subr.bf16.mxu1 %v20230_v63  ;;  %v20325_v62 = vld [vmem:[%s23910_s8 + $0x3cc] ss:$16 sps:$4 sm:$0xff]   ;;  %v20320_v63 = vld [vmem:[%s23910_s8 + $0x3c0] ss:$16 sps:$4 sm:$0xff]  }
  0x8f   : > { %14397 = vmatpush1.bf16.msra.mxu0 %v20232_v0  ;;  %15873 = vmatpush1.bf16.msra.mxu1 %v20233_v1  ;;  %v20323_v0 = vld [vmem:[%s23910_s8 + $0x3c8] ss:$16 sps:$4 sm:$0xff]   ;;  %v20328_v1 = vld [vmem:[%s23910_s8 + $0x3e4] ss:$16 sps:$4 sm:$0xff]  }
  0x90   : > { %14407 = vmatprep.subr.bf16.mxu0 %v20238_v2  ;;  %15883 = vmatprep.subr.bf16.mxu1 %v20241_v3  ;;  %v20331_v2 = vld [vmem:[%s23910_s8 + $0x3ec] ss:$16 sps:$4 sm:$0xff]   ;;  %v20326_v3 = vld [vmem:[%s23910_s8 + $0x3e0] ss:$16 sps:$4 sm:$0xff]  }
  0x92   : > { %14399 = vmatmul.mubr.bf16.vlgmr.msra.gmra.mrb[0].mxu0 %v17425_v4  ;;  %15875 = vmatmul.mubr.bf16.vlgmr.msra.gmra.mrb[0].mxu1 %v17425_v4  ;;  %v20329_v4 = vld [vmem:[%s23910_s8 + $0x3e8] ss:$16 sps:$4 sm:$0xff]  }
  0x93   : > { %14408 = vmatpush1.bf16.msra.mxu0 %v20236_v5  ;;  %15884 = vmatpush1.bf16.msra.mxu1 %v20239_v6  ;;  %v20336_v5 = vld [vmem:[%s23910_s8 + $0x404] ss:$16 sps:$4 sm:$0xff]   ;;  %v20339_v6 = vld [vmem:[%s23910_s8 + $0x40c] ss:$16 sps:$4 sm:$0xff]  }
  0x94   : > { %14409 = vmatprep.subr.bf16.mxu0 %v20244_v7  ;;  %15885 = vmatprep.subr.bf16.mxu1 %v20247_v8  ;;  %v17427_v7 = vcombine.low %v24018_v29, %v24018_v29  ;;  %v20334_v8 = vld [vmem:[%s23910_s8 + $0x400] ss:$16 sps:$4 sm:$0xff]   ;;  %v20369_v29 = vld [vmem:[%s23910_s8 + $0x4ac] ss:$16 sps:$4 sm:$0xff]  }
  0x95   : > { %14439 = vmatprep.mubr.bf16.mxu0 %v17428_v30  ;;  %15915 = vmatprep.mubr.bf16.mxu1 %v17428_v30  ;;  %v20364_v30 = vld [vmem:[%s23910_s8 + $0x4a0] ss:$16 sps:$4 sm:$0xff]  }
  0x97   : > { %14410 = vmatpush1.bf16.msra.mxu0 %v20242_v9  ;;  %15886 = vmatpush1.bf16.msra.mxu1 %v20245_v10  ;;  %v20337_v9 = vld [vmem:[%s23910_s8 + $0x408] ss:$16 sps:$4 sm:$0xff]   ;;  %v20342_v10 = vld [vmem:[%s23910_s8 + $0x424] ss:$16 sps:$4 sm:$0xff]  }
  0x98   : > { %14411 = vmatprep.subr.bf16.mxu0 %v20250_v11  ;;  %15887 = vmatprep.subr.bf16.mxu1 %v20253_v12  ;;  %v24070_v11 = vld [vmem:[%s26563_s0 + $0x10] sm:$0xff]  ;;  %v20345_v12 = vld [vmem:[%s23910_s8 + $0x42c] ss:$16 sps:$4 sm:$0xff]  }
  0x9b   : > { %14412 = vmatpush1.bf16.msra.mxu0 %v20248_v13  ;;  %15888 = vmatpush1.bf16.msra.mxu1 %v20251_v14  ;;  %v17430_v13 = vcombine.high %v24070_v11, %v24070_v11  ;;  %v20340_v14 = vld [vmem:[%s23910_s8 + $0x420] ss:$16 sps:$4 sm:$0xff]  }
  0x9c   : > { %14413 = vmatprep.subr.bf16.mxu0 %v20256_v15  ;;  %15889 = vmatprep.subr.bf16.mxu1 %v20259_v16  ;;  %v20343_v15 = vld [vmem:[%s23910_s8 + $0x428] ss:$16 sps:$4 sm:$0xff]   ;;  %v20348_v16 = vld [vmem:[%s23910_s8 + $0x444] ss:$16 sps:$4 sm:$0xff]  }
  0x9f   : > { %14414 = vmatpush1.bf16.msra.mxu0 %v20254_v17  ;;  %15890 = vmatpush1.bf16.msra.mxu1 %v20257_v18  ;;  %v20351_v17 = vld [vmem:[%s23910_s8 + $0x44c] ss:$16 sps:$4 sm:$0xff]   ;;  %v20346_v18 = vld [vmem:[%s23910_s8 + $0x440] ss:$16 sps:$4 sm:$0xff]  }
  0xa0   : > { %14415 = vmatprep.subr.bf16.mxu0 %v20262_v19  ;;  %15891 = vmatprep.subr.bf16.mxu1 %v20265_v20  ;;  %v20349_v19 = vld [vmem:[%s23910_s8 + $0x448] ss:$16 sps:$4 sm:$0xff]   ;;  %v20354_v20 = vld [vmem:[%s23910_s8 + $0x464] ss:$16 sps:$4 sm:$0xff]  }
  0xa3   : > { %14416 = vmatpush1.bf16.msra.mxu0 %v20260_v21  ;;  %15892 = vmatpush1.bf16.msra.mxu1 %v20263_v22  ;;  %v20357_v21 = vld [vmem:[%s23910_s8 + $0x46c] ss:$16 sps:$4 sm:$0xff]   ;;  %v20352_v22 = vld [vmem:[%s23910_s8 + $0x460] ss:$16 sps:$4 sm:$0xff]  }
  0xa4   : > { %14417 = vmatprep.subr.bf16.mxu0 %v20268_v23  ;;  %15893 = vmatprep.subr.bf16.mxu1 %v20271_v24  ;;  %v20355_v23 = vld [vmem:[%s23910_s8 + $0x468] ss:$16 sps:$4 sm:$0xff]   ;;  %v20360_v24 = vld [vmem:[%s23910_s8 + $0x484] ss:$16 sps:$4 sm:$0xff]  }
  0xa7   : > { %14418 = vmatpush1.bf16.msra.mxu0 %v20266_v25  ;;  %15894 = vmatpush1.bf16.msra.mxu1 %v20269_v26  ;;  %v20363_v25 = vld [vmem:[%s23910_s8 + $0x48c] ss:$16 sps:$4 sm:$0xff]   ;;  %v20358_v26 = vld [vmem:[%s23910_s8 + $0x480] ss:$16 sps:$4 sm:$0xff]  }
  0xa8   : > { %14419 = vmatprep.subr.bf16.mxu0 %v20274_v27  ;;  %15895 = vmatprep.subr.bf16.mxu1 %v20277_v28  ;;  %v20361_v27 = vld [vmem:[%s23910_s8 + $0x488] ss:$16 sps:$4 sm:$0xff]   ;;  %v20366_v28 = vld [vmem:[%s23910_s8 + $0x4a4] ss:$16 sps:$4 sm:$0xff]  }
  0xab   : > { %14420 = vmatpush1.bf16.msra.mxu0 %v20272_v31  ;;  %15896 = vmatpush1.bf16.msra.mxu1 %v20275_v32  ;;  %v20367_v31 = vld [vmem:[%s23910_s8 + $0x4a8] ss:$16 sps:$4 sm:$0xff]   ;;  %v20372_v32 = vld [vmem:[%s23910_s8 + $0x4c4] ss:$16 sps:$4 sm:$0xff]  }
  0xac   : > { %14421 = vmatprep.subr.bf16.mxu0 %v20280_v33  ;;  %15897 = vmatprep.subr.bf16.mxu1 %v20283_v34  ;;  %v20375_v33 = vld [vmem:[%s23910_s8 + $0x4cc] ss:$16 sps:$4 sm:$0xff]   ;;  %v20370_v34 = vld [vmem:[%s23910_s8 + $0x4c0] ss:$16 sps:$4 sm:$0xff]  }
  0xaf   : > { %14422 = vmatpush1.bf16.msra.mxu0 %v20278_v35  ;;  %15898 = vmatpush1.bf16.msra.mxu1 %v20281_v36  ;;  %v20373_v35 = vld [vmem:[%s23910_s8 + $0x4c8] ss:$16 sps:$4 sm:$0xff]   ;;  %v20378_v36 = vld [vmem:[%s23910_s8 + $0x4e4] ss:$16 sps:$4 sm:$0xff]  }
  0xb0   : > { %14423 = vmatprep.subr.bf16.mxu0 %v20286_v37  ;;  %15899 = vmatprep.subr.bf16.mxu1 %v20289_v38  ;;  %v20381_v37 = vld [vmem:[%s23910_s8 + $0x4ec] ss:$16 sps:$4 sm:$0xff]   ;;  %v20376_v38 = vld [vmem:[%s23910_s8 + $0x4e0] ss:$16 sps:$4 sm:$0xff]  }
  0xb3   : > { %14424 = vmatpush1.bf16.msra.mxu0 %v20284_v39  ;;  %15900 = vmatpush1.bf16.msra.mxu1 %v20287_v40  ;;  %v20379_v39 = vld [vmem:[%s23910_s8 + $0x4e8] ss:$16 sps:$4 sm:$0xff]   ;;  %v20384_v40 = vld [vmem:[%s23910_s8 + $0x504] ss:$16 sps:$4 sm:$0xff]  }
  0xb4   : > { %14425 = vmatprep.subr.bf16.mxu0 %v20292_v41  ;;  %15901 = vmatprep.subr.bf16.mxu1 %v20295_v42  ;;  %v20387_v41 = vld [vmem:[%s23910_s8 + $0x50c] ss:$16 sps:$4 sm:$0xff]   ;;  %v20382_v42 = vld [vmem:[%s23910_s8 + $0x500] ss:$16 sps:$4 sm:$0xff]  }
  0xb7   : > { %14426 = vmatpush1.bf16.msra.mxu0 %v20290_v43  ;;  %15902 = vmatpush1.bf16.msra.mxu1 %v20293_v44  ;;  %v20385_v43 = vld [vmem:[%s23910_s8 + $0x508] ss:$16 sps:$4 sm:$0xff]   ;;  %v20390_v44 = vld [vmem:[%s23910_s8 + $0x524] ss:$16 sps:$4 sm:$0xff]  }
  0xb8   : > { %14427 = vmatprep.subr.bf16.mxu0 %v20298_v45  ;;  %15903 = vmatprep.subr.bf16.mxu1 %v20301_v46  ;;  %v20393_v45 = vld [vmem:[%s23910_s8 + $0x52c] ss:$16 sps:$4 sm:$0xff]   ;;  %v20388_v46 = vld [vmem:[%s23910_s8 + $0x520] ss:$16 sps:$4 sm:$0xff]  }
  0xbb   : > { %14428 = vmatpush1.bf16.msra.mxu0 %v20296_v47  ;;  %15904 = vmatpush1.bf16.msra.mxu1 %v20299_v48  ;;  %v20391_v47 = vld [vmem:[%s23910_s8 + $0x528] ss:$16 sps:$4 sm:$0xff]   ;;  %v20396_v48 = vld [vmem:[%s23910_s8 + $0x544] ss:$16 sps:$4 sm:$0xff]  }
  0xbc   : > { %14429 = vmatprep.subr.bf16.mxu0 %v20304_v49  ;;  %15905 = vmatprep.subr.bf16.mxu1 %v20307_v50  ;;  %v20399_v49 = vld [vmem:[%s23910_s8 + $0x54c] ss:$16 sps:$4 sm:$0xff]   ;;  %v20394_v50 = vld [vmem:[%s23910_s8 + $0x540] ss:$16 sps:$4 sm:$0xff]  }
  0xbf   : > { %14430 = vmatpush1.bf16.msra.mxu0 %v20302_v51  ;;  %15906 = vmatpush1.bf16.msra.mxu1 %v20305_v52  ;;  %v20397_v51 = vld [vmem:[%s23910_s8 + $0x548] ss:$16 sps:$4 sm:$0xff]   ;;  %v20402_v52 = vld [vmem:[%s23910_s8 + $0x564] ss:$16 sps:$4 sm:$0xff]  }
  0xc0   : > { %14431 = vmatprep.subr.bf16.mxu0 %v20310_v53  ;;  %15907 = vmatprep.subr.bf16.mxu1 %v20313_v54  ;;  %v20405_v53 = vld [vmem:[%s23910_s8 + $0x56c] ss:$16 sps:$4 sm:$0xff]   ;;  %v20400_v54 = vld [vmem:[%s23910_s8 + $0x560] ss:$16 sps:$4 sm:$0xff]  }
  0xc3   : > { %14432 = vmatpush1.bf16.msra.mxu0 %v20308_v55  ;;  %15908 = vmatpush1.bf16.msra.mxu1 %v20311_v56  ;;  %v20403_v55 = vld [vmem:[%s23910_s8 + $0x568] ss:$16 sps:$4 sm:$0xff]   ;;  %v20408_v56 = vld [vmem:[%s23910_s8 + $0x584] ss:$16 sps:$4 sm:$0xff]  }
  0xc4   : > { %14433 = vmatprep.subr.bf16.mxu0 %v20316_v57  ;;  %15909 = vmatprep.subr.bf16.mxu1 %v20319_v58  ;;  %v20411_v57 = vld [vmem:[%s23910_s8 + $0x58c] ss:$16 sps:$4 sm:$0xff]   ;;  %v20406_v58 = vld [vmem:[%s23910_s8 + $0x580] ss:$16 sps:$4 sm:$0xff]  }
  0xc7   : > { %14434 = vmatpush1.bf16.msra.mxu0 %v20314_v59  ;;  %15910 = vmatpush1.bf16.msra.mxu1 %v20317_v60  ;;  %v20409_v59 = vld [vmem:[%s23910_s8 + $0x588] ss:$16 sps:$4 sm:$0xff]   ;;  %v20414_v60 = vld [vmem:[%s23910_s8 + $0x5a4] ss:$16 sps:$4 sm:$0xff]  }
  0xc8   : > { %14435 = vmatprep.subr.bf16.mxu0 %v20322_v61  ;;  %15911 = vmatprep.subr.bf16.mxu1 %v20325_v62  ;;  %v20417_v61 = vld [vmem:[%s23910_s8 + $0x5ac] ss:$16 sps:$4 sm:$0xff]   ;;  %v20412_v62 = vld [vmem:[%s23910_s8 + $0x5a0] ss:$16 sps:$4 sm:$0xff]  }
  0xcb   : > { %14436 = vmatpush1.bf16.msra.mxu0 %v20320_v63  ;;  %15912 = vmatpush1.bf16.msra.mxu1 %v20323_v0  ;;  %v20415_v63 = vld [vmem:[%s23910_s8 + $0x5a8] ss:$16 sps:$4 sm:$0xff]   ;;  %v20420_v0 = vld [vmem:[%s23910_s8 + $0x5c4] ss:$16 sps:$4 sm:$0xff]  }
  0xcc   : > { %14437 = vmatprep.subr.bf16.mxu0 %v20328_v1  ;;  %15913 = vmatprep.subr.bf16.mxu1 %v20331_v2  ;;  %v20423_v1 = vld [vmem:[%s23910_s8 + $0x5cc] ss:$16 sps:$4 sm:$0xff]   ;;  %v20418_v2 = vld [vmem:[%s23910_s8 + $0x5c0] ss:$16 sps:$4 sm:$0xff]  }
  0xcf   : > { %14438 = vmatpush1.bf16.msra.mxu0 %v20326_v3  ;;  %15914 = vmatpush1.bf16.msra.mxu1 %v20329_v4  ;;  %v20421_v3 = vld [vmem:[%s23910_s8 + $0x5c8] ss:$16 sps:$4 sm:$0xff]   ;;  %v20426_v4 = vld [vmem:[%s23910_s8 + $0x5e4] ss:$16 sps:$4 sm:$0xff]  }
  0xd0   : > { %14448 = vmatprep.subr.bf16.mxu0 %v20336_v5  ;;  %15924 = vmatprep.subr.bf16.mxu1 %v20339_v6  ;;  %v20429_v5 = vld [vmem:[%s23910_s8 + $0x5ec] ss:$16 sps:$4 sm:$0xff]   ;;  %v20424_v6 = vld [vmem:[%s23910_s8 + $0x5e0] ss:$16 sps:$4 sm:$0xff]  }
  0xd2   : > { %14440 = vmatmul.mubr.bf16.vlgmr.msra.gmra.mrb[0].mxu0 %v17427_v7  ;;  %15916 = vmatmul.mubr.bf16.vlgmr.msra.gmra.mrb[0].mxu1 %v17427_v7  ;;  %v20427_v7 = vld [vmem:[%s23910_s8 + $0x5e8] ss:$16 sps:$4 sm:$0xff]  }
  0xd3   : > { %14449 = vmatpush1.bf16.msra.mxu0 %v20334_v8  ;;  %15925 = vmatpush1.bf16.msra.mxu1 %v20337_v9  ;;  %v20434_v8 = vld [vmem:[%s23910_s8 + $0x604] ss:$16 sps:$4 sm:$0xff]   ;;  %v20437_v9 = vld [vmem:[%s23910_s8 + $0x60c] ss:$16 sps:$4 sm:$0xff]  }
  0xd4   : > { %14450 = vmatprep.subr.bf16.mxu0 %v20342_v10  ;;  %15926 = vmatprep.subr.bf16.mxu1 %v20345_v12  ;;  %v20432_v10 = vld [vmem:[%s23910_s8 + $0x600] ss:$16 sps:$4 sm:$0xff]   ;;  %v17429_v12 = vcombine.low %v24070_v11, %v24070_v11 }
  0xd5   : > { %14480 = vmatprep.mubr.bf16.mxu0 %v17430_v13  ;;  %15956 = vmatprep.mubr.bf16.mxu1 %v17430_v13  ;;  %v20435_v13 = vld [vmem:[%s23910_s8 + $0x608] ss:$16 sps:$4 sm:$0xff]   ;;  %v20438_v11 = vld [vmem:[%s23910_s8 + $0x620] ss:$16 sps:$4 sm:$0xff]  }
  0xd7   : > { %14451 = vmatpush1.bf16.msra.mxu0 %v20340_v14  ;;  %15927 = vmatpush1.bf16.msra.mxu1 %v20343_v15  ;;  %v24142_v14 = vld [vmem:[%s26563_s0 + $0x18] sm:$0xff]  ;;  %v20440_v15 = vld [vmem:[%s23910_s8 + $0x624] ss:$16 sps:$4 sm:$0xff]  }
  0xd8   : > { %14452 = vmatprep.subr.bf16.mxu0 %v20348_v16  ;;  %15928 = vmatprep.subr.bf16.mxu1 %v20351_v17  ;;  %v20443_v16 = vld [vmem:[%s23910_s8 + $0x62c] ss:$16 sps:$4 sm:$0xff]   ;;  %v17432_v17 = vcombine.high %v24142_v14, %v24142_v14 }
  0xdb   : > { %14453 = vmatpush1.bf16.msra.mxu0 %v20346_v18  ;;  %15929 = vmatpush1.bf16.msra.mxu1 %v20349_v19  ;;  %v20441_v18 = vld [vmem:[%s23910_s8 + $0x628] ss:$16 sps:$4 sm:$0xff]   ;;  %v20446_v19 = vld [vmem:[%s23910_s8 + $0x644] ss:$16 sps:$4 sm:$0xff]  }
  0xdc   : > { %14454 = vmatprep.subr.bf16.mxu0 %v20354_v20  ;;  %15930 = vmatprep.subr.bf16.mxu1 %v20357_v21  ;;  %v20449_v20 = vld [vmem:[%s23910_s8 + $0x64c] ss:$16 sps:$4 sm:$0xff]   ;;  %v20444_v21 = vld [vmem:[%s23910_s8 + $0x640] ss:$16 sps:$4 sm:$0xff]  }
  0xdf   : > { %14455 = vmatpush1.bf16.msra.mxu0 %v20352_v22  ;;  %15931 = vmatpush1.bf16.msra.mxu1 %v20355_v23  ;;  %v20447_v22 = vld [vmem:[%s23910_s8 + $0x648] ss:$16 sps:$4 sm:$0xff]   ;;  %v20452_v23 = vld [vmem:[%s23910_s8 + $0x664] ss:$16 sps:$4 sm:$0xff]  }
  0xe0   : > { %14456 = vmatprep.subr.bf16.mxu0 %v20360_v24  ;;  %15932 = vmatprep.subr.bf16.mxu1 %v20363_v25  ;;  %v20455_v24 = vld [vmem:[%s23910_s8 + $0x66c] ss:$16 sps:$4 sm:$0xff]   ;;  %v20450_v25 = vld [vmem:[%s23910_s8 + $0x660] ss:$16 sps:$4 sm:$0xff]  }
  0xe3   : > { %14457 = vmatpush1.bf16.msra.mxu0 %v20358_v26  ;;  %15933 = vmatpush1.bf16.msra.mxu1 %v20361_v27  ;;  %v20453_v26 = vld [vmem:[%s23910_s8 + $0x668] ss:$16 sps:$4 sm:$0xff]   ;;  %v20458_v27 = vld [vmem:[%s23910_s8 + $0x684] ss:$16 sps:$4 sm:$0xff]  }
  0xe4   : > { %14458 = vmatprep.subr.bf16.mxu0 %v20366_v28  ;;  %15934 = vmatprep.subr.bf16.mxu1 %v20369_v29  ;;  %v20461_v28 = vld [vmem:[%s23910_s8 + $0x68c] ss:$16 sps:$4 sm:$0xff]   ;;  %v20456_v29 = vld [vmem:[%s23910_s8 + $0x680] ss:$16 sps:$4 sm:$0xff]  }
  0xe7   : > { %14459 = vmatpush1.bf16.msra.mxu0 %v20364_v30  ;;  %15935 = vmatpush1.bf16.msra.mxu1 %v20367_v31  ;;  %v20459_v30 = vld [vmem:[%s23910_s8 + $0x688] ss:$16 sps:$4 sm:$0xff]   ;;  %v20464_v31 = vld [vmem:[%s23910_s8 + $0x6a4] ss:$16 sps:$4 sm:$0xff]  }
  0xe8   : > { %14460 = vmatprep.subr.bf16.mxu0 %v20372_v32  ;;  %15936 = vmatprep.subr.bf16.mxu1 %v20375_v33  ;;  %v20467_v32 = vld [vmem:[%s23910_s8 + $0x6ac] ss:$16 sps:$4 sm:$0xff]   ;;  %v20462_v33 = vld [vmem:[%s23910_s8 + $0x6a0] ss:$16 sps:$4 sm:$0xff]  }
  0xeb   : > { %14461 = vmatpush1.bf16.msra.mxu0 %v20370_v34  ;;  %15937 = vmatpush1.bf16.msra.mxu1 %v20373_v35  ;;  %v20465_v34 = vld [vmem:[%s23910_s8 + $0x6a8] ss:$16 sps:$4 sm:$0xff]   ;;  %v20470_v35 = vld [vmem:[%s23910_s8 + $0x6c4] ss:$16 sps:$4 sm:$0xff]  }
  0xec   : > { %14462 = vmatprep.subr.bf16.mxu0 %v20378_v36  ;;  %15938 = vmatprep.subr.bf16.mxu1 %v20381_v37  ;;  %v20473_v36 = vld [vmem:[%s23910_s8 + $0x6cc] ss:$16 sps:$4 sm:$0xff]   ;;  %v20468_v37 = vld [vmem:[%s23910_s8 + $0x6c0] ss:$16 sps:$4 sm:$0xff]  }
  0xef   : > { %14463 = vmatpush1.bf16.msra.mxu0 %v20376_v38  ;;  %15939 = vmatpush1.bf16.msra.mxu1 %v20379_v39  ;;  %v20471_v38 = vld [vmem:[%s23910_s8 + $0x6c8] ss:$16 sps:$4 sm:$0xff]   ;;  %v20476_v39 = vld [vmem:[%s23910_s8 + $0x6e4] ss:$16 sps:$4 sm:$0xff]  }
  0xf0   : > { %14464 = vmatprep.subr.bf16.mxu0 %v20384_v40  ;;  %15940 = vmatprep.subr.bf16.mxu1 %v20387_v41  ;;  %v20479_v40 = vld [vmem:[%s23910_s8 + $0x6ec] ss:$16 sps:$4 sm:$0xff]   ;;  %v20474_v41 = vld [vmem:[%s23910_s8 + $0x6e0] ss:$16 sps:$4 sm:$0xff]  }
  0xf3   : > { %14465 = vmatpush1.bf16.msra.mxu0 %v20382_v42  ;;  %15941 = vmatpush1.bf16.msra.mxu1 %v20385_v43  ;;  %v20477_v42 = vld [vmem:[%s23910_s8 + $0x6e8] ss:$16 sps:$4 sm:$0xff]   ;;  %v20482_v43 = vld [vmem:[%s23910_s8 + $0x704] ss:$16 sps:$4 sm:$0xff]  }
  0xf4   : > { %14466 = vmatprep.subr.bf16.mxu0 %v20390_v44  ;;  %15942 = vmatprep.subr.bf16.mxu1 %v20393_v45  ;;  %v20485_v44 = vld [vmem:[%s23910_s8 + $0x70c] ss:$16 sps:$4 sm:$0xff]   ;;  %v20480_v45 = vld [vmem:[%s23910_s8 + $0x700] ss:$16 sps:$4 sm:$0xff]  }
  0xf7   : > { %14467 = vmatpush1.bf16.msra.mxu0 %v20388_v46  ;;  %15943 = vmatpush1.bf16.msra.mxu1 %v20391_v47  ;;  %v20483_v46 = vld [vmem:[%s23910_s8 + $0x708] ss:$16 sps:$4 sm:$0xff]   ;;  %v20488_v47 = vld [vmem:[%s23910_s8 + $0x724] ss:$16 sps:$4 sm:$0xff]  }
  0xf8   : > { %14468 = vmatprep.subr.bf16.mxu0 %v20396_v48  ;;  %15944 = vmatprep.subr.bf16.mxu1 %v20399_v49  ;;  %v20491_v48 = vld [vmem:[%s23910_s8 + $0x72c] ss:$16 sps:$4 sm:$0xff]   ;;  %v20486_v49 = vld [vmem:[%s23910_s8 + $0x720] ss:$16 sps:$4 sm:$0xff]  }
  0xfb   : > { %14469 = vmatpush1.bf16.msra.mxu0 %v20394_v50  ;;  %15945 = vmatpush1.bf16.msra.mxu1 %v20397_v51  ;;  %v20489_v50 = vld [vmem:[%s23910_s8 + $0x728] ss:$16 sps:$4 sm:$0xff]   ;;  %v20494_v51 = vld [vmem:[%s23910_s8 + $0x744] ss:$16 sps:$4 sm:$0xff]  }
  0xfc   : > { %14470 = vmatprep.subr.bf16.mxu0 %v20402_v52  ;;  %15946 = vmatprep.subr.bf16.mxu1 %v20405_v53  ;;  %v20497_v52 = vld [vmem:[%s23910_s8 + $0x74c] ss:$16 sps:$4 sm:$0xff]   ;;  %v20492_v53 = vld [vmem:[%s23910_s8 + $0x740] ss:$16 sps:$4 sm:$0xff]  }
  0xff   : > { %14471 = vmatpush1.bf16.msra.mxu0 %v20400_v54  ;;  %15947 = vmatpush1.bf16.msra.mxu1 %v20403_v55  ;;  %v20495_v54 = vld [vmem:[%s23910_s8 + $0x748] ss:$16 sps:$4 sm:$0xff]   ;;  %v20500_v55 = vld [vmem:[%s23910_s8 + $0x764] ss:$16 sps:$4 sm:$0xff]  }
 0x100   : > { %14472 = vmatprep.subr.bf16.mxu0 %v20408_v56  ;;  %15948 = vmatprep.subr.bf16.mxu1 %v20411_v57  ;;  %v20503_v56 = vld [vmem:[%s23910_s8 + $0x76c] ss:$16 sps:$4 sm:$0xff]   ;;  %v20498_v57 = vld [vmem:[%s23910_s8 + $0x760] ss:$16 sps:$4 sm:$0xff]  }
 0x103   : > { %14473 = vmatpush1.bf16.msra.mxu0 %v20406_v58  ;;  %15949 = vmatpush1.bf16.msra.mxu1 %v20409_v59  ;;  %v20501_v58 = vld [vmem:[%s23910_s8 + $0x768] ss:$16 sps:$4 sm:$0xff]   ;;  %v20506_v59 = vld [vmem:[%s23910_s8 + $0x784] ss:$16 sps:$4 sm:$0xff]  }
 0x104   : > { %14474 = vmatprep.subr.bf16.mxu0 %v20414_v60  ;;  %15950 = vmatprep.subr.bf16.mxu1 %v20417_v61  ;;  %v20509_v60 = vld [vmem:[%s23910_s8 + $0x78c] ss:$16 sps:$4 sm:$0xff]   ;;  %v20504_v61 = vld [vmem:[%s23910_s8 + $0x780] ss:$16 sps:$4 sm:$0xff]  }
 0x107   : > { %14475 = vmatpush1.bf16.msra.mxu0 %v20412_v62  ;;  %15951 = vmatpush1.bf16.msra.mxu1 %v20415_v63  ;;  %v20507_v62 = vld [vmem:[%s23910_s8 + $0x788] ss:$16 sps:$4 sm:$0xff]   ;;  %v20512_v63 = vld [vmem:[%s23910_s8 + $0x7a4] ss:$16 sps:$4 sm:$0xff]  }
 0x108   : > { %14476 = vmatprep.subr.bf16.mxu0 %v20420_v0  ;;  %15952 = vmatprep.subr.bf16.mxu1 %v20423_v1  ;;  %v20515_v0 = vld [vmem:[%s23910_s8 + $0x7ac] ss:$16 sps:$4 sm:$0xff]   ;;  %v20510_v1 = vld [vmem:[%s23910_s8 + $0x7a0] ss:$16 sps:$4 sm:$0xff]  }
 0x10b   : > { %14477 = vmatpush1.bf16.msra.mxu0 %v20418_v2  ;;  %15953 = vmatpush1.bf16.msra.mxu1 %v20421_v3  ;;  %v20513_v2 = vld [vmem:[%s23910_s8 + $0x7a8] ss:$16 sps:$4 sm:$0xff]   ;;  %v20518_v3 = vld [vmem:[%s23910_s8 + $0x7c4] ss:$16 sps:$4 sm:$0xff]  }
 0x10c   : > { %14478 = vmatprep.subr.bf16.mxu0 %v20426_v4  ;;  %15954 = vmatprep.subr.bf16.mxu1 %v20429_v5  ;;  %v20521_v4 = vld [vmem:[%s23910_s8 + $0x7cc] ss:$16 sps:$4 sm:$0xff]   ;;  %v20516_v5 = vld [vmem:[%s23910_s8 + $0x7c0] ss:$16 sps:$4 sm:$0xff]  }
 0x10f   : > { %14479 = vmatpush1.bf16.msra.mxu0 %v20424_v6  ;;  %15955 = vmatpush1.bf16.msra.mxu1 %v20427_v7  ;;  %v20519_v6 = vld [vmem:[%s23910_s8 + $0x7c8] ss:$16 sps:$4 sm:$0xff]   ;;  %v20524_v7 = vld [vmem:[%s23910_s8 + $0x7e4] ss:$16 sps:$4 sm:$0xff]  }
 0x110   : > { %14489 = vmatprep.subr.bf16.mxu0 %v20434_v8  ;;  %15965 = vmatprep.subr.bf16.mxu1 %v20437_v9  ;;  %v20527_v8 = vld [vmem:[%s23910_s8 + $0x7ec] ss:$16 sps:$4 sm:$0xff]   ;;  %v20522_v9 = vld [vmem:[%s23910_s8 + $0x7e0] ss:$16 sps:$4 sm:$0xff]  }
 0x112   : > { %14481 = vmatmul.mubr.bf16.vlgmr.msra.gmra.mrb[0].mxu0 %v17429_v12  ;;  %15957 = vmatmul.mubr.bf16.vlgmr.msra.gmra.mrb[0].mxu1 %v17429_v12  ;;  %v20532_v12 = vld [vmem:[%s23910_s8 + $0x804] ss:$16 sps:$4 sm:$0xff]  }
 0x113   : > { %14490 = vmatpush1.bf16.msra.mxu0 %v20432_v10  ;;  %15966 = vmatpush1.bf16.msra.mxu1 %v20435_v13  ;;  %v20525_v10 = vld [vmem:[%s23910_s8 + $0x7e8] ss:$16 sps:$4 sm:$0xff]   ;;  %v20535_v13 = vld [vmem:[%s23910_s8 + $0x80c] ss:$16 sps:$4 sm:$0xff]  }
 0x114   : > { %14491 = vmatprep.subr.bf16.mxu0 %v20440_v15  ;;  %15967 = vmatprep.subr.bf16.mxu1 %v20443_v16  ;;  %v20530_v15 = vld [vmem:[%s23910_s8 + $0x800] ss:$16 sps:$4 sm:$0xff]   ;;  %v17431_v16 = vcombine.low %v24142_v14, %v24142_v14 }
 0x115   : > { %14521 = vmatprep.mubr.bf16.mxu0 %v17432_v17  ;;  %15997 = vmatprep.mubr.bf16.mxu1 %v17432_v17  ;;  %v24214_v17 = vld [vmem:[%s26563_s0 + $0x20] sm:$0xff] }
 0x116   : > { %v20536_v14 = vld [vmem:[%s23910_s8 + $0x820] ss:$16 sps:$4 sm:$0xff]  }
 0x117   : > { %14492 = vmatpush1.bf16.msra.mxu0 %v20438_v11  ;;  %15968 = vmatpush1.bf16.msra.mxu1 %v20441_v18  ;;  %v20533_v11 = vld [vmem:[%s23910_s8 + $0x808] ss:$16 sps:$4 sm:$0xff]   ;;  %v20538_v18 = vld [vmem:[%s23910_s8 + $0x824] ss:$16 sps:$4 sm:$0xff]  }
 0x118   : > { %14493 = vmatprep.subr.bf16.mxu0 %v20446_v19  ;;  %15969 = vmatprep.subr.bf16.mxu1 %v20449_v20  ;;  %v20541_v19 = vld [vmem:[%s23910_s8 + $0x82c] ss:$16 sps:$4 sm:$0xff]   ;;  %v17434_v20 = vcombine.high %v24214_v17, %v24214_v17 }
 0x11b   : > { %14494 = vmatpush1.bf16.msra.mxu0 %v20444_v21  ;;  %15970 = vmatpush1.bf16.msra.mxu1 %v20447_v22  ;;  %v20539_v21 = vld [vmem:[%s23910_s8 + $0x828] ss:$16 sps:$4 sm:$0xff]   ;;  %v20544_v22 = vld [vmem:[%s23910_s8 + $0x844] ss:$16 sps:$4 sm:$0xff]  }
 0x11c   : > { %14495 = vmatprep.subr.bf16.mxu0 %v20452_v23  ;;  %15971 = vmatprep.subr.bf16.mxu1 %v20455_v24  ;;  %v20547_v23 = vld [vmem:[%s23910_s8 + $0x84c] ss:$16 sps:$4 sm:$0xff]   ;;  %v20542_v24 = vld [vmem:[%s23910_s8 + $0x840] ss:$16 sps:$4 sm:$0xff]  }
 0x11f   : > { %14496 = vmatpush1.bf16.msra.mxu0 %v20450_v25  ;;  %15972 = vmatpush1.bf16.msra.mxu1 %v20453_v26  ;;  %v20545_v25 = vld [vmem:[%s23910_s8 + $0x848] ss:$16 sps:$4 sm:$0xff]   ;;  %v20550_v26 = vld [vmem:[%s23910_s8 + $0x864] ss:$16 sps:$4 sm:$0xff]  }
 0x120   : > { %14497 = vmatprep.subr.bf16.mxu0 %v20458_v27  ;;  %15973 = vmatprep.subr.bf16.mxu1 %v20461_v28  ;;  %v20553_v27 = vld [vmem:[%s23910_s8 + $0x86c] ss:$16 sps:$4 sm:$0xff]   ;;  %v20548_v28 = vld [vmem:[%s23910_s8 + $0x860] ss:$16 sps:$4 sm:$0xff]  }
 0x123   : > { %14498 = vmatpush1.bf16.msra.mxu0 %v20456_v29  ;;  %15974 = vmatpush1.bf16.msra.mxu1 %v20459_v30  ;;  %v20551_v29 = vld [vmem:[%s23910_s8 + $0x868] ss:$16 sps:$4 sm:$0xff]   ;;  %v20556_v30 = vld [vmem:[%s23910_s8 + $0x884] ss:$16 sps:$4 sm:$0xff]  }
 0x124   : > { %14499 = vmatprep.subr.bf16.mxu0 %v20464_v31  ;;  %15975 = vmatprep.subr.bf16.mxu1 %v20467_v32  ;;  %v20559_v31 = vld [vmem:[%s23910_s8 + $0x88c] ss:$16 sps:$4 sm:$0xff]   ;;  %v20554_v32 = vld [vmem:[%s23910_s8 + $0x880] ss:$16 sps:$4 sm:$0xff]  }
 0x127   : > { %14500 = vmatpush1.bf16.msra.mxu0 %v20462_v33  ;;  %15976 = vmatpush1.bf16.msra.mxu1 %v20465_v34  ;;  %v20557_v33 = vld [vmem:[%s23910_s8 + $0x888] ss:$16 sps:$4 sm:$0xff]   ;;  %v20562_v34 = vld [vmem:[%s23910_s8 + $0x8a4] ss:$16 sps:$4 sm:$0xff]  }
 0x128   : > { %14501 = vmatprep.subr.bf16.mxu0 %v20470_v35  ;;  %15977 = vmatprep.subr.bf16.mxu1 %v20473_v36  ;;  %v20565_v35 = vld [vmem:[%s23910_s8 + $0x8ac] ss:$16 sps:$4 sm:$0xff]   ;;  %v20560_v36 = vld [vmem:[%s23910_s8 + $0x8a0] ss:$16 sps:$4 sm:$0xff]  }
 0x12b   : > { %14502 = vmatpush1.bf16.msra.mxu0 %v20468_v37  ;;  %15978 = vmatpush1.bf16.msra.mxu1 %v20471_v38  ;;  %v20563_v37 = vld [vmem:[%s23910_s8 + $0x8a8] ss:$16 sps:$4 sm:$0xff]   ;;  %v20568_v38 = vld [vmem:[%s23910_s8 + $0x8c4] ss:$16 sps:$4 sm:$0xff]  }
 0x12c   : > { %14503 = vmatprep.subr.bf16.mxu0 %v20476_v39  ;;  %15979 = vmatprep.subr.bf16.mxu1 %v20479_v40  ;;  %v20571_v39 = vld [vmem:[%s23910_s8 + $0x8cc] ss:$16 sps:$4 sm:$0xff]   ;;  %v20566_v40 = vld [vmem:[%s23910_s8 + $0x8c0] ss:$16 sps:$4 sm:$0xff]  }
 0x12f   : > { %14504 = vmatpush1.bf16.msra.mxu0 %v20474_v41  ;;  %15980 = vmatpush1.bf16.msra.mxu1 %v20477_v42  ;;  %v20569_v41 = vld [vmem:[%s23910_s8 + $0x8c8] ss:$16 sps:$4 sm:$0xff]   ;;  %v20574_v42 = vld [vmem:[%s23910_s8 + $0x8e4] ss:$16 sps:$4 sm:$0xff]  }
 0x130   : > { %14505 = vmatprep.subr.bf16.mxu0 %v20482_v43  ;;  %15981 = vmatprep.subr.bf16.mxu1 %v20485_v44  ;;  %v20577_v43 = vld [vmem:[%s23910_s8 + $0x8ec] ss:$16 sps:$4 sm:$0xff]   ;;  %v20572_v44 = vld [vmem:[%s23910_s8 + $0x8e0] ss:$16 sps:$4 sm:$0xff]  }
 0x133   : > { %14506 = vmatpush1.bf16.msra.mxu0 %v20480_v45  ;;  %15982 = vmatpush1.bf16.msra.mxu1 %v20483_v46  ;;  %v20575_v45 = vld [vmem:[%s23910_s8 + $0x8e8] ss:$16 sps:$4 sm:$0xff]   ;;  %v20580_v46 = vld [vmem:[%s23910_s8 + $0x904] ss:$16 sps:$4 sm:$0xff]  }
 0x134   : > { %14507 = vmatprep.subr.bf16.mxu0 %v20488_v47  ;;  %15983 = vmatprep.subr.bf16.mxu1 %v20491_v48  ;;  %v20583_v47 = vld [vmem:[%s23910_s8 + $0x90c] ss:$16 sps:$4 sm:$0xff]   ;;  %v20578_v48 = vld [vmem:[%s23910_s8 + $0x900] ss:$16 sps:$4 sm:$0xff]  }
 0x137   : > { %14508 = vmatpush1.bf16.msra.mxu0 %v20486_v49  ;;  %15984 = vmatpush1.bf16.msra.mxu1 %v20489_v50  ;;  %v20581_v49 = vld [vmem:[%s23910_s8 + $0x908] ss:$16 sps:$4 sm:$0xff]   ;;  %v20586_v50 = vld [vmem:[%s23910_s8 + $0x924] ss:$16 sps:$4 sm:$0xff]  }
 0x138   : > { %14509 = vmatprep.subr.bf16.mxu0 %v20494_v51  ;;  %15985 = vmatprep.subr.bf16.mxu1 %v20497_v52  ;;  %v20589_v51 = vld [vmem:[%s23910_s8 + $0x92c] ss:$16 sps:$4 sm:$0xff]   ;;  %v20584_v52 = vld [vmem:[%s23910_s8 + $0x920] ss:$16 sps:$4 sm:$0xff]  }
 0x13b   : > { %14510 = vmatpush1.bf16.msra.mxu0 %v20492_v53  ;;  %15986 = vmatpush1.bf16.msra.mxu1 %v20495_v54  ;;  %v20587_v53 = vld [vmem:[%s23910_s8 + $0x928] ss:$16 sps:$4 sm:$0xff]   ;;  %v20592_v54 = vld [vmem:[%s23910_s8 + $0x944] ss:$16 sps:$4 sm:$0xff]  }
 0x13c   : > { %14511 = vmatprep.subr.bf16.mxu0 %v20500_v55  ;;  %15987 = vmatprep.subr.bf16.mxu1 %v20503_v56  ;;  %v20595_v55 = vld [vmem:[%s23910_s8 + $0x94c] ss:$16 sps:$4 sm:$0xff]   ;;  %v20590_v56 = vld [vmem:[%s23910_s8 + $0x940] ss:$16 sps:$4 sm:$0xff]  }
 0x13f   : > { %14512 = vmatpush1.bf16.msra.mxu0 %v20498_v57  ;;  %15988 = vmatpush1.bf16.msra.mxu1 %v20501_v58  ;;  %v20593_v57 = vld [vmem:[%s23910_s8 + $0x948] ss:$16 sps:$4 sm:$0xff]   ;;  %v20598_v58 = vld [vmem:[%s23910_s8 + $0x964] ss:$16 sps:$4 sm:$0xff]  }
 0x140   : > { %14513 = vmatprep.subr.bf16.mxu0 %v20506_v59  ;;  %15989 = vmatprep.subr.bf16.mxu1 %v20509_v60  ;;  %v20601_v59 = vld [vmem:[%s23910_s8 + $0x96c] ss:$16 sps:$4 sm:$0xff]   ;;  %v20596_v60 = vld [vmem:[%s23910_s8 + $0x960] ss:$16 sps:$4 sm:$0xff]  }
 0x143   : > { %14514 = vmatpush1.bf16.msra.mxu0 %v20504_v61  ;;  %15990 = vmatpush1.bf16.msra.mxu1 %v20507_v62  ;;  %v20599_v61 = vld [vmem:[%s23910_s8 + $0x968] ss:$16 sps:$4 sm:$0xff]   ;;  %v20604_v62 = vld [vmem:[%s23910_s8 + $0x984] ss:$16 sps:$4 sm:$0xff]  }
 0x144   : > { %14515 = vmatprep.subr.bf16.mxu0 %v20512_v63  ;;  %15991 = vmatprep.subr.bf16.mxu1 %v20515_v0  ;;  %v20607_v63 = vld [vmem:[%s23910_s8 + $0x98c] ss:$16 sps:$4 sm:$0xff]   ;;  %v20602_v0 = vld [vmem:[%s23910_s8 + $0x980] ss:$16 sps:$4 sm:$0xff]  }
 0x147   : > { %14516 = vmatpush1.bf16.msra.mxu0 %v20510_v1  ;;  %15992 = vmatpush1.bf16.msra.mxu1 %v20513_v2  ;;  %v20605_v1 = vld [vmem:[%s23910_s8 + $0x988] ss:$16 sps:$4 sm:$0xff]   ;;  %v20610_v2 = vld [vmem:[%s23910_s8 + $0x9a4] ss:$16 sps:$4 sm:$0xff]  }
 0x148   : > { %14517 = vmatprep.subr.bf16.mxu0 %v20518_v3  ;;  %15993 = vmatprep.subr.bf16.mxu1 %v20521_v4  ;;  %v20613_v3 = vld [vmem:[%s23910_s8 + $0x9ac] ss:$16 sps:$4 sm:$0xff]   ;;  %v20608_v4 = vld [vmem:[%s23910_s8 + $0x9a0] ss:$16 sps:$4 sm:$0xff]  }
 0x14b   : > { %14518 = vmatpush1.bf16.msra.mxu0 %v20516_v5  ;;  %15994 = vmatpush1.bf16.msra.mxu1 %v20519_v6  ;;  %v20611_v5 = vld [vmem:[%s23910_s8 + $0x9a8] ss:$16 sps:$4 sm:$0xff]   ;;  %v20616_v6 = vld [vmem:[%s23910_s8 + $0x9c4] ss:$16 sps:$4 sm:$0xff]  }
 0x14c   : > { %14519 = vmatprep.subr.bf16.mxu0 %v20524_v7  ;;  %15995 = vmatprep.subr.bf16.mxu1 %v20527_v8  ;;  %v20619_v7 = vld [vmem:[%s23910_s8 + $0x9cc] ss:$16 sps:$4 sm:$0xff]   ;;  %v20614_v8 = vld [vmem:[%s23910_s8 + $0x9c0] ss:$16 sps:$4 sm:$0xff]  }
 0x14f   : > { %14520 = vmatpush1.bf16.msra.mxu0 %v20522_v9  ;;  %15996 = vmatpush1.bf16.msra.mxu1 %v20525_v10  ;;  %v20617_v9 = vld [vmem:[%s23910_s8 + $0x9c8] ss:$16 sps:$4 sm:$0xff]   ;;  %v20622_v10 = vld [vmem:[%s23910_s8 + $0x9e4] ss:$16 sps:$4 sm:$0xff]  }
 0x150   : > { %14530 = vmatprep.subr.bf16.mxu0 %v20532_v12  ;;  %16006 = vmatprep.subr.bf16.mxu1 %v20535_v13  ;;  %v20625_v12 = vld [vmem:[%s23910_s8 + $0x9ec] ss:$16 sps:$4 sm:$0xff]   ;;  %v20620_v13 = vld [vmem:[%s23910_s8 + $0x9e0] ss:$16 sps:$4 sm:$0xff]  }
 0x152   : > { %14522 = vmatmul.mubr.bf16.vlgmr.msra.gmra.mrb[0].mxu0 %v17431_v16  ;;  %15998 = vmatmul.mubr.bf16.vlgmr.msra.gmra.mrb[0].mxu1 %v17431_v16  ;;  %v20630_v16 = vld [vmem:[%s23910_s8 + $0xa04] ss:$16 sps:$4 sm:$0xff]  }
 0x153   : > { %14531 = vmatpush1.bf16.msra.mxu0 %v20530_v15  ;;  %16007 = vmatpush1.bf16.msra.mxu1 %v20533_v11  ;;  %v20623_v15 = vld [vmem:[%s23910_s8 + $0x9e8] ss:$16 sps:$4 sm:$0xff]   ;;  %v20633_v11 = vld [vmem:[%s23910_s8 + $0xa0c] ss:$16 sps:$4 sm:$0xff]  }
 0x154   : > { %14532 = vmatprep.subr.bf16.mxu0 %v20538_v18  ;;  %16008 = vmatprep.subr.bf16.mxu1 %v20541_v19  ;;  %v24284_v18 = vld [vmem:[%s26563_s0 + $0x28] sm:$0xff]  ;;  %v17433_v19 = vcombine.low %v24214_v17, %v24214_v17  ;;  %v20634_v17 = vld [vmem:[%s23910_s8 + $0xa20] ss:$16 sps:$4 sm:$0xff]  }
 0x155   : > { %14562 = vmatprep.mubr.bf16.mxu0 %v17434_v20  ;;  %16038 = vmatprep.mubr.bf16.mxu1 %v17434_v20  ;;  %v20628_v20 = vld [vmem:[%s23910_s8 + $0xa00] ss:$16 sps:$4 sm:$0xff]  }
 0x157   : > { %14533 = vmatpush1.bf16.msra.mxu0 %v20536_v14  ;;  %16009 = vmatpush1.bf16.msra.mxu1 %v20539_v21  ;;  %v20631_v14 = vld [vmem:[%s23910_s8 + $0xa08] ss:$16 sps:$4 sm:$0xff]   ;;  %v20636_v21 = vld [vmem:[%s23910_s8 + $0xa24] ss:$16 sps:$4 sm:$0xff]  }
 0x158   : > { %14534 = vmatprep.subr.bf16.mxu0 %v20544_v22  ;;  %16010 = vmatprep.subr.bf16.mxu1 %v20547_v23  ;;  %v20639_v22 = vld [vmem:[%s23910_s8 + $0xa2c] ss:$16 sps:$4 sm:$0xff]   ;;  %v17436_v23 = vcombine.high %v24284_v18, %v24284_v18 }
 0x15b   : > { %14535 = vmatpush1.bf16.msra.mxu0 %v20542_v24  ;;  %16011 = vmatpush1.bf16.msra.mxu1 %v20545_v25  ;;  %v20637_v24 = vld [vmem:[%s23910_s8 + $0xa28] ss:$16 sps:$4 sm:$0xff]   ;;  %v20642_v25 = vld [vmem:[%s23910_s8 + $0xa44] ss:$16 sps:$4 sm:$0xff]  }
 0x15c   : > { %14536 = vmatprep.subr.bf16.mxu0 %v20550_v26  ;;  %16012 = vmatprep.subr.bf16.mxu1 %v20553_v27  ;;  %v20645_v26 = vld [vmem:[%s23910_s8 + $0xa4c] ss:$16 sps:$4 sm:$0xff]   ;;  %v20640_v27 = vld [vmem:[%s23910_s8 + $0xa40] ss:$16 sps:$4 sm:$0xff]  }
 0x15f   : > { %14537 = vmatpush1.bf16.msra.mxu0 %v20548_v28  ;;  %16013 = vmatpush1.bf16.msra.mxu1 %v20551_v29  ;;  %v20643_v28 = vld [vmem:[%s23910_s8 + $0xa48] ss:$16 sps:$4 sm:$0xff]   ;;  %v20648_v29 = vld [vmem:[%s23910_s8 + $0xa64] ss:$16 sps:$4 sm:$0xff]  }
 0x160   : > { %14538 = vmatprep.subr.bf16.mxu0 %v20556_v30  ;;  %16014 = vmatprep.subr.bf16.mxu1 %v20559_v31  ;;  %v20651_v30 = vld [vmem:[%s23910_s8 + $0xa6c] ss:$16 sps:$4 sm:$0xff]   ;;  %v20646_v31 = vld [vmem:[%s23910_s8 + $0xa60] ss:$16 sps:$4 sm:$0xff]  }
 0x163   : > { %14539 = vmatpush1.bf16.msra.mxu0 %v20554_v32  ;;  %16015 = vmatpush1.bf16.msra.mxu1 %v20557_v33  ;;  %v20649_v32 = vld [vmem:[%s23910_s8 + $0xa68] ss:$16 sps:$4 sm:$0xff]   ;;  %v20654_v33 = vld [vmem:[%s23910_s8 + $0xa84] ss:$16 sps:$4 sm:$0xff]  }
 0x164   : > { %14540 = vmatprep.subr.bf16.mxu0 %v20562_v34  ;;  %16016 = vmatprep.subr.bf16.mxu1 %v20565_v35  ;;  %v20657_v34 = vld [vmem:[%s23910_s8 + $0xa8c] ss:$16 sps:$4 sm:$0xff]   ;;  %v20652_v35 = vld [vmem:[%s23910_s8 + $0xa80] ss:$16 sps:$4 sm:$0xff]  }
 0x167   : > { %14541 = vmatpush1.bf16.msra.mxu0 %v20560_v36  ;;  %16017 = vmatpush1.bf16.msra.mxu1 %v20563_v37  ;;  %v20655_v36 = vld [vmem:[%s23910_s8 + $0xa88] ss:$16 sps:$4 sm:$0xff]   ;;  %v20660_v37 = vld [vmem:[%s23910_s8 + $0xaa4] ss:$16 sps:$4 sm:$0xff]  }
 0x168   : > { %14542 = vmatprep.subr.bf16.mxu0 %v20568_v38  ;;  %16018 = vmatprep.subr.bf16.mxu1 %v20571_v39  ;;  %v20663_v38 = vld [vmem:[%s23910_s8 + $0xaac] ss:$16 sps:$4 sm:$0xff]   ;;  %v20658_v39 = vld [vmem:[%s23910_s8 + $0xaa0] ss:$16 sps:$4 sm:$0xff]  }
 0x16b   : > { %14543 = vmatpush1.bf16.msra.mxu0 %v20566_v40  ;;  %16019 = vmatpush1.bf16.msra.mxu1 %v20569_v41  ;;  %v20661_v40 = vld [vmem:[%s23910_s8 + $0xaa8] ss:$16 sps:$4 sm:$0xff]   ;;  %v20666_v41 = vld [vmem:[%s23910_s8 + $0xac4] ss:$16 sps:$4 sm:$0xff]  }
 0x16c   : > { %14544 = vmatprep.subr.bf16.mxu0 %v20574_v42  ;;  %16020 = vmatprep.subr.bf16.mxu1 %v20577_v43  ;;  %v20669_v42 = vld [vmem:[%s23910_s8 + $0xacc] ss:$16 sps:$4 sm:$0xff]   ;;  %v20664_v43 = vld [vmem:[%s23910_s8 + $0xac0] ss:$16 sps:$4 sm:$0xff]  }
 0x16f   : > { %14545 = vmatpush1.bf16.msra.mxu0 %v20572_v44  ;;  %16021 = vmatpush1.bf16.msra.mxu1 %v20575_v45  ;;  %v20667_v44 = vld [vmem:[%s23910_s8 + $0xac8] ss:$16 sps:$4 sm:$0xff]   ;;  %v20672_v45 = vld [vmem:[%s23910_s8 + $0xae4] ss:$16 sps:$4 sm:$0xff]  }
 0x170   : > { %14546 = vmatprep.subr.bf16.mxu0 %v20580_v46  ;;  %16022 = vmatprep.subr.bf16.mxu1 %v20583_v47  ;;  %v20675_v46 = vld [vmem:[%s23910_s8 + $0xaec] ss:$16 sps:$4 sm:$0xff]   ;;  %v20670_v47 = vld [vmem:[%s23910_s8 + $0xae0] ss:$16 sps:$4 sm:$0xff]  }
 0x173   : > { %14547 = vmatpush1.bf16.msra.mxu0 %v20578_v48  ;;  %16023 = vmatpush1.bf16.msra.mxu1 %v20581_v49  ;;  %v20673_v48 = vld [vmem:[%s23910_s8 + $0xae8] ss:$16 sps:$4 sm:$0xff]   ;;  %v20678_v49 = vld [vmem:[%s23910_s8 + $0xb04] ss:$16 sps:$4 sm:$0xff]  }
 0x174   : > { %14548 = vmatprep.subr.bf16.mxu0 %v20586_v50  ;;  %16024 = vmatprep.subr.bf16.mxu1 %v20589_v51  ;;  %v20681_v50 = vld [vmem:[%s23910_s8 + $0xb0c] ss:$16 sps:$4 sm:$0xff]   ;;  %v20676_v51 = vld [vmem:[%s23910_s8 + $0xb00] ss:$16 sps:$4 sm:$0xff]  }
 0x177   : > { %14549 = vmatpush1.bf16.msra.mxu0 %v20584_v52  ;;  %16025 = vmatpush1.bf16.msra.mxu1 %v20587_v53  ;;  %v20679_v52 = vld [vmem:[%s23910_s8 + $0xb08] ss:$16 sps:$4 sm:$0xff]   ;;  %v20684_v53 = vld [vmem:[%s23910_s8 + $0xb24] ss:$16 sps:$4 sm:$0xff]  }
 0x178   : > { %14550 = vmatprep.subr.bf16.mxu0 %v20592_v54  ;;  %16026 = vmatprep.subr.bf16.mxu1 %v20595_v55  ;;  %v20687_v54 = vld [vmem:[%s23910_s8 + $0xb2c] ss:$16 sps:$4 sm:$0xff]   ;;  %v20682_v55 = vld [vmem:[%s23910_s8 + $0xb20] ss:$16 sps:$4 sm:$0xff]  }
 0x17b   : > { %14551 = vmatpush1.bf16.msra.mxu0 %v20590_v56  ;;  %16027 = vmatpush1.bf16.msra.mxu1 %v20593_v57  ;;  %v20685_v56 = vld [vmem:[%s23910_s8 + $0xb28] ss:$16 sps:$4 sm:$0xff]   ;;  %v20690_v57 = vld [vmem:[%s23910_s8 + $0xb44] ss:$16 sps:$4 sm:$0xff]  }
 0x17c   : > { %14552 = vmatprep.subr.bf16.mxu0 %v20598_v58  ;;  %16028 = vmatprep.subr.bf16.mxu1 %v20601_v59  ;;  %v20693_v58 = vld [vmem:[%s23910_s8 + $0xb4c] ss:$16 sps:$4 sm:$0xff]   ;;  %v20688_v59 = vld [vmem:[%s23910_s8 + $0xb40] ss:$16 sps:$4 sm:$0xff]  }
 0x17f   : > { %14553 = vmatpush1.bf16.msra.mxu0 %v20596_v60  ;;  %16029 = vmatpush1.bf16.msra.mxu1 %v20599_v61  ;;  %v20691_v60 = vld [vmem:[%s23910_s8 + $0xb48] ss:$16 sps:$4 sm:$0xff]   ;;  %v20696_v61 = vld [vmem:[%s23910_s8 + $0xb64] ss:$16 sps:$4 sm:$0xff]  }
 0x180   : > { %14554 = vmatprep.subr.bf16.mxu0 %v20604_v62  ;;  %16030 = vmatprep.subr.bf16.mxu1 %v20607_v63  ;;  %v20699_v62 = vld [vmem:[%s23910_s8 + $0xb6c] ss:$16 sps:$4 sm:$0xff]   ;;  %v20694_v63 = vld [vmem:[%s23910_s8 + $0xb60] ss:$16 sps:$4 sm:$0xff]  }
 0x183   : > { %14555 = vmatpush1.bf16.msra.mxu0 %v20602_v0  ;;  %16031 = vmatpush1.bf16.msra.mxu1 %v20605_v1  ;;  %v20697_v0 = vld [vmem:[%s23910_s8 + $0xb68] ss:$16 sps:$4 sm:$0xff]   ;;  %v20702_v1 = vld [vmem:[%s23910_s8 + $0xb84] ss:$16 sps:$4 sm:$0xff]  }
 0x184   : > { %14556 = vmatprep.subr.bf16.mxu0 %v20610_v2  ;;  %16032 = vmatprep.subr.bf16.mxu1 %v20613_v3  ;;  %v20705_v2 = vld [vmem:[%s23910_s8 + $0xb8c] ss:$16 sps:$4 sm:$0xff]   ;;  %v20700_v3 = vld [vmem:[%s23910_s8 + $0xb80] ss:$16 sps:$4 sm:$0xff]  }
 0x187   : > { %14557 = vmatpush1.bf16.msra.mxu0 %v20608_v4  ;;  %16033 = vmatpush1.bf16.msra.mxu1 %v20611_v5  ;;  %v20703_v4 = vld [vmem:[%s23910_s8 + $0xb88] ss:$16 sps:$4 sm:$0xff]   ;;  %v20708_v5 = vld [vmem:[%s23910_s8 + $0xba4] ss:$16 sps:$4 sm:$0xff]  }
 0x188   : > { %14558 = vmatprep.subr.bf16.mxu0 %v20616_v6  ;;  %16034 = vmatprep.subr.bf16.mxu1 %v20619_v7  ;;  %v20711_v6 = vld [vmem:[%s23910_s8 + $0xbac] ss:$16 sps:$4 sm:$0xff]   ;;  %v20706_v7 = vld [vmem:[%s23910_s8 + $0xba0] ss:$16 sps:$4 sm:$0xff]  }
 0x18b   : > { %14559 = vmatpush1.bf16.msra.mxu0 %v20614_v8  ;;  %16035 = vmatpush1.bf16.msra.mxu1 %v20617_v9  ;;  %v20709_v8 = vld [vmem:[%s23910_s8 + $0xba8] ss:$16 sps:$4 sm:$0xff]   ;;  %v20714_v9 = vld [vmem:[%s23910_s8 + $0xbc4] ss:$16 sps:$4 sm:$0xff]  }
 0x18c   : > { %14560 = vmatprep.subr.bf16.mxu0 %v20622_v10  ;;  %16036 = vmatprep.subr.bf16.mxu1 %v20625_v12  ;;  %v20717_v10 = vld [vmem:[%s23910_s8 + $0xbcc] ss:$16 sps:$4 sm:$0xff]   ;;  %v20712_v12 = vld [vmem:[%s23910_s8 + $0xbc0] ss:$16 sps:$4 sm:$0xff]  }
 0x18f   : > { %14561 = vmatpush1.bf16.msra.mxu0 %v20620_v13  ;;  %16037 = vmatpush1.bf16.msra.mxu1 %v20623_v15  ;;  %v20715_v13 = vld [vmem:[%s23910_s8 + $0xbc8] ss:$16 sps:$4 sm:$0xff]   ;;  %v20720_v15 = vld [vmem:[%s23910_s8 + $0xbe4] ss:$16 sps:$4 sm:$0xff]  }
 0x190   : > { %14571 = vmatprep.subr.bf16.mxu0 %v20630_v16  ;;  %16047 = vmatprep.subr.bf16.mxu1 %v20633_v11  ;;  %v20723_v16 = vld [vmem:[%s23910_s8 + $0xbec] ss:$16 sps:$4 sm:$0xff]   ;;  %v20718_v11 = vld [vmem:[%s23910_s8 + $0xbe0] ss:$16 sps:$4 sm:$0xff]  }
 0x192   : > { %14563 = vmatmul.mubr.bf16.vlgmr.msra.gmra.mrb[0].mxu0 %v17433_v19  ;;  %16039 = vmatmul.mubr.bf16.vlgmr.msra.gmra.mrb[0].mxu1 %v17433_v19  ;;  %v20721_v19 = vld [vmem:[%s23910_s8 + $0xbe8] ss:$16 sps:$4 sm:$0xff]  }
 0x193   : > { %14572 = vmatpush1.bf16.msra.mxu0 %v20628_v20  ;;  %16048 = vmatpush1.bf16.msra.mxu1 %v20631_v14  ;;  %v20728_v20 = vld [vmem:[%s23910_s8 + $0xc04] ss:$16 sps:$4 sm:$0xff]   ;;  %v20731_v14 = vld [vmem:[%s23910_s8 + $0xc0c] ss:$16 sps:$4 sm:$0xff]  }
 0x194   : > { %14573 = vmatprep.subr.bf16.mxu0 %v20636_v21  ;;  %16049 = vmatprep.subr.bf16.mxu1 %v20639_v22  ;;  %v24357_v21 = vld [vmem:[%s26563_s0 + $0x30] sm:$0xff]  ;;  %v17435_v22 = vcombine.low %v24284_v18, %v24284_v18 }
 0x195   : > { %14603 = vmatprep.mubr.bf16.mxu0 %v17436_v23  ;;  %16079 = vmatprep.mubr.bf16.mxu1 %v17436_v23  ;;  %v20726_v23 = vld [vmem:[%s23910_s8 + $0xc00] ss:$16 sps:$4 sm:$0xff]  }
 0x196   : > { %v20732_v18 = vld [vmem:[%s23910_s8 + $0xc20] ss:$16 sps:$4 sm:$0xff]  }
 0x197   : > { %14574 = vmatpush1.bf16.msra.mxu0 %v20634_v17  ;;  %16050 = vmatpush1.bf16.msra.mxu1 %v20637_v24  ;;  %v20729_v17 = vld [vmem:[%s23910_s8 + $0xc08] ss:$16 sps:$4 sm:$0xff]   ;;  %v20734_v24 = vld [vmem:[%s23910_s8 + $0xc24] ss:$16 sps:$4 sm:$0xff]  }
 0x198   : > { %14575 = vmatprep.subr.bf16.mxu0 %v20642_v25  ;;  %16051 = vmatprep.subr.bf16.mxu1 %v20645_v26  ;;  %v20737_v25 = vld [vmem:[%s23910_s8 + $0xc2c] ss:$16 sps:$4 sm:$0xff]   ;;  %v17438_v26 = vcombine.high %v24357_v21, %v24357_v21 }
 0x19b   : > { %14576 = vmatpush1.bf16.msra.mxu0 %v20640_v27  ;;  %16052 = vmatpush1.bf16.msra.mxu1 %v20643_v28  ;;  %v20735_v27 = vld [vmem:[%s23910_s8 + $0xc28] ss:$16 sps:$4 sm:$0xff]   ;;  %v20740_v28 = vld [vmem:[%s23910_s8 + $0xc44] ss:$16 sps:$4 sm:$0xff]  }
 0x19c   : > { %14577 = vmatprep.subr.bf16.mxu0 %v20648_v29  ;;  %16053 = vmatprep.subr.bf16.mxu1 %v20651_v30  ;;  %v20743_v29 = vld [vmem:[%s23910_s8 + $0xc4c] ss:$16 sps:$4 sm:$0xff]   ;;  %v20738_v30 = vld [vmem:[%s23910_s8 + $0xc40] ss:$16 sps:$4 sm:$0xff]  }
 0x19f   : > { %14578 = vmatpush1.bf16.msra.mxu0 %v20646_v31  ;;  %16054 = vmatpush1.bf16.msra.mxu1 %v20649_v32  ;;  %v20741_v31 = vld [vmem:[%s23910_s8 + $0xc48] ss:$16 sps:$4 sm:$0xff]   ;;  %v20746_v32 = vld [vmem:[%s23910_s8 + $0xc64] ss:$16 sps:$4 sm:$0xff]  }
 0x1a0   : > { %14579 = vmatprep.subr.bf16.mxu0 %v20654_v33  ;;  %16055 = vmatprep.subr.bf16.mxu1 %v20657_v34  ;;  %v20749_v33 = vld [vmem:[%s23910_s8 + $0xc6c] ss:$16 sps:$4 sm:$0xff]   ;;  %v20744_v34 = vld [vmem:[%s23910_s8 + $0xc60] ss:$16 sps:$4 sm:$0xff]  }
 0x1a3   : > { %14580 = vmatpush1.bf16.msra.mxu0 %v20652_v35  ;;  %16056 = vmatpush1.bf16.msra.mxu1 %v20655_v36  ;;  %v20747_v35 = vld [vmem:[%s23910_s8 + $0xc68] ss:$16 sps:$4 sm:$0xff]   ;;  %v20752_v36 = vld [vmem:[%s23910_s8 + $0xc84] ss:$16 sps:$4 sm:$0xff]  }
 0x1a4   : > { %14581 = vmatprep.subr.bf16.mxu0 %v20660_v37  ;;  %16057 = vmatprep.subr.bf16.mxu1 %v20663_v38  ;;  %v20755_v37 = vld [vmem:[%s23910_s8 + $0xc8c] ss:$16 sps:$4 sm:$0xff]   ;;  %v20750_v38 = vld [vmem:[%s23910_s8 + $0xc80] ss:$16 sps:$4 sm:$0xff]  }
 0x1a7   : > { %14582 = vmatpush1.bf16.msra.mxu0 %v20658_v39  ;;  %16058 = vmatpush1.bf16.msra.mxu1 %v20661_v40  ;;  %v20753_v39 = vld [vmem:[%s23910_s8 + $0xc88] ss:$16 sps:$4 sm:$0xff]   ;;  %v20758_v40 = vld [vmem:[%s23910_s8 + $0xca4] ss:$16 sps:$4 sm:$0xff]  }
 0x1a8   : > { %14583 = vmatprep.subr.bf16.mxu0 %v20666_v41  ;;  %16059 = vmatprep.subr.bf16.mxu1 %v20669_v42  ;;  %v20761_v41 = vld [vmem:[%s23910_s8 + $0xcac] ss:$16 sps:$4 sm:$0xff]   ;;  %v20756_v42 = vld [vmem:[%s23910_s8 + $0xca0] ss:$16 sps:$4 sm:$0xff]  }
 0x1ab   : > { %14584 = vmatpush1.bf16.msra.mxu0 %v20664_v43  ;;  %16060 = vmatpush1.bf16.msra.mxu1 %v20667_v44  ;;  %v20759_v43 = vld [vmem:[%s23910_s8 + $0xca8] ss:$16 sps:$4 sm:$0xff]   ;;  %v20764_v44 = vld [vmem:[%s23910_s8 + $0xcc4] ss:$16 sps:$4 sm:$0xff]  }
 0x1ac   : > { %14585 = vmatprep.subr.bf16.mxu0 %v20672_v45  ;;  %16061 = vmatprep.subr.bf16.mxu1 %v20675_v46  ;;  %v20767_v45 = vld [vmem:[%s23910_s8 + $0xccc] ss:$16 sps:$4 sm:$0xff]   ;;  %v20762_v46 = vld [vmem:[%s23910_s8 + $0xcc0] ss:$16 sps:$4 sm:$0xff]  }
 0x1af   : > { %14586 = vmatpush1.bf16.msra.mxu0 %v20670_v47  ;;  %16062 = vmatpush1.bf16.msra.mxu1 %v20673_v48  ;;  %v20765_v47 = vld [vmem:[%s23910_s8 + $0xcc8] ss:$16 sps:$4 sm:$0xff]   ;;  %v20770_v48 = vld [vmem:[%s23910_s8 + $0xce4] ss:$16 sps:$4 sm:$0xff]  }
 0x1b0   : > { %14587 = vmatprep.subr.bf16.mxu0 %v20678_v49  ;;  %16063 = vmatprep.subr.bf16.mxu1 %v20681_v50  ;;  %v20773_v49 = vld [vmem:[%s23910_s8 + $0xcec] ss:$16 sps:$4 sm:$0xff]   ;;  %v20768_v50 = vld [vmem:[%s23910_s8 + $0xce0] ss:$16 sps:$4 sm:$0xff]  }
 0x1b3   : > { %14588 = vmatpush1.bf16.msra.mxu0 %v20676_v51  ;;  %16064 = vmatpush1.bf16.msra.mxu1 %v20679_v52  ;;  %v20771_v51 = vld [vmem:[%s23910_s8 + $0xce8] ss:$16 sps:$4 sm:$0xff]   ;;  %v20776_v52 = vld [vmem:[%s23910_s8 + $0xd04] ss:$16 sps:$4 sm:$0xff]  }
 0x1b4   : > { %14589 = vmatprep.subr.bf16.mxu0 %v20684_v53  ;;  %16065 = vmatprep.subr.bf16.mxu1 %v20687_v54  ;;  %v20779_v53 = vld [vmem:[%s23910_s8 + $0xd0c] ss:$16 sps:$4 sm:$0xff]   ;;  %v20774_v54 = vld [vmem:[%s23910_s8 + $0xd00] ss:$16 sps:$4 sm:$0xff]  }
 0x1b7   : > { %14590 = vmatpush1.bf16.msra.mxu0 %v20682_v55  ;;  %16066 = vmatpush1.bf16.msra.mxu1 %v20685_v56  ;;  %v20777_v55 = vld [vmem:[%s23910_s8 + $0xd08] ss:$16 sps:$4 sm:$0xff]   ;;  %v20782_v56 = vld [vmem:[%s23910_s8 + $0xd24] ss:$16 sps:$4 sm:$0xff]  }
 0x1b8   : > { %14591 = vmatprep.subr.bf16.mxu0 %v20690_v57  ;;  %16067 = vmatprep.subr.bf16.mxu1 %v20693_v58  ;;  %v20785_v57 = vld [vmem:[%s23910_s8 + $0xd2c] ss:$16 sps:$4 sm:$0xff]   ;;  %v20780_v58 = vld [vmem:[%s23910_s8 + $0xd20] ss:$16 sps:$4 sm:$0xff]  }
 0x1bb   : > { %14592 = vmatpush1.bf16.msra.mxu0 %v20688_v59  ;;  %16068 = vmatpush1.bf16.msra.mxu1 %v20691_v60  ;;  %v20783_v59 = vld [vmem:[%s23910_s8 + $0xd28] ss:$16 sps:$4 sm:$0xff]   ;;  %v20788_v60 = vld [vmem:[%s23910_s8 + $0xd44] ss:$16 sps:$4 sm:$0xff]  }
 0x1bc   : > { %14593 = vmatprep.subr.bf16.mxu0 %v20696_v61  ;;  %16069 = vmatprep.subr.bf16.mxu1 %v20699_v62  ;;  %v20791_v61 = vld [vmem:[%s23910_s8 + $0xd4c] ss:$16 sps:$4 sm:$0xff]   ;;  %v20786_v62 = vld [vmem:[%s23910_s8 + $0xd40] ss:$16 sps:$4 sm:$0xff]  }
 0x1bf   : > { %14594 = vmatpush1.bf16.msra.mxu0 %v20694_v63  ;;  %16070 = vmatpush1.bf16.msra.mxu1 %v20697_v0  ;;  %v20789_v63 = vld [vmem:[%s23910_s8 + $0xd48] ss:$16 sps:$4 sm:$0xff]   ;;  %v20794_v0 = vld [vmem:[%s23910_s8 + $0xd64] ss:$16 sps:$4 sm:$0xff]  }
 0x1c0   : > { %14595 = vmatprep.subr.bf16.mxu0 %v20702_v1  ;;  %16071 = vmatprep.subr.bf16.mxu1 %v20705_v2  ;;  %v20797_v1 = vld [vmem:[%s23910_s8 + $0xd6c] ss:$16 sps:$4 sm:$0xff]   ;;  %v20792_v2 = vld [vmem:[%s23910_s8 + $0xd60] ss:$16 sps:$4 sm:$0xff]  }
 0x1c3   : > { %14596 = vmatpush1.bf16.msra.mxu0 %v20700_v3  ;;  %16072 = vmatpush1.bf16.msra.mxu1 %v20703_v4  ;;  %v20795_v3 = vld [vmem:[%s23910_s8 + $0xd68] ss:$16 sps:$4 sm:$0xff]   ;;  %v20800_v4 = vld [vmem:[%s23910_s8 + $0xd84] ss:$16 sps:$4 sm:$0xff]  }
 0x1c4   : > { %14597 = vmatprep.subr.bf16.mxu0 %v20708_v5  ;;  %16073 = vmatprep.subr.bf16.mxu1 %v20711_v6  ;;  %v20803_v5 = vld [vmem:[%s23910_s8 + $0xd8c] ss:$16 sps:$4 sm:$0xff]   ;;  %v20798_v6 = vld [vmem:[%s23910_s8 + $0xd80] ss:$16 sps:$4 sm:$0xff]  }
 0x1c7   : > { %14598 = vmatpush1.bf16.msra.mxu0 %v20706_v7  ;;  %16074 = vmatpush1.bf16.msra.mxu1 %v20709_v8  ;;  %v20801_v7 = vld [vmem:[%s23910_s8 + $0xd88] ss:$16 sps:$4 sm:$0xff]   ;;  %v20806_v8 = vld [vmem:[%s23910_s8 + $0xda4] ss:$16 sps:$4 sm:$0xff]  }
 0x1c8   : > { %14599 = vmatprep.subr.bf16.mxu0 %v20714_v9  ;;  %16075 = vmatprep.subr.bf16.mxu1 %v20717_v10  ;;  %v20809_v9 = vld [vmem:[%s23910_s8 + $0xdac] ss:$16 sps:$4 sm:$0xff]   ;;  %v20804_v10 = vld [vmem:[%s23910_s8 + $0xda0] ss:$16 sps:$4 sm:$0xff]  }
 0x1cb   : > { %14600 = vmatpush1.bf16.msra.mxu0 %v20712_v12  ;;  %16076 = vmatpush1.bf16.msra.mxu1 %v20715_v13  ;;  %v20807_v12 = vld [vmem:[%s23910_s8 + $0xda8] ss:$16 sps:$4 sm:$0xff]   ;;  %v20812_v13 = vld [vmem:[%s23910_s8 + $0xdc4] ss:$16 sps:$4 sm:$0xff]  }
 0x1cc   : > { %14601 = vmatprep.subr.bf16.mxu0 %v20720_v15  ;;  %16077 = vmatprep.subr.bf16.mxu1 %v20723_v16  ;;  %v20815_v15 = vld [vmem:[%s23910_s8 + $0xdcc] ss:$16 sps:$4 sm:$0xff]   ;;  %v20810_v16 = vld [vmem:[%s23910_s8 + $0xdc0] ss:$16 sps:$4 sm:$0xff]  }
 0x1cf   : > { %14602 = vmatpush1.bf16.msra.mxu0 %v20718_v11  ;;  %16078 = vmatpush1.bf16.msra.mxu1 %v20721_v19  ;;  %v20813_v11 = vld [vmem:[%s23910_s8 + $0xdc8] ss:$16 sps:$4 sm:$0xff]   ;;  %v20818_v19 = vld [vmem:[%s23910_s8 + $0xde4] ss:$16 sps:$4 sm:$0xff]  }
 0x1d0   : > { %14612 = vmatprep.subr.bf16.mxu0 %v20728_v20  ;;  %16088 = vmatprep.subr.bf16.mxu1 %v20731_v14  ;;  %v20821_v20 = vld [vmem:[%s23910_s8 + $0xdec] ss:$16 sps:$4 sm:$0xff]   ;;  %v20816_v14 = vld [vmem:[%s23910_s8 + $0xde0] ss:$16 sps:$4 sm:$0xff]  }
 0x1d2   : > { %14604 = vmatmul.mubr.bf16.vlgmr.msra.gmra.mrb[0].mxu0 %v17435_v22  ;;  %16080 = vmatmul.mubr.bf16.vlgmr.msra.gmra.mrb[0].mxu1 %v17435_v22  ;;  %v20819_v22 = vld [vmem:[%s23910_s8 + $0xde8] ss:$16 sps:$4 sm:$0xff]  }
 0x1d3   : > { %14613 = vmatpush1.bf16.msra.mxu0 %v20726_v23  ;;  %16089 = vmatpush1.bf16.msra.mxu1 %v20729_v17  ;;  %v20826_v23 = vld [vmem:[%s23910_s8 + $0xe04] ss:$16 sps:$4 sm:$0xff]   ;;  %v20829_v17 = vld [vmem:[%s23910_s8 + $0xe0c] ss:$16 sps:$4 sm:$0xff]  }
 0x1d4   : > { %14614 = vmatprep.subr.bf16.mxu0 %v20734_v24  ;;  %16090 = vmatprep.subr.bf16.mxu1 %v20737_v25  ;;  %v24430_v24 = vld [vmem:[%s26563_s0 + $0x38] sm:$0xff]  ;;  %v17437_v25 = vcombine.low %v24357_v21, %v24357_v21  ;;  %v20830_v21 = vld [vmem:[%s23910_s8 + $0xe20] ss:$16 sps:$4 sm:$0xff]  }
 0x1d5   : > { %14644 = vmatprep.mubr.bf16.mxu0 %v17438_v26  ;;  %16120 = vmatprep.mubr.bf16.mxu1 %v17438_v26  ;;  %v20824_v26 = vld [vmem:[%s23910_s8 + $0xe00] ss:$16 sps:$4 sm:$0xff]  }
 0x1d7   : > { %14615 = vmatpush1.bf16.msra.mxu0 %v20732_v18  ;;  %16091 = vmatpush1.bf16.msra.mxu1 %v20735_v27  ;;  %v20827_v18 = vld [vmem:[%s23910_s8 + $0xe08] ss:$16 sps:$4 sm:$0xff]   ;;  %v20832_v27 = vld [vmem:[%s23910_s8 + $0xe24] ss:$16 sps:$4 sm:$0xff]  }
 0x1d8   : > { %14616 = vmatprep.subr.bf16.mxu0 %v20740_v28  ;;  %16092 = vmatprep.subr.bf16.mxu1 %v20743_v29  ;;  %v20835_v28 = vld [vmem:[%s23910_s8 + $0xe2c] ss:$16 sps:$4 sm:$0xff]   ;;  %v17440_v29 = vcombine.high %v24430_v24, %v24430_v24 }
 0x1db   : > { %14617 = vmatpush1.bf16.msra.mxu0 %v20738_v30  ;;  %16093 = vmatpush1.bf16.msra.mxu1 %v20741_v31  ;;  %v20833_v30 = vld [vmem:[%s23910_s8 + $0xe28] ss:$16 sps:$4 sm:$0xff]   ;;  %v20838_v31 = vld [vmem:[%s23910_s8 + $0xe44] ss:$16 sps:$4 sm:$0xff]  }
 0x1dc   : > { %14618 = vmatprep.subr.bf16.mxu0 %v20746_v32  ;;  %16094 = vmatprep.subr.bf16.mxu1 %v20749_v33  ;;  %v20841_v32 = vld [vmem:[%s23910_s8 + $0xe4c] ss:$16 sps:$4 sm:$0xff]   ;;  %v20836_v33 = vld [vmem:[%s23910_s8 + $0xe40] ss:$16 sps:$4 sm:$0xff]  }
 0x1df   : > { %14619 = vmatpush1.bf16.msra.mxu0 %v20744_v34  ;;  %16095 = vmatpush1.bf16.msra.mxu1 %v20747_v35  ;;  %v20839_v34 = vld [vmem:[%s23910_s8 + $0xe48] ss:$16 sps:$4 sm:$0xff]   ;;  %v20844_v35 = vld [vmem:[%s23910_s8 + $0xe64] ss:$16 sps:$4 sm:$0xff]  }
 0x1e0   : > { %14620 = vmatprep.subr.bf16.mxu0 %v20752_v36  ;;  %16096 = vmatprep.subr.bf16.mxu1 %v20755_v37  ;;  %v20847_v36 = vld [vmem:[%s23910_s8 + $0xe6c] ss:$16 sps:$4 sm:$0xff]   ;;  %v20842_v37 = vld [vmem:[%s23910_s8 + $0xe60] ss:$16 sps:$4 sm:$0xff]  }
 0x1e3   : > { %14621 = vmatpush1.bf16.msra.mxu0 %v20750_v38  ;;  %16097 = vmatpush1.bf16.msra.mxu1 %v20753_v39  ;;  %v20845_v38 = vld [vmem:[%s23910_s8 + $0xe68] ss:$16 sps:$4 sm:$0xff]   ;;  %v20850_v39 = vld [vmem:[%s23910_s8 + $0xe84] ss:$16 sps:$4 sm:$0xff]  }
 0x1e4   : > { %14622 = vmatprep.subr.bf16.mxu0 %v20758_v40  ;;  %16098 = vmatprep.subr.bf16.mxu1 %v20761_v41  ;;  %v20853_v40 = vld [vmem:[%s23910_s8 + $0xe8c] ss:$16 sps:$4 sm:$0xff]   ;;  %v20848_v41 = vld [vmem:[%s23910_s8 + $0xe80] ss:$16 sps:$4 sm:$0xff]  }
 0x1e7   : > { %14623 = vmatpush1.bf16.msra.mxu0 %v20756_v42  ;;  %16099 = vmatpush1.bf16.msra.mxu1 %v20759_v43  ;;  %v20851_v42 = vld [vmem:[%s23910_s8 + $0xe88] ss:$16 sps:$4 sm:$0xff]   ;;  %v20856_v43 = vld [vmem:[%s23910_s8 + $0xea4] ss:$16 sps:$4 sm:$0xff]  }
 0x1e8   : > { %14624 = vmatprep.subr.bf16.mxu0 %v20764_v44  ;;  %16100 = vmatprep.subr.bf16.mxu1 %v20767_v45  ;;  %v20859_v44 = vld [vmem:[%s23910_s8 + $0xeac] ss:$16 sps:$4 sm:$0xff]   ;;  %v20854_v45 = vld [vmem:[%s23910_s8 + $0xea0] ss:$16 sps:$4 sm:$0xff]  }
 0x1eb   : > { %14625 = vmatpush1.bf16.msra.mxu0 %v20762_v46  ;;  %16101 = vmatpush1.bf16.msra.mxu1 %v20765_v47  ;;  %v20857_v46 = vld [vmem:[%s23910_s8 + $0xea8] ss:$16 sps:$4 sm:$0xff]   ;;  %v20862_v47 = vld [vmem:[%s23910_s8 + $0xec4] ss:$16 sps:$4 sm:$0xff]  }
 0x1ec   : > { %14626 = vmatprep.subr.bf16.mxu0 %v20770_v48  ;;  %16102 = vmatprep.subr.bf16.mxu1 %v20773_v49  ;;  %v20865_v48 = vld [vmem:[%s23910_s8 + $0xecc] ss:$16 sps:$4 sm:$0xff]   ;;  %v20860_v49 = vld [vmem:[%s23910_s8 + $0xec0] ss:$16 sps:$4 sm:$0xff]  }
 0x1ef   : > { %14627 = vmatpush1.bf16.msra.mxu0 %v20768_v50  ;;  %16103 = vmatpush1.bf16.msra.mxu1 %v20771_v51  ;;  %v20863_v50 = vld [vmem:[%s23910_s8 + $0xec8] ss:$16 sps:$4 sm:$0xff]   ;;  %v20868_v51 = vld [vmem:[%s23910_s8 + $0xee4] ss:$16 sps:$4 sm:$0xff]  }
 0x1f0   : > { %14628 = vmatprep.subr.bf16.mxu0 %v20776_v52  ;;  %16104 = vmatprep.subr.bf16.mxu1 %v20779_v53  ;;  %v20871_v52 = vld [vmem:[%s23910_s8 + $0xeec] ss:$16 sps:$4 sm:$0xff]   ;;  %v20866_v53 = vld [vmem:[%s23910_s8 + $0xee0] ss:$16 sps:$4 sm:$0xff]  }
 0x1f3   : > { %14629 = vmatpush1.bf16.msra.mxu0 %v20774_v54  ;;  %16105 = vmatpush1.bf16.msra.mxu1 %v20777_v55  ;;  %v20869_v54 = vld [vmem:[%s23910_s8 + $0xee8] ss:$16 sps:$4 sm:$0xff]   ;;  %v20874_v55 = vld [vmem:[%s23910_s8 + $0xf04] ss:$16 sps:$4 sm:$0xff]  }
 0x1f4   : > { %14630 = vmatprep.subr.bf16.mxu0 %v20782_v56  ;;  %16106 = vmatprep.subr.bf16.mxu1 %v20785_v57  ;;  %v20877_v56 = vld [vmem:[%s23910_s8 + $0xf0c] ss:$16 sps:$4 sm:$0xff]   ;;  %v20872_v57 = vld [vmem:[%s23910_s8 + $0xf00] ss:$16 sps:$4 sm:$0xff]  }
 0x1f7   : > { %14631 = vmatpush1.bf16.msra.mxu0 %v20780_v58  ;;  %16107 = vmatpush1.bf16.msra.mxu1 %v20783_v59  ;;  %v20875_v58 = vld [vmem:[%s23910_s8 + $0xf08] ss:$16 sps:$4 sm:$0xff]   ;;  %v20880_v59 = vld [vmem:[%s23910_s8 + $0xf24] ss:$16 sps:$4 sm:$0xff]  }
 0x1f8   : > { %14632 = vmatprep.subr.bf16.mxu0 %v20788_v60  ;;  %16108 = vmatprep.subr.bf16.mxu1 %v20791_v61  ;;  %v20883_v60 = vld [vmem:[%s23910_s8 + $0xf2c] ss:$16 sps:$4 sm:$0xff]   ;;  %v20878_v61 = vld [vmem:[%s23910_s8 + $0xf20] ss:$16 sps:$4 sm:$0xff]  }
 0x1fb   : > { %14633 = vmatpush1.bf16.msra.mxu0 %v20786_v62  ;;  %16109 = vmatpush1.bf16.msra.mxu1 %v20789_v63  ;;  %v20881_v62 = vld [vmem:[%s23910_s8 + $0xf28] ss:$16 sps:$4 sm:$0xff]   ;;  %v20886_v63 = vld [vmem:[%s23910_s8 + $0xf44] ss:$16 sps:$4 sm:$0xff]  }
 0x1fc   : > { %14634 = vmatprep.subr.bf16.mxu0 %v20794_v0  ;;  %16110 = vmatprep.subr.bf16.mxu1 %v20797_v1  ;;  %v20889_v0 = vld [vmem:[%s23910_s8 + $0xf4c] ss:$16 sps:$4 sm:$0xff]   ;;  %v20884_v1 = vld [vmem:[%s23910_s8 + $0xf40] ss:$16 sps:$4 sm:$0xff]  }
 0x1ff   : > { %14635 = vmatpush1.bf16.msra.mxu0 %v20792_v2  ;;  %16111 = vmatpush1.bf16.msra.mxu1 %v20795_v3  ;;  %v20887_v2 = vld [vmem:[%s23910_s8 + $0xf48] ss:$16 sps:$4 sm:$0xff]   ;;  %v20892_v3 = vld [vmem:[%s23910_s8 + $0xf64] ss:$16 sps:$4 sm:$0xff]  }
 0x200   : > { %14636 = vmatprep.subr.bf16.mxu0 %v20800_v4  ;;  %16112 = vmatprep.subr.bf16.mxu1 %v20803_v5  ;;  %v20895_v4 = vld [vmem:[%s23910_s8 + $0xf6c] ss:$16 sps:$4 sm:$0xff]   ;;  %v20890_v5 = vld [vmem:[%s23910_s8 + $0xf60] ss:$16 sps:$4 sm:$0xff]  }
 0x203   : > { %14637 = vmatpush1.bf16.msra.mxu0 %v20798_v6  ;;  %16113 = vmatpush1.bf16.msra.mxu1 %v20801_v7  ;;  %v20893_v6 = vld [vmem:[%s23910_s8 + $0xf68] ss:$16 sps:$4 sm:$0xff]   ;;  %v20898_v7 = vld [vmem:[%s23910_s8 + $0xf84] ss:$16 sps:$4 sm:$0xff]  }
 0x204   : > { %14638 = vmatprep.subr.bf16.mxu0 %v20806_v8  ;;  %16114 = vmatprep.subr.bf16.mxu1 %v20809_v9  ;;  %v20901_v8 = vld [vmem:[%s23910_s8 + $0xf8c] ss:$16 sps:$4 sm:$0xff]   ;;  %v20896_v9 = vld [vmem:[%s23910_s8 + $0xf80] ss:$16 sps:$4 sm:$0xff]  }
 0x207   : > { %14639 = vmatpush1.bf16.msra.mxu0 %v20804_v10  ;;  %16115 = vmatpush1.bf16.msra.mxu1 %v20807_v12  ;;  %v20899_v10 = vld [vmem:[%s23910_s8 + $0xf88] ss:$16 sps:$4 sm:$0xff]   ;;  %v20904_v12 = vld [vmem:[%s23910_s8 + $0xfa4] ss:$16 sps:$4 sm:$0xff]  }
 0x208   : > { %14640 = vmatprep.subr.bf16.mxu0 %v20812_v13  ;;  %16116 = vmatprep.subr.bf16.mxu1 %v20815_v15  ;;  %v20907_v13 = vld [vmem:[%s23910_s8 + $0xfac] ss:$16 sps:$4 sm:$0xff]   ;;  %v20902_v15 = vld [vmem:[%s23910_s8 + $0xfa0] ss:$16 sps:$4 sm:$0xff]  }
 0x20b   : > { %14641 = vmatpush1.bf16.msra.mxu0 %v20810_v16  ;;  %16117 = vmatpush1.bf16.msra.mxu1 %v20813_v11  ;;  %v20905_v16 = vld [vmem:[%s23910_s8 + $0xfa8] ss:$16 sps:$4 sm:$0xff]   ;;  %v20910_v11 = vld [vmem:[%s23910_s8 + $0xfc4] ss:$16 sps:$4 sm:$0xff]  }
 0x20c   : > { %14642 = vmatprep.subr.bf16.mxu0 %v20818_v19  ;;  %16118 = vmatprep.subr.bf16.mxu1 %v20821_v20  ;;  %v20913_v19 = vld [vmem:[%s23910_s8 + $0xfcc] ss:$16 sps:$4 sm:$0xff]   ;;  %v20908_v20 = vld [vmem:[%s23910_s8 + $0xfc0] ss:$16 sps:$4 sm:$0xff]  }
 0x20f   : > { %14643 = vmatpush1.bf16.msra.mxu0 %v20816_v14  ;;  %16119 = vmatpush1.bf16.msra.mxu1 %v20819_v22  ;;  %v20911_v14 = vld [vmem:[%s23910_s8 + $0xfc8] ss:$16 sps:$4 sm:$0xff]   ;;  %v20916_v22 = vld [vmem:[%s23910_s8 + $0xfe4] ss:$16 sps:$4 sm:$0xff]  }
 0x210   : > { %14653 = vmatprep.subr.bf16.mxu0 %v20826_v23  ;;  %16129 = vmatprep.subr.bf16.mxu1 %v20829_v17  ;;  %v20919_v23 = vld [vmem:[%s23910_s8 + $0xfec] ss:$16 sps:$4 sm:$0xff]   ;;  %v20914_v17 = vld [vmem:[%s23910_s8 + $0xfe0] ss:$16 sps:$4 sm:$0xff]  }
 0x212   : > { %14645 = vmatmul.mubr.bf16.vlgmr.msra.gmra.mrb[0].mxu0 %v17437_v25  ;;  %16121 = vmatmul.mubr.bf16.vlgmr.msra.gmra.mrb[0].mxu1 %v17437_v25  ;;  %v20917_v25 = vld [vmem:[%s23910_s8 + $0xfe8] ss:$16 sps:$4 sm:$0xff]  }
 0x213   : > { %14654 = vmatpush1.bf16.msra.mxu0 %v20824_v26  ;;  %16130 = vmatpush1.bf16.msra.mxu1 %v20827_v18  ;;  %v20924_v26 = vld [vmem:[%s23910_s8 + $0x1004] ss:$16 sps:$4 sm:$0xff]   ;;  %v20927_v18 = vld [vmem:[%s23910_s8 + $0x100c] ss:$16 sps:$4 sm:$0xff]  }
 0x214   : > { %14655 = vmatprep.subr.bf16.mxu0 %v20832_v27  ;;  %16131 = vmatprep.subr.bf16.mxu1 %v20835_v28  ;;  %v24503_v27 = vld [vmem:[%s26563_s0 + $0x40] sm:$0xff]  ;;  %v17439_v28 = vcombine.low %v24430_v24, %v24430_v24 }
 0x215   : > { %14685 = vmatprep.mubr.bf16.mxu0 %v17440_v29  ;;  %16161 = vmatprep.mubr.bf16.mxu1 %v17440_v29  ;;  %v20922_v29 = vld [vmem:[%s23910_s8 + $0x1000] ss:$16 sps:$4 sm:$0xff]  }
 0x216   : > { %v20928_v24 = vld [vmem:[%s23910_s8 + $0x1020] ss:$16 sps:$4 sm:$0xff]  }
 0x217   : > { %14656 = vmatpush1.bf16.msra.mxu0 %v20830_v21  ;;  %16132 = vmatpush1.bf16.msra.mxu1 %v20833_v30  ;;  %v20925_v21 = vld [vmem:[%s23910_s8 + $0x1008] ss:$16 sps:$4 sm:$0xff]   ;;  %v20930_v30 = vld [vmem:[%s23910_s8 + $0x1024] ss:$16 sps:$4 sm:$0xff]  }
 0x218   : > { %14657 = vmatprep.subr.bf16.mxu0 %v20838_v31  ;;  %16133 = vmatprep.subr.bf16.mxu1 %v20841_v32  ;;  %v20933_v31 = vld [vmem:[%s23910_s8 + $0x102c] ss:$16 sps:$4 sm:$0xff]   ;;  %v17442_v32 = vcombine.high %v24503_v27, %v24503_v27 }
 0x21b   : > { %14658 = vmatpush1.bf16.msra.mxu0 %v20836_v33  ;;  %16134 = vmatpush1.bf16.msra.mxu1 %v20839_v34  ;;  %v20931_v33 = vld [vmem:[%s23910_s8 + $0x1028] ss:$16 sps:$4 sm:$0xff]   ;;  %v20936_v34 = vld [vmem:[%s23910_s8 + $0x1044] ss:$16 sps:$4 sm:$0xff]  }
 0x21c   : > { %14659 = vmatprep.subr.bf16.mxu0 %v20844_v35  ;;  %16135 = vmatprep.subr.bf16.mxu1 %v20847_v36  ;;  %v20939_v35 = vld [vmem:[%s23910_s8 + $0x104c] ss:$16 sps:$4 sm:$0xff]   ;;  %v20934_v36 = vld [vmem:[%s23910_s8 + $0x1040] ss:$16 sps:$4 sm:$0xff]  }
 0x21f   : > { %14660 = vmatpush1.bf16.msra.mxu0 %v20842_v37  ;;  %16136 = vmatpush1.bf16.msra.mxu1 %v20845_v38  ;;  %v20937_v37 = vld [vmem:[%s23910_s8 + $0x1048] ss:$16 sps:$4 sm:$0xff]   ;;  %v20942_v38 = vld [vmem:[%s23910_s8 + $0x1064] ss:$16 sps:$4 sm:$0xff]  }
 0x220   : > { %14661 = vmatprep.subr.bf16.mxu0 %v20850_v39  ;;  %16137 = vmatprep.subr.bf16.mxu1 %v20853_v40  ;;  %v20945_v39 = vld [vmem:[%s23910_s8 + $0x106c] ss:$16 sps:$4 sm:$0xff]   ;;  %v20940_v40 = vld [vmem:[%s23910_s8 + $0x1060] ss:$16 sps:$4 sm:$0xff]  }
 0x223   : > { %14662 = vmatpush1.bf16.msra.mxu0 %v20848_v41  ;;  %16138 = vmatpush1.bf16.msra.mxu1 %v20851_v42  ;;  %v20943_v41 = vld [vmem:[%s23910_s8 + $0x1068] ss:$16 sps:$4 sm:$0xff]   ;;  %v20948_v42 = vld [vmem:[%s23910_s8 + $0x1084] ss:$16 sps:$4 sm:$0xff]  }
 0x224   : > { %14663 = vmatprep.subr.bf16.mxu0 %v20856_v43  ;;  %16139 = vmatprep.subr.bf16.mxu1 %v20859_v44  ;;  %v20951_v43 = vld [vmem:[%s23910_s8 + $0x108c] ss:$16 sps:$4 sm:$0xff]   ;;  %v20946_v44 = vld [vmem:[%s23910_s8 + $0x1080] ss:$16 sps:$4 sm:$0xff]  }
 0x227   : > { %14664 = vmatpush1.bf16.msra.mxu0 %v20854_v45  ;;  %16140 = vmatpush1.bf16.msra.mxu1 %v20857_v46  ;;  %v20949_v45 = vld [vmem:[%s23910_s8 + $0x1088] ss:$16 sps:$4 sm:$0xff]   ;;  %v20954_v46 = vld [vmem:[%s23910_s8 + $0x10a4] ss:$16 sps:$4 sm:$0xff]  }
 0x228   : > { %14665 = vmatprep.subr.bf16.mxu0 %v20862_v47  ;;  %16141 = vmatprep.subr.bf16.mxu1 %v20865_v48  ;;  %v20957_v47 = vld [vmem:[%s23910_s8 + $0x10ac] ss:$16 sps:$4 sm:$0xff]   ;;  %v20952_v48 = vld [vmem:[%s23910_s8 + $0x10a0] ss:$16 sps:$4 sm:$0xff]  }
 0x22b   : > { %14666 = vmatpush1.bf16.msra.mxu0 %v20860_v49  ;;  %16142 = vmatpush1.bf16.msra.mxu1 %v20863_v50  ;;  %v20955_v49 = vld [vmem:[%s23910_s8 + $0x10a8] ss:$16 sps:$4 sm:$0xff]   ;;  %v20960_v50 = vld [vmem:[%s23910_s8 + $0x10c4] ss:$16 sps:$4 sm:$0xff]  }
 0x22c   : > { %14667 = vmatprep.subr.bf16.mxu0 %v20868_v51  ;;  %16143 = vmatprep.subr.bf16.mxu1 %v20871_v52  ;;  %v20963_v51 = vld [vmem:[%s23910_s8 + $0x10cc] ss:$16 sps:$4 sm:$0xff]   ;;  %v20958_v52 = vld [vmem:[%s23910_s8 + $0x10c0] ss:$16 sps:$4 sm:$0xff]  }
 0x22f   : > { %14668 = vmatpush1.bf16.msra.mxu0 %v20866_v53  ;;  %16144 = vmatpush1.bf16.msra.mxu1 %v20869_v54  ;;  %v20961_v53 = vld [vmem:[%s23910_s8 + $0x10c8] ss:$16 sps:$4 sm:$0xff]   ;;  %v20966_v54 = vld [vmem:[%s23910_s8 + $0x10e4] ss:$16 sps:$4 sm:$0xff]  }
 0x230   : > { %14669 = vmatprep.subr.bf16.mxu0 %v20874_v55  ;;  %16145 = vmatprep.subr.bf16.mxu1 %v20877_v56  ;;  %v20969_v55 = vld [vmem:[%s23910_s8 + $0x10ec] ss:$16 sps:$4 sm:$0xff]   ;;  %v20964_v56 = vld [vmem:[%s23910_s8 + $0x10e0] ss:$16 sps:$4 sm:$0xff]  }
 0x233   : > { %14670 = vmatpush1.bf16.msra.mxu0 %v20872_v57  ;;  %16146 = vmatpush1.bf16.msra.mxu1 %v20875_v58  ;;  %v20967_v57 = vld [vmem:[%s23910_s8 + $0x10e8] ss:$16 sps:$4 sm:$0xff]   ;;  %v20972_v58 = vld [vmem:[%s23910_s8 + $0x1104] ss:$16 sps:$4 sm:$0xff]  }
 0x234   : > { %14671 = vmatprep.subr.bf16.mxu0 %v20880_v59  ;;  %16147 = vmatprep.subr.bf16.mxu1 %v20883_v60  ;;  %v20975_v59 = vld [vmem:[%s23910_s8 + $0x110c] ss:$16 sps:$4 sm:$0xff]   ;;  %v20970_v60 = vld [vmem:[%s23910_s8 + $0x1100] ss:$16 sps:$4 sm:$0xff]  }
 0x237   : > { %14672 = vmatpush1.bf16.msra.mxu0 %v20878_v61  ;;  %16148 = vmatpush1.bf16.msra.mxu1 %v20881_v62  ;;  %v20973_v61 = vld [vmem:[%s23910_s8 + $0x1108] ss:$16 sps:$4 sm:$0xff]   ;;  %v20978_v62 = vld [vmem:[%s23910_s8 + $0x1124] ss:$16 sps:$4 sm:$0xff]  }
 0x238   : > { %14673 = vmatprep.subr.bf16.mxu0 %v20886_v63  ;;  %16149 = vmatprep.subr.bf16.mxu1 %v20889_v0  ;;  %v20981_v63 = vld [vmem:[%s23910_s8 + $0x112c] ss:$16 sps:$4 sm:$0xff]   ;;  %v20976_v0 = vld [vmem:[%s23910_s8 + $0x1120] ss:$16 sps:$4 sm:$0xff]  }
 0x23b   : > { %14674 = vmatpush1.bf16.msra.mxu0 %v20884_v1  ;;  %16150 = vmatpush1.bf16.msra.mxu1 %v20887_v2  ;;  %v20979_v1 = vld [vmem:[%s23910_s8 + $0x1128] ss:$16 sps:$4 sm:$0xff]   ;;  %v20984_v2 = vld [vmem:[%s23910_s8 + $0x1144] ss:$16 sps:$4 sm:$0xff]  }
 0x23c   : > { %14675 = vmatprep.subr.bf16.mxu0 %v20892_v3  ;;  %16151 = vmatprep.subr.bf16.mxu1 %v20895_v4  ;;  %v20987_v3 = vld [vmem:[%s23910_s8 + $0x114c] ss:$16 sps:$4 sm:$0xff]   ;;  %v20982_v4 = vld [vmem:[%s23910_s8 + $0x1140] ss:$16 sps:$4 sm:$0xff]  }
 0x23f   : > { %14676 = vmatpush1.bf16.msra.mxu0 %v20890_v5  ;;  %16152 = vmatpush1.bf16.msra.mxu1 %v20893_v6  ;;  %v20985_v5 = vld [vmem:[%s23910_s8 + $0x1148] ss:$16 sps:$4 sm:$0xff]   ;;  %v20990_v6 = vld [vmem:[%s23910_s8 + $0x1164] ss:$16 sps:$4 sm:$0xff]  }
 0x240   : > { %14677 = vmatprep.subr.bf16.mxu0 %v20898_v7  ;;  %16153 = vmatprep.subr.bf16.mxu1 %v20901_v8  ;;  %v20993_v7 = vld [vmem:[%s23910_s8 + $0x116c] ss:$16 sps:$4 sm:$0xff]   ;;  %v20988_v8 = vld [vmem:[%s23910_s8 + $0x1160] ss:$16 sps:$4 sm:$0xff]  }
 0x243   : > { %14678 = vmatpush1.bf16.msra.mxu0 %v20896_v9  ;;  %16154 = vmatpush1.bf16.msra.mxu1 %v20899_v10  ;;  %v20991_v9 = vld [vmem:[%s23910_s8 + $0x1168] ss:$16 sps:$4 sm:$0xff]   ;;  %v20996_v10 = vld [vmem:[%s23910_s8 + $0x1184] ss:$16 sps:$4 sm:$0xff]  }
 0x244   : > { %14679 = vmatprep.subr.bf16.mxu0 %v20904_v12  ;;  %16155 = vmatprep.subr.bf16.mxu1 %v20907_v13  ;;  %v20999_v12 = vld [vmem:[%s23910_s8 + $0x118c] ss:$16 sps:$4 sm:$0xff]   ;;  %v20994_v13 = vld [vmem:[%s23910_s8 + $0x1180] ss:$16 sps:$4 sm:$0xff]  }
 0x247   : > { %14680 = vmatpush1.bf16.msra.mxu0 %v20902_v15  ;;  %16156 = vmatpush1.bf16.msra.mxu1 %v20905_v16  ;;  %v20997_v15 = vld [vmem:[%s23910_s8 + $0x1188] ss:$16 sps:$4 sm:$0xff]   ;;  %v21002_v16 = vld [vmem:[%s23910_s8 + $0x11a4] ss:$16 sps:$4 sm:$0xff]  }
 0x248   : > { %14681 = vmatprep.subr.bf16.mxu0 %v20910_v11  ;;  %16157 = vmatprep.subr.bf16.mxu1 %v20913_v19  ;;  %v21005_v11 = vld [vmem:[%s23910_s8 + $0x11ac] ss:$16 sps:$4 sm:$0xff]   ;;  %v21000_v19 = vld [vmem:[%s23910_s8 + $0x11a0] ss:$16 sps:$4 sm:$0xff]  }
 0x24b   : > { %14682 = vmatpush1.bf16.msra.mxu0 %v20908_v20  ;;  %16158 = vmatpush1.bf16.msra.mxu1 %v20911_v14  ;;  %v21003_v20 = vld [vmem:[%s23910_s8 + $0x11a8] ss:$16 sps:$4 sm:$0xff]   ;;  %v21008_v14 = vld [vmem:[%s23910_s8 + $0x11c4] ss:$16 sps:$4 sm:$0xff]  }
 0x24c   : > { %14683 = vmatprep.subr.bf16.mxu0 %v20916_v22  ;;  %16159 = vmatprep.subr.bf16.mxu1 %v20919_v23  ;;  %v21011_v22 = vld [vmem:[%s23910_s8 + $0x11cc] ss:$16 sps:$4 sm:$0xff]   ;;  %v21006_v23 = vld [vmem:[%s23910_s8 + $0x11c0] ss:$16 sps:$4 sm:$0xff]  }
 0x24f   : > { %14684 = vmatpush1.bf16.msra.mxu0 %v20914_v17  ;;  %16160 = vmatpush1.bf16.msra.mxu1 %v20917_v25  ;;  %v21009_v17 = vld [vmem:[%s23910_s8 + $0x11c8] ss:$16 sps:$4 sm:$0xff]   ;;  %v21014_v25 = vld [vmem:[%s23910_s8 + $0x11e4] ss:$16 sps:$4 sm:$0xff]  }
 0x250   : > { %14694 = vmatprep.subr.bf16.mxu0 %v20924_v26  ;;  %16170 = vmatprep.subr.bf16.mxu1 %v20927_v18  ;;  %v21017_v26 = vld [vmem:[%s23910_s8 + $0x11ec] ss:$16 sps:$4 sm:$0xff]   ;;  %v21012_v18 = vld [vmem:[%s23910_s8 + $0x11e0] ss:$16 sps:$4 sm:$0xff]  }
 0x252   : > { %14686 = vmatmul.mubr.bf16.vlgmr.msra.gmra.mrb[0].mxu0 %v17439_v28  ;;  %16162 = vmatmul.mubr.bf16.vlgmr.msra.gmra.mrb[0].mxu1 %v17439_v28  ;;  %v21015_v28 = vld [vmem:[%s23910_s8 + $0x11e8] ss:$16 sps:$4 sm:$0xff]  }
 0x253   : > { %14695 = vmatpush1.bf16.msra.mxu0 %v20922_v29  ;;  %16171 = vmatpush1.bf16.msra.mxu1 %v20925_v21  ;;  %v21022_v29 = vld [vmem:[%s23910_s8 + $0x1204] ss:$16 sps:$4 sm:$0xff]   ;;  %v21025_v21 = vld [vmem:[%s23910_s8 + $0x120c] ss:$16 sps:$4 sm:$0xff]  }
 0x254   : > { %14696 = vmatprep.subr.bf16.mxu0 %v20930_v30  ;;  %16172 = vmatprep.subr.bf16.mxu1 %v20933_v31  ;;  %v24576_v30 = vld [vmem:[%s26563_s0 + $0x48] sm:$0xff]  ;;  %v17441_v31 = vcombine.low %v24503_v27, %v24503_v27  ;;  %v21026_v27 = vld [vmem:[%s23910_s8 + $0x1220] ss:$16 sps:$4 sm:$0xff]  }
 0x255   : > { %14726 = vmatprep.mubr.bf16.mxu0 %v17442_v32  ;;  %16202 = vmatprep.mubr.bf16.mxu1 %v17442_v32  ;;  %v21020_v32 = vld [vmem:[%s23910_s8 + $0x1200] ss:$16 sps:$4 sm:$0xff]  }
 0x257   : > { %14697 = vmatpush1.bf16.msra.mxu0 %v20928_v24  ;;  %16173 = vmatpush1.bf16.msra.mxu1 %v20931_v33  ;;  %v21023_v24 = vld [vmem:[%s23910_s8 + $0x1208] ss:$16 sps:$4 sm:$0xff]   ;;  %v21028_v33 = vld [vmem:[%s23910_s8 + $0x1224] ss:$16 sps:$4 sm:$0xff]  }
 0x258   : > { %14698 = vmatprep.subr.bf16.mxu0 %v20936_v34  ;;  %16174 = vmatprep.subr.bf16.mxu1 %v20939_v35  ;;  %v21031_v34 = vld [vmem:[%s23910_s8 + $0x122c] ss:$16 sps:$4 sm:$0xff]   ;;  %v17444_v35 = vcombine.high %v24576_v30, %v24576_v30 }
 0x25b   : > { %14699 = vmatpush1.bf16.msra.mxu0 %v20934_v36  ;;  %16175 = vmatpush1.bf16.msra.mxu1 %v20937_v37  ;;  %v21029_v36 = vld [vmem:[%s23910_s8 + $0x1228] ss:$16 sps:$4 sm:$0xff]   ;;  %v21034_v37 = vld [vmem:[%s23910_s8 + $0x1244] ss:$16 sps:$4 sm:$0xff]  }
 0x25c   : > { %14700 = vmatprep.subr.bf16.mxu0 %v20942_v38  ;;  %16176 = vmatprep.subr.bf16.mxu1 %v20945_v39  ;;  %v21037_v38 = vld [vmem:[%s23910_s8 + $0x124c] ss:$16 sps:$4 sm:$0xff]   ;;  %v21032_v39 = vld [vmem:[%s23910_s8 + $0x1240] ss:$16 sps:$4 sm:$0xff]  }
 0x25f   : > { %14701 = vmatpush1.bf16.msra.mxu0 %v20940_v40  ;;  %16177 = vmatpush1.bf16.msra.mxu1 %v20943_v41  ;;  %v21035_v40 = vld [vmem:[%s23910_s8 + $0x1248] ss:$16 sps:$4 sm:$0xff]   ;;  %v21040_v41 = vld [vmem:[%s23910_s8 + $0x1264] ss:$16 sps:$4 sm:$0xff]  }
 0x260   : > { %14702 = vmatprep.subr.bf16.mxu0 %v20948_v42  ;;  %16178 = vmatprep.subr.bf16.mxu1 %v20951_v43  ;;  %v21043_v42 = vld [vmem:[%s23910_s8 + $0x126c] ss:$16 sps:$4 sm:$0xff]   ;;  %v21038_v43 = vld [vmem:[%s23910_s8 + $0x1260] ss:$16 sps:$4 sm:$0xff]  }
 0x263   : > { %14703 = vmatpush1.bf16.msra.mxu0 %v20946_v44  ;;  %16179 = vmatpush1.bf16.msra.mxu1 %v20949_v45  ;;  %v21041_v44 = vld [vmem:[%s23910_s8 + $0x1268] ss:$16 sps:$4 sm:$0xff]   ;;  %v21046_v45 = vld [vmem:[%s23910_s8 + $0x1284] ss:$16 sps:$4 sm:$0xff]  }
 0x264   : > { %14704 = vmatprep.subr.bf16.mxu0 %v20954_v46  ;;  %16180 = vmatprep.subr.bf16.mxu1 %v20957_v47  ;;  %v21049_v46 = vld [vmem:[%s23910_s8 + $0x128c] ss:$16 sps:$4 sm:$0xff]   ;;  %v21044_v47 = vld [vmem:[%s23910_s8 + $0x1280] ss:$16 sps:$4 sm:$0xff]  }
 0x267   : > { %14705 = vmatpush1.bf16.msra.mxu0 %v20952_v48  ;;  %16181 = vmatpush1.bf16.msra.mxu1 %v20955_v49  ;;  %v21047_v48 = vld [vmem:[%s23910_s8 + $0x1288] ss:$16 sps:$4 sm:$0xff]   ;;  %v21052_v49 = vld [vmem:[%s23910_s8 + $0x12a4] ss:$16 sps:$4 sm:$0xff]  }
 0x268   : > { %14706 = vmatprep.subr.bf16.mxu0 %v20960_v50  ;;  %16182 = vmatprep.subr.bf16.mxu1 %v20963_v51  ;;  %v21055_v50 = vld [vmem:[%s23910_s8 + $0x12ac] ss:$16 sps:$4 sm:$0xff]   ;;  %v21050_v51 = vld [vmem:[%s23910_s8 + $0x12a0] ss:$16 sps:$4 sm:$0xff]  }
 0x26b   : > { %14707 = vmatpush1.bf16.msra.mxu0 %v20958_v52  ;;  %16183 = vmatpush1.bf16.msra.mxu1 %v20961_v53  ;;  %v21053_v52 = vld [vmem:[%s23910_s8 + $0x12a8] ss:$16 sps:$4 sm:$0xff]   ;;  %v21058_v53 = vld [vmem:[%s23910_s8 + $0x12c4] ss:$16 sps:$4 sm:$0xff]  }
 0x26c   : > { %14708 = vmatprep.subr.bf16.mxu0 %v20966_v54  ;;  %16184 = vmatprep.subr.bf16.mxu1 %v20969_v55  ;;  %v21061_v54 = vld [vmem:[%s23910_s8 + $0x12cc] ss:$16 sps:$4 sm:$0xff]   ;;  %v21056_v55 = vld [vmem:[%s23910_s8 + $0x12c0] ss:$16 sps:$4 sm:$0xff]  }
 0x26f   : > { %14709 = vmatpush1.bf16.msra.mxu0 %v20964_v56  ;;  %16185 = vmatpush1.bf16.msra.mxu1 %v20967_v57  ;;  %v21059_v56 = vld [vmem:[%s23910_s8 + $0x12c8] ss:$16 sps:$4 sm:$0xff]   ;;  %v21064_v57 = vld [vmem:[%s23910_s8 + $0x12e4] ss:$16 sps:$4 sm:$0xff]  }
 0x270   : > { %14710 = vmatprep.subr.bf16.mxu0 %v20972_v58  ;;  %16186 = vmatprep.subr.bf16.mxu1 %v20975_v59  ;;  %v21067_v58 = vld [vmem:[%s23910_s8 + $0x12ec] ss:$16 sps:$4 sm:$0xff]   ;;  %v21062_v59 = vld [vmem:[%s23910_s8 + $0x12e0] ss:$16 sps:$4 sm:$0xff]  }
 0x273   : > { %14711 = vmatpush1.bf16.msra.mxu0 %v20970_v60  ;;  %16187 = vmatpush1.bf16.msra.mxu1 %v20973_v61  ;;  %v21065_v60 = vld [vmem:[%s23910_s8 + $0x12e8] ss:$16 sps:$4 sm:$0xff]   ;;  %v21070_v61 = vld [vmem:[%s23910_s8 + $0x1304] ss:$16 sps:$4 sm:$0xff]  }
 0x274   : > { %14712 = vmatprep.subr.bf16.mxu0 %v20978_v62  ;;  %16188 = vmatprep.subr.bf16.mxu1 %v20981_v63  ;;  %v21073_v62 = vld [vmem:[%s23910_s8 + $0x130c] ss:$16 sps:$4 sm:$0xff]   ;;  %v21068_v63 = vld [vmem:[%s23910_s8 + $0x1300] ss:$16 sps:$4 sm:$0xff]  }
 0x277   : > { %14713 = vmatpush1.bf16.msra.mxu0 %v20976_v0  ;;  %16189 = vmatpush1.bf16.msra.mxu1 %v20979_v1  ;;  %v21071_v0 = vld [vmem:[%s23910_s8 + $0x1308] ss:$16 sps:$4 sm:$0xff]   ;;  %v21076_v1 = vld [vmem:[%s23910_s8 + $0x1324] ss:$16 sps:$4 sm:$0xff]  }
 0x278   : > { %14714 = vmatprep.subr.bf16.mxu0 %v20984_v2  ;;  %16190 = vmatprep.subr.bf16.mxu1 %v20987_v3  ;;  %v21079_v2 = vld [vmem:[%s23910_s8 + $0x132c] ss:$16 sps:$4 sm:$0xff]   ;;  %v21074_v3 = vld [vmem:[%s23910_s8 + $0x1320] ss:$16 sps:$4 sm:$0xff]  }
 0x27b   : > { %14715 = vmatpush1.bf16.msra.mxu0 %v20982_v4  ;;  %16191 = vmatpush1.bf16.msra.mxu1 %v20985_v5  ;;  %v21077_v4 = vld [vmem:[%s23910_s8 + $0x1328] ss:$16 sps:$4 sm:$0xff]   ;;  %v21082_v5 = vld [vmem:[%s23910_s8 + $0x1344] ss:$16 sps:$4 sm:$0xff]  }
 0x27c   : > { %14716 = vmatprep.subr.bf16.mxu0 %v20990_v6  ;;  %16192 = vmatprep.subr.bf16.mxu1 %v20993_v7  ;;  %v21085_v6 = vld [vmem:[%s23910_s8 + $0x134c] ss:$16 sps:$4 sm:$0xff]   ;;  %v21080_v7 = vld [vmem:[%s23910_s8 + $0x1340] ss:$16 sps:$4 sm:$0xff]  }
 0x27f   : > { %14717 = vmatpush1.bf16.msra.mxu0 %v20988_v8  ;;  %16193 = vmatpush1.bf16.msra.mxu1 %v20991_v9  ;;  %v21083_v8 = vld [vmem:[%s23910_s8 + $0x1348] ss:$16 sps:$4 sm:$0xff]   ;;  %v21088_v9 = vld [vmem:[%s23910_s8 + $0x1364] ss:$16 sps:$4 sm:$0xff]  }
 0x280   : > { %14718 = vmatprep.subr.bf16.mxu0 %v20996_v10  ;;  %16194 = vmatprep.subr.bf16.mxu1 %v20999_v12  ;;  %v21091_v10 = vld [vmem:[%s23910_s8 + $0x136c] ss:$16 sps:$4 sm:$0xff]   ;;  %v21086_v12 = vld [vmem:[%s23910_s8 + $0x1360] ss:$16 sps:$4 sm:$0xff]  }
 0x283   : > { %14719 = vmatpush1.bf16.msra.mxu0 %v20994_v13  ;;  %16195 = vmatpush1.bf16.msra.mxu1 %v20997_v15  ;;  %v21089_v13 = vld [vmem:[%s23910_s8 + $0x1368] ss:$16 sps:$4 sm:$0xff]   ;;  %v21094_v15 = vld [vmem:[%s23910_s8 + $0x1384] ss:$16 sps:$4 sm:$0xff]  }
 0x284   : > { %14720 = vmatprep.subr.bf16.mxu0 %v21002_v16  ;;  %16196 = vmatprep.subr.bf16.mxu1 %v21005_v11  ;;  %v21097_v16 = vld [vmem:[%s23910_s8 + $0x138c] ss:$16 sps:$4 sm:$0xff]   ;;  %v21092_v11 = vld [vmem:[%s23910_s8 + $0x1380] ss:$16 sps:$4 sm:$0xff]  }
 0x287   : > { %14721 = vmatpush1.bf16.msra.mxu0 %v21000_v19  ;;  %16197 = vmatpush1.bf16.msra.mxu1 %v21003_v20  ;;  %v21095_v19 = vld [vmem:[%s23910_s8 + $0x1388] ss:$16 sps:$4 sm:$0xff]   ;;  %v21100_v20 = vld [vmem:[%s23910_s8 + $0x13a4] ss:$16 sps:$4 sm:$0xff]  }
 0x288   : > { %14722 = vmatprep.subr.bf16.mxu0 %v21008_v14  ;;  %16198 = vmatprep.subr.bf16.mxu1 %v21011_v22  ;;  %v21103_v14 = vld [vmem:[%s23910_s8 + $0x13ac] ss:$16 sps:$4 sm:$0xff]   ;;  %v21098_v22 = vld [vmem:[%s23910_s8 + $0x13a0] ss:$16 sps:$4 sm:$0xff]  }
 0x28b   : > { %14723 = vmatpush1.bf16.msra.mxu0 %v21006_v23  ;;  %16199 = vmatpush1.bf16.msra.mxu1 %v21009_v17  ;;  %v21101_v23 = vld [vmem:[%s23910_s8 + $0x13a8] ss:$16 sps:$4 sm:$0xff]   ;;  %v21106_v17 = vld [vmem:[%s23910_s8 + $0x13c4] ss:$16 sps:$4 sm:$0xff]  }
 0x28c   : > { %14724 = vmatprep.subr.bf16.mxu0 %v21014_v25  ;;  %16200 = vmatprep.subr.bf16.mxu1 %v21017_v26  ;;  %v21109_v25 = vld [vmem:[%s23910_s8 + $0x13cc] ss:$16 sps:$4 sm:$0xff]   ;;  %v21104_v26 = vld [vmem:[%s23910_s8 + $0x13c0] ss:$16 sps:$4 sm:$0xff]  }
 0x28f   : > { %14725 = vmatpush1.bf16.msra.mxu0 %v21012_v18  ;;  %16201 = vmatpush1.bf16.msra.mxu1 %v21015_v28  ;;  %v21107_v18 = vld [vmem:[%s23910_s8 + $0x13c8] ss:$16 sps:$4 sm:$0xff]   ;;  %v21112_v28 = vld [vmem:[%s23910_s8 + $0x13e4] ss:$16 sps:$4 sm:$0xff]  }
 0x290   : > { %14735 = vmatprep.subr.bf16.mxu0 %v21022_v29  ;;  %16211 = vmatprep.subr.bf16.mxu1 %v21025_v21  ;;  %v21115_v29 = vld [vmem:[%s23910_s8 + $0x13ec] ss:$16 sps:$4 sm:$0xff]   ;;  %v21110_v21 = vld [vmem:[%s23910_s8 + $0x13e0] ss:$16 sps:$4 sm:$0xff]  }
 0x292   : > { %14727 = vmatmul.mubr.bf16.vlgmr.msra.gmra.mrb[0].mxu0 %v17441_v31  ;;  %16203 = vmatmul.mubr.bf16.vlgmr.msra.gmra.mrb[0].mxu1 %v17441_v31  ;;  %v21113_v31 = vld [vmem:[%s23910_s8 + $0x13e8] ss:$16 sps:$4 sm:$0xff]  }
 0x293   : > { %14736 = vmatpush1.bf16.msra.mxu0 %v21020_v32  ;;  %16212 = vmatpush1.bf16.msra.mxu1 %v21023_v24  ;;  %v21120_v32 = vld [vmem:[%s23910_s8 + $0x1404] ss:$16 sps:$4 sm:$0xff]   ;;  %v21123_v24 = vld [vmem:[%s23910_s8 + $0x140c] ss:$16 sps:$4 sm:$0xff]  }
 0x294   : > { %14737 = vmatprep.subr.bf16.mxu0 %v21028_v33  ;;  %16213 = vmatprep.subr.bf16.mxu1 %v21031_v34  ;;  %v24649_v33 = vld [vmem:[%s26563_s0 + $0x50] sm:$0xff]  ;;  %v17443_v34 = vcombine.low %v24576_v30, %v24576_v30 }
 0x295   : > { %14767 = vmatprep.mubr.bf16.mxu0 %v17444_v35  ;;  %16243 = vmatprep.mubr.bf16.mxu1 %v17444_v35  ;;  %v21118_v35 = vld [vmem:[%s23910_s8 + $0x1400] ss:$16 sps:$4 sm:$0xff]  }
 0x296   : > { %v21124_v30 = vld [vmem:[%s23910_s8 + $0x1420] ss:$16 sps:$4 sm:$0xff]  }
 0x297   : > { %14738 = vmatpush1.bf16.msra.mxu0 %v21026_v27  ;;  %16214 = vmatpush1.bf16.msra.mxu1 %v21029_v36  ;;  %v21121_v27 = vld [vmem:[%s23910_s8 + $0x1408] ss:$16 sps:$4 sm:$0xff]   ;;  %v21126_v36 = vld [vmem:[%s23910_s8 + $0x1424] ss:$16 sps:$4 sm:$0xff]  }
 0x298   : > { %14739 = vmatprep.subr.bf16.mxu0 %v21034_v37  ;;  %16215 = vmatprep.subr.bf16.mxu1 %v21037_v38  ;;  %v21129_v37 = vld [vmem:[%s23910_s8 + $0x142c] ss:$16 sps:$4 sm:$0xff]   ;;  %v17446_v38 = vcombine.high %v24649_v33, %v24649_v33 }
 0x29b   : > { %14740 = vmatpush1.bf16.msra.mxu0 %v21032_v39  ;;  %16216 = vmatpush1.bf16.msra.mxu1 %v21035_v40  ;;  %v21127_v39 = vld [vmem:[%s23910_s8 + $0x1428] ss:$16 sps:$4 sm:$0xff]   ;;  %v21132_v40 = vld [vmem:[%s23910_s8 + $0x1444] ss:$16 sps:$4 sm:$0xff]  }
 0x29c   : > { %14741 = vmatprep.subr.bf16.mxu0 %v21040_v41  ;;  %16217 = vmatprep.subr.bf16.mxu1 %v21043_v42  ;;  %v21135_v41 = vld [vmem:[%s23910_s8 + $0x144c] ss:$16 sps:$4 sm:$0xff]   ;;  %v21130_v42 = vld [vmem:[%s23910_s8 + $0x1440] ss:$16 sps:$4 sm:$0xff]  }
 0x29f   : > { %14742 = vmatpush1.bf16.msra.mxu0 %v21038_v43  ;;  %16218 = vmatpush1.bf16.msra.mxu1 %v21041_v44  ;;  %v21133_v43 = vld [vmem:[%s23910_s8 + $0x1448] ss:$16 sps:$4 sm:$0xff]   ;;  %v21138_v44 = vld [vmem:[%s23910_s8 + $0x1464] ss:$16 sps:$4 sm:$0xff]  }
 0x2a0   : > { %14743 = vmatprep.subr.bf16.mxu0 %v21046_v45  ;;  %16219 = vmatprep.subr.bf16.mxu1 %v21049_v46  ;;  %v21141_v45 = vld [vmem:[%s23910_s8 + $0x146c] ss:$16 sps:$4 sm:$0xff]   ;;  %v21136_v46 = vld [vmem:[%s23910_s8 + $0x1460] ss:$16 sps:$4 sm:$0xff]  }
 0x2a3   : > { %14744 = vmatpush1.bf16.msra.mxu0 %v21044_v47  ;;  %16220 = vmatpush1.bf16.msra.mxu1 %v21047_v48  ;;  %v21139_v47 = vld [vmem:[%s23910_s8 + $0x1468] ss:$16 sps:$4 sm:$0xff]   ;;  %v21144_v48 = vld [vmem:[%s23910_s8 + $0x1484] ss:$16 sps:$4 sm:$0xff]  }
 0x2a4   : > { %14745 = vmatprep.subr.bf16.mxu0 %v21052_v49  ;;  %16221 = vmatprep.subr.bf16.mxu1 %v21055_v50  ;;  %v21147_v49 = vld [vmem:[%s23910_s8 + $0x148c] ss:$16 sps:$4 sm:$0xff]   ;;  %v21142_v50 = vld [vmem:[%s23910_s8 + $0x1480] ss:$16 sps:$4 sm:$0xff]  }
 0x2a7   : > { %14746 = vmatpush1.bf16.msra.mxu0 %v21050_v51  ;;  %16222 = vmatpush1.bf16.msra.mxu1 %v21053_v52  ;;  %v21145_v51 = vld [vmem:[%s23910_s8 + $0x1488] ss:$16 sps:$4 sm:$0xff]   ;;  %v21150_v52 = vld [vmem:[%s23910_s8 + $0x14a4] ss:$16 sps:$4 sm:$0xff]  }
 0x2a8   : > { %14747 = vmatprep.subr.bf16.mxu0 %v21058_v53  ;;  %16223 = vmatprep.subr.bf16.mxu1 %v21061_v54  ;;  %v21153_v53 = vld [vmem:[%s23910_s8 + $0x14ac] ss:$16 sps:$4 sm:$0xff]   ;;  %v21148_v54 = vld [vmem:[%s23910_s8 + $0x14a0] ss:$16 sps:$4 sm:$0xff]  }
 0x2ab   : > { %14748 = vmatpush1.bf16.msra.mxu0 %v21056_v55  ;;  %16224 = vmatpush1.bf16.msra.mxu1 %v21059_v56  ;;  %v21151_v55 = vld [vmem:[%s23910_s8 + $0x14a8] ss:$16 sps:$4 sm:$0xff]   ;;  %v21156_v56 = vld [vmem:[%s23910_s8 + $0x14c4] ss:$16 sps:$4 sm:$0xff]  }
 0x2ac   : > { %14749 = vmatprep.subr.bf16.mxu0 %v21064_v57  ;;  %16225 = vmatprep.subr.bf16.mxu1 %v21067_v58  ;;  %v21159_v57 = vld [vmem:[%s23910_s8 + $0x14cc] ss:$16 sps:$4 sm:$0xff]   ;;  %v21154_v58 = vld [vmem:[%s23910_s8 + $0x14c0] ss:$16 sps:$4 sm:$0xff]  }
 0x2af   : > { %14750 = vmatpush1.bf16.msra.mxu0 %v21062_v59  ;;  %16226 = vmatpush1.bf16.msra.mxu1 %v21065_v60  ;;  %v21157_v59 = vld [vmem:[%s23910_s8 + $0x14c8] ss:$16 sps:$4 sm:$0xff]   ;;  %v21162_v60 = vld [vmem:[%s23910_s8 + $0x14e4] ss:$16 sps:$4 sm:$0xff]  }
 0x2b0   : > { %14751 = vmatprep.subr.bf16.mxu0 %v21070_v61  ;;  %16227 = vmatprep.subr.bf16.mxu1 %v21073_v62  ;;  %v21165_v61 = vld [vmem:[%s23910_s8 + $0x14ec] ss:$16 sps:$4 sm:$0xff]   ;;  %v21160_v62 = vld [vmem:[%s23910_s8 + $0x14e0] ss:$16 sps:$4 sm:$0xff]  }
 0x2b3   : > { %14752 = vmatpush1.bf16.msra.mxu0 %v21068_v63  ;;  %16228 = vmatpush1.bf16.msra.mxu1 %v21071_v0  ;;  %v21163_v63 = vld [vmem:[%s23910_s8 + $0x14e8] ss:$16 sps:$4 sm:$0xff]   ;;  %v21168_v0 = vld [vmem:[%s23910_s8 + $0x1504] ss:$16 sps:$4 sm:$0xff]  }
 0x2b4   : > { %14753 = vmatprep.subr.bf16.mxu0 %v21076_v1  ;;  %16229 = vmatprep.subr.bf16.mxu1 %v21079_v2  ;;  %v21171_v1 = vld [vmem:[%s23910_s8 + $0x150c] ss:$16 sps:$4 sm:$0xff]   ;;  %v21166_v2 = vld [vmem:[%s23910_s8 + $0x1500] ss:$16 sps:$4 sm:$0xff]  }
 0x2b7   : > { %14754 = vmatpush1.bf16.msra.mxu0 %v21074_v3  ;;  %16230 = vmatpush1.bf16.msra.mxu1 %v21077_v4  ;;  %v21169_v3 = vld [vmem:[%s23910_s8 + $0x1508] ss:$16 sps:$4 sm:$0xff]   ;;  %v21174_v4 = vld [vmem:[%s23910_s8 + $0x1524] ss:$16 sps:$4 sm:$0xff]  }
 0x2b8   : > { %14755 = vmatprep.subr.bf16.mxu0 %v21082_v5  ;;  %16231 = vmatprep.subr.bf16.mxu1 %v21085_v6  ;;  %v21177_v5 = vld [vmem:[%s23910_s8 + $0x152c] ss:$16 sps:$4 sm:$0xff]   ;;  %v21172_v6 = vld [vmem:[%s23910_s8 + $0x1520] ss:$16 sps:$4 sm:$0xff]  }
 0x2bb   : > { %14756 = vmatpush1.bf16.msra.mxu0 %v21080_v7  ;;  %16232 = vmatpush1.bf16.msra.mxu1 %v21083_v8  ;;  %v21175_v7 = vld [vmem:[%s23910_s8 + $0x1528] ss:$16 sps:$4 sm:$0xff]   ;;  %v21180_v8 = vld [vmem:[%s23910_s8 + $0x1544] ss:$16 sps:$4 sm:$0xff]  }
 0x2bc   : > { %14757 = vmatprep.subr.bf16.mxu0 %v21088_v9  ;;  %16233 = vmatprep.subr.bf16.mxu1 %v21091_v10  ;;  %v21183_v9 = vld [vmem:[%s23910_s8 + $0x154c] ss:$16 sps:$4 sm:$0xff]   ;;  %v21178_v10 = vld [vmem:[%s23910_s8 + $0x1540] ss:$16 sps:$4 sm:$0xff]  }
 0x2bf   : > { %14758 = vmatpush1.bf16.msra.mxu0 %v21086_v12  ;;  %16234 = vmatpush1.bf16.msra.mxu1 %v21089_v13  ;;  %v21181_v12 = vld [vmem:[%s23910_s8 + $0x1548] ss:$16 sps:$4 sm:$0xff]   ;;  %v21186_v13 = vld [vmem:[%s23910_s8 + $0x1564] ss:$16 sps:$4 sm:$0xff]  }
 0x2c0   : > { %14759 = vmatprep.subr.bf16.mxu0 %v21094_v15  ;;  %16235 = vmatprep.subr.bf16.mxu1 %v21097_v16  ;;  %v21189_v15 = vld [vmem:[%s23910_s8 + $0x156c] ss:$16 sps:$4 sm:$0xff]   ;;  %v21184_v16 = vld [vmem:[%s23910_s8 + $0x1560] ss:$16 sps:$4 sm:$0xff]  }
 0x2c3   : > { %14760 = vmatpush1.bf16.msra.mxu0 %v21092_v11  ;;  %16236 = vmatpush1.bf16.msra.mxu1 %v21095_v19  ;;  %v21187_v11 = vld [vmem:[%s23910_s8 + $0x1568] ss:$16 sps:$4 sm:$0xff]   ;;  %v21192_v19 = vld [vmem:[%s23910_s8 + $0x1584] ss:$16 sps:$4 sm:$0xff]  }
 0x2c4   : > { %14761 = vmatprep.subr.bf16.mxu0 %v21100_v20  ;;  %16237 = vmatprep.subr.bf16.mxu1 %v21103_v14  ;;  %v21195_v20 = vld [vmem:[%s23910_s8 + $0x158c] ss:$16 sps:$4 sm:$0xff]   ;;  %v21190_v14 = vld [vmem:[%s23910_s8 + $0x1580] ss:$16 sps:$4 sm:$0xff]  }
 0x2c7   : > { %14762 = vmatpush1.bf16.msra.mxu0 %v21098_v22  ;;  %16238 = vmatpush1.bf16.msra.mxu1 %v21101_v23  ;;  %v21193_v22 = vld [vmem:[%s23910_s8 + $0x1588] ss:$16 sps:$4 sm:$0xff]   ;;  %v21198_v23 = vld [vmem:[%s23910_s8 + $0x15a4] ss:$16 sps:$4 sm:$0xff]  }
 0x2c8   : > { %14763 = vmatprep.subr.bf16.mxu0 %v21106_v17  ;;  %16239 = vmatprep.subr.bf16.mxu1 %v21109_v25  ;;  %v21201_v17 = vld [vmem:[%s23910_s8 + $0x15ac] ss:$16 sps:$4 sm:$0xff]   ;;  %v21196_v25 = vld [vmem:[%s23910_s8 + $0x15a0] ss:$16 sps:$4 sm:$0xff]  }
 0x2cb   : > { %14764 = vmatpush1.bf16.msra.mxu0 %v21104_v26  ;;  %16240 = vmatpush1.bf16.msra.mxu1 %v21107_v18  ;;  %v21199_v26 = vld [vmem:[%s23910_s8 + $0x15a8] ss:$16 sps:$4 sm:$0xff]   ;;  %v21204_v18 = vld [vmem:[%s23910_s8 + $0x15c4] ss:$16 sps:$4 sm:$0xff]  }
 0x2cc   : > { %14765 = vmatprep.subr.bf16.mxu0 %v21112_v28  ;;  %16241 = vmatprep.subr.bf16.mxu1 %v21115_v29  ;;  %v21207_v28 = vld [vmem:[%s23910_s8 + $0x15cc] ss:$16 sps:$4 sm:$0xff]   ;;  %v21202_v29 = vld [vmem:[%s23910_s8 + $0x15c0] ss:$16 sps:$4 sm:$0xff]  }
 0x2cf   : > { %14766 = vmatpush1.bf16.msra.mxu0 %v21110_v21  ;;  %16242 = vmatpush1.bf16.msra.mxu1 %v21113_v31  ;;  %v21205_v21 = vld [vmem:[%s23910_s8 + $0x15c8] ss:$16 sps:$4 sm:$0xff]   ;;  %v21210_v31 = vld [vmem:[%s23910_s8 + $0x15e4] ss:$16 sps:$4 sm:$0xff]  }
 0x2d0   : > { %14776 = vmatprep.subr.bf16.mxu0 %v21120_v32  ;;  %16252 = vmatprep.subr.bf16.mxu1 %v21123_v24  ;;  %v21213_v32 = vld [vmem:[%s23910_s8 + $0x15ec] ss:$16 sps:$4 sm:$0xff]   ;;  %v21208_v24 = vld [vmem:[%s23910_s8 + $0x15e0] ss:$16 sps:$4 sm:$0xff]  }
 0x2d2   : > { %14768 = vmatmul.mubr.bf16.vlgmr.msra.gmra.mrb[0].mxu0 %v17443_v34  ;;  %16244 = vmatmul.mubr.bf16.vlgmr.msra.gmra.mrb[0].mxu1 %v17443_v34  ;;  %v21211_v34 = vld [vmem:[%s23910_s8 + $0x15e8] ss:$16 sps:$4 sm:$0xff]  }
 0x2d3   : > { %14777 = vmatpush1.bf16.msra.mxu0 %v21118_v35  ;;  %16253 = vmatpush1.bf16.msra.mxu1 %v21121_v27  ;;  %v21218_v35 = vld [vmem:[%s23910_s8 + $0x1604] ss:$16 sps:$4 sm:$0xff]   ;;  %v21221_v27 = vld [vmem:[%s23910_s8 + $0x160c] ss:$16 sps:$4 sm:$0xff]  }
 0x2d4   : > { %14778 = vmatprep.subr.bf16.mxu0 %v21126_v36  ;;  %16254 = vmatprep.subr.bf16.mxu1 %v21129_v37  ;;  %v24722_v36 = vld [vmem:[%s26563_s0 + $0x58] sm:$0xff]  ;;  %v17445_v37 = vcombine.low %v24649_v33, %v24649_v33  ;;  %v21222_v33 = vld [vmem:[%s23910_s8 + $0x1620] ss:$16 sps:$4 sm:$0xff]  }
 0x2d5   : > { %14808 = vmatprep.mubr.bf16.mxu0 %v17446_v38  ;;  %16284 = vmatprep.mubr.bf16.mxu1 %v17446_v38  ;;  %v21216_v38 = vld [vmem:[%s23910_s8 + $0x1600] ss:$16 sps:$4 sm:$0xff]  }
 0x2d7   : > { %14779 = vmatpush1.bf16.msra.mxu0 %v21124_v30  ;;  %16255 = vmatpush1.bf16.msra.mxu1 %v21127_v39  ;;  %v21219_v30 = vld [vmem:[%s23910_s8 + $0x1608] ss:$16 sps:$4 sm:$0xff]   ;;  %v21224_v39 = vld [vmem:[%s23910_s8 + $0x1624] ss:$16 sps:$4 sm:$0xff]  }
 0x2d8   : > { %14780 = vmatprep.subr.bf16.mxu0 %v21132_v40  ;;  %16256 = vmatprep.subr.bf16.mxu1 %v21135_v41  ;;  %v21227_v40 = vld [vmem:[%s23910_s8 + $0x162c] ss:$16 sps:$4 sm:$0xff]   ;;  %v17448_v41 = vcombine.high %v24722_v36, %v24722_v36 }
 0x2db   : > { %14781 = vmatpush1.bf16.msra.mxu0 %v21130_v42  ;;  %16257 = vmatpush1.bf16.msra.mxu1 %v21133_v43  ;;  %v21225_v42 = vld [vmem:[%s23910_s8 + $0x1628] ss:$16 sps:$4 sm:$0xff]   ;;  %v21230_v43 = vld [vmem:[%s23910_s8 + $0x1644] ss:$16 sps:$4 sm:$0xff]  }
 0x2dc   : > { %14782 = vmatprep.subr.bf16.mxu0 %v21138_v44  ;;  %16258 = vmatprep.subr.bf16.mxu1 %v21141_v45  ;;  %v21233_v44 = vld [vmem:[%s23910_s8 + $0x164c] ss:$16 sps:$4 sm:$0xff]   ;;  %v21228_v45 = vld [vmem:[%s23910_s8 + $0x1640] ss:$16 sps:$4 sm:$0xff]  }
 0x2df   : > { %14783 = vmatpush1.bf16.msra.mxu0 %v21136_v46  ;;  %16259 = vmatpush1.bf16.msra.mxu1 %v21139_v47  ;;  %v21231_v46 = vld [vmem:[%s23910_s8 + $0x1648] ss:$16 sps:$4 sm:$0xff]   ;;  %v21236_v47 = vld [vmem:[%s23910_s8 + $0x1664] ss:$16 sps:$4 sm:$0xff]  }
 0x2e0   : > { %14784 = vmatprep.subr.bf16.mxu0 %v21144_v48  ;;  %16260 = vmatprep.subr.bf16.mxu1 %v21147_v49  ;;  %v21239_v48 = vld [vmem:[%s23910_s8 + $0x166c] ss:$16 sps:$4 sm:$0xff]   ;;  %v21234_v49 = vld [vmem:[%s23910_s8 + $0x1660] ss:$16 sps:$4 sm:$0xff]  }
 0x2e3   : > { %14785 = vmatpush1.bf16.msra.mxu0 %v21142_v50  ;;  %16261 = vmatpush1.bf16.msra.mxu1 %v21145_v51  ;;  %v21237_v50 = vld [vmem:[%s23910_s8 + $0x1668] ss:$16 sps:$4 sm:$0xff]   ;;  %v21242_v51 = vld [vmem:[%s23910_s8 + $0x1684] ss:$16 sps:$4 sm:$0xff]  }
 0x2e4   : > { %14786 = vmatprep.subr.bf16.mxu0 %v21150_v52  ;;  %16262 = vmatprep.subr.bf16.mxu1 %v21153_v53  ;;  %v21245_v52 = vld [vmem:[%s23910_s8 + $0x168c] ss:$16 sps:$4 sm:$0xff]   ;;  %v21240_v53 = vld [vmem:[%s23910_s8 + $0x1680] ss:$16 sps:$4 sm:$0xff]  }
 0x2e7   : > { %14787 = vmatpush1.bf16.msra.mxu0 %v21148_v54  ;;  %16263 = vmatpush1.bf16.msra.mxu1 %v21151_v55  ;;  %v21243_v54 = vld [vmem:[%s23910_s8 + $0x1688] ss:$16 sps:$4 sm:$0xff]   ;;  %v21248_v55 = vld [vmem:[%s23910_s8 + $0x16a4] ss:$16 sps:$4 sm:$0xff]  }
 0x2e8   : > { %14788 = vmatprep.subr.bf16.mxu0 %v21156_v56  ;;  %16264 = vmatprep.subr.bf16.mxu1 %v21159_v57  ;;  %v21251_v56 = vld [vmem:[%s23910_s8 + $0x16ac] ss:$16 sps:$4 sm:$0xff]   ;;  %v21246_v57 = vld [vmem:[%s23910_s8 + $0x16a0] ss:$16 sps:$4 sm:$0xff]  }
 0x2eb   : > { %14789 = vmatpush1.bf16.msra.mxu0 %v21154_v58  ;;  %16265 = vmatpush1.bf16.msra.mxu1 %v21157_v59  ;;  %v21249_v58 = vld [vmem:[%s23910_s8 + $0x16a8] ss:$16 sps:$4 sm:$0xff]   ;;  %v21254_v59 = vld [vmem:[%s23910_s8 + $0x16c4] ss:$16 sps:$4 sm:$0xff]  }
 0x2ec   : > { %14790 = vmatprep.subr.bf16.mxu0 %v21162_v60  ;;  %16266 = vmatprep.subr.bf16.mxu1 %v21165_v61  ;;  %v21257_v60 = vld [vmem:[%s23910_s8 + $0x16cc] ss:$16 sps:$4 sm:$0xff]   ;;  %v21252_v61 = vld [vmem:[%s23910_s8 + $0x16c0] ss:$16 sps:$4 sm:$0xff]  }
 0x2ef   : > { %14791 = vmatpush1.bf16.msra.mxu0 %v21160_v62  ;;  %16267 = vmatpush1.bf16.msra.mxu1 %v21163_v63  ;;  %v21255_v62 = vld [vmem:[%s23910_s8 + $0x16c8] ss:$16 sps:$4 sm:$0xff]   ;;  %v21260_v63 = vld [vmem:[%s23910_s8 + $0x16e4] ss:$16 sps:$4 sm:$0xff]  }
 0x2f0   : > { %14792 = vmatprep.subr.bf16.mxu0 %v21168_v0  ;;  %16268 = vmatprep.subr.bf16.mxu1 %v21171_v1  ;;  %v21263_v0 = vld [vmem:[%s23910_s8 + $0x16ec] ss:$16 sps:$4 sm:$0xff]   ;;  %v21258_v1 = vld [vmem:[%s23910_s8 + $0x16e0] ss:$16 sps:$4 sm:$0xff]  }
 0x2f3   : > { %14793 = vmatpush1.bf16.msra.mxu0 %v21166_v2  ;;  %16269 = vmatpush1.bf16.msra.mxu1 %v21169_v3  ;;  %v21261_v2 = vld [vmem:[%s23910_s8 + $0x16e8] ss:$16 sps:$4 sm:$0xff]   ;;  %v21266_v3 = vld [vmem:[%s23910_s8 + $0x1704] ss:$16 sps:$4 sm:$0xff]  }
 0x2f4   : > { %14794 = vmatprep.subr.bf16.mxu0 %v21174_v4  ;;  %16270 = vmatprep.subr.bf16.mxu1 %v21177_v5  ;;  %v21269_v4 = vld [vmem:[%s23910_s8 + $0x170c] ss:$16 sps:$4 sm:$0xff]   ;;  %v21264_v5 = vld [vmem:[%s23910_s8 + $0x1700] ss:$16 sps:$4 sm:$0xff]  }
 0x2f7   : > { %14795 = vmatpush1.bf16.msra.mxu0 %v21172_v6  ;;  %16271 = vmatpush1.bf16.msra.mxu1 %v21175_v7  ;;  %v21267_v6 = vld [vmem:[%s23910_s8 + $0x1708] ss:$16 sps:$4 sm:$0xff]   ;;  %v21272_v7 = vld [vmem:[%s23910_s8 + $0x1724] ss:$16 sps:$4 sm:$0xff]  }
 0x2f8   : > { %14796 = vmatprep.subr.bf16.mxu0 %v21180_v8  ;;  %16272 = vmatprep.subr.bf16.mxu1 %v21183_v9  ;;  %v21275_v8 = vld [vmem:[%s23910_s8 + $0x172c] ss:$16 sps:$4 sm:$0xff]   ;;  %v21270_v9 = vld [vmem:[%s23910_s8 + $0x1720] ss:$16 sps:$4 sm:$0xff]  }
 0x2fb   : > { %14797 = vmatpush1.bf16.msra.mxu0 %v21178_v10  ;;  %16273 = vmatpush1.bf16.msra.mxu1 %v21181_v12  ;;  %v21273_v10 = vld [vmem:[%s23910_s8 + $0x1728] ss:$16 sps:$4 sm:$0xff]   ;;  %v21278_v12 = vld [vmem:[%s23910_s8 + $0x1744] ss:$16 sps:$4 sm:$0xff]  }
 0x2fc   : > { %14798 = vmatprep.subr.bf16.mxu0 %v21186_v13  ;;  %16274 = vmatprep.subr.bf16.mxu1 %v21189_v15  ;;  %v21281_v13 = vld [vmem:[%s23910_s8 + $0x174c] ss:$16 sps:$4 sm:$0xff]   ;;  %v21276_v15 = vld [vmem:[%s23910_s8 + $0x1740] ss:$16 sps:$4 sm:$0xff]  }
 0x2ff   : > { %14799 = vmatpush1.bf16.msra.mxu0 %v21184_v16  ;;  %16275 = vmatpush1.bf16.msra.mxu1 %v21187_v11  ;;  %v21279_v16 = vld [vmem:[%s23910_s8 + $0x1748] ss:$16 sps:$4 sm:$0xff]   ;;  %v21284_v11 = vld [vmem:[%s23910_s8 + $0x1764] ss:$16 sps:$4 sm:$0xff]  }
 0x300   : > { %14800 = vmatprep.subr.bf16.mxu0 %v21192_v19  ;;  %16276 = vmatprep.subr.bf16.mxu1 %v21195_v20  ;;  %v21287_v19 = vld [vmem:[%s23910_s8 + $0x176c] ss:$16 sps:$4 sm:$0xff]   ;;  %v21282_v20 = vld [vmem:[%s23910_s8 + $0x1760] ss:$16 sps:$4 sm:$0xff]  }
 0x303   : > { %14801 = vmatpush1.bf16.msra.mxu0 %v21190_v14  ;;  %16277 = vmatpush1.bf16.msra.mxu1 %v21193_v22  ;;  %v21285_v14 = vld [vmem:[%s23910_s8 + $0x1768] ss:$16 sps:$4 sm:$0xff]   ;;  %v21290_v22 = vld [vmem:[%s23910_s8 + $0x1784] ss:$16 sps:$4 sm:$0xff]  }
 0x304   : > { %14802 = vmatprep.subr.bf16.mxu0 %v21198_v23  ;;  %16278 = vmatprep.subr.bf16.mxu1 %v21201_v17  ;;  %v21293_v23 = vld [vmem:[%s23910_s8 + $0x178c] ss:$16 sps:$4 sm:$0xff]   ;;  %v21288_v17 = vld [vmem:[%s23910_s8 + $0x1780] ss:$16 sps:$4 sm:$0xff]  }
 0x307   : > { %14803 = vmatpush1.bf16.msra.mxu0 %v21196_v25  ;;  %16279 = vmatpush1.bf16.msra.mxu1 %v21199_v26  ;;  %v21291_v25 = vld [vmem:[%s23910_s8 + $0x1788] ss:$16 sps:$4 sm:$0xff]   ;;  %v21296_v26 = vld [vmem:[%s23910_s8 + $0x17a4] ss:$16 sps:$4 sm:$0xff]  }
 0x308   : > { %14804 = vmatprep.subr.bf16.mxu0 %v21204_v18  ;;  %16280 = vmatprep.subr.bf16.mxu1 %v21207_v28  ;;  %v21299_v18 = vld [vmem:[%s23910_s8 + $0x17ac] ss:$16 sps:$4 sm:$0xff]   ;;  %v21294_v28 = vld [vmem:[%s23910_s8 + $0x17a0] ss:$16 sps:$4 sm:$0xff]  }
 0x30b   : > { %14805 = vmatpush1.bf16.msra.mxu0 %v21202_v29  ;;  %16281 = vmatpush1.bf16.msra.mxu1 %v21205_v21  ;;  %v21297_v29 = vld [vmem:[%s23910_s8 + $0x17a8] ss:$16 sps:$4 sm:$0xff]   ;;  %v21302_v21 = vld [vmem:[%s23910_s8 + $0x17c4] ss:$16 sps:$4 sm:$0xff]  }
 0x30c   : > { %14806 = vmatprep.subr.bf16.mxu0 %v21210_v31  ;;  %16282 = vmatprep.subr.bf16.mxu1 %v21213_v32  ;;  %v21305_v31 = vld [vmem:[%s23910_s8 + $0x17cc] ss:$16 sps:$4 sm:$0xff]   ;;  %v21300_v32 = vld [vmem:[%s23910_s8 + $0x17c0] ss:$16 sps:$4 sm:$0xff]  }
 0x30f   : > { %14807 = vmatpush1.bf16.msra.mxu0 %v21208_v24  ;;  %16283 = vmatpush1.bf16.msra.mxu1 %v21211_v34  ;;  %v21303_v24 = vld [vmem:[%s23910_s8 + $0x17c8] ss:$16 sps:$4 sm:$0xff]   ;;  %v21308_v34 = vld [vmem:[%s23910_s8 + $0x17e4] ss:$16 sps:$4 sm:$0xff]  }
 0x310   : > { %14817 = vmatprep.subr.bf16.mxu0 %v21218_v35  ;;  %16293 = vmatprep.subr.bf16.mxu1 %v21221_v27  ;;  %v21311_v35 = vld [vmem:[%s23910_s8 + $0x17ec] ss:$16 sps:$4 sm:$0xff]   ;;  %v21306_v27 = vld [vmem:[%s23910_s8 + $0x17e0] ss:$16 sps:$4 sm:$0xff]  }
 0x312   : > { %14809 = vmatmul.mubr.bf16.vlgmr.msra.gmra.mrb[0].mxu0 %v17445_v37  ;;  %16285 = vmatmul.mubr.bf16.vlgmr.msra.gmra.mrb[0].mxu1 %v17445_v37  ;;  %v21309_v37 = vld [vmem:[%s23910_s8 + $0x17e8] ss:$16 sps:$4 sm:$0xff]  }
 0x313   : > { %14818 = vmatpush1.bf16.msra.mxu0 %v21216_v38  ;;  %16294 = vmatpush1.bf16.msra.mxu1 %v21219_v30  ;;  %v21316_v38 = vld [vmem:[%s23910_s8 + $0x1804] ss:$16 sps:$4 sm:$0xff]   ;;  %v21319_v30 = vld [vmem:[%s23910_s8 + $0x180c] ss:$16 sps:$4 sm:$0xff]  }
 0x314   : > { %14819 = vmatprep.subr.bf16.mxu0 %v21224_v39  ;;  %16295 = vmatprep.subr.bf16.mxu1 %v21227_v40  ;;  %v24795_v39 = vld [vmem:[%s26563_s0 + $0x60] sm:$0xff]  ;;  %v17447_v40 = vcombine.low %v24722_v36, %v24722_v36 }
 0x315   : > { %14849 = vmatprep.mubr.bf16.mxu0 %v17448_v41  ;;  %16325 = vmatprep.mubr.bf16.mxu1 %v17448_v41  ;;  %v21314_v41 = vld [vmem:[%s23910_s8 + $0x1800] ss:$16 sps:$4 sm:$0xff]  }
 0x316   : > { %v21320_v36 = vld [vmem:[%s23910_s8 + $0x1820] ss:$16 sps:$4 sm:$0xff]  }
 0x317   : > { %14820 = vmatpush1.bf16.msra.mxu0 %v21222_v33  ;;  %16296 = vmatpush1.bf16.msra.mxu1 %v21225_v42  ;;  %v21317_v33 = vld [vmem:[%s23910_s8 + $0x1808] ss:$16 sps:$4 sm:$0xff]   ;;  %v21322_v42 = vld [vmem:[%s23910_s8 + $0x1824] ss:$16 sps:$4 sm:$0xff]  }
 0x318   : > { %14821 = vmatprep.subr.bf16.mxu0 %v21230_v43  ;;  %16297 = vmatprep.subr.bf16.mxu1 %v21233_v44  ;;  %v21325_v43 = vld [vmem:[%s23910_s8 + $0x182c] ss:$16 sps:$4 sm:$0xff]   ;;  %v17450_v44 = vcombine.high %v24795_v39, %v24795_v39 }
 0x31b   : > { %14822 = vmatpush1.bf16.msra.mxu0 %v21228_v45  ;;  %16298 = vmatpush1.bf16.msra.mxu1 %v21231_v46  ;;  %v21323_v45 = vld [vmem:[%s23910_s8 + $0x1828] ss:$16 sps:$4 sm:$0xff]   ;;  %v21328_v46 = vld [vmem:[%s23910_s8 + $0x1844] ss:$16 sps:$4 sm:$0xff]  }
 0x31c   : > { %14823 = vmatprep.subr.bf16.mxu0 %v21236_v47  ;;  %16299 = vmatprep.subr.bf16.mxu1 %v21239_v48  ;;  %v21331_v47 = vld [vmem:[%s23910_s8 + $0x184c] ss:$16 sps:$4 sm:$0xff]   ;;  %v21326_v48 = vld [vmem:[%s23910_s8 + $0x1840] ss:$16 sps:$4 sm:$0xff]  }
 0x31f   : > { %14824 = vmatpush1.bf16.msra.mxu0 %v21234_v49  ;;  %16300 = vmatpush1.bf16.msra.mxu1 %v21237_v50  ;;  %v21329_v49 = vld [vmem:[%s23910_s8 + $0x1848] ss:$16 sps:$4 sm:$0xff]   ;;  %v21334_v50 = vld [vmem:[%s23910_s8 + $0x1864] ss:$16 sps:$4 sm:$0xff]  }
 0x320   : > { %14825 = vmatprep.subr.bf16.mxu0 %v21242_v51  ;;  %16301 = vmatprep.subr.bf16.mxu1 %v21245_v52  ;;  %v21337_v51 = vld [vmem:[%s23910_s8 + $0x186c] ss:$16 sps:$4 sm:$0xff]   ;;  %v21332_v52 = vld [vmem:[%s23910_s8 + $0x1860] ss:$16 sps:$4 sm:$0xff]  }
 0x323   : > { %14826 = vmatpush1.bf16.msra.mxu0 %v21240_v53  ;;  %16302 = vmatpush1.bf16.msra.mxu1 %v21243_v54  ;;  %v21335_v53 = vld [vmem:[%s23910_s8 + $0x1868] ss:$16 sps:$4 sm:$0xff]   ;;  %v21340_v54 = vld [vmem:[%s23910_s8 + $0x1884] ss:$16 sps:$4 sm:$0xff]  }
 0x324   : > { %14827 = vmatprep.subr.bf16.mxu0 %v21248_v55  ;;  %16303 = vmatprep.subr.bf16.mxu1 %v21251_v56  ;;  %v21343_v55 = vld [vmem:[%s23910_s8 + $0x188c] ss:$16 sps:$4 sm:$0xff]   ;;  %v21338_v56 = vld [vmem:[%s23910_s8 + $0x1880] ss:$16 sps:$4 sm:$0xff]  }
 0x327   : > { %14828 = vmatpush1.bf16.msra.mxu0 %v21246_v57  ;;  %16304 = vmatpush1.bf16.msra.mxu1 %v21249_v58  ;;  %v21341_v57 = vld [vmem:[%s23910_s8 + $0x1888] ss:$16 sps:$4 sm:$0xff]   ;;  %v21346_v58 = vld [vmem:[%s23910_s8 + $0x18a4] ss:$16 sps:$4 sm:$0xff]  }
 0x328   : > { %14829 = vmatprep.subr.bf16.mxu0 %v21254_v59  ;;  %16305 = vmatprep.subr.bf16.mxu1 %v21257_v60  ;;  %v21349_v59 = vld [vmem:[%s23910_s8 + $0x18ac] ss:$16 sps:$4 sm:$0xff]   ;;  %v21344_v60 = vld [vmem:[%s23910_s8 + $0x18a0] ss:$16 sps:$4 sm:$0xff]  }
 0x32b   : > { %14830 = vmatpush1.bf16.msra.mxu0 %v21252_v61  ;;  %16306 = vmatpush1.bf16.msra.mxu1 %v21255_v62  ;;  %v21347_v61 = vld [vmem:[%s23910_s8 + $0x18a8] ss:$16 sps:$4 sm:$0xff]   ;;  %v21352_v62 = vld [vmem:[%s23910_s8 + $0x18c4] ss:$16 sps:$4 sm:$0xff]  }
 0x32c   : > { %14831 = vmatprep.subr.bf16.mxu0 %v21260_v63  ;;  %16307 = vmatprep.subr.bf16.mxu1 %v21263_v0  ;;  %v21355_v63 = vld [vmem:[%s23910_s8 + $0x18cc] ss:$16 sps:$4 sm:$0xff]   ;;  %v21350_v0 = vld [vmem:[%s23910_s8 + $0x18c0] ss:$16 sps:$4 sm:$0xff]  }
 0x32f   : > { %14832 = vmatpush1.bf16.msra.mxu0 %v21258_v1  ;;  %16308 = vmatpush1.bf16.msra.mxu1 %v21261_v2  ;;  %v21353_v1 = vld [vmem:[%s23910_s8 + $0x18c8] ss:$16 sps:$4 sm:$0xff]   ;;  %v21358_v2 = vld [vmem:[%s23910_s8 + $0x18e4] ss:$16 sps:$4 sm:$0xff]  }
 0x330   : > { %14833 = vmatprep.subr.bf16.mxu0 %v21266_v3  ;;  %16309 = vmatprep.subr.bf16.mxu1 %v21269_v4  ;;  %v21361_v3 = vld [vmem:[%s23910_s8 + $0x18ec] ss:$16 sps:$4 sm:$0xff]   ;;  %v21356_v4 = vld [vmem:[%s23910_s8 + $0x18e0] ss:$16 sps:$4 sm:$0xff]  }
 0x333   : > { %14834 = vmatpush1.bf16.msra.mxu0 %v21264_v5  ;;  %16310 = vmatpush1.bf16.msra.mxu1 %v21267_v6  ;;  %v21359_v5 = vld [vmem:[%s23910_s8 + $0x18e8] ss:$16 sps:$4 sm:$0xff]   ;;  %v21364_v6 = vld [vmem:[%s23910_s8 + $0x1904] ss:$16 sps:$4 sm:$0xff]  }
 0x334   : > { %14835 = vmatprep.subr.bf16.mxu0 %v21272_v7  ;;  %16311 = vmatprep.subr.bf16.mxu1 %v21275_v8  ;;  %v21367_v7 = vld [vmem:[%s23910_s8 + $0x190c] ss:$16 sps:$4 sm:$0xff]   ;;  %v21362_v8 = vld [vmem:[%s23910_s8 + $0x1900] ss:$16 sps:$4 sm:$0xff]  }
 0x337   : > { %14836 = vmatpush1.bf16.msra.mxu0 %v21270_v9  ;;  %16312 = vmatpush1.bf16.msra.mxu1 %v21273_v10  ;;  %v21365_v9 = vld [vmem:[%s23910_s8 + $0x1908] ss:$16 sps:$4 sm:$0xff]   ;;  %v21370_v10 = vld [vmem:[%s23910_s8 + $0x1924] ss:$16 sps:$4 sm:$0xff]  }
 0x338   : > { %14837 = vmatprep.subr.bf16.mxu0 %v21278_v12  ;;  %16313 = vmatprep.subr.bf16.mxu1 %v21281_v13  ;;  %v21373_v12 = vld [vmem:[%s23910_s8 + $0x192c] ss:$16 sps:$4 sm:$0xff]   ;;  %v21368_v13 = vld [vmem:[%s23910_s8 + $0x1920] ss:$16 sps:$4 sm:$0xff]  }
 0x33b   : > { %14838 = vmatpush1.bf16.msra.mxu0 %v21276_v15  ;;  %16314 = vmatpush1.bf16.msra.mxu1 %v21279_v16  ;;  %v21371_v15 = vld [vmem:[%s23910_s8 + $0x1928] ss:$16 sps:$4 sm:$0xff]   ;;  %v21376_v16 = vld [vmem:[%s23910_s8 + $0x1944] ss:$16 sps:$4 sm:$0xff]  }
 0x33c   : > { %14839 = vmatprep.subr.bf16.mxu0 %v21284_v11  ;;  %16315 = vmatprep.subr.bf16.mxu1 %v21287_v19  ;;  %v21379_v11 = vld [vmem:[%s23910_s8 + $0x194c] ss:$16 sps:$4 sm:$0xff]   ;;  %v21374_v19 = vld [vmem:[%s23910_s8 + $0x1940] ss:$16 sps:$4 sm:$0xff]  }
 0x33f   : > { %14840 = vmatpush1.bf16.msra.mxu0 %v21282_v20  ;;  %16316 = vmatpush1.bf16.msra.mxu1 %v21285_v14  ;;  %v21377_v20 = vld [vmem:[%s23910_s8 + $0x1948] ss:$16 sps:$4 sm:$0xff]   ;;  %v21382_v14 = vld [vmem:[%s23910_s8 + $0x1964] ss:$16 sps:$4 sm:$0xff]  }
 0x340   : > { %14841 = vmatprep.subr.bf16.mxu0 %v21290_v22  ;;  %16317 = vmatprep.subr.bf16.mxu1 %v21293_v23  ;;  %v21385_v22 = vld [vmem:[%s23910_s8 + $0x196c] ss:$16 sps:$4 sm:$0xff]   ;;  %v21380_v23 = vld [vmem:[%s23910_s8 + $0x1960] ss:$16 sps:$4 sm:$0xff]  }
 0x343   : > { %14842 = vmatpush1.bf16.msra.mxu0 %v21288_v17  ;;  %16318 = vmatpush1.bf16.msra.mxu1 %v21291_v25  ;;  %v21383_v17 = vld [vmem:[%s23910_s8 + $0x1968] ss:$16 sps:$4 sm:$0xff]   ;;  %v21388_v25 = vld [vmem:[%s23910_s8 + $0x1984] ss:$16 sps:$4 sm:$0xff]  }
 0x344   : > { %14843 = vmatprep.subr.bf16.mxu0 %v21296_v26  ;;  %16319 = vmatprep.subr.bf16.mxu1 %v21299_v18  ;;  %v21391_v26 = vld [vmem:[%s23910_s8 + $0x198c] ss:$16 sps:$4 sm:$0xff]   ;;  %v21386_v18 = vld [vmem:[%s23910_s8 + $0x1980] ss:$16 sps:$4 sm:$0xff]  }
 0x347   : > { %14844 = vmatpush1.bf16.msra.mxu0 %v21294_v28  ;;  %16320 = vmatpush1.bf16.msra.mxu1 %v21297_v29  ;;  %v21389_v28 = vld [vmem:[%s23910_s8 + $0x1988] ss:$16 sps:$4 sm:$0xff]   ;;  %v21394_v29 = vld [vmem:[%s23910_s8 + $0x19a4] ss:$16 sps:$4 sm:$0xff]  }
 0x348   : > { %14845 = vmatprep.subr.bf16.mxu0 %v21302_v21  ;;  %16321 = vmatprep.subr.bf16.mxu1 %v21305_v31  ;;  %v21397_v21 = vld [vmem:[%s23910_s8 + $0x19ac] ss:$16 sps:$4 sm:$0xff]   ;;  %v21392_v31 = vld [vmem:[%s23910_s8 + $0x19a0] ss:$16 sps:$4 sm:$0xff]  }
 0x34b   : > { %14846 = vmatpush1.bf16.msra.mxu0 %v21300_v32  ;;  %16322 = vmatpush1.bf16.msra.mxu1 %v21303_v24  ;;  %v21395_v32 = vld [vmem:[%s23910_s8 + $0x19a8] ss:$16 sps:$4 sm:$0xff]   ;;  %v21400_v24 = vld [vmem:[%s23910_s8 + $0x19c4] ss:$16 sps:$4 sm:$0xff]  }
 0x34c   : > { %14847 = vmatprep.subr.bf16.mxu0 %v21308_v34  ;;  %16323 = vmatprep.subr.bf16.mxu1 %v21311_v35  ;;  %v21403_v34 = vld [vmem:[%s23910_s8 + $0x19cc] ss:$16 sps:$4 sm:$0xff]   ;;  %v21398_v35 = vld [vmem:[%s23910_s8 + $0x19c0] ss:$16 sps:$4 sm:$0xff]  }
 0x34f   : > { %14848 = vmatpush1.bf16.msra.mxu0 %v21306_v27  ;;  %16324 = vmatpush1.bf16.msra.mxu1 %v21309_v37  ;;  %v21401_v27 = vld [vmem:[%s23910_s8 + $0x19c8] ss:$16 sps:$4 sm:$0xff]   ;;  %v21406_v37 = vld [vmem:[%s23910_s8 + $0x19e4] ss:$16 sps:$4 sm:$0xff]  }
 0x350   : > { %14858 = vmatprep.subr.bf16.mxu0 %v21316_v38  ;;  %16334 = vmatprep.subr.bf16.mxu1 %v21319_v30  ;;  %v21409_v38 = vld [vmem:[%s23910_s8 + $0x19ec] ss:$16 sps:$4 sm:$0xff]   ;;  %v21404_v30 = vld [vmem:[%s23910_s8 + $0x19e0] ss:$16 sps:$4 sm:$0xff]  }
 0x352   : > { %14850 = vmatmul.mubr.bf16.vlgmr.msra.gmra.mrb[0].mxu0 %v17447_v40  ;;  %16326 = vmatmul.mubr.bf16.vlgmr.msra.gmra.mrb[0].mxu1 %v17447_v40  ;;  %v21407_v40 = vld [vmem:[%s23910_s8 + $0x19e8] ss:$16 sps:$4 sm:$0xff]  }
 0x353   : > { %14859 = vmatpush1.bf16.msra.mxu0 %v21314_v41  ;;  %16335 = vmatpush1.bf16.msra.mxu1 %v21317_v33  ;;  %v21414_v41 = vld [vmem:[%s23910_s8 + $0x1a04] ss:$16 sps:$4 sm:$0xff]   ;;  %v21417_v33 = vld [vmem:[%s23910_s8 + $0x1a0c] ss:$16 sps:$4 sm:$0xff]  }
 0x354   : > { %14860 = vmatprep.subr.bf16.mxu0 %v21322_v42  ;;  %16336 = vmatprep.subr.bf16.mxu1 %v21325_v43  ;;  %v24868_v42 = vld [vmem:[%s26563_s0 + $0x68] sm:$0xff]  ;;  %v17449_v43 = vcombine.low %v24795_v39, %v24795_v39  ;;  %v21418_v39 = vld [vmem:[%s23910_s8 + $0x1a20] ss:$16 sps:$4 sm:$0xff]  }
 0x355   : > { %14890 = vmatprep.mubr.bf16.mxu0 %v17450_v44  ;;  %16366 = vmatprep.mubr.bf16.mxu1 %v17450_v44  ;;  %v21412_v44 = vld [vmem:[%s23910_s8 + $0x1a00] ss:$16 sps:$4 sm:$0xff]  }
 0x357   : > { %14861 = vmatpush1.bf16.msra.mxu0 %v21320_v36  ;;  %16337 = vmatpush1.bf16.msra.mxu1 %v21323_v45  ;;  %v21415_v36 = vld [vmem:[%s23910_s8 + $0x1a08] ss:$16 sps:$4 sm:$0xff]   ;;  %v21420_v45 = vld [vmem:[%s23910_s8 + $0x1a24] ss:$16 sps:$4 sm:$0xff]  }
 0x358   : > { %14862 = vmatprep.subr.bf16.mxu0 %v21328_v46  ;;  %16338 = vmatprep.subr.bf16.mxu1 %v21331_v47  ;;  %v21423_v46 = vld [vmem:[%s23910_s8 + $0x1a2c] ss:$16 sps:$4 sm:$0xff]   ;;  %v17452_v47 = vcombine.high %v24868_v42, %v24868_v42 }
 0x35b   : > { %14863 = vmatpush1.bf16.msra.mxu0 %v21326_v48  ;;  %16339 = vmatpush1.bf16.msra.mxu1 %v21329_v49  ;;  %v21421_v48 = vld [vmem:[%s23910_s8 + $0x1a28] ss:$16 sps:$4 sm:$0xff]   ;;  %v21426_v49 = vld [vmem:[%s23910_s8 + $0x1a44] ss:$16 sps:$4 sm:$0xff]  }
 0x35c   : > { %14864 = vmatprep.subr.bf16.mxu0 %v21334_v50  ;;  %16340 = vmatprep.subr.bf16.mxu1 %v21337_v51  ;;  %v21429_v50 = vld [vmem:[%s23910_s8 + $0x1a4c] ss:$16 sps:$4 sm:$0xff]   ;;  %v21424_v51 = vld [vmem:[%s23910_s8 + $0x1a40] ss:$16 sps:$4 sm:$0xff]  }
 0x35f   : > { %14865 = vmatpush1.bf16.msra.mxu0 %v21332_v52  ;;  %16341 = vmatpush1.bf16.msra.mxu1 %v21335_v53  ;;  %v21427_v52 = vld [vmem:[%s23910_s8 + $0x1a48] ss:$16 sps:$4 sm:$0xff]   ;;  %v21432_v53 = vld [vmem:[%s23910_s8 + $0x1a64] ss:$16 sps:$4 sm:$0xff]  }
 0x360   : > { %14866 = vmatprep.subr.bf16.mxu0 %v21340_v54  ;;  %16342 = vmatprep.subr.bf16.mxu1 %v21343_v55  ;;  %v21435_v54 = vld [vmem:[%s23910_s8 + $0x1a6c] ss:$16 sps:$4 sm:$0xff]   ;;  %v21430_v55 = vld [vmem:[%s23910_s8 + $0x1a60] ss:$16 sps:$4 sm:$0xff]  }
 0x363   : > { %14867 = vmatpush1.bf16.msra.mxu0 %v21338_v56  ;;  %16343 = vmatpush1.bf16.msra.mxu1 %v21341_v57  ;;  %v21433_v56 = vld [vmem:[%s23910_s8 + $0x1a68] ss:$16 sps:$4 sm:$0xff]   ;;  %v21438_v57 = vld [vmem:[%s23910_s8 + $0x1a84] ss:$16 sps:$4 sm:$0xff]  }
 0x364   : > { %14868 = vmatprep.subr.bf16.mxu0 %v21346_v58  ;;  %16344 = vmatprep.subr.bf16.mxu1 %v21349_v59  ;;  %v21441_v58 = vld [vmem:[%s23910_s8 + $0x1a8c] ss:$16 sps:$4 sm:$0xff]   ;;  %v21436_v59 = vld [vmem:[%s23910_s8 + $0x1a80] ss:$16 sps:$4 sm:$0xff]  }
 0x367   : > { %14869 = vmatpush1.bf16.msra.mxu0 %v21344_v60  ;;  %16345 = vmatpush1.bf16.msra.mxu1 %v21347_v61  ;;  %v21439_v60 = vld [vmem:[%s23910_s8 + $0x1a88] ss:$16 sps:$4 sm:$0xff]   ;;  %v21444_v61 = vld [vmem:[%s23910_s8 + $0x1aa4] ss:$16 sps:$4 sm:$0xff]  }
 0x368   : > { %14870 = vmatprep.subr.bf16.mxu0 %v21352_v62  ;;  %16346 = vmatprep.subr.bf16.mxu1 %v21355_v63  ;;  %v21447_v62 = vld [vmem:[%s23910_s8 + $0x1aac] ss:$16 sps:$4 sm:$0xff]   ;;  %v21442_v63 = vld [vmem:[%s23910_s8 + $0x1aa0] ss:$16 sps:$4 sm:$0xff]  }
 0x36b   : > { %14871 = vmatpush1.bf16.msra.mxu0 %v21350_v0  ;;  %16347 = vmatpush1.bf16.msra.mxu1 %v21353_v1  ;;  %v21445_v0 = vld [vmem:[%s23910_s8 + $0x1aa8] ss:$16 sps:$4 sm:$0xff]   ;;  %v21450_v1 = vld [vmem:[%s23910_s8 + $0x1ac4] ss:$16 sps:$4 sm:$0xff]  }
 0x36c   : > { %14872 = vmatprep.subr.bf16.mxu0 %v21358_v2  ;;  %16348 = vmatprep.subr.bf16.mxu1 %v21361_v3  ;;  %v21453_v2 = vld [vmem:[%s23910_s8 + $0x1acc] ss:$16 sps:$4 sm:$0xff]   ;;  %v21448_v3 = vld [vmem:[%s23910_s8 + $0x1ac0] ss:$16 sps:$4 sm:$0xff]  }
 0x36f   : > { %14873 = vmatpush1.bf16.msra.mxu0 %v21356_v4  ;;  %16349 = vmatpush1.bf16.msra.mxu1 %v21359_v5  ;;  %v21451_v4 = vld [vmem:[%s23910_s8 + $0x1ac8] ss:$16 sps:$4 sm:$0xff]   ;;  %v21456_v5 = vld [vmem:[%s23910_s8 + $0x1ae4] ss:$16 sps:$4 sm:$0xff]  }
 0x370   : > { %14874 = vmatprep.subr.bf16.mxu0 %v21364_v6  ;;  %16350 = vmatprep.subr.bf16.mxu1 %v21367_v7  ;;  %v21459_v6 = vld [vmem:[%s23910_s8 + $0x1aec] ss:$16 sps:$4 sm:$0xff]   ;;  %v21454_v7 = vld [vmem:[%s23910_s8 + $0x1ae0] ss:$16 sps:$4 sm:$0xff]  }
 0x373   : > { %14875 = vmatpush1.bf16.msra.mxu0 %v21362_v8  ;;  %16351 = vmatpush1.bf16.msra.mxu1 %v21365_v9  ;;  %v21457_v8 = vld [vmem:[%s23910_s8 + $0x1ae8] ss:$16 sps:$4 sm:$0xff]   ;;  %v21462_v9 = vld [vmem:[%s23910_s8 + $0x1b04] ss:$16 sps:$4 sm:$0xff]  }
 0x374   : > { %14876 = vmatprep.subr.bf16.mxu0 %v21370_v10  ;;  %16352 = vmatprep.subr.bf16.mxu1 %v21373_v12  ;;  %v21465_v10 = vld [vmem:[%s23910_s8 + $0x1b0c] ss:$16 sps:$4 sm:$0xff]   ;;  %v21460_v12 = vld [vmem:[%s23910_s8 + $0x1b00] ss:$16 sps:$4 sm:$0xff]  }
 0x377   : > { %14877 = vmatpush1.bf16.msra.mxu0 %v21368_v13  ;;  %16353 = vmatpush1.bf16.msra.mxu1 %v21371_v15  ;;  %v21463_v13 = vld [vmem:[%s23910_s8 + $0x1b08] ss:$16 sps:$4 sm:$0xff]   ;;  %v21468_v15 = vld [vmem:[%s23910_s8 + $0x1b24] ss:$16 sps:$4 sm:$0xff]  }
 0x378   : > { %14878 = vmatprep.subr.bf16.mxu0 %v21376_v16  ;;  %16354 = vmatprep.subr.bf16.mxu1 %v21379_v11  ;;  %v21471_v16 = vld [vmem:[%s23910_s8 + $0x1b2c] ss:$16 sps:$4 sm:$0xff]   ;;  %v21466_v11 = vld [vmem:[%s23910_s8 + $0x1b20] ss:$16 sps:$4 sm:$0xff]  }
 0x37b   : > { %14879 = vmatpush1.bf16.msra.mxu0 %v21374_v19  ;;  %16355 = vmatpush1.bf16.msra.mxu1 %v21377_v20  ;;  %v21469_v19 = vld [vmem:[%s23910_s8 + $0x1b28] ss:$16 sps:$4 sm:$0xff]   ;;  %v21474_v20 = vld [vmem:[%s23910_s8 + $0x1b44] ss:$16 sps:$4 sm:$0xff]  }
 0x37c   : > { %14880 = vmatprep.subr.bf16.mxu0 %v21382_v14  ;;  %16356 = vmatprep.subr.bf16.mxu1 %v21385_v22  ;;  %v21477_v14 = vld [vmem:[%s23910_s8 + $0x1b4c] ss:$16 sps:$4 sm:$0xff]   ;;  %v21472_v22 = vld [vmem:[%s23910_s8 + $0x1b40] ss:$16 sps:$4 sm:$0xff]  }
 0x37f   : > { %14881 = vmatpush1.bf16.msra.mxu0 %v21380_v23  ;;  %16357 = vmatpush1.bf16.msra.mxu1 %v21383_v17  ;;  %v21475_v23 = vld [vmem:[%s23910_s8 + $0x1b48] ss:$16 sps:$4 sm:$0xff]   ;;  %v21480_v17 = vld [vmem:[%s23910_s8 + $0x1b64] ss:$16 sps:$4 sm:$0xff]  }
 0x380   : > { %14882 = vmatprep.subr.bf16.mxu0 %v21388_v25  ;;  %16358 = vmatprep.subr.bf16.mxu1 %v21391_v26  ;;  %v21483_v25 = vld [vmem:[%s23910_s8 + $0x1b6c] ss:$16 sps:$4 sm:$0xff]   ;;  %v21478_v26 = vld [vmem:[%s23910_s8 + $0x1b60] ss:$16 sps:$4 sm:$0xff]  }
 0x383   : > { %14883 = vmatpush1.bf16.msra.mxu0 %v21386_v18  ;;  %16359 = vmatpush1.bf16.msra.mxu1 %v21389_v28  ;;  %v21481_v18 = vld [vmem:[%s23910_s8 + $0x1b68] ss:$16 sps:$4 sm:$0xff]   ;;  %v21486_v28 = vld [vmem:[%s23910_s8 + $0x1b84] ss:$16 sps:$4 sm:$0xff]  }
 0x384   : > { %14884 = vmatprep.subr.bf16.mxu0 %v21394_v29  ;;  %16360 = vmatprep.subr.bf16.mxu1 %v21397_v21  ;;  %v21489_v29 = vld [vmem:[%s23910_s8 + $0x1b8c] ss:$16 sps:$4 sm:$0xff]   ;;  %v21484_v21 = vld [vmem:[%s23910_s8 + $0x1b80] ss:$16 sps:$4 sm:$0xff]  }
 0x387   : > { %14885 = vmatpush1.bf16.msra.mxu0 %v21392_v31  ;;  %16361 = vmatpush1.bf16.msra.mxu1 %v21395_v32  ;;  %v21487_v31 = vld [vmem:[%s23910_s8 + $0x1b88] ss:$16 sps:$4 sm:$0xff]   ;;  %v21492_v32 = vld [vmem:[%s23910_s8 + $0x1ba4] ss:$16 sps:$4 sm:$0xff]  }
 0x388   : > { %14886 = vmatprep.subr.bf16.mxu0 %v21400_v24  ;;  %16362 = vmatprep.subr.bf16.mxu1 %v21403_v34  ;;  %v21495_v24 = vld [vmem:[%s23910_s8 + $0x1bac] ss:$16 sps:$4 sm:$0xff]   ;;  %v21490_v34 = vld [vmem:[%s23910_s8 + $0x1ba0] ss:$16 sps:$4 sm:$0xff]  }
 0x38b   : > { %14887 = vmatpush1.bf16.msra.mxu0 %v21398_v35  ;;  %16363 = vmatpush1.bf16.msra.mxu1 %v21401_v27  ;;  %v21493_v35 = vld [vmem:[%s23910_s8 + $0x1ba8] ss:$16 sps:$4 sm:$0xff]   ;;  %v21498_v27 = vld [vmem:[%s23910_s8 + $0x1bc4] ss:$16 sps:$4 sm:$0xff]  }
 0x38c   : > { %14888 = vmatprep.subr.bf16.mxu0 %v21406_v37  ;;  %16364 = vmatprep.subr.bf16.mxu1 %v21409_v38  ;;  %v21501_v37 = vld [vmem:[%s23910_s8 + $0x1bcc] ss:$16 sps:$4 sm:$0xff]   ;;  %v21496_v38 = vld [vmem:[%s23910_s8 + $0x1bc0] ss:$16 sps:$4 sm:$0xff]  }
 0x38f   : > { %14889 = vmatpush1.bf16.msra.mxu0 %v21404_v30  ;;  %16365 = vmatpush1.bf16.msra.mxu1 %v21407_v40  ;;  %v21499_v30 = vld [vmem:[%s23910_s8 + $0x1bc8] ss:$16 sps:$4 sm:$0xff]   ;;  %v21504_v40 = vld [vmem:[%s23910_s8 + $0x1be4] ss:$16 sps:$4 sm:$0xff]  }
 0x390   : > { %14899 = vmatprep.subr.bf16.mxu0 %v21414_v41  ;;  %16375 = vmatprep.subr.bf16.mxu1 %v21417_v33  ;;  %v21507_v41 = vld [vmem:[%s23910_s8 + $0x1bec] ss:$16 sps:$4 sm:$0xff]   ;;  %v21502_v33 = vld [vmem:[%s23910_s8 + $0x1be0] ss:$16 sps:$4 sm:$0xff]  }
 0x392   : > { %14891 = vmatmul.mubr.bf16.vlgmr.msra.gmra.mrb[0].mxu0 %v17449_v43  ;;  %16367 = vmatmul.mubr.bf16.vlgmr.msra.gmra.mrb[0].mxu1 %v17449_v43  ;;  %v21505_v43 = vld [vmem:[%s23910_s8 + $0x1be8] ss:$16 sps:$4 sm:$0xff]  }
 0x393   : > { %14900 = vmatpush1.bf16.msra.mxu0 %v21412_v44  ;;  %16376 = vmatpush1.bf16.msra.mxu1 %v21415_v36  ;;  %v21512_v44 = vld [vmem:[%s23910_s8 + $0x1c04] ss:$16 sps:$4 sm:$0xff]   ;;  %v21515_v36 = vld [vmem:[%s23910_s8 + $0x1c0c] ss:$16 sps:$4 sm:$0xff]  }
 0x394   : > { %14901 = vmatprep.subr.bf16.mxu0 %v21420_v45  ;;  %16377 = vmatprep.subr.bf16.mxu1 %v21423_v46  ;;  %v24941_v45 = vld [vmem:[%s26563_s0 + $0x70] sm:$0xff]  ;;  %v17451_v46 = vcombine.low %v24868_v42, %v24868_v42 }
 0x395   : > { %14931 = vmatprep.mubr.bf16.mxu0 %v17452_v47  ;;  %16407 = vmatprep.mubr.bf16.mxu1 %v17452_v47  ;;  %v21510_v47 = vld [vmem:[%s23910_s8 + $0x1c00] ss:$16 sps:$4 sm:$0xff]  }
 0x396   : > { %v21516_v42 = vld [vmem:[%s23910_s8 + $0x1c20] ss:$16 sps:$4 sm:$0xff]  }
 0x397   : > { %14902 = vmatpush1.bf16.msra.mxu0 %v21418_v39  ;;  %16378 = vmatpush1.bf16.msra.mxu1 %v21421_v48  ;;  %v21513_v39 = vld [vmem:[%s23910_s8 + $0x1c08] ss:$16 sps:$4 sm:$0xff]   ;;  %v21518_v48 = vld [vmem:[%s23910_s8 + $0x1c24] ss:$16 sps:$4 sm:$0xff]  }
 0x398   : > { %14903 = vmatprep.subr.bf16.mxu0 %v21426_v49  ;;  %16379 = vmatprep.subr.bf16.mxu1 %v21429_v50  ;;  %v21521_v49 = vld [vmem:[%s23910_s8 + $0x1c2c] ss:$16 sps:$4 sm:$0xff]   ;;  %v17454_v50 = vcombine.high %v24941_v45, %v24941_v45 }
 0x39b   : > { %14904 = vmatpush1.bf16.msra.mxu0 %v21424_v51  ;;  %16380 = vmatpush1.bf16.msra.mxu1 %v21427_v52  ;;  %v21519_v51 = vld [vmem:[%s23910_s8 + $0x1c28] ss:$16 sps:$4 sm:$0xff]   ;;  %v21524_v52 = vld [vmem:[%s23910_s8 + $0x1c44] ss:$16 sps:$4 sm:$0xff]  }
 0x39c   : > { %14905 = vmatprep.subr.bf16.mxu0 %v21432_v53  ;;  %16381 = vmatprep.subr.bf16.mxu1 %v21435_v54  ;;  %v21527_v53 = vld [vmem:[%s23910_s8 + $0x1c4c] ss:$16 sps:$4 sm:$0xff]   ;;  %v21522_v54 = vld [vmem:[%s23910_s8 + $0x1c40] ss:$16 sps:$4 sm:$0xff]  }
 0x39f   : > { %14906 = vmatpush1.bf16.msra.mxu0 %v21430_v55  ;;  %16382 = vmatpush1.bf16.msra.mxu1 %v21433_v56  ;;  %v21525_v55 = vld [vmem:[%s23910_s8 + $0x1c48] ss:$16 sps:$4 sm:$0xff]   ;;  %v21530_v56 = vld [vmem:[%s23910_s8 + $0x1c64] ss:$16 sps:$4 sm:$0xff]  }
 0x3a0   : > { %14907 = vmatprep.subr.bf16.mxu0 %v21438_v57  ;;  %16383 = vmatprep.subr.bf16.mxu1 %v21441_v58  ;;  %v21533_v57 = vld [vmem:[%s23910_s8 + $0x1c6c] ss:$16 sps:$4 sm:$0xff]   ;;  %v21528_v58 = vld [vmem:[%s23910_s8 + $0x1c60] ss:$16 sps:$4 sm:$0xff]  }
 0x3a3   : > { %14908 = vmatpush1.bf16.msra.mxu0 %v21436_v59  ;;  %16384 = vmatpush1.bf16.msra.mxu1 %v21439_v60  ;;  %v21531_v59 = vld [vmem:[%s23910_s8 + $0x1c68] ss:$16 sps:$4 sm:$0xff]   ;;  %v21536_v60 = vld [vmem:[%s23910_s8 + $0x1c84] ss:$16 sps:$4 sm:$0xff]  }
 0x3a4   : > { %14909 = vmatprep.subr.bf16.mxu0 %v21444_v61  ;;  %16385 = vmatprep.subr.bf16.mxu1 %v21447_v62  ;;  %v21539_v61 = vld [vmem:[%s23910_s8 + $0x1c8c] ss:$16 sps:$4 sm:$0xff]   ;;  %v21534_v62 = vld [vmem:[%s23910_s8 + $0x1c80] ss:$16 sps:$4 sm:$0xff]  }
 0x3a7   : > { %14910 = vmatpush1.bf16.msra.mxu0 %v21442_v63  ;;  %16386 = vmatpush1.bf16.msra.mxu1 %v21445_v0  ;;  %v21537_v63 = vld [vmem:[%s23910_s8 + $0x1c88] ss:$16 sps:$4 sm:$0xff]   ;;  %v21542_v0 = vld [vmem:[%s23910_s8 + $0x1ca4] ss:$16 sps:$4 sm:$0xff]  }
 0x3a8   : > { %14911 = vmatprep.subr.bf16.mxu0 %v21450_v1  ;;  %16387 = vmatprep.subr.bf16.mxu1 %v21453_v2  ;;  %v21545_v1 = vld [vmem:[%s23910_s8 + $0x1cac] ss:$16 sps:$4 sm:$0xff]   ;;  %v21540_v2 = vld [vmem:[%s23910_s8 + $0x1ca0] ss:$16 sps:$4 sm:$0xff]  }
 0x3ab   : > { %14912 = vmatpush1.bf16.msra.mxu0 %v21448_v3  ;;  %16388 = vmatpush1.bf16.msra.mxu1 %v21451_v4  ;;  %v21543_v3 = vld [vmem:[%s23910_s8 + $0x1ca8] ss:$16 sps:$4 sm:$0xff]   ;;  %v21548_v4 = vld [vmem:[%s23910_s8 + $0x1cc4] ss:$16 sps:$4 sm:$0xff]  }
 0x3ac   : > { %14913 = vmatprep.subr.bf16.mxu0 %v21456_v5  ;;  %16389 = vmatprep.subr.bf16.mxu1 %v21459_v6  ;;  %v21551_v5 = vld [vmem:[%s23910_s8 + $0x1ccc] ss:$16 sps:$4 sm:$0xff]   ;;  %v21546_v6 = vld [vmem:[%s23910_s8 + $0x1cc0] ss:$16 sps:$4 sm:$0xff]  }
 0x3af   : > { %14914 = vmatpush1.bf16.msra.mxu0 %v21454_v7  ;;  %16390 = vmatpush1.bf16.msra.mxu1 %v21457_v8  ;;  %v21549_v7 = vld [vmem:[%s23910_s8 + $0x1cc8] ss:$16 sps:$4 sm:$0xff]   ;;  %v21554_v8 = vld [vmem:[%s23910_s8 + $0x1ce4] ss:$16 sps:$4 sm:$0xff]  }
 0x3b0   : > { %14915 = vmatprep.subr.bf16.mxu0 %v21462_v9  ;;  %16391 = vmatprep.subr.bf16.mxu1 %v21465_v10  ;;  %v21557_v9 = vld [vmem:[%s23910_s8 + $0x1cec] ss:$16 sps:$4 sm:$0xff]   ;;  %v21552_v10 = vld [vmem:[%s23910_s8 + $0x1ce0] ss:$16 sps:$4 sm:$0xff]  }
 0x3b3   : > { %14916 = vmatpush1.bf16.msra.mxu0 %v21460_v12  ;;  %16392 = vmatpush1.bf16.msra.mxu1 %v21463_v13  ;;  %v21555_v12 = vld [vmem:[%s23910_s8 + $0x1ce8] ss:$16 sps:$4 sm:$0xff]   ;;  %v21560_v13 = vld [vmem:[%s23910_s8 + $0x1d04] ss:$16 sps:$4 sm:$0xff]  }
 0x3b4   : > { %14917 = vmatprep.subr.bf16.mxu0 %v21468_v15  ;;  %16393 = vmatprep.subr.bf16.mxu1 %v21471_v16  ;;  %v21563_v15 = vld [vmem:[%s23910_s8 + $0x1d0c] ss:$16 sps:$4 sm:$0xff]   ;;  %v21558_v16 = vld [vmem:[%s23910_s8 + $0x1d00] ss:$16 sps:$4 sm:$0xff]  }
 0x3b7   : > { %14918 = vmatpush1.bf16.msra.mxu0 %v21466_v11  ;;  %16394 = vmatpush1.bf16.msra.mxu1 %v21469_v19  ;;  %v21561_v11 = vld [vmem:[%s23910_s8 + $0x1d08] ss:$16 sps:$4 sm:$0xff]   ;;  %v21566_v19 = vld [vmem:[%s23910_s8 + $0x1d24] ss:$16 sps:$4 sm:$0xff]  }
 0x3b8   : > { %14919 = vmatprep.subr.bf16.mxu0 %v21474_v20  ;;  %16395 = vmatprep.subr.bf16.mxu1 %v21477_v14  ;;  %v21569_v20 = vld [vmem:[%s23910_s8 + $0x1d2c] ss:$16 sps:$4 sm:$0xff]   ;;  %v21564_v14 = vld [vmem:[%s23910_s8 + $0x1d20] ss:$16 sps:$4 sm:$0xff]  }
 0x3bb   : > { %14920 = vmatpush1.bf16.msra.mxu0 %v21472_v22  ;;  %16396 = vmatpush1.bf16.msra.mxu1 %v21475_v23  ;;  %v21567_v22 = vld [vmem:[%s23910_s8 + $0x1d28] ss:$16 sps:$4 sm:$0xff]   ;;  %v21572_v23 = vld [vmem:[%s23910_s8 + $0x1d44] ss:$16 sps:$4 sm:$0xff]  }
 0x3bc   : > { %14921 = vmatprep.subr.bf16.mxu0 %v21480_v17  ;;  %16397 = vmatprep.subr.bf16.mxu1 %v21483_v25  ;;  %v21575_v17 = vld [vmem:[%s23910_s8 + $0x1d4c] ss:$16 sps:$4 sm:$0xff]   ;;  %v21570_v25 = vld [vmem:[%s23910_s8 + $0x1d40] ss:$16 sps:$4 sm:$0xff]  }
 0x3bf   : > { %14922 = vmatpush1.bf16.msra.mxu0 %v21478_v26  ;;  %16398 = vmatpush1.bf16.msra.mxu1 %v21481_v18  ;;  %v21573_v26 = vld [vmem:[%s23910_s8 + $0x1d48] ss:$16 sps:$4 sm:$0xff]   ;;  %v21578_v18 = vld [vmem:[%s23910_s8 + $0x1d64] ss:$16 sps:$4 sm:$0xff]  }
 0x3c0   : > { %14923 = vmatprep.subr.bf16.mxu0 %v21486_v28  ;;  %16399 = vmatprep.subr.bf16.mxu1 %v21489_v29  ;;  %v21581_v28 = vld [vmem:[%s23910_s8 + $0x1d6c] ss:$16 sps:$4 sm:$0xff]   ;;  %v21576_v29 = vld [vmem:[%s23910_s8 + $0x1d60] ss:$16 sps:$4 sm:$0xff]  }
 0x3c3   : > { %14924 = vmatpush1.bf16.msra.mxu0 %v21484_v21  ;;  %16400 = vmatpush1.bf16.msra.mxu1 %v21487_v31  ;;  %v21579_v21 = vld [vmem:[%s23910_s8 + $0x1d68] ss:$16 sps:$4 sm:$0xff]   ;;  %v21584_v31 = vld [vmem:[%s23910_s8 + $0x1d84] ss:$16 sps:$4 sm:$0xff]  }
 0x3c4   : > { %14925 = vmatprep.subr.bf16.mxu0 %v21492_v32  ;;  %16401 = vmatprep.subr.bf16.mxu1 %v21495_v24  ;;  %v21587_v32 = vld [vmem:[%s23910_s8 + $0x1d8c] ss:$16 sps:$4 sm:$0xff]   ;;  %v21582_v24 = vld [vmem:[%s23910_s8 + $0x1d80] ss:$16 sps:$4 sm:$0xff]  }
 0x3c7   : > { %14926 = vmatpush1.bf16.msra.mxu0 %v21490_v34  ;;  %16402 = vmatpush1.bf16.msra.mxu1 %v21493_v35  ;;  %v21585_v34 = vld [vmem:[%s23910_s8 + $0x1d88] ss:$16 sps:$4 sm:$0xff]   ;;  %v21590_v35 = vld [vmem:[%s23910_s8 + $0x1da4] ss:$16 sps:$4 sm:$0xff]  }
 0x3c8   : > { %14927 = vmatprep.subr.bf16.mxu0 %v21498_v27  ;;  %16403 = vmatprep.subr.bf16.mxu1 %v21501_v37  ;;  %v21593_v27 = vld [vmem:[%s23910_s8 + $0x1dac] ss:$16 sps:$4 sm:$0xff]   ;;  %v21588_v37 = vld [vmem:[%s23910_s8 + $0x1da0] ss:$16 sps:$4 sm:$0xff]  }
 0x3cb   : > { %14928 = vmatpush1.bf16.msra.mxu0 %v21496_v38  ;;  %16404 = vmatpush1.bf16.msra.mxu1 %v21499_v30  ;;  %v21591_v38 = vld [vmem:[%s23910_s8 + $0x1da8] ss:$16 sps:$4 sm:$0xff]   ;;  %v21596_v30 = vld [vmem:[%s23910_s8 + $0x1dc4] ss:$16 sps:$4 sm:$0xff]  }
 0x3cc   : > { %14929 = vmatprep.subr.bf16.mxu0 %v21504_v40  ;;  %16405 = vmatprep.subr.bf16.mxu1 %v21507_v41  ;;  %v21599_v40 = vld [vmem:[%s23910_s8 + $0x1dcc] ss:$16 sps:$4 sm:$0xff]   ;;  %v21594_v41 = vld [vmem:[%s23910_s8 + $0x1dc0] ss:$16 sps:$4 sm:$0xff]  }
 0x3cf   : > { %14930 = vmatpush1.bf16.msra.mxu0 %v21502_v33  ;;  %16406 = vmatpush1.bf16.msra.mxu1 %v21505_v43  ;;  %v21597_v33 = vld [vmem:[%s23910_s8 + $0x1dc8] ss:$16 sps:$4 sm:$0xff]   ;;  %v21602_v43 = vld [vmem:[%s23910_s8 + $0x1de4] ss:$16 sps:$4 sm:$0xff]  }
 0x3d0   : > { %14940 = vmatprep.subr.bf16.mxu0 %v21512_v44  ;;  %16416 = vmatprep.subr.bf16.mxu1 %v21515_v36  ;;  %v21605_v44 = vld [vmem:[%s23910_s8 + $0x1dec] ss:$16 sps:$4 sm:$0xff]   ;;  %v21600_v36 = vld [vmem:[%s23910_s8 + $0x1de0] ss:$16 sps:$4 sm:$0xff]  }
 0x3d2   : > { %14932 = vmatmul.mubr.bf16.vlgmr.msra.gmra.mrb[0].mxu0 %v17451_v46  ;;  %16408 = vmatmul.mubr.bf16.vlgmr.msra.gmra.mrb[0].mxu1 %v17451_v46  ;;  %v21603_v46 = vld [vmem:[%s23910_s8 + $0x1de8] ss:$16 sps:$4 sm:$0xff]  }
 0x3d3   : > { %14941 = vmatpush1.bf16.msra.mxu0 %v21510_v47  ;;  %16417 = vmatpush1.bf16.msra.mxu1 %v21513_v39  ;;  %v21610_v47 = vld [vmem:[%s23910_s8 + $0x1e04] ss:$16 sps:$4 sm:$0xff]   ;;  %v21613_v39 = vld [vmem:[%s23910_s8 + $0x1e0c] ss:$16 sps:$4 sm:$0xff]  }
 0x3d4   : > { %14942 = vmatprep.subr.bf16.mxu0 %v21518_v48  ;;  %16418 = vmatprep.subr.bf16.mxu1 %v21521_v49  ;;  %v25014_v48 = vld [vmem:[%s26563_s0 + $0x78] sm:$0xff]  ;;  %v17453_v49 = vcombine.low %v24941_v45, %v24941_v45  ;;  %v21614_v45 = vld [vmem:[%s23910_s8 + $0x1e20] ss:$16 sps:$4 sm:$0xff]  }
 0x3d5   : > { %14972 = vmatprep.mubr.bf16.mxu0 %v17454_v50  ;;  %16448 = vmatprep.mubr.bf16.mxu1 %v17454_v50  ;;  %v21608_v50 = vld [vmem:[%s23910_s8 + $0x1e00] ss:$16 sps:$4 sm:$0xff]  }
 0x3d7   : > { %14943 = vmatpush1.bf16.msra.mxu0 %v21516_v42  ;;  %16419 = vmatpush1.bf16.msra.mxu1 %v21519_v51  ;;  %v21611_v42 = vld [vmem:[%s23910_s8 + $0x1e08] ss:$16 sps:$4 sm:$0xff]   ;;  %v21616_v51 = vld [vmem:[%s23910_s8 + $0x1e24] ss:$16 sps:$4 sm:$0xff]  }
 0x3d8   : > { %14944 = vmatprep.subr.bf16.mxu0 %v21524_v52  ;;  %16420 = vmatprep.subr.bf16.mxu1 %v21527_v53  ;;  %v21619_v52 = vld [vmem:[%s23910_s8 + $0x1e2c] ss:$16 sps:$4 sm:$0xff]   ;;  %v17456_v53 = vcombine.high %v25014_v48, %v25014_v48 }
 0x3db   : > { %14945 = vmatpush1.bf16.msra.mxu0 %v21522_v54  ;;  %16421 = vmatpush1.bf16.msra.mxu1 %v21525_v55  ;;  %v21617_v54 = vld [vmem:[%s23910_s8 + $0x1e28] ss:$16 sps:$4 sm:$0xff]   ;;  %v21622_v55 = vld [vmem:[%s23910_s8 + $0x1e44] ss:$16 sps:$4 sm:$0xff]  }
 0x3dc   : > { %14946 = vmatprep.subr.bf16.mxu0 %v21530_v56  ;;  %16422 = vmatprep.subr.bf16.mxu1 %v21533_v57  ;;  %v21625_v56 = vld [vmem:[%s23910_s8 + $0x1e4c] ss:$16 sps:$4 sm:$0xff]   ;;  %v21620_v57 = vld [vmem:[%s23910_s8 + $0x1e40] ss:$16 sps:$4 sm:$0xff]  }
 0x3df   : > { %14947 = vmatpush1.bf16.msra.mxu0 %v21528_v58  ;;  %16423 = vmatpush1.bf16.msra.mxu1 %v21531_v59  ;;  %v21623_v58 = vld [vmem:[%s23910_s8 + $0x1e48] ss:$16 sps:$4 sm:$0xff]   ;;  %v21628_v59 = vld [vmem:[%s23910_s8 + $0x1e64] ss:$16 sps:$4 sm:$0xff]  }
 0x3e0   : > { %14948 = vmatprep.subr.bf16.mxu0 %v21536_v60  ;;  %16424 = vmatprep.subr.bf16.mxu1 %v21539_v61  ;;  %v21631_v60 = vld [vmem:[%s23910_s8 + $0x1e6c] ss:$16 sps:$4 sm:$0xff]   ;;  %v21626_v61 = vld [vmem:[%s23910_s8 + $0x1e60] ss:$16 sps:$4 sm:$0xff]  }
 0x3e3   : > { %14949 = vmatpush1.bf16.msra.mxu0 %v21534_v62  ;;  %16425 = vmatpush1.bf16.msra.mxu1 %v21537_v63  ;;  %v21629_v62 = vld [vmem:[%s23910_s8 + $0x1e68] ss:$16 sps:$4 sm:$0xff]   ;;  %v21634_v63 = vld [vmem:[%s23910_s8 + $0x1e84] ss:$16 sps:$4 sm:$0xff]  }
 0x3e4   : > { %14950 = vmatprep.subr.bf16.mxu0 %v21542_v0  ;;  %16426 = vmatprep.subr.bf16.mxu1 %v21545_v1  ;;  %v21637_v0 = vld [vmem:[%s23910_s8 + $0x1e8c] ss:$16 sps:$4 sm:$0xff]   ;;  %v21632_v1 = vld [vmem:[%s23910_s8 + $0x1e80] ss:$16 sps:$4 sm:$0xff]  }
 0x3e7   : > { %14951 = vmatpush1.bf16.msra.mxu0 %v21540_v2  ;;  %16427 = vmatpush1.bf16.msra.mxu1 %v21543_v3  ;;  %v21635_v2 = vld [vmem:[%s23910_s8 + $0x1e88] ss:$16 sps:$4 sm:$0xff]   ;;  %v21640_v3 = vld [vmem:[%s23910_s8 + $0x1ea4] ss:$16 sps:$4 sm:$0xff]  }
 0x3e8   : > { %14952 = vmatprep.subr.bf16.mxu0 %v21548_v4  ;;  %16428 = vmatprep.subr.bf16.mxu1 %v21551_v5  ;;  %v21643_v4 = vld [vmem:[%s23910_s8 + $0x1eac] ss:$16 sps:$4 sm:$0xff]   ;;  %v21638_v5 = vld [vmem:[%s23910_s8 + $0x1ea0] ss:$16 sps:$4 sm:$0xff]  }
 0x3eb   : > { %14953 = vmatpush1.bf16.msra.mxu0 %v21546_v6  ;;  %16429 = vmatpush1.bf16.msra.mxu1 %v21549_v7  ;;  %v21641_v6 = vld [vmem:[%s23910_s8 + $0x1ea8] ss:$16 sps:$4 sm:$0xff]   ;;  %v21646_v7 = vld [vmem:[%s23910_s8 + $0x1ec4] ss:$16 sps:$4 sm:$0xff]  }
 0x3ec   : > { %14954 = vmatprep.subr.bf16.mxu0 %v21554_v8  ;;  %16430 = vmatprep.subr.bf16.mxu1 %v21557_v9  ;;  %v21649_v8 = vld [vmem:[%s23910_s8 + $0x1ecc] ss:$16 sps:$4 sm:$0xff]   ;;  %v21644_v9 = vld [vmem:[%s23910_s8 + $0x1ec0] ss:$16 sps:$4 sm:$0xff]  }
 0x3ef   : > { %14955 = vmatpush1.bf16.msra.mxu0 %v21552_v10  ;;  %16431 = vmatpush1.bf16.msra.mxu1 %v21555_v12  ;;  %v21647_v10 = vld [vmem:[%s23910_s8 + $0x1ec8] ss:$16 sps:$4 sm:$0xff]   ;;  %v21652_v12 = vld [vmem:[%s23910_s8 + $0x1ee4] ss:$16 sps:$4 sm:$0xff]  }
 0x3f0   : > { %14956 = vmatprep.subr.bf16.mxu0 %v21560_v13  ;;  %16432 = vmatprep.subr.bf16.mxu1 %v21563_v15  ;;  %v21655_v13 = vld [vmem:[%s23910_s8 + $0x1eec] ss:$16 sps:$4 sm:$0xff]   ;;  %v21650_v15 = vld [vmem:[%s23910_s8 + $0x1ee0] ss:$16 sps:$4 sm:$0xff]  }
 0x3f3   : > { %14957 = vmatpush1.bf16.msra.mxu0 %v21558_v16  ;;  %16433 = vmatpush1.bf16.msra.mxu1 %v21561_v11  ;;  %v21653_v16 = vld [vmem:[%s23910_s8 + $0x1ee8] ss:$16 sps:$4 sm:$0xff]   ;;  %v21658_v11 = vld [vmem:[%s23910_s8 + $0x1f04] ss:$16 sps:$4 sm:$0xff]  }
 0x3f4   : > { %14958 = vmatprep.subr.bf16.mxu0 %v21566_v19  ;;  %16434 = vmatprep.subr.bf16.mxu1 %v21569_v20  ;;  %v21661_v19 = vld [vmem:[%s23910_s8 + $0x1f0c] ss:$16 sps:$4 sm:$0xff]   ;;  %v21656_v20 = vld [vmem:[%s23910_s8 + $0x1f00] ss:$16 sps:$4 sm:$0xff]  }
 0x3f7   : > { %14959 = vmatpush1.bf16.msra.mxu0 %v21564_v14  ;;  %16435 = vmatpush1.bf16.msra.mxu1 %v21567_v22  ;;  %v21659_v14 = vld [vmem:[%s23910_s8 + $0x1f08] ss:$16 sps:$4 sm:$0xff]   ;;  %v21664_v22 = vld [vmem:[%s23910_s8 + $0x1f24] ss:$16 sps:$4 sm:$0xff]  }
 0x3f8   : > { %14960 = vmatprep.subr.bf16.mxu0 %v21572_v23  ;;  %16436 = vmatprep.subr.bf16.mxu1 %v21575_v17  ;;  %v21667_v23 = vld [vmem:[%s23910_s8 + $0x1f2c] ss:$16 sps:$4 sm:$0xff]   ;;  %v21662_v17 = vld [vmem:[%s23910_s8 + $0x1f20] ss:$16 sps:$4 sm:$0xff]  }
 0x3fb   : > { %14961 = vmatpush1.bf16.msra.mxu0 %v21570_v25  ;;  %16437 = vmatpush1.bf16.msra.mxu1 %v21573_v26  ;;  %v21665_v25 = vld [vmem:[%s23910_s8 + $0x1f28] ss:$16 sps:$4 sm:$0xff]   ;;  %v21670_v26 = vld [vmem:[%s23910_s8 + $0x1f44] ss:$16 sps:$4 sm:$0xff]  }
 0x3fc   : > { %14962 = vmatprep.subr.bf16.mxu0 %v21578_v18  ;;  %16438 = vmatprep.subr.bf16.mxu1 %v21581_v28  ;;  %v21673_v18 = vld [vmem:[%s23910_s8 + $0x1f4c] ss:$16 sps:$4 sm:$0xff]   ;;  %v21668_v28 = vld [vmem:[%s23910_s8 + $0x1f40] ss:$16 sps:$4 sm:$0xff]  }
 0x3ff   : > { %14963 = vmatpush1.bf16.msra.mxu0 %v21576_v29  ;;  %16439 = vmatpush1.bf16.msra.mxu1 %v21579_v21  ;;  %v21671_v29 = vld [vmem:[%s23910_s8 + $0x1f48] ss:$16 sps:$4 sm:$0xff]   ;;  %v21676_v21 = vld [vmem:[%s23910_s8 + $0x1f64] ss:$16 sps:$4 sm:$0xff]  }
 0x400   : > { %14964 = vmatprep.subr.bf16.mxu0 %v21584_v31  ;;  %16440 = vmatprep.subr.bf16.mxu1 %v21587_v32  ;;  %v21679_v31 = vld [vmem:[%s23910_s8 + $0x1f6c] ss:$16 sps:$4 sm:$0xff]   ;;  %v21674_v32 = vld [vmem:[%s23910_s8 + $0x1f60] ss:$16 sps:$4 sm:$0xff]  }
 0x403   : > { %14965 = vmatpush1.bf16.msra.mxu0 %v21582_v24  ;;  %16441 = vmatpush1.bf16.msra.mxu1 %v21585_v34  ;;  %v21677_v24 = vld [vmem:[%s23910_s8 + $0x1f68] ss:$16 sps:$4 sm:$0xff]   ;;  %v21682_v34 = vld [vmem:[%s23910_s8 + $0x1f84] ss:$16 sps:$4 sm:$0xff]  }
 0x404   : > { %14966 = vmatprep.subr.bf16.mxu0 %v21590_v35  ;;  %16442 = vmatprep.subr.bf16.mxu1 %v21593_v27  ;;  %v21685_v35 = vld [vmem:[%s23910_s8 + $0x1f8c] ss:$16 sps:$4 sm:$0xff]   ;;  %v21680_v27 = vld [vmem:[%s23910_s8 + $0x1f80] ss:$16 sps:$4 sm:$0xff]  }
 0x407   : > { %14967 = vmatpush1.bf16.msra.mxu0 %v21588_v37  ;;  %16443 = vmatpush1.bf16.msra.mxu1 %v21591_v38  ;;  %v21683_v37 = vld [vmem:[%s23910_s8 + $0x1f88] ss:$16 sps:$4 sm:$0xff]   ;;  %v21688_v38 = vld [vmem:[%s23910_s8 + $0x1fa4] ss:$16 sps:$4 sm:$0xff]  }
 0x408   : > { %14968 = vmatprep.subr.bf16.mxu0 %v21596_v30  ;;  %16444 = vmatprep.subr.bf16.mxu1 %v21599_v40  ;;  %v21691_v30 = vld [vmem:[%s23910_s8 + $0x1fac] ss:$16 sps:$4 sm:$0xff]   ;;  %v21686_v40 = vld [vmem:[%s23910_s8 + $0x1fa0] ss:$16 sps:$4 sm:$0xff]  }
 0x40b   : > { %14969 = vmatpush1.bf16.msra.mxu0 %v21594_v41  ;;  %16445 = vmatpush1.bf16.msra.mxu1 %v21597_v33  ;;  %v21689_v41 = vld [vmem:[%s23910_s8 + $0x1fa8] ss:$16 sps:$4 sm:$0xff]   ;;  %v21694_v33 = vld [vmem:[%s23910_s8 + $0x1fc4] ss:$16 sps:$4 sm:$0xff]  }
 0x40c   : > { %14970 = vmatprep.subr.bf16.mxu0 %v21602_v43  ;;  %16446 = vmatprep.subr.bf16.mxu1 %v21605_v44  ;;  %v21697_v43 = vld [vmem:[%s23910_s8 + $0x1fcc] ss:$16 sps:$4 sm:$0xff]   ;;  %v21692_v44 = vld [vmem:[%s23910_s8 + $0x1fc0] ss:$16 sps:$4 sm:$0xff]  }
 0x40f   : > { %14971 = vmatpush1.bf16.msra.mxu0 %v21600_v36  ;;  %16447 = vmatpush1.bf16.msra.mxu1 %v21603_v46  ;;  %v21695_v36 = vld [vmem:[%s23910_s8 + $0x1fc8] ss:$16 sps:$4 sm:$0xff]   ;;  %v21700_v46 = vld [vmem:[%s23910_s8 + $0x1fe4] ss:$16 sps:$4 sm:$0xff]  }
 0x410   : > { %14981 = vmatprep.subr.bf16.mxu0 %v21610_v47  ;;  %16457 = vmatprep.subr.bf16.mxu1 %v21613_v39  ;;  %v21703_v47 = vld [vmem:[%s23910_s8 + $0x1fec] ss:$16 sps:$4 sm:$0xff]   ;;  %v21698_v39 = vld [vmem:[%s23910_s8 + $0x1fe0] ss:$16 sps:$4 sm:$0xff]  }
 0x412   : > { %14973 = vmatmul.mubr.bf16.vlgmr.msra.gmra.mrb[0].mxu0 %v17453_v49  ;;  %16449 = vmatmul.mubr.bf16.vlgmr.msra.gmra.mrb[0].mxu1 %v17453_v49  ;;  %v21701_v49 = vld [vmem:[%s23910_s8 + $0x1fe8] ss:$16 sps:$4 sm:$0xff]  }
 0x413   : > { %14982 = vmatpush1.bf16.msra.mxu0 %v21608_v50  ;;  %16458 = vmatpush1.bf16.msra.mxu1 %v21611_v42  ;;  %v21708_v50 = vld [vmem:[%s23910_s8 + $0x2004] ss:$16 sps:$4 sm:$0xff]   ;;  %v21711_v42 = vld [vmem:[%s23910_s8 + $0x200c] ss:$16 sps:$4 sm:$0xff]  }
 0x414   : > { %14983 = vmatprep.subr.bf16.mxu0 %v21616_v51  ;;  %16459 = vmatprep.subr.bf16.mxu1 %v21619_v52  ;;  %v25087_v51 = vld [vmem:[%s26563_s0 + $0x80] sm:$0xff]  ;;  %v17455_v52 = vcombine.low %v25014_v48, %v25014_v48 }
 0x415   : > { %15013 = vmatprep.mubr.bf16.mxu0 %v17456_v53  ;;  %16489 = vmatprep.mubr.bf16.mxu1 %v17456_v53  ;;  %v21706_v53 = vld [vmem:[%s23910_s8 + $0x2000] ss:$16 sps:$4 sm:$0xff]  }
 0x416   : > { %v21712_v48 = vld [vmem:[%s23910_s8 + $0x2020] ss:$16 sps:$4 sm:$0xff]  }
 0x417   : > { %14984 = vmatpush1.bf16.msra.mxu0 %v21614_v45  ;;  %16460 = vmatpush1.bf16.msra.mxu1 %v21617_v54  ;;  %v21709_v45 = vld [vmem:[%s23910_s8 + $0x2008] ss:$16 sps:$4 sm:$0xff]   ;;  %v21714_v54 = vld [vmem:[%s23910_s8 + $0x2024] ss:$16 sps:$4 sm:$0xff]  }
 0x418   : > { %14985 = vmatprep.subr.bf16.mxu0 %v21622_v55  ;;  %16461 = vmatprep.subr.bf16.mxu1 %v21625_v56  ;;  %v21717_v55 = vld [vmem:[%s23910_s8 + $0x202c] ss:$16 sps:$4 sm:$0xff]   ;;  %v17458_v56 = vcombine.high %v25087_v51, %v25087_v51 }
 0x41b   : > { %14986 = vmatpush1.bf16.msra.mxu0 %v21620_v57  ;;  %16462 = vmatpush1.bf16.msra.mxu1 %v21623_v58  ;;  %v21715_v57 = vld [vmem:[%s23910_s8 + $0x2028] ss:$16 sps:$4 sm:$0xff]   ;;  %v21720_v58 = vld [vmem:[%s23910_s8 + $0x2044] ss:$16 sps:$4 sm:$0xff]  }
 0x41c   : > { %14987 = vmatprep.subr.bf16.mxu0 %v21628_v59  ;;  %16463 = vmatprep.subr.bf16.mxu1 %v21631_v60  ;;  %v21723_v59 = vld [vmem:[%s23910_s8 + $0x204c] ss:$16 sps:$4 sm:$0xff]   ;;  %v21718_v60 = vld [vmem:[%s23910_s8 + $0x2040] ss:$16 sps:$4 sm:$0xff]  }
 0x41f   : > { %14988 = vmatpush1.bf16.msra.mxu0 %v21626_v61  ;;  %16464 = vmatpush1.bf16.msra.mxu1 %v21629_v62  ;;  %v21721_v61 = vld [vmem:[%s23910_s8 + $0x2048] ss:$16 sps:$4 sm:$0xff]   ;;  %v21726_v62 = vld [vmem:[%s23910_s8 + $0x2064] ss:$16 sps:$4 sm:$0xff]  }
 0x420   : > { %14989 = vmatprep.subr.bf16.mxu0 %v21634_v63  ;;  %16465 = vmatprep.subr.bf16.mxu1 %v21637_v0  ;;  %v21729_v63 = vld [vmem:[%s23910_s8 + $0x206c] ss:$16 sps:$4 sm:$0xff]   ;;  %v21724_v0 = vld [vmem:[%s23910_s8 + $0x2060] ss:$16 sps:$4 sm:$0xff]  }
 0x423   : > { %14990 = vmatpush1.bf16.msra.mxu0 %v21632_v1  ;;  %16466 = vmatpush1.bf16.msra.mxu1 %v21635_v2  ;;  %v21727_v1 = vld [vmem:[%s23910_s8 + $0x2068] ss:$16 sps:$4 sm:$0xff]   ;;  %v21732_v2 = vld [vmem:[%s23910_s8 + $0x2084] ss:$16 sps:$4 sm:$0xff]  }
 0x424   : > { %14991 = vmatprep.subr.bf16.mxu0 %v21640_v3  ;;  %16467 = vmatprep.subr.bf16.mxu1 %v21643_v4  ;;  %v21735_v3 = vld [vmem:[%s23910_s8 + $0x208c] ss:$16 sps:$4 sm:$0xff]   ;;  %v21730_v4 = vld [vmem:[%s23910_s8 + $0x2080] ss:$16 sps:$4 sm:$0xff]  }
 0x427   : > { %14992 = vmatpush1.bf16.msra.mxu0 %v21638_v5  ;;  %16468 = vmatpush1.bf16.msra.mxu1 %v21641_v6  ;;  %v21733_v5 = vld [vmem:[%s23910_s8 + $0x2088] ss:$16 sps:$4 sm:$0xff]   ;;  %v21738_v6 = vld [vmem:[%s23910_s8 + $0x20a4] ss:$16 sps:$4 sm:$0xff]  }
 0x428   : > { %14993 = vmatprep.subr.bf16.mxu0 %v21646_v7  ;;  %16469 = vmatprep.subr.bf16.mxu1 %v21649_v8  ;;  %v21741_v7 = vld [vmem:[%s23910_s8 + $0x20ac] ss:$16 sps:$4 sm:$0xff]   ;;  %v21736_v8 = vld [vmem:[%s23910_s8 + $0x20a0] ss:$16 sps:$4 sm:$0xff]  }
 0x42b   : > { %14994 = vmatpush1.bf16.msra.mxu0 %v21644_v9  ;;  %16470 = vmatpush1.bf16.msra.mxu1 %v21647_v10  ;;  %v21739_v9 = vld [vmem:[%s23910_s8 + $0x20a8] ss:$16 sps:$4 sm:$0xff]   ;;  %v21744_v10 = vld [vmem:[%s23910_s8 + $0x20c4] ss:$16 sps:$4 sm:$0xff]  }
 0x42c   : > { %14995 = vmatprep.subr.bf16.mxu0 %v21652_v12  ;;  %16471 = vmatprep.subr.bf16.mxu1 %v21655_v13  ;;  %v21747_v12 = vld [vmem:[%s23910_s8 + $0x20cc] ss:$16 sps:$4 sm:$0xff]   ;;  %v21742_v13 = vld [vmem:[%s23910_s8 + $0x20c0] ss:$16 sps:$4 sm:$0xff]  }
 0x42f   : > { %14996 = vmatpush1.bf16.msra.mxu0 %v21650_v15  ;;  %16472 = vmatpush1.bf16.msra.mxu1 %v21653_v16  ;;  %v21745_v15 = vld [vmem:[%s23910_s8 + $0x20c8] ss:$16 sps:$4 sm:$0xff]   ;;  %v21750_v16 = vld [vmem:[%s23910_s8 + $0x20e4] ss:$16 sps:$4 sm:$0xff]  }
 0x430   : > { %14997 = vmatprep.subr.bf16.mxu0 %v21658_v11  ;;  %16473 = vmatprep.subr.bf16.mxu1 %v21661_v19  ;;  %v21753_v11 = vld [vmem:[%s23910_s8 + $0x20ec] ss:$16 sps:$4 sm:$0xff]   ;;  %v21748_v19 = vld [vmem:[%s23910_s8 + $0x20e0] ss:$16 sps:$4 sm:$0xff]  }
 0x433   : > { %14998 = vmatpush1.bf16.msra.mxu0 %v21656_v20  ;;  %16474 = vmatpush1.bf16.msra.mxu1 %v21659_v14  ;;  %v21751_v20 = vld [vmem:[%s23910_s8 + $0x20e8] ss:$16 sps:$4 sm:$0xff]   ;;  %v21756_v14 = vld [vmem:[%s23910_s8 + $0x2104] ss:$16 sps:$4 sm:$0xff]  }
 0x434   : > { %14999 = vmatprep.subr.bf16.mxu0 %v21664_v22  ;;  %16475 = vmatprep.subr.bf16.mxu1 %v21667_v23  ;;  %v21759_v22 = vld [vmem:[%s23910_s8 + $0x210c] ss:$16 sps:$4 sm:$0xff]   ;;  %v21754_v23 = vld [vmem:[%s23910_s8 + $0x2100] ss:$16 sps:$4 sm:$0xff]  }
 0x437   : > { %15000 = vmatpush1.bf16.msra.mxu0 %v21662_v17  ;;  %16476 = vmatpush1.bf16.msra.mxu1 %v21665_v25  ;;  %v21757_v17 = vld [vmem:[%s23910_s8 + $0x2108] ss:$16 sps:$4 sm:$0xff]   ;;  %v21762_v25 = vld [vmem:[%s23910_s8 + $0x2124] ss:$16 sps:$4 sm:$0xff]  }
 0x438   : > { %15001 = vmatprep.subr.bf16.mxu0 %v21670_v26  ;;  %16477 = vmatprep.subr.bf16.mxu1 %v21673_v18  ;;  %v21765_v26 = vld [vmem:[%s23910_s8 + $0x212c] ss:$16 sps:$4 sm:$0xff]   ;;  %v21760_v18 = vld [vmem:[%s23910_s8 + $0x2120] ss:$16 sps:$4 sm:$0xff]  }
 0x43b   : > { %15002 = vmatpush1.bf16.msra.mxu0 %v21668_v28  ;;  %16478 = vmatpush1.bf16.msra.mxu1 %v21671_v29  ;;  %v21763_v28 = vld [vmem:[%s23910_s8 + $0x2128] ss:$16 sps:$4 sm:$0xff]   ;;  %v21768_v29 = vld [vmem:[%s23910_s8 + $0x2144] ss:$16 sps:$4 sm:$0xff]  }
 0x43c   : > { %15003 = vmatprep.subr.bf16.mxu0 %v21676_v21  ;;  %16479 = vmatprep.subr.bf16.mxu1 %v21679_v31  ;;  %v21771_v21 = vld [vmem:[%s23910_s8 + $0x214c] ss:$16 sps:$4 sm:$0xff]   ;;  %v21766_v31 = vld [vmem:[%s23910_s8 + $0x2140] ss:$16 sps:$4 sm:$0xff]  }
 0x43f   : > { %15004 = vmatpush1.bf16.msra.mxu0 %v21674_v32  ;;  %16480 = vmatpush1.bf16.msra.mxu1 %v21677_v24  ;;  %v21769_v32 = vld [vmem:[%s23910_s8 + $0x2148] ss:$16 sps:$4 sm:$0xff]   ;;  %v21774_v24 = vld [vmem:[%s23910_s8 + $0x2164] ss:$16 sps:$4 sm:$0xff]  }
 0x440   : > { %15005 = vmatprep.subr.bf16.mxu0 %v21682_v34  ;;  %16481 = vmatprep.subr.bf16.mxu1 %v21685_v35  ;;  %v21777_v34 = vld [vmem:[%s23910_s8 + $0x216c] ss:$16 sps:$4 sm:$0xff]   ;;  %v21772_v35 = vld [vmem:[%s23910_s8 + $0x2160] ss:$16 sps:$4 sm:$0xff]  }
 0x443   : > { %15006 = vmatpush1.bf16.msra.mxu0 %v21680_v27  ;;  %16482 = vmatpush1.bf16.msra.mxu1 %v21683_v37  ;;  %v21775_v27 = vld [vmem:[%s23910_s8 + $0x2168] ss:$16 sps:$4 sm:$0xff]   ;;  %v21780_v37 = vld [vmem:[%s23910_s8 + $0x2184] ss:$16 sps:$4 sm:$0xff]  }
 0x444   : > { %15007 = vmatprep.subr.bf16.mxu0 %v21688_v38  ;;  %16483 = vmatprep.subr.bf16.mxu1 %v21691_v30  ;;  %v21783_v38 = vld [vmem:[%s23910_s8 + $0x218c] ss:$16 sps:$4 sm:$0xff]   ;;  %v21778_v30 = vld [vmem:[%s23910_s8 + $0x2180] ss:$16 sps:$4 sm:$0xff]  }
 0x447   : > { %15008 = vmatpush1.bf16.msra.mxu0 %v21686_v40  ;;  %16484 = vmatpush1.bf16.msra.mxu1 %v21689_v41  ;;  %v21781_v40 = vld [vmem:[%s23910_s8 + $0x2188] ss:$16 sps:$4 sm:$0xff]   ;;  %v21786_v41 = vld [vmem:[%s23910_s8 + $0x21a4] ss:$16 sps:$4 sm:$0xff]  }
 0x448   : > { %15009 = vmatprep.subr.bf16.mxu0 %v21694_v33  ;;  %16485 = vmatprep.subr.bf16.mxu1 %v21697_v43  ;;  %v21789_v33 = vld [vmem:[%s23910_s8 + $0x21ac] ss:$16 sps:$4 sm:$0xff]   ;;  %v21784_v43 = vld [vmem:[%s23910_s8 + $0x21a0] ss:$16 sps:$4 sm:$0xff]  }
 0x44b   : > { %15010 = vmatpush1.bf16.msra.mxu0 %v21692_v44  ;;  %16486 = vmatpush1.bf16.msra.mxu1 %v21695_v36  ;;  %v21787_v44 = vld [vmem:[%s23910_s8 + $0x21a8] ss:$16 sps:$4 sm:$0xff]   ;;  %v21792_v36 = vld [vmem:[%s23910_s8 + $0x21c4] ss:$16 sps:$4 sm:$0xff]  }
 0x44c   : > { %15011 = vmatprep.subr.bf16.mxu0 %v21700_v46  ;;  %16487 = vmatprep.subr.bf16.mxu1 %v21703_v47  ;;  %v21795_v46 = vld [vmem:[%s23910_s8 + $0x21cc] ss:$16 sps:$4 sm:$0xff]   ;;  %v21790_v47 = vld [vmem:[%s23910_s8 + $0x21c0] ss:$16 sps:$4 sm:$0xff]  }
 0x44f   : > { %15012 = vmatpush1.bf16.msra.mxu0 %v21698_v39  ;;  %16488 = vmatpush1.bf16.msra.mxu1 %v21701_v49  ;;  %v21793_v39 = vld [vmem:[%s23910_s8 + $0x21c8] ss:$16 sps:$4 sm:$0xff]   ;;  %v21798_v49 = vld [vmem:[%s23910_s8 + $0x21e4] ss:$16 sps:$4 sm:$0xff]  }
 0x450   : > { %15022 = vmatprep.subr.bf16.mxu0 %v21708_v50  ;;  %16498 = vmatprep.subr.bf16.mxu1 %v21711_v42  ;;  %v21801_v50 = vld [vmem:[%s23910_s8 + $0x21ec] ss:$16 sps:$4 sm:$0xff]   ;;  %v21796_v42 = vld [vmem:[%s23910_s8 + $0x21e0] ss:$16 sps:$4 sm:$0xff]  }
 0x452   : > { %15014 = vmatmul.mubr.bf16.vlgmr.msra.gmra.mrb[0].mxu0 %v17455_v52  ;;  %16490 = vmatmul.mubr.bf16.vlgmr.msra.gmra.mrb[0].mxu1 %v17455_v52  ;;  %v21799_v52 = vld [vmem:[%s23910_s8 + $0x21e8] ss:$16 sps:$4 sm:$0xff]  }
 0x453   : > { %15023 = vmatpush1.bf16.msra.mxu0 %v21706_v53  ;;  %16499 = vmatpush1.bf16.msra.mxu1 %v21709_v45  ;;  %v21806_v53 = vld [vmem:[%s23910_s8 + $0x2204] ss:$16 sps:$4 sm:$0xff]   ;;  %v21809_v45 = vld [vmem:[%s23910_s8 + $0x220c] ss:$16 sps:$4 sm:$0xff]  }
 0x454   : > { %15024 = vmatprep.subr.bf16.mxu0 %v21714_v54  ;;  %16500 = vmatprep.subr.bf16.mxu1 %v21717_v55  ;;  %v25160_v54 = vld [vmem:[%s26563_s0 + $0x88] sm:$0xff]  ;;  %v17457_v55 = vcombine.low %v25087_v51, %v25087_v51  ;;  %v21810_v51 = vld [vmem:[%s23910_s8 + $0x2220] ss:$16 sps:$4 sm:$0xff]  }
 0x455   : > { %15054 = vmatprep.mubr.bf16.mxu0 %v17458_v56  ;;  %16530 = vmatprep.mubr.bf16.mxu1 %v17458_v56  ;;  %v21804_v56 = vld [vmem:[%s23910_s8 + $0x2200] ss:$16 sps:$4 sm:$0xff]  }
 0x457   : > { %15025 = vmatpush1.bf16.msra.mxu0 %v21712_v48  ;;  %16501 = vmatpush1.bf16.msra.mxu1 %v21715_v57  ;;  %v21807_v48 = vld [vmem:[%s23910_s8 + $0x2208] ss:$16 sps:$4 sm:$0xff]   ;;  %v21812_v57 = vld [vmem:[%s23910_s8 + $0x2224] ss:$16 sps:$4 sm:$0xff]  }
 0x458   : > { %15026 = vmatprep.subr.bf16.mxu0 %v21720_v58  ;;  %16502 = vmatprep.subr.bf16.mxu1 %v21723_v59  ;;  %v21815_v58 = vld [vmem:[%s23910_s8 + $0x222c] ss:$16 sps:$4 sm:$0xff]   ;;  %v17460_v59 = vcombine.high %v25160_v54, %v25160_v54 }
 0x45b   : > { %15027 = vmatpush1.bf16.msra.mxu0 %v21718_v60  ;;  %16503 = vmatpush1.bf16.msra.mxu1 %v21721_v61  ;;  %v21813_v60 = vld [vmem:[%s23910_s8 + $0x2228] ss:$16 sps:$4 sm:$0xff]   ;;  %v21818_v61 = vld [vmem:[%s23910_s8 + $0x2244] ss:$16 sps:$4 sm:$0xff]  }
 0x45c   : > { %15028 = vmatprep.subr.bf16.mxu0 %v21726_v62  ;;  %16504 = vmatprep.subr.bf16.mxu1 %v21729_v63  ;;  %v21821_v62 = vld [vmem:[%s23910_s8 + $0x224c] ss:$16 sps:$4 sm:$0xff]   ;;  %v21816_v63 = vld [vmem:[%s23910_s8 + $0x2240] ss:$16 sps:$4 sm:$0xff]  }
 0x45f   : > { %15029 = vmatpush1.bf16.msra.mxu0 %v21724_v0  ;;  %16505 = vmatpush1.bf16.msra.mxu1 %v21727_v1  ;;  %v21819_v0 = vld [vmem:[%s23910_s8 + $0x2248] ss:$16 sps:$4 sm:$0xff]   ;;  %v21824_v1 = vld [vmem:[%s23910_s8 + $0x2264] ss:$16 sps:$4 sm:$0xff]  }
 0x460   : > { %15030 = vmatprep.subr.bf16.mxu0 %v21732_v2  ;;  %16506 = vmatprep.subr.bf16.mxu1 %v21735_v3  ;;  %v21827_v2 = vld [vmem:[%s23910_s8 + $0x226c] ss:$16 sps:$4 sm:$0xff]   ;;  %v21822_v3 = vld [vmem:[%s23910_s8 + $0x2260] ss:$16 sps:$4 sm:$0xff]  }
 0x463   : > { %15031 = vmatpush1.bf16.msra.mxu0 %v21730_v4  ;;  %16507 = vmatpush1.bf16.msra.mxu1 %v21733_v5  ;;  %v21825_v4 = vld [vmem:[%s23910_s8 + $0x2268] ss:$16 sps:$4 sm:$0xff]   ;;  %v21830_v5 = vld [vmem:[%s23910_s8 + $0x2284] ss:$16 sps:$4 sm:$0xff]  }
 0x464   : > { %15032 = vmatprep.subr.bf16.mxu0 %v21738_v6  ;;  %16508 = vmatprep.subr.bf16.mxu1 %v21741_v7  ;;  %v21833_v6 = vld [vmem:[%s23910_s8 + $0x228c] ss:$16 sps:$4 sm:$0xff]   ;;  %v21828_v7 = vld [vmem:[%s23910_s8 + $0x2280] ss:$16 sps:$4 sm:$0xff]  }
 0x467   : > { %15033 = vmatpush1.bf16.msra.mxu0 %v21736_v8  ;;  %16509 = vmatpush1.bf16.msra.mxu1 %v21739_v9  ;;  %v21831_v8 = vld [vmem:[%s23910_s8 + $0x2288] ss:$16 sps:$4 sm:$0xff]   ;;  %v21836_v9 = vld [vmem:[%s23910_s8 + $0x22a4] ss:$16 sps:$4 sm:$0xff]  }
 0x468   : > { %15034 = vmatprep.subr.bf16.mxu0 %v21744_v10  ;;  %16510 = vmatprep.subr.bf16.mxu1 %v21747_v12  ;;  %v21839_v10 = vld [vmem:[%s23910_s8 + $0x22ac] ss:$16 sps:$4 sm:$0xff]   ;;  %v21834_v12 = vld [vmem:[%s23910_s8 + $0x22a0] ss:$16 sps:$4 sm:$0xff]  }
 0x46b   : > { %15035 = vmatpush1.bf16.msra.mxu0 %v21742_v13  ;;  %16511 = vmatpush1.bf16.msra.mxu1 %v21745_v15  ;;  %v21837_v13 = vld [vmem:[%s23910_s8 + $0x22a8] ss:$16 sps:$4 sm:$0xff]   ;;  %v21842_v15 = vld [vmem:[%s23910_s8 + $0x22c4] ss:$16 sps:$4 sm:$0xff]  }
 0x46c   : > { %15036 = vmatprep.subr.bf16.mxu0 %v21750_v16  ;;  %16512 = vmatprep.subr.bf16.mxu1 %v21753_v11  ;;  %v21845_v16 = vld [vmem:[%s23910_s8 + $0x22cc] ss:$16 sps:$4 sm:$0xff]   ;;  %v21840_v11 = vld [vmem:[%s23910_s8 + $0x22c0] ss:$16 sps:$4 sm:$0xff]  }
 0x46f   : > { %15037 = vmatpush1.bf16.msra.mxu0 %v21748_v19  ;;  %16513 = vmatpush1.bf16.msra.mxu1 %v21751_v20  ;;  %v21843_v19 = vld [vmem:[%s23910_s8 + $0x22c8] ss:$16 sps:$4 sm:$0xff]   ;;  %v21848_v20 = vld [vmem:[%s23910_s8 + $0x22e4] ss:$16 sps:$4 sm:$0xff]  }
 0x470   : > { %15038 = vmatprep.subr.bf16.mxu0 %v21756_v14  ;;  %16514 = vmatprep.subr.bf16.mxu1 %v21759_v22  ;;  %v21851_v14 = vld [vmem:[%s23910_s8 + $0x22ec] ss:$16 sps:$4 sm:$0xff]   ;;  %v21846_v22 = vld [vmem:[%s23910_s8 + $0x22e0] ss:$16 sps:$4 sm:$0xff]  }
 0x473   : > { %15039 = vmatpush1.bf16.msra.mxu0 %v21754_v23  ;;  %16515 = vmatpush1.bf16.msra.mxu1 %v21757_v17  ;;  %v21849_v23 = vld [vmem:[%s23910_s8 + $0x22e8] ss:$16 sps:$4 sm:$0xff]   ;;  %v21854_v17 = vld [vmem:[%s23910_s8 + $0x2304] ss:$16 sps:$4 sm:$0xff]  }
 0x474   : > { %15040 = vmatprep.subr.bf16.mxu0 %v21762_v25  ;;  %16516 = vmatprep.subr.bf16.mxu1 %v21765_v26  ;;  %v21857_v25 = vld [vmem:[%s23910_s8 + $0x230c] ss:$16 sps:$4 sm:$0xff]   ;;  %v21852_v26 = vld [vmem:[%s23910_s8 + $0x2300] ss:$16 sps:$4 sm:$0xff]  }
 0x477   : > { %15041 = vmatpush1.bf16.msra.mxu0 %v21760_v18  ;;  %16517 = vmatpush1.bf16.msra.mxu1 %v21763_v28  ;;  %v21855_v18 = vld [vmem:[%s23910_s8 + $0x2308] ss:$16 sps:$4 sm:$0xff]   ;;  %v21860_v28 = vld [vmem:[%s23910_s8 + $0x2324] ss:$16 sps:$4 sm:$0xff]  }
 0x478   : > { %15042 = vmatprep.subr.bf16.mxu0 %v21768_v29  ;;  %16518 = vmatprep.subr.bf16.mxu1 %v21771_v21  ;;  %v21863_v29 = vld [vmem:[%s23910_s8 + $0x232c] ss:$16 sps:$4 sm:$0xff]   ;;  %v21858_v21 = vld [vmem:[%s23910_s8 + $0x2320] ss:$16 sps:$4 sm:$0xff]  }
 0x47b   : > { %15043 = vmatpush1.bf16.msra.mxu0 %v21766_v31  ;;  %16519 = vmatpush1.bf16.msra.mxu1 %v21769_v32  ;;  %v21861_v31 = vld [vmem:[%s23910_s8 + $0x2328] ss:$16 sps:$4 sm:$0xff]   ;;  %v21866_v32 = vld [vmem:[%s23910_s8 + $0x2344] ss:$16 sps:$4 sm:$0xff]  }
 0x47c   : > { %15044 = vmatprep.subr.bf16.mxu0 %v21774_v24  ;;  %16520 = vmatprep.subr.bf16.mxu1 %v21777_v34  ;;  %v21869_v24 = vld [vmem:[%s23910_s8 + $0x234c] ss:$16 sps:$4 sm:$0xff]   ;;  %v21864_v34 = vld [vmem:[%s23910_s8 + $0x2340] ss:$16 sps:$4 sm:$0xff]  }
 0x47f   : > { %15045 = vmatpush1.bf16.msra.mxu0 %v21772_v35  ;;  %16521 = vmatpush1.bf16.msra.mxu1 %v21775_v27  ;;  %v21867_v35 = vld [vmem:[%s23910_s8 + $0x2348] ss:$16 sps:$4 sm:$0xff]   ;;  %v21872_v27 = vld [vmem:[%s23910_s8 + $0x2364] ss:$16 sps:$4 sm:$0xff]  }
 0x480   : > { %15046 = vmatprep.subr.bf16.mxu0 %v21780_v37  ;;  %16522 = vmatprep.subr.bf16.mxu1 %v21783_v38  ;;  %v21875_v37 = vld [vmem:[%s23910_s8 + $0x236c] ss:$16 sps:$4 sm:$0xff]   ;;  %v21870_v38 = vld [vmem:[%s23910_s8 + $0x2360] ss:$16 sps:$4 sm:$0xff]  }
 0x483   : > { %15047 = vmatpush1.bf16.msra.mxu0 %v21778_v30  ;;  %16523 = vmatpush1.bf16.msra.mxu1 %v21781_v40  ;;  %v21873_v30 = vld [vmem:[%s23910_s8 + $0x2368] ss:$16 sps:$4 sm:$0xff]   ;;  %v21878_v40 = vld [vmem:[%s23910_s8 + $0x2384] ss:$16 sps:$4 sm:$0xff]  }
 0x484   : > { %15048 = vmatprep.subr.bf16.mxu0 %v21786_v41  ;;  %16524 = vmatprep.subr.bf16.mxu1 %v21789_v33  ;;  %v21881_v41 = vld [vmem:[%s23910_s8 + $0x238c] ss:$16 sps:$4 sm:$0xff]   ;;  %v21876_v33 = vld [vmem:[%s23910_s8 + $0x2380] ss:$16 sps:$4 sm:$0xff]  }
 0x487   : > { %15049 = vmatpush1.bf16.msra.mxu0 %v21784_v43  ;;  %16525 = vmatpush1.bf16.msra.mxu1 %v21787_v44  ;;  %v21879_v43 = vld [vmem:[%s23910_s8 + $0x2388] ss:$16 sps:$4 sm:$0xff]   ;;  %v21884_v44 = vld [vmem:[%s23910_s8 + $0x23a4] ss:$16 sps:$4 sm:$0xff]  }
 0x488   : > { %15050 = vmatprep.subr.bf16.mxu0 %v21792_v36  ;;  %16526 = vmatprep.subr.bf16.mxu1 %v21795_v46  ;;  %v21887_v36 = vld [vmem:[%s23910_s8 + $0x23ac] ss:$16 sps:$4 sm:$0xff]   ;;  %v21882_v46 = vld [vmem:[%s23910_s8 + $0x23a0] ss:$16 sps:$4 sm:$0xff]  }
 0x48b   : > { %15051 = vmatpush1.bf16.msra.mxu0 %v21790_v47  ;;  %16527 = vmatpush1.bf16.msra.mxu1 %v21793_v39  ;;  %v21885_v47 = vld [vmem:[%s23910_s8 + $0x23a8] ss:$16 sps:$4 sm:$0xff]   ;;  %v21890_v39 = vld [vmem:[%s23910_s8 + $0x23c4] ss:$16 sps:$4 sm:$0xff]  }
 0x48c   : > { %15052 = vmatprep.subr.bf16.mxu0 %v21798_v49  ;;  %16528 = vmatprep.subr.bf16.mxu1 %v21801_v50  ;;  %v21893_v49 = vld [vmem:[%s23910_s8 + $0x23cc] ss:$16 sps:$4 sm:$0xff]   ;;  %v21888_v50 = vld [vmem:[%s23910_s8 + $0x23c0] ss:$16 sps:$4 sm:$0xff]  }
 0x48f   : > { %15053 = vmatpush1.bf16.msra.mxu0 %v21796_v42  ;;  %16529 = vmatpush1.bf16.msra.mxu1 %v21799_v52  ;;  %v21891_v42 = vld [vmem:[%s23910_s8 + $0x23c8] ss:$16 sps:$4 sm:$0xff]   ;;  %v21896_v52 = vld [vmem:[%s23910_s8 + $0x23e4] ss:$16 sps:$4 sm:$0xff]  }
 0x490   : > { %15063 = vmatprep.subr.bf16.mxu0 %v21806_v53  ;;  %16539 = vmatprep.subr.bf16.mxu1 %v21809_v45  ;;  %v21899_v53 = vld [vmem:[%s23910_s8 + $0x23ec] ss:$16 sps:$4 sm:$0xff]   ;;  %v21894_v45 = vld [vmem:[%s23910_s8 + $0x23e0] ss:$16 sps:$4 sm:$0xff]  }
 0x492   : > { %15055 = vmatmul.mubr.bf16.vlgmr.msra.gmra.mrb[0].mxu0 %v17457_v55  ;;  %16531 = vmatmul.mubr.bf16.vlgmr.msra.gmra.mrb[0].mxu1 %v17457_v55  ;;  %v21897_v55 = vld [vmem:[%s23910_s8 + $0x23e8] ss:$16 sps:$4 sm:$0xff]  }
 0x493   : > { %15064 = vmatpush1.bf16.msra.mxu0 %v21804_v56  ;;  %16540 = vmatpush1.bf16.msra.mxu1 %v21807_v48  ;;  %v21904_v56 = vld [vmem:[%s23910_s8 + $0x2404] ss:$16 sps:$4 sm:$0xff]   ;;  %v21907_v48 = vld [vmem:[%s23910_s8 + $0x240c] ss:$16 sps:$4 sm:$0xff]  }
 0x494   : > { %15065 = vmatprep.subr.bf16.mxu0 %v21812_v57  ;;  %16541 = vmatprep.subr.bf16.mxu1 %v21815_v58  ;;  %v25233_v57 = vld [vmem:[%s26563_s0 + $0x90] sm:$0xff]  ;;  %v17459_v58 = vcombine.low %v25160_v54, %v25160_v54 }
 0x495   : > { %15095 = vmatprep.mubr.bf16.mxu0 %v17460_v59  ;;  %16571 = vmatprep.mubr.bf16.mxu1 %v17460_v59  ;;  %v21902_v59 = vld [vmem:[%s23910_s8 + $0x2400] ss:$16 sps:$4 sm:$0xff]  }
 0x496   : > { %v21908_v54 = vld [vmem:[%s23910_s8 + $0x2420] ss:$16 sps:$4 sm:$0xff]  }
 0x497   : > { %15066 = vmatpush1.bf16.msra.mxu0 %v21810_v51  ;;  %16542 = vmatpush1.bf16.msra.mxu1 %v21813_v60  ;;  %v21905_v51 = vld [vmem:[%s23910_s8 + $0x2408] ss:$16 sps:$4 sm:$0xff]   ;;  %v21910_v60 = vld [vmem:[%s23910_s8 + $0x2424] ss:$16 sps:$4 sm:$0xff]  }
 0x498   : > { %15067 = vmatprep.subr.bf16.mxu0 %v21818_v61  ;;  %16543 = vmatprep.subr.bf16.mxu1 %v21821_v62  ;;  %v21913_v61 = vld [vmem:[%s23910_s8 + $0x242c] ss:$16 sps:$4 sm:$0xff]   ;;  %v17462_v62 = vcombine.high %v25233_v57, %v25233_v57 }
 0x49b   : > { %15068 = vmatpush1.bf16.msra.mxu0 %v21816_v63  ;;  %16544 = vmatpush1.bf16.msra.mxu1 %v21819_v0  ;;  %v21911_v63 = vld [vmem:[%s23910_s8 + $0x2428] ss:$16 sps:$4 sm:$0xff]   ;;  %v21916_v0 = vld [vmem:[%s23910_s8 + $0x2444] ss:$16 sps:$4 sm:$0xff]  }
 0x49c   : > { %15069 = vmatprep.subr.bf16.mxu0 %v21824_v1  ;;  %16545 = vmatprep.subr.bf16.mxu1 %v21827_v2  ;;  %v21919_v1 = vld [vmem:[%s23910_s8 + $0x244c] ss:$16 sps:$4 sm:$0xff]   ;;  %v21914_v2 = vld [vmem:[%s23910_s8 + $0x2440] ss:$16 sps:$4 sm:$0xff]  }
 0x49f   : > { %15070 = vmatpush1.bf16.msra.mxu0 %v21822_v3  ;;  %16546 = vmatpush1.bf16.msra.mxu1 %v21825_v4  ;;  %v21917_v3 = vld [vmem:[%s23910_s8 + $0x2448] ss:$16 sps:$4 sm:$0xff]   ;;  %v21922_v4 = vld [vmem:[%s23910_s8 + $0x2464] ss:$16 sps:$4 sm:$0xff]  }
 0x4a0   : > { %15071 = vmatprep.subr.bf16.mxu0 %v21830_v5  ;;  %16547 = vmatprep.subr.bf16.mxu1 %v21833_v6  ;;  %v21925_v5 = vld [vmem:[%s23910_s8 + $0x246c] ss:$16 sps:$4 sm:$0xff]   ;;  %v21920_v6 = vld [vmem:[%s23910_s8 + $0x2460] ss:$16 sps:$4 sm:$0xff]  }
 0x4a3   : > { %15072 = vmatpush1.bf16.msra.mxu0 %v21828_v7  ;;  %16548 = vmatpush1.bf16.msra.mxu1 %v21831_v8  ;;  %v21923_v7 = vld [vmem:[%s23910_s8 + $0x2468] ss:$16 sps:$4 sm:$0xff]   ;;  %v21928_v8 = vld [vmem:[%s23910_s8 + $0x2484] ss:$16 sps:$4 sm:$0xff]  }
 0x4a4   : > { %15073 = vmatprep.subr.bf16.mxu0 %v21836_v9  ;;  %16549 = vmatprep.subr.bf16.mxu1 %v21839_v10  ;;  %v21931_v9 = vld [vmem:[%s23910_s8 + $0x248c] ss:$16 sps:$4 sm:$0xff]   ;;  %v21926_v10 = vld [vmem:[%s23910_s8 + $0x2480] ss:$16 sps:$4 sm:$0xff]  }
 0x4a7   : > { %15074 = vmatpush1.bf16.msra.mxu0 %v21834_v12  ;;  %16550 = vmatpush1.bf16.msra.mxu1 %v21837_v13  ;;  %v21929_v12 = vld [vmem:[%s23910_s8 + $0x2488] ss:$16 sps:$4 sm:$0xff]   ;;  %v21934_v13 = vld [vmem:[%s23910_s8 + $0x24a4] ss:$16 sps:$4 sm:$0xff]  }
 0x4a8   : > { %15075 = vmatprep.subr.bf16.mxu0 %v21842_v15  ;;  %16551 = vmatprep.subr.bf16.mxu1 %v21845_v16  ;;  %v21937_v15 = vld [vmem:[%s23910_s8 + $0x24ac] ss:$16 sps:$4 sm:$0xff]   ;;  %v21932_v16 = vld [vmem:[%s23910_s8 + $0x24a0] ss:$16 sps:$4 sm:$0xff]  }
 0x4ab   : > { %15076 = vmatpush1.bf16.msra.mxu0 %v21840_v11  ;;  %16552 = vmatpush1.bf16.msra.mxu1 %v21843_v19  ;;  %v21935_v11 = vld [vmem:[%s23910_s8 + $0x24a8] ss:$16 sps:$4 sm:$0xff]   ;;  %v21940_v19 = vld [vmem:[%s23910_s8 + $0x24c4] ss:$16 sps:$4 sm:$0xff]  }
 0x4ac   : > { %15077 = vmatprep.subr.bf16.mxu0 %v21848_v20  ;;  %16553 = vmatprep.subr.bf16.mxu1 %v21851_v14  ;;  %v21943_v20 = vld [vmem:[%s23910_s8 + $0x24cc] ss:$16 sps:$4 sm:$0xff]   ;;  %v21938_v14 = vld [vmem:[%s23910_s8 + $0x24c0] ss:$16 sps:$4 sm:$0xff]  }
 0x4af   : > { %15078 = vmatpush1.bf16.msra.mxu0 %v21846_v22  ;;  %16554 = vmatpush1.bf16.msra.mxu1 %v21849_v23  ;;  %v21941_v22 = vld [vmem:[%s23910_s8 + $0x24c8] ss:$16 sps:$4 sm:$0xff]   ;;  %v21946_v23 = vld [vmem:[%s23910_s8 + $0x24e4] ss:$16 sps:$4 sm:$0xff]  }
 0x4b0   : > { %15079 = vmatprep.subr.bf16.mxu0 %v21854_v17  ;;  %16555 = vmatprep.subr.bf16.mxu1 %v21857_v25  ;;  %v21949_v17 = vld [vmem:[%s23910_s8 + $0x24ec] ss:$16 sps:$4 sm:$0xff]   ;;  %v21944_v25 = vld [vmem:[%s23910_s8 + $0x24e0] ss:$16 sps:$4 sm:$0xff]  }
 0x4b3   : > { %15080 = vmatpush1.bf16.msra.mxu0 %v21852_v26  ;;  %16556 = vmatpush1.bf16.msra.mxu1 %v21855_v18  ;;  %v21947_v26 = vld [vmem:[%s23910_s8 + $0x24e8] ss:$16 sps:$4 sm:$0xff]   ;;  %v21952_v18 = vld [vmem:[%s23910_s8 + $0x2504] ss:$16 sps:$4 sm:$0xff]  }
 0x4b4   : > { %15081 = vmatprep.subr.bf16.mxu0 %v21860_v28  ;;  %16557 = vmatprep.subr.bf16.mxu1 %v21863_v29  ;;  %v21955_v28 = vld [vmem:[%s23910_s8 + $0x250c] ss:$16 sps:$4 sm:$0xff]   ;;  %v21950_v29 = vld [vmem:[%s23910_s8 + $0x2500] ss:$16 sps:$4 sm:$0xff]  }
 0x4b7   : > { %15082 = vmatpush1.bf16.msra.mxu0 %v21858_v21  ;;  %16558 = vmatpush1.bf16.msra.mxu1 %v21861_v31  ;;  %v21953_v21 = vld [vmem:[%s23910_s8 + $0x2508] ss:$16 sps:$4 sm:$0xff]   ;;  %v21958_v31 = vld [vmem:[%s23910_s8 + $0x2524] ss:$16 sps:$4 sm:$0xff]  }
 0x4b8   : > { %15083 = vmatprep.subr.bf16.mxu0 %v21866_v32  ;;  %16559 = vmatprep.subr.bf16.mxu1 %v21869_v24  ;;  %v21961_v32 = vld [vmem:[%s23910_s8 + $0x252c] ss:$16 sps:$4 sm:$0xff]   ;;  %v21956_v24 = vld [vmem:[%s23910_s8 + $0x2520] ss:$16 sps:$4 sm:$0xff]  }
 0x4bb   : > { %15084 = vmatpush1.bf16.msra.mxu0 %v21864_v34  ;;  %16560 = vmatpush1.bf16.msra.mxu1 %v21867_v35  ;;  %v21959_v34 = vld [vmem:[%s23910_s8 + $0x2528] ss:$16 sps:$4 sm:$0xff]   ;;  %v21964_v35 = vld [vmem:[%s23910_s8 + $0x2544] ss:$16 sps:$4 sm:$0xff]  }
 0x4bc   : > { %15085 = vmatprep.subr.bf16.mxu0 %v21872_v27  ;;  %16561 = vmatprep.subr.bf16.mxu1 %v21875_v37  ;;  %v21967_v27 = vld [vmem:[%s23910_s8 + $0x254c] ss:$16 sps:$4 sm:$0xff]   ;;  %v21962_v37 = vld [vmem:[%s23910_s8 + $0x2540] ss:$16 sps:$4 sm:$0xff]  }
 0x4bf   : > { %15086 = vmatpush1.bf16.msra.mxu0 %v21870_v38  ;;  %16562 = vmatpush1.bf16.msra.mxu1 %v21873_v30  ;;  %v21965_v38 = vld [vmem:[%s23910_s8 + $0x2548] ss:$16 sps:$4 sm:$0xff]   ;;  %v21970_v30 = vld [vmem:[%s23910_s8 + $0x2564] ss:$16 sps:$4 sm:$0xff]  }
 0x4c0   : > { %15087 = vmatprep.subr.bf16.mxu0 %v21878_v40  ;;  %16563 = vmatprep.subr.bf16.mxu1 %v21881_v41  ;;  %v21973_v40 = vld [vmem:[%s23910_s8 + $0x256c] ss:$16 sps:$4 sm:$0xff]   ;;  %v21968_v41 = vld [vmem:[%s23910_s8 + $0x2560] ss:$16 sps:$4 sm:$0xff]  }
 0x4c3   : > { %15088 = vmatpush1.bf16.msra.mxu0 %v21876_v33  ;;  %16564 = vmatpush1.bf16.msra.mxu1 %v21879_v43  ;;  %v21971_v33 = vld [vmem:[%s23910_s8 + $0x2568] ss:$16 sps:$4 sm:$0xff]   ;;  %v21976_v43 = vld [vmem:[%s23910_s8 + $0x2584] ss:$16 sps:$4 sm:$0xff]  }
 0x4c4   : > { %15089 = vmatprep.subr.bf16.mxu0 %v21884_v44  ;;  %16565 = vmatprep.subr.bf16.mxu1 %v21887_v36  ;;  %v21979_v44 = vld [vmem:[%s23910_s8 + $0x258c] ss:$16 sps:$4 sm:$0xff]   ;;  %v21974_v36 = vld [vmem:[%s23910_s8 + $0x2580] ss:$16 sps:$4 sm:$0xff]  }
 0x4c7   : > { %15090 = vmatpush1.bf16.msra.mxu0 %v21882_v46  ;;  %16566 = vmatpush1.bf16.msra.mxu1 %v21885_v47  ;;  %v21977_v46 = vld [vmem:[%s23910_s8 + $0x2588] ss:$16 sps:$4 sm:$0xff]   ;;  %v21982_v47 = vld [vmem:[%s23910_s8 + $0x25a4] ss:$16 sps:$4 sm:$0xff]  }
 0x4c8   : > { %15091 = vmatprep.subr.bf16.mxu0 %v21890_v39  ;;  %16567 = vmatprep.subr.bf16.mxu1 %v21893_v49  ;;  %v21985_v39 = vld [vmem:[%s23910_s8 + $0x25ac] ss:$16 sps:$4 sm:$0xff]   ;;  %v21980_v49 = vld [vmem:[%s23910_s8 + $0x25a0] ss:$16 sps:$4 sm:$0xff]  }
 0x4cb   : > { %15092 = vmatpush1.bf16.msra.mxu0 %v21888_v50  ;;  %16568 = vmatpush1.bf16.msra.mxu1 %v21891_v42  ;;  %v21983_v50 = vld [vmem:[%s23910_s8 + $0x25a8] ss:$16 sps:$4 sm:$0xff]   ;;  %v21988_v42 = vld [vmem:[%s23910_s8 + $0x25c4] ss:$16 sps:$4 sm:$0xff]  }
 0x4cc   : > { %15093 = vmatprep.subr.bf16.mxu0 %v21896_v52  ;;  %16569 = vmatprep.subr.bf16.mxu1 %v21899_v53  ;;  %v21991_v52 = vld [vmem:[%s23910_s8 + $0x25cc] ss:$16 sps:$4 sm:$0xff]   ;;  %v21986_v53 = vld [vmem:[%s23910_s8 + $0x25c0] ss:$16 sps:$4 sm:$0xff]  }
 0x4cf   : > { %15094 = vmatpush1.bf16.msra.mxu0 %v21894_v45  ;;  %16570 = vmatpush1.bf16.msra.mxu1 %v21897_v55  ;;  %v21989_v45 = vld [vmem:[%s23910_s8 + $0x25c8] ss:$16 sps:$4 sm:$0xff]   ;;  %v21994_v55 = vld [vmem:[%s23910_s8 + $0x25e4] ss:$16 sps:$4 sm:$0xff]  }
 0x4d0   : > { %15104 = vmatprep.subr.bf16.mxu0 %v21904_v56  ;;  %16580 = vmatprep.subr.bf16.mxu1 %v21907_v48  ;;  %v21997_v56 = vld [vmem:[%s23910_s8 + $0x25ec] ss:$16 sps:$4 sm:$0xff]   ;;  %v21992_v48 = vld [vmem:[%s23910_s8 + $0x25e0] ss:$16 sps:$4 sm:$0xff]  }
 0x4d2   : > { %15096 = vmatmul.mubr.bf16.vlgmr.msra.gmra.mrb[0].mxu0 %v17459_v58  ;;  %16572 = vmatmul.mubr.bf16.vlgmr.msra.gmra.mrb[0].mxu1 %v17459_v58  ;;  %v21995_v58 = vld [vmem:[%s23910_s8 + $0x25e8] ss:$16 sps:$4 sm:$0xff]  }
 0x4d3   : > { %15105 = vmatpush1.bf16.msra.mxu0 %v21902_v59  ;;  %16581 = vmatpush1.bf16.msra.mxu1 %v21905_v51  ;;  %v22002_v59 = vld [vmem:[%s23910_s8 + $0x2604] ss:$16 sps:$4 sm:$0xff]   ;;  %v22005_v51 = vld [vmem:[%s23910_s8 + $0x260c] ss:$16 sps:$4 sm:$0xff]  }
 0x4d4   : > { %15106 = vmatprep.subr.bf16.mxu0 %v21910_v60  ;;  %16582 = vmatprep.subr.bf16.mxu1 %v21913_v61  ;;  %v25306_v60 = vld [vmem:[%s26563_s0 + $0x98] sm:$0xff]  ;;  %v17461_v61 = vcombine.low %v25233_v57, %v25233_v57  ;;  %v22006_v57 = vld [vmem:[%s23910_s8 + $0x2620] ss:$16 sps:$4 sm:$0xff]  }
 0x4d5   : > { %15136 = vmatprep.mubr.bf16.mxu0 %v17462_v62  ;;  %16612 = vmatprep.mubr.bf16.mxu1 %v17462_v62  ;;  %v22000_v62 = vld [vmem:[%s23910_s8 + $0x2600] ss:$16 sps:$4 sm:$0xff]  }
 0x4d7   : > { %15107 = vmatpush1.bf16.msra.mxu0 %v21908_v54  ;;  %16583 = vmatpush1.bf16.msra.mxu1 %v21911_v63  ;;  %v22003_v54 = vld [vmem:[%s23910_s8 + $0x2608] ss:$16 sps:$4 sm:$0xff]   ;;  %v22008_v63 = vld [vmem:[%s23910_s8 + $0x2624] ss:$16 sps:$4 sm:$0xff]  }
 0x4d8   : > { %15108 = vmatprep.subr.bf16.mxu0 %v21916_v0  ;;  %16584 = vmatprep.subr.bf16.mxu1 %v21919_v1  ;;  %v22011_v0 = vld [vmem:[%s23910_s8 + $0x262c] ss:$16 sps:$4 sm:$0xff]   ;;  %v17464_v1 = vcombine.high %v25306_v60, %v25306_v60 }
 0x4db   : > { %15109 = vmatpush1.bf16.msra.mxu0 %v21914_v2  ;;  %16585 = vmatpush1.bf16.msra.mxu1 %v21917_v3  ;;  %v22009_v2 = vld [vmem:[%s23910_s8 + $0x2628] ss:$16 sps:$4 sm:$0xff]   ;;  %v22014_v3 = vld [vmem:[%s23910_s8 + $0x2644] ss:$16 sps:$4 sm:$0xff]  }
 0x4dc   : > { %15110 = vmatprep.subr.bf16.mxu0 %v21922_v4  ;;  %16586 = vmatprep.subr.bf16.mxu1 %v21925_v5  ;;  %v22017_v4 = vld [vmem:[%s23910_s8 + $0x264c] ss:$16 sps:$4 sm:$0xff]   ;;  %v22012_v5 = vld [vmem:[%s23910_s8 + $0x2640] ss:$16 sps:$4 sm:$0xff]  }
 0x4df   : > { %15111 = vmatpush1.bf16.msra.mxu0 %v21920_v6  ;;  %16587 = vmatpush1.bf16.msra.mxu1 %v21923_v7  ;;  %v22015_v6 = vld [vmem:[%s23910_s8 + $0x2648] ss:$16 sps:$4 sm:$0xff]   ;;  %v22020_v7 = vld [vmem:[%s23910_s8 + $0x2664] ss:$16 sps:$4 sm:$0xff]  }
 0x4e0   : > { %15112 = vmatprep.subr.bf16.mxu0 %v21928_v8  ;;  %16588 = vmatprep.subr.bf16.mxu1 %v21931_v9  ;;  %v22023_v8 = vld [vmem:[%s23910_s8 + $0x266c] ss:$16 sps:$4 sm:$0xff]   ;;  %v22018_v9 = vld [vmem:[%s23910_s8 + $0x2660] ss:$16 sps:$4 sm:$0xff]  }
 0x4e3   : > { %15113 = vmatpush1.bf16.msra.mxu0 %v21926_v10  ;;  %16589 = vmatpush1.bf16.msra.mxu1 %v21929_v12  ;;  %v22021_v10 = vld [vmem:[%s23910_s8 + $0x2668] ss:$16 sps:$4 sm:$0xff]   ;;  %v22026_v12 = vld [vmem:[%s23910_s8 + $0x2684] ss:$16 sps:$4 sm:$0xff]  }
 0x4e4   : > { %15114 = vmatprep.subr.bf16.mxu0 %v21934_v13  ;;  %16590 = vmatprep.subr.bf16.mxu1 %v21937_v15  ;;  %v22029_v13 = vld [vmem:[%s23910_s8 + $0x268c] ss:$16 sps:$4 sm:$0xff]   ;;  %v22024_v15 = vld [vmem:[%s23910_s8 + $0x2680] ss:$16 sps:$4 sm:$0xff]  }
 0x4e7   : > { %15115 = vmatpush1.bf16.msra.mxu0 %v21932_v16  ;;  %16591 = vmatpush1.bf16.msra.mxu1 %v21935_v11  ;;  %v22027_v16 = vld [vmem:[%s23910_s8 + $0x2688] ss:$16 sps:$4 sm:$0xff]   ;;  %v22032_v11 = vld [vmem:[%s23910_s8 + $0x26a4] ss:$16 sps:$4 sm:$0xff]  }
 0x4e8   : > { %15116 = vmatprep.subr.bf16.mxu0 %v21940_v19  ;;  %16592 = vmatprep.subr.bf16.mxu1 %v21943_v20  ;;  %v22035_v19 = vld [vmem:[%s23910_s8 + $0x26ac] ss:$16 sps:$4 sm:$0xff]   ;;  %v22030_v20 = vld [vmem:[%s23910_s8 + $0x26a0] ss:$16 sps:$4 sm:$0xff]  }
 0x4eb   : > { %15117 = vmatpush1.bf16.msra.mxu0 %v21938_v14  ;;  %16593 = vmatpush1.bf16.msra.mxu1 %v21941_v22  ;;  %v22033_v14 = vld [vmem:[%s23910_s8 + $0x26a8] ss:$16 sps:$4 sm:$0xff]   ;;  %v22038_v22 = vld [vmem:[%s23910_s8 + $0x26c4] ss:$16 sps:$4 sm:$0xff]  }
 0x4ec   : > { %15118 = vmatprep.subr.bf16.mxu0 %v21946_v23  ;;  %16594 = vmatprep.subr.bf16.mxu1 %v21949_v17  ;;  %v22041_v23 = vld [vmem:[%s23910_s8 + $0x26cc] ss:$16 sps:$4 sm:$0xff]   ;;  %v22036_v17 = vld [vmem:[%s23910_s8 + $0x26c0] ss:$16 sps:$4 sm:$0xff]  }
 0x4ef   : > { %15119 = vmatpush1.bf16.msra.mxu0 %v21944_v25  ;;  %16595 = vmatpush1.bf16.msra.mxu1 %v21947_v26  ;;  %v22039_v25 = vld [vmem:[%s23910_s8 + $0x26c8] ss:$16 sps:$4 sm:$0xff]   ;;  %v22044_v26 = vld [vmem:[%s23910_s8 + $0x26e4] ss:$16 sps:$4 sm:$0xff]  }
 0x4f0   : > { %15120 = vmatprep.subr.bf16.mxu0 %v21952_v18  ;;  %16596 = vmatprep.subr.bf16.mxu1 %v21955_v28  ;;  %v22047_v18 = vld [vmem:[%s23910_s8 + $0x26ec] ss:$16 sps:$4 sm:$0xff]   ;;  %v22042_v28 = vld [vmem:[%s23910_s8 + $0x26e0] ss:$16 sps:$4 sm:$0xff]  }
 0x4f3   : > { %15121 = vmatpush1.bf16.msra.mxu0 %v21950_v29  ;;  %16597 = vmatpush1.bf16.msra.mxu1 %v21953_v21  ;;  %v22045_v29 = vld [vmem:[%s23910_s8 + $0x26e8] ss:$16 sps:$4 sm:$0xff]   ;;  %v22050_v21 = vld [vmem:[%s23910_s8 + $0x2704] ss:$16 sps:$4 sm:$0xff]  }
 0x4f4   : > { %15122 = vmatprep.subr.bf16.mxu0 %v21958_v31  ;;  %16598 = vmatprep.subr.bf16.mxu1 %v21961_v32  ;;  %v22053_v31 = vld [vmem:[%s23910_s8 + $0x270c] ss:$16 sps:$4 sm:$0xff]   ;;  %v22048_v32 = vld [vmem:[%s23910_s8 + $0x2700] ss:$16 sps:$4 sm:$0xff]  }
 0x4f7   : > { %15123 = vmatpush1.bf16.msra.mxu0 %v21956_v24  ;;  %16599 = vmatpush1.bf16.msra.mxu1 %v21959_v34  ;;  %v22051_v24 = vld [vmem:[%s23910_s8 + $0x2708] ss:$16 sps:$4 sm:$0xff]   ;;  %v22056_v34 = vld [vmem:[%s23910_s8 + $0x2724] ss:$16 sps:$4 sm:$0xff]  }
 0x4f8   : > { %15124 = vmatprep.subr.bf16.mxu0 %v21964_v35  ;;  %16600 = vmatprep.subr.bf16.mxu1 %v21967_v27  ;;  %v22059_v35 = vld [vmem:[%s23910_s8 + $0x272c] ss:$16 sps:$4 sm:$0xff]   ;;  %v22054_v27 = vld [vmem:[%s23910_s8 + $0x2720] ss:$16 sps:$4 sm:$0xff]  }
 0x4fb   : > { %15125 = vmatpush1.bf16.msra.mxu0 %v21962_v37  ;;  %16601 = vmatpush1.bf16.msra.mxu1 %v21965_v38  ;;  %v22057_v37 = vld [vmem:[%s23910_s8 + $0x2728] ss:$16 sps:$4 sm:$0xff]   ;;  %v22062_v38 = vld [vmem:[%s23910_s8 + $0x2744] ss:$16 sps:$4 sm:$0xff]  }
 0x4fc   : > { %15126 = vmatprep.subr.bf16.mxu0 %v21970_v30  ;;  %16602 = vmatprep.subr.bf16.mxu1 %v21973_v40  ;;  %v22065_v30 = vld [vmem:[%s23910_s8 + $0x274c] ss:$16 sps:$4 sm:$0xff]   ;;  %v22060_v40 = vld [vmem:[%s23910_s8 + $0x2740] ss:$16 sps:$4 sm:$0xff]  }
 0x4ff   : > { %15127 = vmatpush1.bf16.msra.mxu0 %v21968_v41  ;;  %16603 = vmatpush1.bf16.msra.mxu1 %v21971_v33  ;;  %v22063_v41 = vld [vmem:[%s23910_s8 + $0x2748] ss:$16 sps:$4 sm:$0xff]   ;;  %v22068_v33 = vld [vmem:[%s23910_s8 + $0x2764] ss:$16 sps:$4 sm:$0xff]  }
 0x500   : > { %15128 = vmatprep.subr.bf16.mxu0 %v21976_v43  ;;  %16604 = vmatprep.subr.bf16.mxu1 %v21979_v44  ;;  %v22071_v43 = vld [vmem:[%s23910_s8 + $0x276c] ss:$16 sps:$4 sm:$0xff]   ;;  %v22066_v44 = vld [vmem:[%s23910_s8 + $0x2760] ss:$16 sps:$4 sm:$0xff]  }
 0x503   : > { %15129 = vmatpush1.bf16.msra.mxu0 %v21974_v36  ;;  %16605 = vmatpush1.bf16.msra.mxu1 %v21977_v46  ;;  %v22069_v36 = vld [vmem:[%s23910_s8 + $0x2768] ss:$16 sps:$4 sm:$0xff]   ;;  %v22074_v46 = vld [vmem:[%s23910_s8 + $0x2784] ss:$16 sps:$4 sm:$0xff]  }
 0x504   : > { %15130 = vmatprep.subr.bf16.mxu0 %v21982_v47  ;;  %16606 = vmatprep.subr.bf16.mxu1 %v21985_v39  ;;  %v22077_v47 = vld [vmem:[%s23910_s8 + $0x278c] ss:$16 sps:$4 sm:$0xff]   ;;  %v22072_v39 = vld [vmem:[%s23910_s8 + $0x2780] ss:$16 sps:$4 sm:$0xff]  }
 0x507   : > { %15131 = vmatpush1.bf16.msra.mxu0 %v21980_v49  ;;  %16607 = vmatpush1.bf16.msra.mxu1 %v21983_v50  ;;  %v22075_v49 = vld [vmem:[%s23910_s8 + $0x2788] ss:$16 sps:$4 sm:$0xff]   ;;  %v22080_v50 = vld [vmem:[%s23910_s8 + $0x27a4] ss:$16 sps:$4 sm:$0xff]  }
 0x508   : > { %15132 = vmatprep.subr.bf16.mxu0 %v21988_v42  ;;  %16608 = vmatprep.subr.bf16.mxu1 %v21991_v52  ;;  %v22083_v42 = vld [vmem:[%s23910_s8 + $0x27ac] ss:$16 sps:$4 sm:$0xff]   ;;  %v22078_v52 = vld [vmem:[%s23910_s8 + $0x27a0] ss:$16 sps:$4 sm:$0xff]  }
 0x50b   : > { %15133 = vmatpush1.bf16.msra.mxu0 %v21986_v53  ;;  %16609 = vmatpush1.bf16.msra.mxu1 %v21989_v45  ;;  %v22081_v53 = vld [vmem:[%s23910_s8 + $0x27a8] ss:$16 sps:$4 sm:$0xff]   ;;  %v22086_v45 = vld [vmem:[%s23910_s8 + $0x27c4] ss:$16 sps:$4 sm:$0xff]  }
 0x50c   : > { %15134 = vmatprep.subr.bf16.mxu0 %v21994_v55  ;;  %16610 = vmatprep.subr.bf16.mxu1 %v21997_v56  ;;  %v22089_v55 = vld [vmem:[%s23910_s8 + $0x27cc] ss:$16 sps:$4 sm:$0xff]   ;;  %v22084_v56 = vld [vmem:[%s23910_s8 + $0x27c0] ss:$16 sps:$4 sm:$0xff]  }
 0x50f   : > { %15135 = vmatpush1.bf16.msra.mxu0 %v21992_v48  ;;  %16611 = vmatpush1.bf16.msra.mxu1 %v21995_v58  ;;  %v22087_v48 = vld [vmem:[%s23910_s8 + $0x27c8] ss:$16 sps:$4 sm:$0xff]   ;;  %v22092_v58 = vld [vmem:[%s23910_s8 + $0x27e4] ss:$16 sps:$4 sm:$0xff]  }
 0x510   : > { %15145 = vmatprep.subr.bf16.mxu0 %v22002_v59  ;;  %16621 = vmatprep.subr.bf16.mxu1 %v22005_v51  ;;  %v22095_v59 = vld [vmem:[%s23910_s8 + $0x27ec] ss:$16 sps:$4 sm:$0xff]   ;;  %v22090_v51 = vld [vmem:[%s23910_s8 + $0x27e0] ss:$16 sps:$4 sm:$0xff]  }
 0x512   : > { %15137 = vmatmul.mubr.bf16.vlgmr.msra.gmra.mrb[0].mxu0 %v17461_v61  ;;  %16613 = vmatmul.mubr.bf16.vlgmr.msra.gmra.mrb[0].mxu1 %v17461_v61  ;;  %v22093_v61 = vld [vmem:[%s23910_s8 + $0x27e8] ss:$16 sps:$4 sm:$0xff]  }
 0x513   : > { %15146 = vmatpush1.bf16.msra.mxu0 %v22000_v62  ;;  %16622 = vmatpush1.bf16.msra.mxu1 %v22003_v54  ;;  %v22100_v62 = vld [vmem:[%s23910_s8 + $0x2804] ss:$16 sps:$4 sm:$0xff]   ;;  %v22103_v54 = vld [vmem:[%s23910_s8 + $0x280c] ss:$16 sps:$4 sm:$0xff]  }
 0x514   : > { %15147 = vmatprep.subr.bf16.mxu0 %v22008_v63  ;;  %16623 = vmatprep.subr.bf16.mxu1 %v22011_v0  ;;  %v17463_v63 = vcombine.low %v25306_v60, %v25306_v60  ;;  %v25381_v0 = vld [vmem:[%s26563_s0 + $0xa0] sm:$0xff] }
 0x515   : > { %15177 = vmatprep.mubr.bf16.mxu0 %v17464_v1  ;;  %16653 = vmatprep.mubr.bf16.mxu1 %v17464_v1  ;;  %v22098_v1 = vld [vmem:[%s23910_s8 + $0x2800] ss:$16 sps:$4 sm:$0xff]   ;;  %v17466_v60 = vcombine.high %v25381_v0, %v25381_v0 }
 0x517   : > { %15148 = vmatpush1.bf16.msra.mxu0 %v22006_v57  ;;  %16624 = vmatpush1.bf16.msra.mxu1 %v22009_v2  ;;  %v22101_v57 = vld [vmem:[%s23910_s8 + $0x2808] ss:$16 sps:$4 sm:$0xff]   ;;  %v22106_v2 = vld [vmem:[%s23910_s8 + $0x2824] ss:$16 sps:$4 sm:$0xff]  }
 0x518   : > { %15149 = vmatprep.subr.bf16.mxu0 %v22014_v3  ;;  %16625 = vmatprep.subr.bf16.mxu1 %v22017_v4  ;;  %v22109_v3 = vld [vmem:[%s23910_s8 + $0x282c] ss:$16 sps:$4 sm:$0xff]   ;;  %v22104_v4 = vld [vmem:[%s23910_s8 + $0x2820] ss:$16 sps:$4 sm:$0xff]  }
 0x51b   : > { %15150 = vmatpush1.bf16.msra.mxu0 %v22012_v5  ;;  %16626 = vmatpush1.bf16.msra.mxu1 %v22015_v6  ;;  %v22107_v5 = vld [vmem:[%s23910_s8 + $0x2828] ss:$16 sps:$4 sm:$0xff]   ;;  %v22112_v6 = vld [vmem:[%s23910_s8 + $0x2844] ss:$16 sps:$4 sm:$0xff]  }
 0x51c   : > { %15151 = vmatprep.subr.bf16.mxu0 %v22020_v7  ;;  %16627 = vmatprep.subr.bf16.mxu1 %v22023_v8  ;;  %v22115_v7 = vld [vmem:[%s23910_s8 + $0x284c] ss:$16 sps:$4 sm:$0xff]   ;;  %v22110_v8 = vld [vmem:[%s23910_s8 + $0x2840] ss:$16 sps:$4 sm:$0xff]  }
 0x51f   : > { %15152 = vmatpush1.bf16.msra.mxu0 %v22018_v9  ;;  %16628 = vmatpush1.bf16.msra.mxu1 %v22021_v10  ;;  %v22113_v9 = vld [vmem:[%s23910_s8 + $0x2848] ss:$16 sps:$4 sm:$0xff]   ;;  %v22118_v10 = vld [vmem:[%s23910_s8 + $0x2864] ss:$16 sps:$4 sm:$0xff]  }
 0x520   : > { %15153 = vmatprep.subr.bf16.mxu0 %v22026_v12  ;;  %16629 = vmatprep.subr.bf16.mxu1 %v22029_v13  ;;  %v22121_v12 = vld [vmem:[%s23910_s8 + $0x286c] ss:$16 sps:$4 sm:$0xff]   ;;  %v22116_v13 = vld [vmem:[%s23910_s8 + $0x2860] ss:$16 sps:$4 sm:$0xff]  }
 0x523   : > { %15154 = vmatpush1.bf16.msra.mxu0 %v22024_v15  ;;  %16630 = vmatpush1.bf16.msra.mxu1 %v22027_v16  ;;  %v22119_v15 = vld [vmem:[%s23910_s8 + $0x2868] ss:$16 sps:$4 sm:$0xff]   ;;  %v22124_v16 = vld [vmem:[%s23910_s8 + $0x2884] ss:$16 sps:$4 sm:$0xff]  }
 0x524   : > { %15155 = vmatprep.subr.bf16.mxu0 %v22032_v11  ;;  %16631 = vmatprep.subr.bf16.mxu1 %v22035_v19  ;;  %v22127_v11 = vld [vmem:[%s23910_s8 + $0x288c] ss:$16 sps:$4 sm:$0xff]   ;;  %v22122_v19 = vld [vmem:[%s23910_s8 + $0x2880] ss:$16 sps:$4 sm:$0xff]  }
 0x527   : > { %15156 = vmatpush1.bf16.msra.mxu0 %v22030_v20  ;;  %16632 = vmatpush1.bf16.msra.mxu1 %v22033_v14  ;;  %v22125_v20 = vld [vmem:[%s23910_s8 + $0x2888] ss:$16 sps:$4 sm:$0xff]   ;;  %v22130_v14 = vld [vmem:[%s23910_s8 + $0x28a4] ss:$16 sps:$4 sm:$0xff]  }
 0x528   : > { %15157 = vmatprep.subr.bf16.mxu0 %v22038_v22  ;;  %16633 = vmatprep.subr.bf16.mxu1 %v22041_v23  ;;  %v22133_v22 = vld [vmem:[%s23910_s8 + $0x28ac] ss:$16 sps:$4 sm:$0xff]   ;;  %v22128_v23 = vld [vmem:[%s23910_s8 + $0x28a0] ss:$16 sps:$4 sm:$0xff]  }
 0x52b   : > { %15158 = vmatpush1.bf16.msra.mxu0 %v22036_v17  ;;  %16634 = vmatpush1.bf16.msra.mxu1 %v22039_v25  ;;  %v22131_v17 = vld [vmem:[%s23910_s8 + $0x28a8] ss:$16 sps:$4 sm:$0xff]   ;;  %v22136_v25 = vld [vmem:[%s23910_s8 + $0x28c4] ss:$16 sps:$4 sm:$0xff]  }
 0x52c   : > { %15159 = vmatprep.subr.bf16.mxu0 %v22044_v26  ;;  %16635 = vmatprep.subr.bf16.mxu1 %v22047_v18  ;;  %v22139_v26 = vld [vmem:[%s23910_s8 + $0x28cc] ss:$16 sps:$4 sm:$0xff]   ;;  %v22134_v18 = vld [vmem:[%s23910_s8 + $0x28c0] ss:$16 sps:$4 sm:$0xff]  }
 0x52f   : > { %15160 = vmatpush1.bf16.msra.mxu0 %v22042_v28  ;;  %16636 = vmatpush1.bf16.msra.mxu1 %v22045_v29  ;;  %v22137_v28 = vld [vmem:[%s23910_s8 + $0x28c8] ss:$16 sps:$4 sm:$0xff]   ;;  %v22142_v29 = vld [vmem:[%s23910_s8 + $0x28e4] ss:$16 sps:$4 sm:$0xff]  }
 0x530   : > { %15161 = vmatprep.subr.bf16.mxu0 %v22050_v21  ;;  %16637 = vmatprep.subr.bf16.mxu1 %v22053_v31  ;;  %v22145_v21 = vld [vmem:[%s23910_s8 + $0x28ec] ss:$16 sps:$4 sm:$0xff]   ;;  %v22140_v31 = vld [vmem:[%s23910_s8 + $0x28e0] ss:$16 sps:$4 sm:$0xff]  }
 0x533   : > { %15162 = vmatpush1.bf16.msra.mxu0 %v22048_v32  ;;  %16638 = vmatpush1.bf16.msra.mxu1 %v22051_v24  ;;  %v22143_v32 = vld [vmem:[%s23910_s8 + $0x28e8] ss:$16 sps:$4 sm:$0xff]   ;;  %v22148_v24 = vld [vmem:[%s23910_s8 + $0x2904] ss:$16 sps:$4 sm:$0xff]  }
 0x534   : > { %15163 = vmatprep.subr.bf16.mxu0 %v22056_v34  ;;  %16639 = vmatprep.subr.bf16.mxu1 %v22059_v35  ;;  %v22151_v34 = vld [vmem:[%s23910_s8 + $0x290c] ss:$16 sps:$4 sm:$0xff]   ;;  %v22146_v35 = vld [vmem:[%s23910_s8 + $0x2900] ss:$16 sps:$4 sm:$0xff]  }
 0x537   : > { %15164 = vmatpush1.bf16.msra.mxu0 %v22054_v27  ;;  %16640 = vmatpush1.bf16.msra.mxu1 %v22057_v37  ;;  %v22149_v27 = vld [vmem:[%s23910_s8 + $0x2908] ss:$16 sps:$4 sm:$0xff]   ;;  %v22154_v37 = vld [vmem:[%s23910_s8 + $0x2924] ss:$16 sps:$4 sm:$0xff]  }
 0x538   : > { %15165 = vmatprep.subr.bf16.mxu0 %v22062_v38  ;;  %16641 = vmatprep.subr.bf16.mxu1 %v22065_v30  ;;  %v22157_v38 = vld [vmem:[%s23910_s8 + $0x292c] ss:$16 sps:$4 sm:$0xff]   ;;  %v22152_v30 = vld [vmem:[%s23910_s8 + $0x2920] ss:$16 sps:$4 sm:$0xff]  }
 0x53b   : > { %15166 = vmatpush1.bf16.msra.mxu0 %v22060_v40  ;;  %16642 = vmatpush1.bf16.msra.mxu1 %v22063_v41  ;;  %v22155_v40 = vld [vmem:[%s23910_s8 + $0x2928] ss:$16 sps:$4 sm:$0xff]   ;;  %v22160_v41 = vld [vmem:[%s23910_s8 + $0x2944] ss:$16 sps:$4 sm:$0xff]  }
 0x53c   : > { %15167 = vmatprep.subr.bf16.mxu0 %v22068_v33  ;;  %16643 = vmatprep.subr.bf16.mxu1 %v22071_v43  ;;  %v22163_v33 = vld [vmem:[%s23910_s8 + $0x294c] ss:$16 sps:$4 sm:$0xff]   ;;  %v22158_v43 = vld [vmem:[%s23910_s8 + $0x2940] ss:$16 sps:$4 sm:$0xff]  }
 0x53f   : > { %15168 = vmatpush1.bf16.msra.mxu0 %v22066_v44  ;;  %16644 = vmatpush1.bf16.msra.mxu1 %v22069_v36  ;;  %v22161_v44 = vld [vmem:[%s23910_s8 + $0x2948] ss:$16 sps:$4 sm:$0xff]   ;;  %v22166_v36 = vld [vmem:[%s23910_s8 + $0x2964] ss:$16 sps:$4 sm:$0xff]  }
 0x540   : > { %15169 = vmatprep.subr.bf16.mxu0 %v22074_v46  ;;  %16645 = vmatprep.subr.bf16.mxu1 %v22077_v47  ;;  %v22169_v46 = vld [vmem:[%s23910_s8 + $0x296c] ss:$16 sps:$4 sm:$0xff]   ;;  %v22164_v47 = vld [vmem:[%s23910_s8 + $0x2960] ss:$16 sps:$4 sm:$0xff]  }
 0x543   : > { %15170 = vmatpush1.bf16.msra.mxu0 %v22072_v39  ;;  %16646 = vmatpush1.bf16.msra.mxu1 %v22075_v49  ;;  %v22167_v39 = vld [vmem:[%s23910_s8 + $0x2968] ss:$16 sps:$4 sm:$0xff]   ;;  %v22172_v49 = vld [vmem:[%s23910_s8 + $0x2984] ss:$16 sps:$4 sm:$0xff]  }
 0x544   : > { %15171 = vmatprep.subr.bf16.mxu0 %v22080_v50  ;;  %16647 = vmatprep.subr.bf16.mxu1 %v22083_v42  ;;  %v22175_v50 = vld [vmem:[%s23910_s8 + $0x298c] ss:$16 sps:$4 sm:$0xff]   ;;  %v22170_v42 = vld [vmem:[%s23910_s8 + $0x2980] ss:$16 sps:$4 sm:$0xff]  }
 0x547   : > { %15172 = vmatpush1.bf16.msra.mxu0 %v22078_v52  ;;  %16648 = vmatpush1.bf16.msra.mxu1 %v22081_v53  ;;  %v22173_v52 = vld [vmem:[%s23910_s8 + $0x2988] ss:$16 sps:$4 sm:$0xff]   ;;  %v22178_v53 = vld [vmem:[%s23910_s8 + $0x29a4] ss:$16 sps:$4 sm:$0xff]  }
 0x548   : > { %15173 = vmatprep.subr.bf16.mxu0 %v22086_v45  ;;  %16649 = vmatprep.subr.bf16.mxu1 %v22089_v55  ;;  %v22181_v45 = vld [vmem:[%s23910_s8 + $0x29ac] ss:$16 sps:$4 sm:$0xff]   ;;  %v22176_v55 = vld [vmem:[%s23910_s8 + $0x29a0] ss:$16 sps:$4 sm:$0xff]  }
 0x54b   : > { %15174 = vmatpush1.bf16.msra.mxu0 %v22084_v56  ;;  %16650 = vmatpush1.bf16.msra.mxu1 %v22087_v48  ;;  %v22179_v56 = vld [vmem:[%s23910_s8 + $0x29a8] ss:$16 sps:$4 sm:$0xff]   ;;  %v22184_v48 = vld [vmem:[%s23910_s8 + $0x29c4] ss:$16 sps:$4 sm:$0xff]  }
 0x54c   : > { %15175 = vmatprep.subr.bf16.mxu0 %v22092_v58  ;;  %16651 = vmatprep.subr.bf16.mxu1 %v22095_v59  ;;  %v22187_v58 = vld [vmem:[%s23910_s8 + $0x29cc] ss:$16 sps:$4 sm:$0xff]   ;;  %v22182_v59 = vld [vmem:[%s23910_s8 + $0x29c0] ss:$16 sps:$4 sm:$0xff]  }
 0x54f   : > { %15176 = vmatpush1.bf16.msra.mxu0 %v22090_v51  ;;  %16652 = vmatpush1.bf16.msra.mxu1 %v22093_v61  ;;  %v22185_v51 = vld [vmem:[%s23910_s8 + $0x29c8] ss:$16 sps:$4 sm:$0xff]   ;;  %v22190_v61 = vld [vmem:[%s23910_s8 + $0x29e4] ss:$16 sps:$4 sm:$0xff]  }
 0x550   : > { %15186 = vmatprep.subr.bf16.mxu0 %v22100_v62  ;;  %16662 = vmatprep.subr.bf16.mxu1 %v22103_v54  ;;  %v22193_v62 = vld [vmem:[%s23910_s8 + $0x29ec] ss:$16 sps:$4 sm:$0xff]   ;;  %v22188_v54 = vld [vmem:[%s23910_s8 + $0x29e0] ss:$16 sps:$4 sm:$0xff]  }
 0x552   : > { %15178 = vmatmul.mubr.bf16.vlgmr.msra.gmra.mrb[0].mxu0 %v17463_v63  ;;  %16654 = vmatmul.mubr.bf16.vlgmr.msra.gmra.mrb[0].mxu1 %v17463_v63  ;;  %v22191_v63 = vld [vmem:[%s23910_s8 + $0x29e8] ss:$16 sps:$4 sm:$0xff]  }
 0x553   : > { %15187 = vmatpush1.bf16.msra.mxu0 %v22098_v1  ;;  %16663 = vmatpush1.bf16.msra.mxu1 %v22101_v57  ;;  %v22198_v1 = vld [vmem:[%s23910_s8 + $0x2a04] ss:$16 sps:$4 sm:$0xff]   ;;  %v22201_v57 = vld [vmem:[%s23910_s8 + $0x2a0c] ss:$16 sps:$4 sm:$0xff]  }
 0x554   : > { %15188 = vmatprep.subr.bf16.mxu0 %v22106_v2  ;;  %16664 = vmatprep.subr.bf16.mxu1 %v22109_v3  ;;  %v17465_v2 = vcombine.low %v25381_v0, %v25381_v0  ;;  %v25454_v3 = vld [vmem:[%s26563_s0 + $0xa8] sm:$0xff] }
 0x555   : > { %15218 = vmatprep.mubr.bf16.mxu0 %v17466_v60  ;;  %16694 = vmatprep.mubr.bf16.mxu1 %v17466_v60  ;;  %v22196_v60 = vld [vmem:[%s23910_s8 + $0x2a00] ss:$16 sps:$4 sm:$0xff]   ;;  %v17468_v0 = vcombine.high %v25454_v3, %v25454_v3 }
 0x557   : > { %15189 = vmatpush1.bf16.msra.mxu0 %v22104_v4  ;;  %16665 = vmatpush1.bf16.msra.mxu1 %v22107_v5  ;;  %v22199_v4 = vld [vmem:[%s23910_s8 + $0x2a08] ss:$16 sps:$4 sm:$0xff]   ;;  %v22204_v5 = vld [vmem:[%s23910_s8 + $0x2a24] ss:$16 sps:$4 sm:$0xff]  }
 0x558   : > { %15190 = vmatprep.subr.bf16.mxu0 %v22112_v6  ;;  %16666 = vmatprep.subr.bf16.mxu1 %v22115_v7  ;;  %v22207_v6 = vld [vmem:[%s23910_s8 + $0x2a2c] ss:$16 sps:$4 sm:$0xff]   ;;  %v22202_v7 = vld [vmem:[%s23910_s8 + $0x2a20] ss:$16 sps:$4 sm:$0xff]  }
 0x55b   : > { %15191 = vmatpush1.bf16.msra.mxu0 %v22110_v8  ;;  %16667 = vmatpush1.bf16.msra.mxu1 %v22113_v9  ;;  %v22205_v8 = vld [vmem:[%s23910_s8 + $0x2a28] ss:$16 sps:$4 sm:$0xff]   ;;  %v22210_v9 = vld [vmem:[%s23910_s8 + $0x2a44] ss:$16 sps:$4 sm:$0xff]  }
 0x55c   : > { %15192 = vmatprep.subr.bf16.mxu0 %v22118_v10  ;;  %16668 = vmatprep.subr.bf16.mxu1 %v22121_v12  ;;  %v22213_v10 = vld [vmem:[%s23910_s8 + $0x2a4c] ss:$16 sps:$4 sm:$0xff]   ;;  %v22208_v12 = vld [vmem:[%s23910_s8 + $0x2a40] ss:$16 sps:$4 sm:$0xff]  }
 0x55f   : > { %15193 = vmatpush1.bf16.msra.mxu0 %v22116_v13  ;;  %16669 = vmatpush1.bf16.msra.mxu1 %v22119_v15  ;;  %v22211_v13 = vld [vmem:[%s23910_s8 + $0x2a48] ss:$16 sps:$4 sm:$0xff]   ;;  %v22216_v15 = vld [vmem:[%s23910_s8 + $0x2a64] ss:$16 sps:$4 sm:$0xff]  }
 0x560   : > { %15194 = vmatprep.subr.bf16.mxu0 %v22124_v16  ;;  %16670 = vmatprep.subr.bf16.mxu1 %v22127_v11  ;;  %v22219_v16 = vld [vmem:[%s23910_s8 + $0x2a6c] ss:$16 sps:$4 sm:$0xff]   ;;  %v22214_v11 = vld [vmem:[%s23910_s8 + $0x2a60] ss:$16 sps:$4 sm:$0xff]  }
 0x563   : > { %15195 = vmatpush1.bf16.msra.mxu0 %v22122_v19  ;;  %16671 = vmatpush1.bf16.msra.mxu1 %v22125_v20  ;;  %v22217_v19 = vld [vmem:[%s23910_s8 + $0x2a68] ss:$16 sps:$4 sm:$0xff]   ;;  %v22222_v20 = vld [vmem:[%s23910_s8 + $0x2a84] ss:$16 sps:$4 sm:$0xff]  }
 0x564   : > { %15196 = vmatprep.subr.bf16.mxu0 %v22130_v14  ;;  %16672 = vmatprep.subr.bf16.mxu1 %v22133_v22  ;;  %v22225_v14 = vld [vmem:[%s23910_s8 + $0x2a8c] ss:$16 sps:$4 sm:$0xff]   ;;  %v22220_v22 = vld [vmem:[%s23910_s8 + $0x2a80] ss:$16 sps:$4 sm:$0xff]  }
 0x567   : > { %15197 = vmatpush1.bf16.msra.mxu0 %v22128_v23  ;;  %16673 = vmatpush1.bf16.msra.mxu1 %v22131_v17  ;;  %v22223_v23 = vld [vmem:[%s23910_s8 + $0x2a88] ss:$16 sps:$4 sm:$0xff]   ;;  %v22228_v17 = vld [vmem:[%s23910_s8 + $0x2aa4] ss:$16 sps:$4 sm:$0xff]  }
 0x568   : > { %15198 = vmatprep.subr.bf16.mxu0 %v22136_v25  ;;  %16674 = vmatprep.subr.bf16.mxu1 %v22139_v26  ;;  %v22231_v25 = vld [vmem:[%s23910_s8 + $0x2aac] ss:$16 sps:$4 sm:$0xff]   ;;  %v22226_v26 = vld [vmem:[%s23910_s8 + $0x2aa0] ss:$16 sps:$4 sm:$0xff]  }
 0x56b   : > { %15199 = vmatpush1.bf16.msra.mxu0 %v22134_v18  ;;  %16675 = vmatpush1.bf16.msra.mxu1 %v22137_v28  ;;  %v22229_v18 = vld [vmem:[%s23910_s8 + $0x2aa8] ss:$16 sps:$4 sm:$0xff]   ;;  %v22234_v28 = vld [vmem:[%s23910_s8 + $0x2ac4] ss:$16 sps:$4 sm:$0xff]  }
 0x56c   : > { %15200 = vmatprep.subr.bf16.mxu0 %v22142_v29  ;;  %16676 = vmatprep.subr.bf16.mxu1 %v22145_v21  ;;  %v22237_v29 = vld [vmem:[%s23910_s8 + $0x2acc] ss:$16 sps:$4 sm:$0xff]   ;;  %v22232_v21 = vld [vmem:[%s23910_s8 + $0x2ac0] ss:$16 sps:$4 sm:$0xff]  }
 0x56f   : > { %15201 = vmatpush1.bf16.msra.mxu0 %v22140_v31  ;;  %16677 = vmatpush1.bf16.msra.mxu1 %v22143_v32  ;;  %v22235_v31 = vld [vmem:[%s23910_s8 + $0x2ac8] ss:$16 sps:$4 sm:$0xff]   ;;  %v22240_v32 = vld [vmem:[%s23910_s8 + $0x2ae4] ss:$16 sps:$4 sm:$0xff]  }
 0x570   : > { %15202 = vmatprep.subr.bf16.mxu0 %v22148_v24  ;;  %16678 = vmatprep.subr.bf16.mxu1 %v22151_v34  ;;  %v22243_v24 = vld [vmem:[%s23910_s8 + $0x2aec] ss:$16 sps:$4 sm:$0xff]   ;;  %v22238_v34 = vld [vmem:[%s23910_s8 + $0x2ae0] ss:$16 sps:$4 sm:$0xff]  }
 0x573   : > { %15203 = vmatpush1.bf16.msra.mxu0 %v22146_v35  ;;  %16679 = vmatpush1.bf16.msra.mxu1 %v22149_v27  ;;  %v22241_v35 = vld [vmem:[%s23910_s8 + $0x2ae8] ss:$16 sps:$4 sm:$0xff]   ;;  %v22246_v27 = vld [vmem:[%s23910_s8 + $0x2b04] ss:$16 sps:$4 sm:$0xff]  }
 0x574   : > { %15204 = vmatprep.subr.bf16.mxu0 %v22154_v37  ;;  %16680 = vmatprep.subr.bf16.mxu1 %v22157_v38  ;;  %v22249_v37 = vld [vmem:[%s23910_s8 + $0x2b0c] ss:$16 sps:$4 sm:$0xff]   ;;  %v22244_v38 = vld [vmem:[%s23910_s8 + $0x2b00] ss:$16 sps:$4 sm:$0xff]  }
 0x577   : > { %15205 = vmatpush1.bf16.msra.mxu0 %v22152_v30  ;;  %16681 = vmatpush1.bf16.msra.mxu1 %v22155_v40  ;;  %v22247_v30 = vld [vmem:[%s23910_s8 + $0x2b08] ss:$16 sps:$4 sm:$0xff]   ;;  %v22252_v40 = vld [vmem:[%s23910_s8 + $0x2b24] ss:$16 sps:$4 sm:$0xff]  }
 0x578   : > { %15206 = vmatprep.subr.bf16.mxu0 %v22160_v41  ;;  %16682 = vmatprep.subr.bf16.mxu1 %v22163_v33  ;;  %v22255_v41 = vld [vmem:[%s23910_s8 + $0x2b2c] ss:$16 sps:$4 sm:$0xff]   ;;  %v22250_v33 = vld [vmem:[%s23910_s8 + $0x2b20] ss:$16 sps:$4 sm:$0xff]  }
 0x57b   : > { %15207 = vmatpush1.bf16.msra.mxu0 %v22158_v43  ;;  %16683 = vmatpush1.bf16.msra.mxu1 %v22161_v44  ;;  %v22253_v43 = vld [vmem:[%s23910_s8 + $0x2b28] ss:$16 sps:$4 sm:$0xff]   ;;  %v22258_v44 = vld [vmem:[%s23910_s8 + $0x2b44] ss:$16 sps:$4 sm:$0xff]  }
 0x57c   : > { %15208 = vmatprep.subr.bf16.mxu0 %v22166_v36  ;;  %16684 = vmatprep.subr.bf16.mxu1 %v22169_v46  ;;  %v22261_v36 = vld [vmem:[%s23910_s8 + $0x2b4c] ss:$16 sps:$4 sm:$0xff]   ;;  %v22256_v46 = vld [vmem:[%s23910_s8 + $0x2b40] ss:$16 sps:$4 sm:$0xff]  }
 0x57f   : > { %15209 = vmatpush1.bf16.msra.mxu0 %v22164_v47  ;;  %16685 = vmatpush1.bf16.msra.mxu1 %v22167_v39  ;;  %v22259_v47 = vld [vmem:[%s23910_s8 + $0x2b48] ss:$16 sps:$4 sm:$0xff]   ;;  %v22264_v39 = vld [vmem:[%s23910_s8 + $0x2b64] ss:$16 sps:$4 sm:$0xff]  }
 0x580   : > { %15210 = vmatprep.subr.bf16.mxu0 %v22172_v49  ;;  %16686 = vmatprep.subr.bf16.mxu1 %v22175_v50  ;;  %v22267_v49 = vld [vmem:[%s23910_s8 + $0x2b6c] ss:$16 sps:$4 sm:$0xff]   ;;  %v22262_v50 = vld [vmem:[%s23910_s8 + $0x2b60] ss:$16 sps:$4 sm:$0xff]  }
 0x583   : > { %15211 = vmatpush1.bf16.msra.mxu0 %v22170_v42  ;;  %16687 = vmatpush1.bf16.msra.mxu1 %v22173_v52  ;;  %v22265_v42 = vld [vmem:[%s23910_s8 + $0x2b68] ss:$16 sps:$4 sm:$0xff]   ;;  %v22270_v52 = vld [vmem:[%s23910_s8 + $0x2b84] ss:$16 sps:$4 sm:$0xff]  }
 0x584   : > { %15212 = vmatprep.subr.bf16.mxu0 %v22178_v53  ;;  %16688 = vmatprep.subr.bf16.mxu1 %v22181_v45  ;;  %v22273_v53 = vld [vmem:[%s23910_s8 + $0x2b8c] ss:$16 sps:$4 sm:$0xff]   ;;  %v22268_v45 = vld [vmem:[%s23910_s8 + $0x2b80] ss:$16 sps:$4 sm:$0xff]  }
 0x587   : > { %15213 = vmatpush1.bf16.msra.mxu0 %v22176_v55  ;;  %16689 = vmatpush1.bf16.msra.mxu1 %v22179_v56  ;;  %v22271_v55 = vld [vmem:[%s23910_s8 + $0x2b88] ss:$16 sps:$4 sm:$0xff]   ;;  %v22276_v56 = vld [vmem:[%s23910_s8 + $0x2ba4] ss:$16 sps:$4 sm:$0xff]  }
 0x588   : > { %15214 = vmatprep.subr.bf16.mxu0 %v22184_v48  ;;  %16690 = vmatprep.subr.bf16.mxu1 %v22187_v58  ;;  %v22279_v48 = vld [vmem:[%s23910_s8 + $0x2bac] ss:$16 sps:$4 sm:$0xff]   ;;  %v22274_v58 = vld [vmem:[%s23910_s8 + $0x2ba0] ss:$16 sps:$4 sm:$0xff]  }
 0x58b   : > { %15215 = vmatpush1.bf16.msra.mxu0 %v22182_v59  ;;  %16691 = vmatpush1.bf16.msra.mxu1 %v22185_v51  ;;  %v22277_v59 = vld [vmem:[%s23910_s8 + $0x2ba8] ss:$16 sps:$4 sm:$0xff]   ;;  %v22282_v51 = vld [vmem:[%s23910_s8 + $0x2bc4] ss:$16 sps:$4 sm:$0xff]  }
 0x58c   : > { %15216 = vmatprep.subr.bf16.mxu0 %v22190_v61  ;;  %16692 = vmatprep.subr.bf16.mxu1 %v22193_v62  ;;  %v22285_v61 = vld [vmem:[%s23910_s8 + $0x2bcc] ss:$16 sps:$4 sm:$0xff]   ;;  %v22280_v62 = vld [vmem:[%s23910_s8 + $0x2bc0] ss:$16 sps:$4 sm:$0xff]  }
 0x58f   : > { %15217 = vmatpush1.bf16.msra.mxu0 %v22188_v54  ;;  %16693 = vmatpush1.bf16.msra.mxu1 %v22191_v63  ;;  %v22283_v54 = vld [vmem:[%s23910_s8 + $0x2bc8] ss:$16 sps:$4 sm:$0xff]   ;;  %v22288_v63 = vld [vmem:[%s23910_s8 + $0x2be4] ss:$16 sps:$4 sm:$0xff]  }
 0x590   : > { %15227 = vmatprep.subr.bf16.mxu0 %v22198_v1  ;;  %16703 = vmatprep.subr.bf16.mxu1 %v22201_v57  ;;  %v22291_v1 = vld [vmem:[%s23910_s8 + $0x2bec] ss:$16 sps:$4 sm:$0xff]   ;;  %v22286_v57 = vld [vmem:[%s23910_s8 + $0x2be0] ss:$16 sps:$4 sm:$0xff]  }
 0x592   : > { %15219 = vmatmul.mubr.bf16.vlgmr.msra.gmra.mrb[0].mxu0 %v17465_v2  ;;  %16695 = vmatmul.mubr.bf16.vlgmr.msra.gmra.mrb[0].mxu1 %v17465_v2  ;;  %v22289_v2 = vld [vmem:[%s23910_s8 + $0x2be8] ss:$16 sps:$4 sm:$0xff]  }
 0x593   : > { %15228 = vmatpush1.bf16.msra.mxu0 %v22196_v60  ;;  %16704 = vmatpush1.bf16.msra.mxu1 %v22199_v4  ;;  %v22296_v60 = vld [vmem:[%s23910_s8 + $0x2c04] ss:$16 sps:$4 sm:$0xff]   ;;  %v22299_v4 = vld [vmem:[%s23910_s8 + $0x2c0c] ss:$16 sps:$4 sm:$0xff]  }
 0x594   : > { %15229 = vmatprep.subr.bf16.mxu0 %v22204_v5  ;;  %16705 = vmatprep.subr.bf16.mxu1 %v22207_v6  ;;  %v17467_v5 = vcombine.low %v25454_v3, %v25454_v3  ;;  %v25527_v6 = vld [vmem:[%s26563_s0 + $0xb0] sm:$0xff] }
 0x595   : > { %15259 = vmatprep.mubr.bf16.mxu0 %v17468_v0  ;;  %16735 = vmatprep.mubr.bf16.mxu1 %v17468_v0  ;;  %v22294_v0 = vld [vmem:[%s23910_s8 + $0x2c00] ss:$16 sps:$4 sm:$0xff]   ;;  %v17470_v3 = vcombine.high %v25527_v6, %v25527_v6 }
 0x597   : > { %15230 = vmatpush1.bf16.msra.mxu0 %v22202_v7  ;;  %16706 = vmatpush1.bf16.msra.mxu1 %v22205_v8  ;;  %v22297_v7 = vld [vmem:[%s23910_s8 + $0x2c08] ss:$16 sps:$4 sm:$0xff]   ;;  %v22302_v8 = vld [vmem:[%s23910_s8 + $0x2c24] ss:$16 sps:$4 sm:$0xff]  }
 0x598   : > { %15231 = vmatprep.subr.bf16.mxu0 %v22210_v9  ;;  %16707 = vmatprep.subr.bf16.mxu1 %v22213_v10  ;;  %v22305_v9 = vld [vmem:[%s23910_s8 + $0x2c2c] ss:$16 sps:$4 sm:$0xff]   ;;  %v22300_v10 = vld [vmem:[%s23910_s8 + $0x2c20] ss:$16 sps:$4 sm:$0xff]  }
 0x59b   : > { %15232 = vmatpush1.bf16.msra.mxu0 %v22208_v12  ;;  %16708 = vmatpush1.bf16.msra.mxu1 %v22211_v13  ;;  %v22303_v12 = vld [vmem:[%s23910_s8 + $0x2c28] ss:$16 sps:$4 sm:$0xff]   ;;  %v22308_v13 = vld [vmem:[%s23910_s8 + $0x2c44] ss:$16 sps:$4 sm:$0xff]  }
 0x59c   : > { %15233 = vmatprep.subr.bf16.mxu0 %v22216_v15  ;;  %16709 = vmatprep.subr.bf16.mxu1 %v22219_v16  ;;  %v22311_v15 = vld [vmem:[%s23910_s8 + $0x2c4c] ss:$16 sps:$4 sm:$0xff]   ;;  %v22306_v16 = vld [vmem:[%s23910_s8 + $0x2c40] ss:$16 sps:$4 sm:$0xff]  }
 0x59f   : > { %15234 = vmatpush1.bf16.msra.mxu0 %v22214_v11  ;;  %16710 = vmatpush1.bf16.msra.mxu1 %v22217_v19  ;;  %v22309_v11 = vld [vmem:[%s23910_s8 + $0x2c48] ss:$16 sps:$4 sm:$0xff]   ;;  %v22314_v19 = vld [vmem:[%s23910_s8 + $0x2c64] ss:$16 sps:$4 sm:$0xff]  }
 0x5a0   : > { %15235 = vmatprep.subr.bf16.mxu0 %v22222_v20  ;;  %16711 = vmatprep.subr.bf16.mxu1 %v22225_v14  ;;  %v22317_v20 = vld [vmem:[%s23910_s8 + $0x2c6c] ss:$16 sps:$4 sm:$0xff]   ;;  %v22312_v14 = vld [vmem:[%s23910_s8 + $0x2c60] ss:$16 sps:$4 sm:$0xff]  }
 0x5a3   : > { %15236 = vmatpush1.bf16.msra.mxu0 %v22220_v22  ;;  %16712 = vmatpush1.bf16.msra.mxu1 %v22223_v23  ;;  %v22315_v22 = vld [vmem:[%s23910_s8 + $0x2c68] ss:$16 sps:$4 sm:$0xff]   ;;  %v22320_v23 = vld [vmem:[%s23910_s8 + $0x2c84] ss:$16 sps:$4 sm:$0xff]  }
 0x5a4   : > { %15237 = vmatprep.subr.bf16.mxu0 %v22228_v17  ;;  %16713 = vmatprep.subr.bf16.mxu1 %v22231_v25  ;;  %v22323_v17 = vld [vmem:[%s23910_s8 + $0x2c8c] ss:$16 sps:$4 sm:$0xff]   ;;  %v22318_v25 = vld [vmem:[%s23910_s8 + $0x2c80] ss:$16 sps:$4 sm:$0xff]  }
 0x5a7   : > { %15238 = vmatpush1.bf16.msra.mxu0 %v22226_v26  ;;  %16714 = vmatpush1.bf16.msra.mxu1 %v22229_v18  ;;  %v22321_v26 = vld [vmem:[%s23910_s8 + $0x2c88] ss:$16 sps:$4 sm:$0xff]   ;;  %v22326_v18 = vld [vmem:[%s23910_s8 + $0x2ca4] ss:$16 sps:$4 sm:$0xff]  }
 0x5a8   : > { %15239 = vmatprep.subr.bf16.mxu0 %v22234_v28  ;;  %16715 = vmatprep.subr.bf16.mxu1 %v22237_v29  ;;  %v22329_v28 = vld [vmem:[%s23910_s8 + $0x2cac] ss:$16 sps:$4 sm:$0xff]   ;;  %v22324_v29 = vld [vmem:[%s23910_s8 + $0x2ca0] ss:$16 sps:$4 sm:$0xff]  }
 0x5ab   : > { %15240 = vmatpush1.bf16.msra.mxu0 %v22232_v21  ;;  %16716 = vmatpush1.bf16.msra.mxu1 %v22235_v31  ;;  %v22327_v21 = vld [vmem:[%s23910_s8 + $0x2ca8] ss:$16 sps:$4 sm:$0xff]   ;;  %v22332_v31 = vld [vmem:[%s23910_s8 + $0x2cc4] ss:$16 sps:$4 sm:$0xff]  }
 0x5ac   : > { %15241 = vmatprep.subr.bf16.mxu0 %v22240_v32  ;;  %16717 = vmatprep.subr.bf16.mxu1 %v22243_v24  ;;  %v22335_v32 = vld [vmem:[%s23910_s8 + $0x2ccc] ss:$16 sps:$4 sm:$0xff]   ;;  %v22330_v24 = vld [vmem:[%s23910_s8 + $0x2cc0] ss:$16 sps:$4 sm:$0xff]  }
 0x5af   : > { %15242 = vmatpush1.bf16.msra.mxu0 %v22238_v34  ;;  %16718 = vmatpush1.bf16.msra.mxu1 %v22241_v35  ;;  %v22333_v34 = vld [vmem:[%s23910_s8 + $0x2cc8] ss:$16 sps:$4 sm:$0xff]   ;;  %v22338_v35 = vld [vmem:[%s23910_s8 + $0x2ce4] ss:$16 sps:$4 sm:$0xff]  }
 0x5b0   : > { %15243 = vmatprep.subr.bf16.mxu0 %v22246_v27  ;;  %16719 = vmatprep.subr.bf16.mxu1 %v22249_v37  ;;  %v22341_v27 = vld [vmem:[%s23910_s8 + $0x2cec] ss:$16 sps:$4 sm:$0xff]   ;;  %v22336_v37 = vld [vmem:[%s23910_s8 + $0x2ce0] ss:$16 sps:$4 sm:$0xff]  }
 0x5b3   : > { %15244 = vmatpush1.bf16.msra.mxu0 %v22244_v38  ;;  %16720 = vmatpush1.bf16.msra.mxu1 %v22247_v30  ;;  %v22339_v38 = vld [vmem:[%s23910_s8 + $0x2ce8] ss:$16 sps:$4 sm:$0xff]   ;;  %v22344_v30 = vld [vmem:[%s23910_s8 + $0x2d04] ss:$16 sps:$4 sm:$0xff]  }
 0x5b4   : > { %15245 = vmatprep.subr.bf16.mxu0 %v22252_v40  ;;  %16721 = vmatprep.subr.bf16.mxu1 %v22255_v41  ;;  %v22347_v40 = vld [vmem:[%s23910_s8 + $0x2d0c] ss:$16 sps:$4 sm:$0xff]   ;;  %v22342_v41 = vld [vmem:[%s23910_s8 + $0x2d00] ss:$16 sps:$4 sm:$0xff]  }
 0x5b7   : > { %15246 = vmatpush1.bf16.msra.mxu0 %v22250_v33  ;;  %16722 = vmatpush1.bf16.msra.mxu1 %v22253_v43  ;;  %v22345_v33 = vld [vmem:[%s23910_s8 + $0x2d08] ss:$16 sps:$4 sm:$0xff]   ;;  %v22350_v43 = vld [vmem:[%s23910_s8 + $0x2d24] ss:$16 sps:$4 sm:$0xff]  }
 0x5b8   : > { %15247 = vmatprep.subr.bf16.mxu0 %v22258_v44  ;;  %16723 = vmatprep.subr.bf16.mxu1 %v22261_v36  ;;  %v22353_v44 = vld [vmem:[%s23910_s8 + $0x2d2c] ss:$16 sps:$4 sm:$0xff]   ;;  %v22348_v36 = vld [vmem:[%s23910_s8 + $0x2d20] ss:$16 sps:$4 sm:$0xff]  }
 0x5bb   : > { %15248 = vmatpush1.bf16.msra.mxu0 %v22256_v46  ;;  %16724 = vmatpush1.bf16.msra.mxu1 %v22259_v47  ;;  %v22351_v46 = vld [vmem:[%s23910_s8 + $0x2d28] ss:$16 sps:$4 sm:$0xff]   ;;  %v22356_v47 = vld [vmem:[%s23910_s8 + $0x2d44] ss:$16 sps:$4 sm:$0xff]  }
 0x5bc   : > { %15249 = vmatprep.subr.bf16.mxu0 %v22264_v39  ;;  %16725 = vmatprep.subr.bf16.mxu1 %v22267_v49  ;;  %v22359_v39 = vld [vmem:[%s23910_s8 + $0x2d4c] ss:$16 sps:$4 sm:$0xff]   ;;  %v22354_v49 = vld [vmem:[%s23910_s8 + $0x2d40] ss:$16 sps:$4 sm:$0xff]  }
 0x5bf   : > { %15250 = vmatpush1.bf16.msra.mxu0 %v22262_v50  ;;  %16726 = vmatpush1.bf16.msra.mxu1 %v22265_v42  ;;  %v22357_v50 = vld [vmem:[%s23910_s8 + $0x2d48] ss:$16 sps:$4 sm:$0xff]   ;;  %v22362_v42 = vld [vmem:[%s23910_s8 + $0x2d64] ss:$16 sps:$4 sm:$0xff]  }
 0x5c0   : > { %15251 = vmatprep.subr.bf16.mxu0 %v22270_v52  ;;  %16727 = vmatprep.subr.bf16.mxu1 %v22273_v53  ;;  %v22365_v52 = vld [vmem:[%s23910_s8 + $0x2d6c] ss:$16 sps:$4 sm:$0xff]   ;;  %v22360_v53 = vld [vmem:[%s23910_s8 + $0x2d60] ss:$16 sps:$4 sm:$0xff]  }
 0x5c3   : > { %15252 = vmatpush1.bf16.msra.mxu0 %v22268_v45  ;;  %16728 = vmatpush1.bf16.msra.mxu1 %v22271_v55  ;;  %v22363_v45 = vld [vmem:[%s23910_s8 + $0x2d68] ss:$16 sps:$4 sm:$0xff]   ;;  %v22368_v55 = vld [vmem:[%s23910_s8 + $0x2d84] ss:$16 sps:$4 sm:$0xff]  }
 0x5c4   : > { %15253 = vmatprep.subr.bf16.mxu0 %v22276_v56  ;;  %16729 = vmatprep.subr.bf16.mxu1 %v22279_v48  ;;  %v22371_v56 = vld [vmem:[%s23910_s8 + $0x2d8c] ss:$16 sps:$4 sm:$0xff]   ;;  %v22366_v48 = vld [vmem:[%s23910_s8 + $0x2d80] ss:$16 sps:$4 sm:$0xff]  }
 0x5c7   : > { %15254 = vmatpush1.bf16.msra.mxu0 %v22274_v58  ;;  %16730 = vmatpush1.bf16.msra.mxu1 %v22277_v59  ;;  %v22369_v58 = vld [vmem:[%s23910_s8 + $0x2d88] ss:$16 sps:$4 sm:$0xff]   ;;  %v22374_v59 = vld [vmem:[%s23910_s8 + $0x2da4] ss:$16 sps:$4 sm:$0xff]  }
 0x5c8   : > { %15255 = vmatprep.subr.bf16.mxu0 %v22282_v51  ;;  %16731 = vmatprep.subr.bf16.mxu1 %v22285_v61  ;;  %v22377_v51 = vld [vmem:[%s23910_s8 + $0x2dac] ss:$16 sps:$4 sm:$0xff]   ;;  %v22372_v61 = vld [vmem:[%s23910_s8 + $0x2da0] ss:$16 sps:$4 sm:$0xff]  }
 0x5cb   : > { %15256 = vmatpush1.bf16.msra.mxu0 %v22280_v62  ;;  %16732 = vmatpush1.bf16.msra.mxu1 %v22283_v54  ;;  %v22375_v62 = vld [vmem:[%s23910_s8 + $0x2da8] ss:$16 sps:$4 sm:$0xff]   ;;  %v22380_v54 = vld [vmem:[%s23910_s8 + $0x2dc4] ss:$16 sps:$4 sm:$0xff]  }
 0x5cc   : > { %15257 = vmatprep.subr.bf16.mxu0 %v22288_v63  ;;  %16733 = vmatprep.subr.bf16.mxu1 %v22291_v1  ;;  %v22383_v63 = vld [vmem:[%s23910_s8 + $0x2dcc] ss:$16 sps:$4 sm:$0xff]   ;;  %v22378_v1 = vld [vmem:[%s23910_s8 + $0x2dc0] ss:$16 sps:$4 sm:$0xff]  }
 0x5cf   : > { %15258 = vmatpush1.bf16.msra.mxu0 %v22286_v57  ;;  %16734 = vmatpush1.bf16.msra.mxu1 %v22289_v2  ;;  %v22381_v57 = vld [vmem:[%s23910_s8 + $0x2dc8] ss:$16 sps:$4 sm:$0xff]   ;;  %v22386_v2 = vld [vmem:[%s23910_s8 + $0x2de4] ss:$16 sps:$4 sm:$0xff]  }
 0x5d0   : > { %15268 = vmatprep.subr.bf16.mxu0 %v22296_v60  ;;  %16744 = vmatprep.subr.bf16.mxu1 %v22299_v4  ;;  %v22389_v60 = vld [vmem:[%s23910_s8 + $0x2dec] ss:$16 sps:$4 sm:$0xff]   ;;  %v22384_v4 = vld [vmem:[%s23910_s8 + $0x2de0] ss:$16 sps:$4 sm:$0xff]  }
 0x5d2   : > { %15260 = vmatmul.mubr.bf16.vlgmr.msra.gmra.mrb[0].mxu0 %v17467_v5  ;;  %16736 = vmatmul.mubr.bf16.vlgmr.msra.gmra.mrb[0].mxu1 %v17467_v5  ;;  %v22387_v5 = vld [vmem:[%s23910_s8 + $0x2de8] ss:$16 sps:$4 sm:$0xff]  }
 0x5d3   : > { %15269 = vmatpush1.bf16.msra.mxu0 %v22294_v0  ;;  %16745 = vmatpush1.bf16.msra.mxu1 %v22297_v7  ;;  %v22394_v0 = vld [vmem:[%s23910_s8 + $0x2e04] ss:$16 sps:$4 sm:$0xff]   ;;  %v22397_v7 = vld [vmem:[%s23910_s8 + $0x2e0c] ss:$16 sps:$4 sm:$0xff]  }
 0x5d4   : > { %15270 = vmatprep.subr.bf16.mxu0 %v22302_v8  ;;  %16746 = vmatprep.subr.bf16.mxu1 %v22305_v9  ;;  %v17469_v8 = vcombine.low %v25527_v6, %v25527_v6  ;;  %v25600_v9 = vld [vmem:[%s26563_s0 + $0xb8] sm:$0xff] }
 0x5d5   : > { %15300 = vmatprep.mubr.bf16.mxu0 %v17470_v3  ;;  %16776 = vmatprep.mubr.bf16.mxu1 %v17470_v3  ;;  %v22392_v3 = vld [vmem:[%s23910_s8 + $0x2e00] ss:$16 sps:$4 sm:$0xff]   ;;  %v17472_v6 = vcombine.high %v25600_v9, %v25600_v9 }
 0x5d7   : > { %15271 = vmatpush1.bf16.msra.mxu0 %v22300_v10  ;;  %16747 = vmatpush1.bf16.msra.mxu1 %v22303_v12  ;;  %v22395_v10 = vld [vmem:[%s23910_s8 + $0x2e08] ss:$16 sps:$4 sm:$0xff]   ;;  %v22400_v12 = vld [vmem:[%s23910_s8 + $0x2e24] ss:$16 sps:$4 sm:$0xff]  }
 0x5d8   : > { %15272 = vmatprep.subr.bf16.mxu0 %v22308_v13  ;;  %16748 = vmatprep.subr.bf16.mxu1 %v22311_v15  ;;  %v22403_v13 = vld [vmem:[%s23910_s8 + $0x2e2c] ss:$16 sps:$4 sm:$0xff]   ;;  %v22398_v15 = vld [vmem:[%s23910_s8 + $0x2e20] ss:$16 sps:$4 sm:$0xff]  }
 0x5db   : > { %15273 = vmatpush1.bf16.msra.mxu0 %v22306_v16  ;;  %16749 = vmatpush1.bf16.msra.mxu1 %v22309_v11  ;;  %v22401_v16 = vld [vmem:[%s23910_s8 + $0x2e28] ss:$16 sps:$4 sm:$0xff]   ;;  %v22406_v11 = vld [vmem:[%s23910_s8 + $0x2e44] ss:$16 sps:$4 sm:$0xff]  }
 0x5dc   : > { %15274 = vmatprep.subr.bf16.mxu0 %v22314_v19  ;;  %16750 = vmatprep.subr.bf16.mxu1 %v22317_v20  ;;  %v22409_v19 = vld [vmem:[%s23910_s8 + $0x2e4c] ss:$16 sps:$4 sm:$0xff]   ;;  %v22404_v20 = vld [vmem:[%s23910_s8 + $0x2e40] ss:$16 sps:$4 sm:$0xff]  }
 0x5df   : > { %15275 = vmatpush1.bf16.msra.mxu0 %v22312_v14  ;;  %16751 = vmatpush1.bf16.msra.mxu1 %v22315_v22  ;;  %v22407_v14 = vld [vmem:[%s23910_s8 + $0x2e48] ss:$16 sps:$4 sm:$0xff]   ;;  %v22412_v22 = vld [vmem:[%s23910_s8 + $0x2e64] ss:$16 sps:$4 sm:$0xff]  }
 0x5e0   : > { %15276 = vmatprep.subr.bf16.mxu0 %v22320_v23  ;;  %16752 = vmatprep.subr.bf16.mxu1 %v22323_v17  ;;  %v22415_v23 = vld [vmem:[%s23910_s8 + $0x2e6c] ss:$16 sps:$4 sm:$0xff]   ;;  %v22410_v17 = vld [vmem:[%s23910_s8 + $0x2e60] ss:$16 sps:$4 sm:$0xff]  }
 0x5e3   : > { %15277 = vmatpush1.bf16.msra.mxu0 %v22318_v25  ;;  %16753 = vmatpush1.bf16.msra.mxu1 %v22321_v26  ;;  %v22413_v25 = vld [vmem:[%s23910_s8 + $0x2e68] ss:$16 sps:$4 sm:$0xff]   ;;  %v22418_v26 = vld [vmem:[%s23910_s8 + $0x2e84] ss:$16 sps:$4 sm:$0xff]  }
 0x5e4   : > { %15278 = vmatprep.subr.bf16.mxu0 %v22326_v18  ;;  %16754 = vmatprep.subr.bf16.mxu1 %v22329_v28  ;;  %v22421_v18 = vld [vmem:[%s23910_s8 + $0x2e8c] ss:$16 sps:$4 sm:$0xff]   ;;  %v22416_v28 = vld [vmem:[%s23910_s8 + $0x2e80] ss:$16 sps:$4 sm:$0xff]  }
 0x5e7   : > { %15279 = vmatpush1.bf16.msra.mxu0 %v22324_v29  ;;  %16755 = vmatpush1.bf16.msra.mxu1 %v22327_v21  ;;  %v22419_v29 = vld [vmem:[%s23910_s8 + $0x2e88] ss:$16 sps:$4 sm:$0xff]   ;;  %v22424_v21 = vld [vmem:[%s23910_s8 + $0x2ea4] ss:$16 sps:$4 sm:$0xff]  }
 0x5e8   : > { %15280 = vmatprep.subr.bf16.mxu0 %v22332_v31  ;;  %16756 = vmatprep.subr.bf16.mxu1 %v22335_v32  ;;  %v22427_v31 = vld [vmem:[%s23910_s8 + $0x2eac] ss:$16 sps:$4 sm:$0xff]   ;;  %v22422_v32 = vld [vmem:[%s23910_s8 + $0x2ea0] ss:$16 sps:$4 sm:$0xff]  }
 0x5eb   : > { %15281 = vmatpush1.bf16.msra.mxu0 %v22330_v24  ;;  %16757 = vmatpush1.bf16.msra.mxu1 %v22333_v34  ;;  %v22425_v24 = vld [vmem:[%s23910_s8 + $0x2ea8] ss:$16 sps:$4 sm:$0xff]   ;;  %v22430_v34 = vld [vmem:[%s23910_s8 + $0x2ec4] ss:$16 sps:$4 sm:$0xff]  }
 0x5ec   : > { %15282 = vmatprep.subr.bf16.mxu0 %v22338_v35  ;;  %16758 = vmatprep.subr.bf16.mxu1 %v22341_v27  ;;  %v22433_v35 = vld [vmem:[%s23910_s8 + $0x2ecc] ss:$16 sps:$4 sm:$0xff]   ;;  %v22428_v27 = vld [vmem:[%s23910_s8 + $0x2ec0] ss:$16 sps:$4 sm:$0xff]  }
 0x5ef   : > { %15283 = vmatpush1.bf16.msra.mxu0 %v22336_v37  ;;  %16759 = vmatpush1.bf16.msra.mxu1 %v22339_v38  ;;  %v22431_v37 = vld [vmem:[%s23910_s8 + $0x2ec8] ss:$16 sps:$4 sm:$0xff]   ;;  %v22436_v38 = vld [vmem:[%s23910_s8 + $0x2ee4] ss:$16 sps:$4 sm:$0xff]  }
 0x5f0   : > { %15284 = vmatprep.subr.bf16.mxu0 %v22344_v30  ;;  %16760 = vmatprep.subr.bf16.mxu1 %v22347_v40  ;;  %v22439_v30 = vld [vmem:[%s23910_s8 + $0x2eec] ss:$16 sps:$4 sm:$0xff]   ;;  %v22434_v40 = vld [vmem:[%s23910_s8 + $0x2ee0] ss:$16 sps:$4 sm:$0xff]  }
 0x5f3   : > { %15285 = vmatpush1.bf16.msra.mxu0 %v22342_v41  ;;  %16761 = vmatpush1.bf16.msra.mxu1 %v22345_v33  ;;  %v22437_v41 = vld [vmem:[%s23910_s8 + $0x2ee8] ss:$16 sps:$4 sm:$0xff]   ;;  %v22442_v33 = vld [vmem:[%s23910_s8 + $0x2f04] ss:$16 sps:$4 sm:$0xff]  }
 0x5f4   : > { %15286 = vmatprep.subr.bf16.mxu0 %v22350_v43  ;;  %16762 = vmatprep.subr.bf16.mxu1 %v22353_v44  ;;  %v22445_v43 = vld [vmem:[%s23910_s8 + $0x2f0c] ss:$16 sps:$4 sm:$0xff]   ;;  %v22440_v44 = vld [vmem:[%s23910_s8 + $0x2f00] ss:$16 sps:$4 sm:$0xff]  }
 0x5f7   : > { %15287 = vmatpush1.bf16.msra.mxu0 %v22348_v36  ;;  %16763 = vmatpush1.bf16.msra.mxu1 %v22351_v46  ;;  %v22443_v36 = vld [vmem:[%s23910_s8 + $0x2f08] ss:$16 sps:$4 sm:$0xff]   ;;  %v22448_v46 = vld [vmem:[%s23910_s8 + $0x2f24] ss:$16 sps:$4 sm:$0xff]  }
 0x5f8   : > { %15288 = vmatprep.subr.bf16.mxu0 %v22356_v47  ;;  %16764 = vmatprep.subr.bf16.mxu1 %v22359_v39  ;;  %v22451_v47 = vld [vmem:[%s23910_s8 + $0x2f2c] ss:$16 sps:$4 sm:$0xff]   ;;  %v22446_v39 = vld [vmem:[%s23910_s8 + $0x2f20] ss:$16 sps:$4 sm:$0xff]  }
 0x5fb   : > { %15289 = vmatpush1.bf16.msra.mxu0 %v22354_v49  ;;  %16765 = vmatpush1.bf16.msra.mxu1 %v22357_v50  ;;  %v22449_v49 = vld [vmem:[%s23910_s8 + $0x2f28] ss:$16 sps:$4 sm:$0xff]   ;;  %v22454_v50 = vld [vmem:[%s23910_s8 + $0x2f44] ss:$16 sps:$4 sm:$0xff]  }
 0x5fc   : > { %15290 = vmatprep.subr.bf16.mxu0 %v22362_v42  ;;  %16766 = vmatprep.subr.bf16.mxu1 %v22365_v52  ;;  %v22457_v42 = vld [vmem:[%s23910_s8 + $0x2f4c] ss:$16 sps:$4 sm:$0xff]   ;;  %v22452_v52 = vld [vmem:[%s23910_s8 + $0x2f40] ss:$16 sps:$4 sm:$0xff]  }
 0x5ff   : > { %15291 = vmatpush1.bf16.msra.mxu0 %v22360_v53  ;;  %16767 = vmatpush1.bf16.msra.mxu1 %v22363_v45  ;;  %v22455_v53 = vld [vmem:[%s23910_s8 + $0x2f48] ss:$16 sps:$4 sm:$0xff]   ;;  %v22460_v45 = vld [vmem:[%s23910_s8 + $0x2f64] ss:$16 sps:$4 sm:$0xff]  }
 0x600   : > { %15292 = vmatprep.subr.bf16.mxu0 %v22368_v55  ;;  %16768 = vmatprep.subr.bf16.mxu1 %v22371_v56  ;;  %v22463_v55 = vld [vmem:[%s23910_s8 + $0x2f6c] ss:$16 sps:$4 sm:$0xff]   ;;  %v22458_v56 = vld [vmem:[%s23910_s8 + $0x2f60] ss:$16 sps:$4 sm:$0xff]  }
 0x603   : > { %15293 = vmatpush1.bf16.msra.mxu0 %v22366_v48  ;;  %16769 = vmatpush1.bf16.msra.mxu1 %v22369_v58  ;;  %v22461_v48 = vld [vmem:[%s23910_s8 + $0x2f68] ss:$16 sps:$4 sm:$0xff]   ;;  %v22466_v58 = vld [vmem:[%s23910_s8 + $0x2f84] ss:$16 sps:$4 sm:$0xff]  }
 0x604   : > { %15294 = vmatprep.subr.bf16.mxu0 %v22374_v59  ;;  %16770 = vmatprep.subr.bf16.mxu1 %v22377_v51  ;;  %v22469_v59 = vld [vmem:[%s23910_s8 + $0x2f8c] ss:$16 sps:$4 sm:$0xff]   ;;  %v22464_v51 = vld [vmem:[%s23910_s8 + $0x2f80] ss:$16 sps:$4 sm:$0xff]  }
 0x607   : > { %15295 = vmatpush1.bf16.msra.mxu0 %v22372_v61  ;;  %16771 = vmatpush1.bf16.msra.mxu1 %v22375_v62  ;;  %v22467_v61 = vld [vmem:[%s23910_s8 + $0x2f88] ss:$16 sps:$4 sm:$0xff]   ;;  %v22472_v62 = vld [vmem:[%s23910_s8 + $0x2fa4] ss:$16 sps:$4 sm:$0xff]  }
 0x608   : > { %15296 = vmatprep.subr.bf16.mxu0 %v22380_v54  ;;  %16772 = vmatprep.subr.bf16.mxu1 %v22383_v63  ;;  %v22475_v54 = vld [vmem:[%s23910_s8 + $0x2fac] ss:$16 sps:$4 sm:$0xff]   ;;  %v22470_v63 = vld [vmem:[%s23910_s8 + $0x2fa0] ss:$16 sps:$4 sm:$0xff]  }
 0x60b   : > { %15297 = vmatpush1.bf16.msra.mxu0 %v22378_v1  ;;  %16773 = vmatpush1.bf16.msra.mxu1 %v22381_v57  ;;  %v22473_v1 = vld [vmem:[%s23910_s8 + $0x2fa8] ss:$16 sps:$4 sm:$0xff]   ;;  %v22478_v57 = vld [vmem:[%s23910_s8 + $0x2fc4] ss:$16 sps:$4 sm:$0xff]  }
 0x60c   : > { %15298 = vmatprep.subr.bf16.mxu0 %v22386_v2  ;;  %16774 = vmatprep.subr.bf16.mxu1 %v22389_v60  ;;  %v22481_v2 = vld [vmem:[%s23910_s8 + $0x2fcc] ss:$16 sps:$4 sm:$0xff]   ;;  %v22476_v60 = vld [vmem:[%s23910_s8 + $0x2fc0] ss:$16 sps:$4 sm:$0xff]  }
 0x60f   : > { %15299 = vmatpush1.bf16.msra.mxu0 %v22384_v4  ;;  %16775 = vmatpush1.bf16.msra.mxu1 %v22387_v5  ;;  %v22479_v4 = vld [vmem:[%s23910_s8 + $0x2fc8] ss:$16 sps:$4 sm:$0xff]   ;;  %v22484_v5 = vld [vmem:[%s23910_s8 + $0x2fe4] ss:$16 sps:$4 sm:$0xff]  }
 0x610   : > { %15309 = vmatprep.subr.bf16.mxu0 %v22394_v0  ;;  %16785 = vmatprep.subr.bf16.mxu1 %v22397_v7  ;;  %v22487_v0 = vld [vmem:[%s23910_s8 + $0x2fec] ss:$16 sps:$4 sm:$0xff]   ;;  %v22482_v7 = vld [vmem:[%s23910_s8 + $0x2fe0] ss:$16 sps:$4 sm:$0xff]  }
 0x612   : > { %15301 = vmatmul.mubr.bf16.vlgmr.msra.gmra.mrb[0].mxu0 %v17469_v8  ;;  %16777 = vmatmul.mubr.bf16.vlgmr.msra.gmra.mrb[0].mxu1 %v17469_v8  ;;  %v22485_v8 = vld [vmem:[%s23910_s8 + $0x2fe8] ss:$16 sps:$4 sm:$0xff]  }
 0x613   : > { %15310 = vmatpush1.bf16.msra.mxu0 %v22392_v3  ;;  %16786 = vmatpush1.bf16.msra.mxu1 %v22395_v10  ;;  %v22492_v3 = vld [vmem:[%s23910_s8 + $0x3004] ss:$16 sps:$4 sm:$0xff]   ;;  %v22495_v10 = vld [vmem:[%s23910_s8 + $0x300c] ss:$16 sps:$4 sm:$0xff]  }
 0x614   : > { %15311 = vmatprep.subr.bf16.mxu0 %v22400_v12  ;;  %16787 = vmatprep.subr.bf16.mxu1 %v22403_v13  ;;  %v17471_v12 = vcombine.low %v25600_v9, %v25600_v9  ;;  %v25673_v13 = vld [vmem:[%s26563_s0 + $0xc0] sm:$0xff] }
 0x615   : > { %15341 = vmatprep.mubr.bf16.mxu0 %v17472_v6  ;;  %16817 = vmatprep.mubr.bf16.mxu1 %v17472_v6  ;;  %v22490_v6 = vld [vmem:[%s23910_s8 + $0x3000] ss:$16 sps:$4 sm:$0xff]   ;;  %v17474_v9 = vcombine.high %v25673_v13, %v25673_v13 }
 0x617   : > { %15312 = vmatpush1.bf16.msra.mxu0 %v22398_v15  ;;  %16788 = vmatpush1.bf16.msra.mxu1 %v22401_v16  ;;  %v22493_v15 = vld [vmem:[%s23910_s8 + $0x3008] ss:$16 sps:$4 sm:$0xff]   ;;  %v22498_v16 = vld [vmem:[%s23910_s8 + $0x3024] ss:$16 sps:$4 sm:$0xff]  }
 0x618   : > { %15313 = vmatprep.subr.bf16.mxu0 %v22406_v11  ;;  %16789 = vmatprep.subr.bf16.mxu1 %v22409_v19  ;;  %v22501_v11 = vld [vmem:[%s23910_s8 + $0x302c] ss:$16 sps:$4 sm:$0xff]   ;;  %v22496_v19 = vld [vmem:[%s23910_s8 + $0x3020] ss:$16 sps:$4 sm:$0xff]  }
 0x61b   : > { %15314 = vmatpush1.bf16.msra.mxu0 %v22404_v20  ;;  %16790 = vmatpush1.bf16.msra.mxu1 %v22407_v14  ;;  %v22499_v20 = vld [vmem:[%s23910_s8 + $0x3028] ss:$16 sps:$4 sm:$0xff]   ;;  %v22504_v14 = vld [vmem:[%s23910_s8 + $0x3044] ss:$16 sps:$4 sm:$0xff]  }
 0x61c   : > { %15315 = vmatprep.subr.bf16.mxu0 %v22412_v22  ;;  %16791 = vmatprep.subr.bf16.mxu1 %v22415_v23  ;;  %v22507_v22 = vld [vmem:[%s23910_s8 + $0x304c] ss:$16 sps:$4 sm:$0xff]   ;;  %v22502_v23 = vld [vmem:[%s23910_s8 + $0x3040] ss:$16 sps:$4 sm:$0xff]  }
 0x61f   : > { %15316 = vmatpush1.bf16.msra.mxu0 %v22410_v17  ;;  %16792 = vmatpush1.bf16.msra.mxu1 %v22413_v25  ;;  %v22505_v17 = vld [vmem:[%s23910_s8 + $0x3048] ss:$16 sps:$4 sm:$0xff]   ;;  %v22510_v25 = vld [vmem:[%s23910_s8 + $0x3064] ss:$16 sps:$4 sm:$0xff]  }
 0x620   : > { %15317 = vmatprep.subr.bf16.mxu0 %v22418_v26  ;;  %16793 = vmatprep.subr.bf16.mxu1 %v22421_v18  ;;  %v22513_v26 = vld [vmem:[%s23910_s8 + $0x306c] ss:$16 sps:$4 sm:$0xff]   ;;  %v22508_v18 = vld [vmem:[%s23910_s8 + $0x3060] ss:$16 sps:$4 sm:$0xff]  }
 0x623   : > { %15318 = vmatpush1.bf16.msra.mxu0 %v22416_v28  ;;  %16794 = vmatpush1.bf16.msra.mxu1 %v22419_v29  ;;  %v22511_v28 = vld [vmem:[%s23910_s8 + $0x3068] ss:$16 sps:$4 sm:$0xff]   ;;  %v22516_v29 = vld [vmem:[%s23910_s8 + $0x3084] ss:$16 sps:$4 sm:$0xff]  }
 0x624   : > { %15319 = vmatprep.subr.bf16.mxu0 %v22424_v21  ;;  %16795 = vmatprep.subr.bf16.mxu1 %v22427_v31  ;;  %v22519_v21 = vld [vmem:[%s23910_s8 + $0x308c] ss:$16 sps:$4 sm:$0xff]   ;;  %v22514_v31 = vld [vmem:[%s23910_s8 + $0x3080] ss:$16 sps:$4 sm:$0xff]  }
 0x627   : > { %15320 = vmatpush1.bf16.msra.mxu0 %v22422_v32  ;;  %16796 = vmatpush1.bf16.msra.mxu1 %v22425_v24  ;;  %v22517_v32 = vld [vmem:[%s23910_s8 + $0x3088] ss:$16 sps:$4 sm:$0xff]   ;;  %v22522_v24 = vld [vmem:[%s23910_s8 + $0x30a4] ss:$16 sps:$4 sm:$0xff]  }
 0x628   : > { %15321 = vmatprep.subr.bf16.mxu0 %v22430_v34  ;;  %16797 = vmatprep.subr.bf16.mxu1 %v22433_v35  ;;  %v22525_v34 = vld [vmem:[%s23910_s8 + $0x30ac] ss:$16 sps:$4 sm:$0xff]   ;;  %v22520_v35 = vld [vmem:[%s23910_s8 + $0x30a0] ss:$16 sps:$4 sm:$0xff]  }
 0x62b   : > { %15322 = vmatpush1.bf16.msra.mxu0 %v22428_v27  ;;  %16798 = vmatpush1.bf16.msra.mxu1 %v22431_v37  ;;  %v22523_v27 = vld [vmem:[%s23910_s8 + $0x30a8] ss:$16 sps:$4 sm:$0xff]   ;;  %v22528_v37 = vld [vmem:[%s23910_s8 + $0x30c4] ss:$16 sps:$4 sm:$0xff]  }
 0x62c   : > { %15323 = vmatprep.subr.bf16.mxu0 %v22436_v38  ;;  %16799 = vmatprep.subr.bf16.mxu1 %v22439_v30  ;;  %v22531_v38 = vld [vmem:[%s23910_s8 + $0x30cc] ss:$16 sps:$4 sm:$0xff]   ;;  %v22526_v30 = vld [vmem:[%s23910_s8 + $0x30c0] ss:$16 sps:$4 sm:$0xff]  }
 0x62f   : > { %15324 = vmatpush1.bf16.msra.mxu0 %v22434_v40  ;;  %16800 = vmatpush1.bf16.msra.mxu1 %v22437_v41  ;;  %v22529_v40 = vld [vmem:[%s23910_s8 + $0x30c8] ss:$16 sps:$4 sm:$0xff]   ;;  %v22534_v41 = vld [vmem:[%s23910_s8 + $0x30e4] ss:$16 sps:$4 sm:$0xff]  }
 0x630   : > { %15325 = vmatprep.subr.bf16.mxu0 %v22442_v33  ;;  %16801 = vmatprep.subr.bf16.mxu1 %v22445_v43  ;;  %v22537_v33 = vld [vmem:[%s23910_s8 + $0x30ec] ss:$16 sps:$4 sm:$0xff]   ;;  %v22532_v43 = vld [vmem:[%s23910_s8 + $0x30e0] ss:$16 sps:$4 sm:$0xff]  }
 0x633   : > { %15326 = vmatpush1.bf16.msra.mxu0 %v22440_v44  ;;  %16802 = vmatpush1.bf16.msra.mxu1 %v22443_v36  ;;  %v22535_v44 = vld [vmem:[%s23910_s8 + $0x30e8] ss:$16 sps:$4 sm:$0xff]   ;;  %v22540_v36 = vld [vmem:[%s23910_s8 + $0x3104] ss:$16 sps:$4 sm:$0xff]  }
 0x634   : > { %15327 = vmatprep.subr.bf16.mxu0 %v22448_v46  ;;  %16803 = vmatprep.subr.bf16.mxu1 %v22451_v47  ;;  %v22543_v46 = vld [vmem:[%s23910_s8 + $0x310c] ss:$16 sps:$4 sm:$0xff]   ;;  %v22538_v47 = vld [vmem:[%s23910_s8 + $0x3100] ss:$16 sps:$4 sm:$0xff]  }
 0x637   : > { %15328 = vmatpush1.bf16.msra.mxu0 %v22446_v39  ;;  %16804 = vmatpush1.bf16.msra.mxu1 %v22449_v49  ;;  %v22541_v39 = vld [vmem:[%s23910_s8 + $0x3108] ss:$16 sps:$4 sm:$0xff]   ;;  %v22546_v49 = vld [vmem:[%s23910_s8 + $0x3124] ss:$16 sps:$4 sm:$0xff]  }
 0x638   : > { %15329 = vmatprep.subr.bf16.mxu0 %v22454_v50  ;;  %16805 = vmatprep.subr.bf16.mxu1 %v22457_v42  ;;  %v22549_v50 = vld [vmem:[%s23910_s8 + $0x312c] ss:$16 sps:$4 sm:$0xff]   ;;  %v22544_v42 = vld [vmem:[%s23910_s8 + $0x3120] ss:$16 sps:$4 sm:$0xff]  }
 0x63b   : > { %15330 = vmatpush1.bf16.msra.mxu0 %v22452_v52  ;;  %16806 = vmatpush1.bf16.msra.mxu1 %v22455_v53  ;;  %v22547_v52 = vld [vmem:[%s23910_s8 + $0x3128] ss:$16 sps:$4 sm:$0xff]   ;;  %v22552_v53 = vld [vmem:[%s23910_s8 + $0x3144] ss:$16 sps:$4 sm:$0xff]  }
 0x63c   : > { %15331 = vmatprep.subr.bf16.mxu0 %v22460_v45  ;;  %16807 = vmatprep.subr.bf16.mxu1 %v22463_v55  ;;  %v22555_v45 = vld [vmem:[%s23910_s8 + $0x314c] ss:$16 sps:$4 sm:$0xff]   ;;  %v22550_v55 = vld [vmem:[%s23910_s8 + $0x3140] ss:$16 sps:$4 sm:$0xff]  }
 0x63f   : > { %15332 = vmatpush1.bf16.msra.mxu0 %v22458_v56  ;;  %16808 = vmatpush1.bf16.msra.mxu1 %v22461_v48  ;;  %v22553_v56 = vld [vmem:[%s23910_s8 + $0x3148] ss:$16 sps:$4 sm:$0xff]   ;;  %v22558_v48 = vld [vmem:[%s23910_s8 + $0x3164] ss:$16 sps:$4 sm:$0xff]  }
 0x640   : > { %15333 = vmatprep.subr.bf16.mxu0 %v22466_v58  ;;  %16809 = vmatprep.subr.bf16.mxu1 %v22469_v59  ;;  %v22561_v58 = vld [vmem:[%s23910_s8 + $0x316c] ss:$16 sps:$4 sm:$0xff]   ;;  %v22556_v59 = vld [vmem:[%s23910_s8 + $0x3160] ss:$16 sps:$4 sm:$0xff]  }
 0x643   : > { %15334 = vmatpush1.bf16.msra.mxu0 %v22464_v51  ;;  %16810 = vmatpush1.bf16.msra.mxu1 %v22467_v61  ;;  %v22559_v51 = vld [vmem:[%s23910_s8 + $0x3168] ss:$16 sps:$4 sm:$0xff]   ;;  %v22564_v61 = vld [vmem:[%s23910_s8 + $0x3184] ss:$16 sps:$4 sm:$0xff]  }
 0x644   : > { %15335 = vmatprep.subr.bf16.mxu0 %v22472_v62  ;;  %16811 = vmatprep.subr.bf16.mxu1 %v22475_v54  ;;  %v22567_v62 = vld [vmem:[%s23910_s8 + $0x318c] ss:$16 sps:$4 sm:$0xff]   ;;  %v22562_v54 = vld [vmem:[%s23910_s8 + $0x3180] ss:$16 sps:$4 sm:$0xff]  }
 0x647   : > { %15336 = vmatpush1.bf16.msra.mxu0 %v22470_v63  ;;  %16812 = vmatpush1.bf16.msra.mxu1 %v22473_v1  ;;  %v22565_v63 = vld [vmem:[%s23910_s8 + $0x3188] ss:$16 sps:$4 sm:$0xff]   ;;  %v22570_v1 = vld [vmem:[%s23910_s8 + $0x31a4] ss:$16 sps:$4 sm:$0xff]  }
 0x648   : > { %15337 = vmatprep.subr.bf16.mxu0 %v22478_v57  ;;  %16813 = vmatprep.subr.bf16.mxu1 %v22481_v2  ;;  %v22573_v57 = vld [vmem:[%s23910_s8 + $0x31ac] ss:$16 sps:$4 sm:$0xff]   ;;  %v22568_v2 = vld [vmem:[%s23910_s8 + $0x31a0] ss:$16 sps:$4 sm:$0xff]  }
 0x64b   : > { %15338 = vmatpush1.bf16.msra.mxu0 %v22476_v60  ;;  %16814 = vmatpush1.bf16.msra.mxu1 %v22479_v4  ;;  %v22571_v60 = vld [vmem:[%s23910_s8 + $0x31a8] ss:$16 sps:$4 sm:$0xff]   ;;  %v22576_v4 = vld [vmem:[%s23910_s8 + $0x31c4] ss:$16 sps:$4 sm:$0xff]  }
 0x64c   : > { %15339 = vmatprep.subr.bf16.mxu0 %v22484_v5  ;;  %16815 = vmatprep.subr.bf16.mxu1 %v22487_v0  ;;  %v22579_v5 = vld [vmem:[%s23910_s8 + $0x31cc] ss:$16 sps:$4 sm:$0xff]   ;;  %v22574_v0 = vld [vmem:[%s23910_s8 + $0x31c0] ss:$16 sps:$4 sm:$0xff]  }
 0x64f   : > { %15340 = vmatpush1.bf16.msra.mxu0 %v22482_v7  ;;  %16816 = vmatpush1.bf16.msra.mxu1 %v22485_v8  ;;  %v22577_v7 = vld [vmem:[%s23910_s8 + $0x31c8] ss:$16 sps:$4 sm:$0xff]   ;;  %v22582_v8 = vld [vmem:[%s23910_s8 + $0x31e4] ss:$16 sps:$4 sm:$0xff]  }
 0x650   : > { %15350 = vmatprep.subr.bf16.mxu0 %v22492_v3  ;;  %16826 = vmatprep.subr.bf16.mxu1 %v22495_v10  ;;  %v22585_v3 = vld [vmem:[%s23910_s8 + $0x31ec] ss:$16 sps:$4 sm:$0xff]   ;;  %v22580_v10 = vld [vmem:[%s23910_s8 + $0x31e0] ss:$16 sps:$4 sm:$0xff]  }
 0x652   : > { %15342 = vmatmul.mubr.bf16.vlgmr.msra.gmra.mrb[0].mxu0 %v17471_v12  ;;  %16818 = vmatmul.mubr.bf16.vlgmr.msra.gmra.mrb[0].mxu1 %v17471_v12  ;;  %v22583_v12 = vld [vmem:[%s23910_s8 + $0x31e8] ss:$16 sps:$4 sm:$0xff]  }
 0x653   : > { %15351 = vmatpush1.bf16.msra.mxu0 %v22490_v6  ;;  %16827 = vmatpush1.bf16.msra.mxu1 %v22493_v15  ;;  %v22590_v6 = vld [vmem:[%s23910_s8 + $0x3204] ss:$16 sps:$4 sm:$0xff]   ;;  %v22593_v15 = vld [vmem:[%s23910_s8 + $0x320c] ss:$16 sps:$4 sm:$0xff]  }
 0x654   : > { %15352 = vmatprep.subr.bf16.mxu0 %v22498_v16  ;;  %16828 = vmatprep.subr.bf16.mxu1 %v22501_v11  ;;  %v17473_v16 = vcombine.low %v25673_v13, %v25673_v13  ;;  %v25746_v11 = vld [vmem:[%s26563_s0 + $0xc8] sm:$0xff] }
 0x655   : > { %15382 = vmatprep.mubr.bf16.mxu0 %v17474_v9  ;;  %16858 = vmatprep.mubr.bf16.mxu1 %v17474_v9  ;;  %v22588_v9 = vld [vmem:[%s23910_s8 + $0x3200] ss:$16 sps:$4 sm:$0xff]   ;;  %v17476_v13 = vcombine.high %v25746_v11, %v25746_v11 }
 0x657   : > { %15353 = vmatpush1.bf16.msra.mxu0 %v22496_v19  ;;  %16829 = vmatpush1.bf16.msra.mxu1 %v22499_v20  ;;  %v22591_v19 = vld [vmem:[%s23910_s8 + $0x3208] ss:$16 sps:$4 sm:$0xff]   ;;  %v22596_v20 = vld [vmem:[%s23910_s8 + $0x3224] ss:$16 sps:$4 sm:$0xff]  }
 0x658   : > { %15354 = vmatprep.subr.bf16.mxu0 %v22504_v14  ;;  %16830 = vmatprep.subr.bf16.mxu1 %v22507_v22  ;;  %v22599_v14 = vld [vmem:[%s23910_s8 + $0x322c] ss:$16 sps:$4 sm:$0xff]   ;;  %v22594_v22 = vld [vmem:[%s23910_s8 + $0x3220] ss:$16 sps:$4 sm:$0xff]  }
 0x65b   : > { %15355 = vmatpush1.bf16.msra.mxu0 %v22502_v23  ;;  %16831 = vmatpush1.bf16.msra.mxu1 %v22505_v17  ;;  %v22597_v23 = vld [vmem:[%s23910_s8 + $0x3228] ss:$16 sps:$4 sm:$0xff]   ;;  %v22602_v17 = vld [vmem:[%s23910_s8 + $0x3244] ss:$16 sps:$4 sm:$0xff]  }
 0x65c   : > { %15356 = vmatprep.subr.bf16.mxu0 %v22510_v25  ;;  %16832 = vmatprep.subr.bf16.mxu1 %v22513_v26  ;;  %v22605_v25 = vld [vmem:[%s23910_s8 + $0x324c] ss:$16 sps:$4 sm:$0xff]   ;;  %v22600_v26 = vld [vmem:[%s23910_s8 + $0x3240] ss:$16 sps:$4 sm:$0xff]  }
 0x65f   : > { %15357 = vmatpush1.bf16.msra.mxu0 %v22508_v18  ;;  %16833 = vmatpush1.bf16.msra.mxu1 %v22511_v28  ;;  %v22603_v18 = vld [vmem:[%s23910_s8 + $0x3248] ss:$16 sps:$4 sm:$0xff]   ;;  %v22608_v28 = vld [vmem:[%s23910_s8 + $0x3264] ss:$16 sps:$4 sm:$0xff]  }
 0x660   : > { %15358 = vmatprep.subr.bf16.mxu0 %v22516_v29  ;;  %16834 = vmatprep.subr.bf16.mxu1 %v22519_v21  ;;  %v22611_v29 = vld [vmem:[%s23910_s8 + $0x326c] ss:$16 sps:$4 sm:$0xff]   ;;  %v22606_v21 = vld [vmem:[%s23910_s8 + $0x3260] ss:$16 sps:$4 sm:$0xff]  }
 0x663   : > { %15359 = vmatpush1.bf16.msra.mxu0 %v22514_v31  ;;  %16835 = vmatpush1.bf16.msra.mxu1 %v22517_v32  ;;  %v22609_v31 = vld [vmem:[%s23910_s8 + $0x3268] ss:$16 sps:$4 sm:$0xff]   ;;  %v22614_v32 = vld [vmem:[%s23910_s8 + $0x3284] ss:$16 sps:$4 sm:$0xff]  }
 0x664   : > { %15360 = vmatprep.subr.bf16.mxu0 %v22522_v24  ;;  %16836 = vmatprep.subr.bf16.mxu1 %v22525_v34  ;;  %v22617_v24 = vld [vmem:[%s23910_s8 + $0x328c] ss:$16 sps:$4 sm:$0xff]   ;;  %v22612_v34 = vld [vmem:[%s23910_s8 + $0x3280] ss:$16 sps:$4 sm:$0xff]  }
 0x667   : > { %15361 = vmatpush1.bf16.msra.mxu0 %v22520_v35  ;;  %16837 = vmatpush1.bf16.msra.mxu1 %v22523_v27  ;;  %v22615_v35 = vld [vmem:[%s23910_s8 + $0x3288] ss:$16 sps:$4 sm:$0xff]   ;;  %v22620_v27 = vld [vmem:[%s23910_s8 + $0x32a4] ss:$16 sps:$4 sm:$0xff]  }
 0x668   : > { %15362 = vmatprep.subr.bf16.mxu0 %v22528_v37  ;;  %16838 = vmatprep.subr.bf16.mxu1 %v22531_v38  ;;  %v22623_v37 = vld [vmem:[%s23910_s8 + $0x32ac] ss:$16 sps:$4 sm:$0xff]   ;;  %v22618_v38 = vld [vmem:[%s23910_s8 + $0x32a0] ss:$16 sps:$4 sm:$0xff]  }
 0x66b   : > { %15363 = vmatpush1.bf16.msra.mxu0 %v22526_v30  ;;  %16839 = vmatpush1.bf16.msra.mxu1 %v22529_v40  ;;  %v22621_v30 = vld [vmem:[%s23910_s8 + $0x32a8] ss:$16 sps:$4 sm:$0xff]   ;;  %v22626_v40 = vld [vmem:[%s23910_s8 + $0x32c4] ss:$16 sps:$4 sm:$0xff]  }
 0x66c   : > { %15364 = vmatprep.subr.bf16.mxu0 %v22534_v41  ;;  %16840 = vmatprep.subr.bf16.mxu1 %v22537_v33  ;;  %v22629_v41 = vld [vmem:[%s23910_s8 + $0x32cc] ss:$16 sps:$4 sm:$0xff]   ;;  %v22624_v33 = vld [vmem:[%s23910_s8 + $0x32c0] ss:$16 sps:$4 sm:$0xff]  }
 0x66f   : > { %15365 = vmatpush1.bf16.msra.mxu0 %v22532_v43  ;;  %16841 = vmatpush1.bf16.msra.mxu1 %v22535_v44  ;;  %v22627_v43 = vld [vmem:[%s23910_s8 + $0x32c8] ss:$16 sps:$4 sm:$0xff]   ;;  %v22632_v44 = vld [vmem:[%s23910_s8 + $0x32e4] ss:$16 sps:$4 sm:$0xff]  }
 0x670   : > { %15366 = vmatprep.subr.bf16.mxu0 %v22540_v36  ;;  %16842 = vmatprep.subr.bf16.mxu1 %v22543_v46  ;;  %v22635_v36 = vld [vmem:[%s23910_s8 + $0x32ec] ss:$16 sps:$4 sm:$0xff]   ;;  %v22630_v46 = vld [vmem:[%s23910_s8 + $0x32e0] ss:$16 sps:$4 sm:$0xff]  }
 0x673   : > { %15367 = vmatpush1.bf16.msra.mxu0 %v22538_v47  ;;  %16843 = vmatpush1.bf16.msra.mxu1 %v22541_v39  ;;  %v22633_v47 = vld [vmem:[%s23910_s8 + $0x32e8] ss:$16 sps:$4 sm:$0xff]   ;;  %v22638_v39 = vld [vmem:[%s23910_s8 + $0x3304] ss:$16 sps:$4 sm:$0xff]  }
 0x674   : > { %15368 = vmatprep.subr.bf16.mxu0 %v22546_v49  ;;  %16844 = vmatprep.subr.bf16.mxu1 %v22549_v50  ;;  %v22641_v49 = vld [vmem:[%s23910_s8 + $0x330c] ss:$16 sps:$4 sm:$0xff]   ;;  %v22636_v50 = vld [vmem:[%s23910_s8 + $0x3300] ss:$16 sps:$4 sm:$0xff]  }
 0x677   : > { %15369 = vmatpush1.bf16.msra.mxu0 %v22544_v42  ;;  %16845 = vmatpush1.bf16.msra.mxu1 %v22547_v52  ;;  %v22639_v42 = vld [vmem:[%s23910_s8 + $0x3308] ss:$16 sps:$4 sm:$0xff]   ;;  %v22644_v52 = vld [vmem:[%s23910_s8 + $0x3324] ss:$16 sps:$4 sm:$0xff]  }
 0x678   : > { %15370 = vmatprep.subr.bf16.mxu0 %v22552_v53  ;;  %16846 = vmatprep.subr.bf16.mxu1 %v22555_v45  ;;  %v22647_v53 = vld [vmem:[%s23910_s8 + $0x332c] ss:$16 sps:$4 sm:$0xff]   ;;  %v22642_v45 = vld [vmem:[%s23910_s8 + $0x3320] ss:$16 sps:$4 sm:$0xff]  }
 0x67b   : > { %15371 = vmatpush1.bf16.msra.mxu0 %v22550_v55  ;;  %16847 = vmatpush1.bf16.msra.mxu1 %v22553_v56  ;;  %v22645_v55 = vld [vmem:[%s23910_s8 + $0x3328] ss:$16 sps:$4 sm:$0xff]   ;;  %v22650_v56 = vld [vmem:[%s23910_s8 + $0x3344] ss:$16 sps:$4 sm:$0xff]  }
 0x67c   : > { %15372 = vmatprep.subr.bf16.mxu0 %v22558_v48  ;;  %16848 = vmatprep.subr.bf16.mxu1 %v22561_v58  ;;  %v22653_v48 = vld [vmem:[%s23910_s8 + $0x334c] ss:$16 sps:$4 sm:$0xff]   ;;  %v22648_v58 = vld [vmem:[%s23910_s8 + $0x3340] ss:$16 sps:$4 sm:$0xff]  }
 0x67f   : > { %15373 = vmatpush1.bf16.msra.mxu0 %v22556_v59  ;;  %16849 = vmatpush1.bf16.msra.mxu1 %v22559_v51  ;;  %v22651_v59 = vld [vmem:[%s23910_s8 + $0x3348] ss:$16 sps:$4 sm:$0xff]   ;;  %v22656_v51 = vld [vmem:[%s23910_s8 + $0x3364] ss:$16 sps:$4 sm:$0xff]  }
 0x680   : > { %15374 = vmatprep.subr.bf16.mxu0 %v22564_v61  ;;  %16850 = vmatprep.subr.bf16.mxu1 %v22567_v62  ;;  %v22659_v61 = vld [vmem:[%s23910_s8 + $0x336c] ss:$16 sps:$4 sm:$0xff]   ;;  %v22654_v62 = vld [vmem:[%s23910_s8 + $0x3360] ss:$16 sps:$4 sm:$0xff]  }
 0x683   : > { %15375 = vmatpush1.bf16.msra.mxu0 %v22562_v54  ;;  %16851 = vmatpush1.bf16.msra.mxu1 %v22565_v63  ;;  %v22657_v54 = vld [vmem:[%s23910_s8 + $0x3368] ss:$16 sps:$4 sm:$0xff]   ;;  %v22662_v63 = vld [vmem:[%s23910_s8 + $0x3384] ss:$16 sps:$4 sm:$0xff]  }
 0x684   : > { %15376 = vmatprep.subr.bf16.mxu0 %v22570_v1  ;;  %16852 = vmatprep.subr.bf16.mxu1 %v22573_v57  ;;  %v22665_v1 = vld [vmem:[%s23910_s8 + $0x338c] ss:$16 sps:$4 sm:$0xff]   ;;  %v22660_v57 = vld [vmem:[%s23910_s8 + $0x3380] ss:$16 sps:$4 sm:$0xff]  }
 0x687   : > { %15377 = vmatpush1.bf16.msra.mxu0 %v22568_v2  ;;  %16853 = vmatpush1.bf16.msra.mxu1 %v22571_v60  ;;  %v22663_v2 = vld [vmem:[%s23910_s8 + $0x3388] ss:$16 sps:$4 sm:$0xff]   ;;  %v22668_v60 = vld [vmem:[%s23910_s8 + $0x33a4] ss:$16 sps:$4 sm:$0xff]  }
 0x688   : > { %15378 = vmatprep.subr.bf16.mxu0 %v22576_v4  ;;  %16854 = vmatprep.subr.bf16.mxu1 %v22579_v5  ;;  %v22671_v4 = vld [vmem:[%s23910_s8 + $0x33ac] ss:$16 sps:$4 sm:$0xff]   ;;  %v22666_v5 = vld [vmem:[%s23910_s8 + $0x33a0] ss:$16 sps:$4 sm:$0xff]  }
 0x68b   : > { %15379 = vmatpush1.bf16.msra.mxu0 %v22574_v0  ;;  %16855 = vmatpush1.bf16.msra.mxu1 %v22577_v7  ;;  %v22669_v0 = vld [vmem:[%s23910_s8 + $0x33a8] ss:$16 sps:$4 sm:$0xff]   ;;  %v22674_v7 = vld [vmem:[%s23910_s8 + $0x33c4] ss:$16 sps:$4 sm:$0xff]  }
 0x68c   : > { %15380 = vmatprep.subr.bf16.mxu0 %v22582_v8  ;;  %16856 = vmatprep.subr.bf16.mxu1 %v22585_v3  ;;  %v22677_v8 = vld [vmem:[%s23910_s8 + $0x33cc] ss:$16 sps:$4 sm:$0xff]   ;;  %v22672_v3 = vld [vmem:[%s23910_s8 + $0x33c0] ss:$16 sps:$4 sm:$0xff]  }
 0x68f   : > { %15381 = vmatpush1.bf16.msra.mxu0 %v22580_v10  ;;  %16857 = vmatpush1.bf16.msra.mxu1 %v22583_v12  ;;  %v22675_v10 = vld [vmem:[%s23910_s8 + $0x33c8] ss:$16 sps:$4 sm:$0xff]   ;;  %v22680_v12 = vld [vmem:[%s23910_s8 + $0x33e4] ss:$16 sps:$4 sm:$0xff]  }
 0x690   : > { %15391 = vmatprep.subr.bf16.mxu0 %v22590_v6  ;;  %16867 = vmatprep.subr.bf16.mxu1 %v22593_v15  ;;  %v22683_v6 = vld [vmem:[%s23910_s8 + $0x33ec] ss:$16 sps:$4 sm:$0xff]   ;;  %v22678_v15 = vld [vmem:[%s23910_s8 + $0x33e0] ss:$16 sps:$4 sm:$0xff]  }
 0x692   : > { %15383 = vmatmul.mubr.bf16.vlgmr.msra.gmra.mrb[0].mxu0 %v17473_v16  ;;  %16859 = vmatmul.mubr.bf16.vlgmr.msra.gmra.mrb[0].mxu1 %v17473_v16  ;;  %v22681_v16 = vld [vmem:[%s23910_s8 + $0x33e8] ss:$16 sps:$4 sm:$0xff]  }
 0x693   : > { %15392 = vmatpush1.bf16.msra.mxu0 %v22588_v9  ;;  %16868 = vmatpush1.bf16.msra.mxu1 %v22591_v19  ;;  %v22688_v9 = vld [vmem:[%s23910_s8 + $0x3404] ss:$16 sps:$4 sm:$0xff]   ;;  %v22691_v19 = vld [vmem:[%s23910_s8 + $0x340c] ss:$16 sps:$4 sm:$0xff]  }
 0x694   : > { %15393 = vmatprep.subr.bf16.mxu0 %v22596_v20  ;;  %16869 = vmatprep.subr.bf16.mxu1 %v22599_v14  ;;  %v17475_v20 = vcombine.low %v25746_v11, %v25746_v11  ;;  %v25819_v14 = vld [vmem:[%s26563_s0 + $0xd0] sm:$0xff] }
 0x695   : > { %15423 = vmatprep.mubr.bf16.mxu0 %v17476_v13  ;;  %16899 = vmatprep.mubr.bf16.mxu1 %v17476_v13  ;;  %v22686_v13 = vld [vmem:[%s23910_s8 + $0x3400] ss:$16 sps:$4 sm:$0xff]   ;;  %v17478_v11 = vcombine.high %v25819_v14, %v25819_v14 }
 0x697   : > { %15394 = vmatpush1.bf16.msra.mxu0 %v22594_v22  ;;  %16870 = vmatpush1.bf16.msra.mxu1 %v22597_v23  ;;  %v22689_v22 = vld [vmem:[%s23910_s8 + $0x3408] ss:$16 sps:$4 sm:$0xff]   ;;  %v22694_v23 = vld [vmem:[%s23910_s8 + $0x3424] ss:$16 sps:$4 sm:$0xff]  }
 0x698   : > { %15395 = vmatprep.subr.bf16.mxu0 %v22602_v17  ;;  %16871 = vmatprep.subr.bf16.mxu1 %v22605_v25  ;;  %v22697_v17 = vld [vmem:[%s23910_s8 + $0x342c] ss:$16 sps:$4 sm:$0xff]   ;;  %v22692_v25 = vld [vmem:[%s23910_s8 + $0x3420] ss:$16 sps:$4 sm:$0xff]  }
 0x69b   : > { %15396 = vmatpush1.bf16.msra.mxu0 %v22600_v26  ;;  %16872 = vmatpush1.bf16.msra.mxu1 %v22603_v18  ;;  %v22695_v26 = vld [vmem:[%s23910_s8 + $0x3428] ss:$16 sps:$4 sm:$0xff]   ;;  %v22700_v18 = vld [vmem:[%s23910_s8 + $0x3444] ss:$16 sps:$4 sm:$0xff]  }
 0x69c   : > { %15397 = vmatprep.subr.bf16.mxu0 %v22608_v28  ;;  %16873 = vmatprep.subr.bf16.mxu1 %v22611_v29  ;;  %v22703_v28 = vld [vmem:[%s23910_s8 + $0x344c] ss:$16 sps:$4 sm:$0xff]   ;;  %v22698_v29 = vld [vmem:[%s23910_s8 + $0x3440] ss:$16 sps:$4 sm:$0xff]  }
 0x69f   : > { %15398 = vmatpush1.bf16.msra.mxu0 %v22606_v21  ;;  %16874 = vmatpush1.bf16.msra.mxu1 %v22609_v31  ;;  %v22701_v21 = vld [vmem:[%s23910_s8 + $0x3448] ss:$16 sps:$4 sm:$0xff]   ;;  %v22706_v31 = vld [vmem:[%s23910_s8 + $0x3464] ss:$16 sps:$4 sm:$0xff]  }
 0x6a0   : > { %15399 = vmatprep.subr.bf16.mxu0 %v22614_v32  ;;  %16875 = vmatprep.subr.bf16.mxu1 %v22617_v24  ;;  %v22709_v32 = vld [vmem:[%s23910_s8 + $0x346c] ss:$16 sps:$4 sm:$0xff]   ;;  %v22704_v24 = vld [vmem:[%s23910_s8 + $0x3460] ss:$16 sps:$4 sm:$0xff]  }
 0x6a3   : > { %15400 = vmatpush1.bf16.msra.mxu0 %v22612_v34  ;;  %16876 = vmatpush1.bf16.msra.mxu1 %v22615_v35  ;;  %v22707_v34 = vld [vmem:[%s23910_s8 + $0x3468] ss:$16 sps:$4 sm:$0xff]   ;;  %v22712_v35 = vld [vmem:[%s23910_s8 + $0x3484] ss:$16 sps:$4 sm:$0xff]  }
 0x6a4   : > { %15401 = vmatprep.subr.bf16.mxu0 %v22620_v27  ;;  %16877 = vmatprep.subr.bf16.mxu1 %v22623_v37  ;;  %v22715_v27 = vld [vmem:[%s23910_s8 + $0x348c] ss:$16 sps:$4 sm:$0xff]   ;;  %v22710_v37 = vld [vmem:[%s23910_s8 + $0x3480] ss:$16 sps:$4 sm:$0xff]  }
 0x6a7   : > { %15402 = vmatpush1.bf16.msra.mxu0 %v22618_v38  ;;  %16878 = vmatpush1.bf16.msra.mxu1 %v22621_v30  ;;  %v22713_v38 = vld [vmem:[%s23910_s8 + $0x3488] ss:$16 sps:$4 sm:$0xff]   ;;  %v22718_v30 = vld [vmem:[%s23910_s8 + $0x34a4] ss:$16 sps:$4 sm:$0xff]  }
 0x6a8   : > { %15403 = vmatprep.subr.bf16.mxu0 %v22626_v40  ;;  %16879 = vmatprep.subr.bf16.mxu1 %v22629_v41  ;;  %v22721_v40 = vld [vmem:[%s23910_s8 + $0x34ac] ss:$16 sps:$4 sm:$0xff]   ;;  %v22716_v41 = vld [vmem:[%s23910_s8 + $0x34a0] ss:$16 sps:$4 sm:$0xff]  }
 0x6ab   : > { %15404 = vmatpush1.bf16.msra.mxu0 %v22624_v33  ;;  %16880 = vmatpush1.bf16.msra.mxu1 %v22627_v43  ;;  %v22719_v33 = vld [vmem:[%s23910_s8 + $0x34a8] ss:$16 sps:$4 sm:$0xff]   ;;  %v22724_v43 = vld [vmem:[%s23910_s8 + $0x34c4] ss:$16 sps:$4 sm:$0xff]  }
 0x6ac   : > { %15405 = vmatprep.subr.bf16.mxu0 %v22632_v44  ;;  %16881 = vmatprep.subr.bf16.mxu1 %v22635_v36  ;;  %v22727_v44 = vld [vmem:[%s23910_s8 + $0x34cc] ss:$16 sps:$4 sm:$0xff]   ;;  %v22722_v36 = vld [vmem:[%s23910_s8 + $0x34c0] ss:$16 sps:$4 sm:$0xff]  }
 0x6af   : > { %15406 = vmatpush1.bf16.msra.mxu0 %v22630_v46  ;;  %16882 = vmatpush1.bf16.msra.mxu1 %v22633_v47  ;;  %v22725_v46 = vld [vmem:[%s23910_s8 + $0x34c8] ss:$16 sps:$4 sm:$0xff]   ;;  %v22730_v47 = vld [vmem:[%s23910_s8 + $0x34e4] ss:$16 sps:$4 sm:$0xff]  }
 0x6b0   : > { %15407 = vmatprep.subr.bf16.mxu0 %v22638_v39  ;;  %16883 = vmatprep.subr.bf16.mxu1 %v22641_v49  ;;  %v22733_v39 = vld [vmem:[%s23910_s8 + $0x34ec] ss:$16 sps:$4 sm:$0xff]   ;;  %v22728_v49 = vld [vmem:[%s23910_s8 + $0x34e0] ss:$16 sps:$4 sm:$0xff]  }
 0x6b3   : > { %15408 = vmatpush1.bf16.msra.mxu0 %v22636_v50  ;;  %16884 = vmatpush1.bf16.msra.mxu1 %v22639_v42  ;;  %v22731_v50 = vld [vmem:[%s23910_s8 + $0x34e8] ss:$16 sps:$4 sm:$0xff]   ;;  %v22736_v42 = vld [vmem:[%s23910_s8 + $0x3504] ss:$16 sps:$4 sm:$0xff]  }
 0x6b4   : > { %15409 = vmatprep.subr.bf16.mxu0 %v22644_v52  ;;  %16885 = vmatprep.subr.bf16.mxu1 %v22647_v53  ;;  %v22739_v52 = vld [vmem:[%s23910_s8 + $0x350c] ss:$16 sps:$4 sm:$0xff]   ;;  %v22734_v53 = vld [vmem:[%s23910_s8 + $0x3500] ss:$16 sps:$4 sm:$0xff]  }
 0x6b7   : > { %15410 = vmatpush1.bf16.msra.mxu0 %v22642_v45  ;;  %16886 = vmatpush1.bf16.msra.mxu1 %v22645_v55  ;;  %v22737_v45 = vld [vmem:[%s23910_s8 + $0x3508] ss:$16 sps:$4 sm:$0xff]   ;;  %v22742_v55 = vld [vmem:[%s23910_s8 + $0x3524] ss:$16 sps:$4 sm:$0xff]  }
 0x6b8   : > { %15411 = vmatprep.subr.bf16.mxu0 %v22650_v56  ;;  %16887 = vmatprep.subr.bf16.mxu1 %v22653_v48  ;;  %v22745_v56 = vld [vmem:[%s23910_s8 + $0x352c] ss:$16 sps:$4 sm:$0xff]   ;;  %v22740_v48 = vld [vmem:[%s23910_s8 + $0x3520] ss:$16 sps:$4 sm:$0xff]  }
 0x6bb   : > { %15412 = vmatpush1.bf16.msra.mxu0 %v22648_v58  ;;  %16888 = vmatpush1.bf16.msra.mxu1 %v22651_v59  ;;  %v22743_v58 = vld [vmem:[%s23910_s8 + $0x3528] ss:$16 sps:$4 sm:$0xff]   ;;  %v22748_v59 = vld [vmem:[%s23910_s8 + $0x3544] ss:$16 sps:$4 sm:$0xff]  }
 0x6bc   : > { %15413 = vmatprep.subr.bf16.mxu0 %v22656_v51  ;;  %16889 = vmatprep.subr.bf16.mxu1 %v22659_v61  ;;  %v22751_v51 = vld [vmem:[%s23910_s8 + $0x354c] ss:$16 sps:$4 sm:$0xff]   ;;  %v22746_v61 = vld [vmem:[%s23910_s8 + $0x3540] ss:$16 sps:$4 sm:$0xff]  }
 0x6bf   : > { %15414 = vmatpush1.bf16.msra.mxu0 %v22654_v62  ;;  %16890 = vmatpush1.bf16.msra.mxu1 %v22657_v54  ;;  %v22749_v62 = vld [vmem:[%s23910_s8 + $0x3548] ss:$16 sps:$4 sm:$0xff]   ;;  %v22754_v54 = vld [vmem:[%s23910_s8 + $0x3564] ss:$16 sps:$4 sm:$0xff]  }
 0x6c0   : > { %15415 = vmatprep.subr.bf16.mxu0 %v22662_v63  ;;  %16891 = vmatprep.subr.bf16.mxu1 %v22665_v1  ;;  %v22757_v63 = vld [vmem:[%s23910_s8 + $0x356c] ss:$16 sps:$4 sm:$0xff]   ;;  %v22752_v1 = vld [vmem:[%s23910_s8 + $0x3560] ss:$16 sps:$4 sm:$0xff]  }
 0x6c3   : > { %15416 = vmatpush1.bf16.msra.mxu0 %v22660_v57  ;;  %16892 = vmatpush1.bf16.msra.mxu1 %v22663_v2  ;;  %v22755_v57 = vld [vmem:[%s23910_s8 + $0x3568] ss:$16 sps:$4 sm:$0xff]   ;;  %v22760_v2 = vld [vmem:[%s23910_s8 + $0x3584] ss:$16 sps:$4 sm:$0xff]  }
 0x6c4   : > { %15417 = vmatprep.subr.bf16.mxu0 %v22668_v60  ;;  %16893 = vmatprep.subr.bf16.mxu1 %v22671_v4  ;;  %v22763_v60 = vld [vmem:[%s23910_s8 + $0x358c] ss:$16 sps:$4 sm:$0xff]   ;;  %v22758_v4 = vld [vmem:[%s23910_s8 + $0x3580] ss:$16 sps:$4 sm:$0xff]  }
 0x6c7   : > { %15418 = vmatpush1.bf16.msra.mxu0 %v22666_v5  ;;  %16894 = vmatpush1.bf16.msra.mxu1 %v22669_v0  ;;  %v22761_v5 = vld [vmem:[%s23910_s8 + $0x3588] ss:$16 sps:$4 sm:$0xff]   ;;  %v22766_v0 = vld [vmem:[%s23910_s8 + $0x35a4] ss:$16 sps:$4 sm:$0xff]  }
 0x6c8   : > { %15419 = vmatprep.subr.bf16.mxu0 %v22674_v7  ;;  %16895 = vmatprep.subr.bf16.mxu1 %v22677_v8  ;;  %v22769_v7 = vld [vmem:[%s23910_s8 + $0x35ac] ss:$16 sps:$4 sm:$0xff]   ;;  %v22764_v8 = vld [vmem:[%s23910_s8 + $0x35a0] ss:$16 sps:$4 sm:$0xff]  }
 0x6cb   : > { %15420 = vmatpush1.bf16.msra.mxu0 %v22672_v3  ;;  %16896 = vmatpush1.bf16.msra.mxu1 %v22675_v10  ;;  %v22767_v3 = vld [vmem:[%s23910_s8 + $0x35a8] ss:$16 sps:$4 sm:$0xff]   ;;  %v22772_v10 = vld [vmem:[%s23910_s8 + $0x35c4] ss:$16 sps:$4 sm:$0xff]  }
 0x6cc   : > { %15421 = vmatprep.subr.bf16.mxu0 %v22680_v12  ;;  %16897 = vmatprep.subr.bf16.mxu1 %v22683_v6  ;;  %v22775_v12 = vld [vmem:[%s23910_s8 + $0x35cc] ss:$16 sps:$4 sm:$0xff]   ;;  %v22770_v6 = vld [vmem:[%s23910_s8 + $0x35c0] ss:$16 sps:$4 sm:$0xff]  }
 0x6cf   : > { %15422 = vmatpush1.bf16.msra.mxu0 %v22678_v15  ;;  %16898 = vmatpush1.bf16.msra.mxu1 %v22681_v16  ;;  %v22773_v15 = vld [vmem:[%s23910_s8 + $0x35c8] ss:$16 sps:$4 sm:$0xff]   ;;  %v22778_v16 = vld [vmem:[%s23910_s8 + $0x35e4] ss:$16 sps:$4 sm:$0xff]  }
 0x6d0   : > { %15432 = vmatprep.subr.bf16.mxu0 %v22688_v9  ;;  %16908 = vmatprep.subr.bf16.mxu1 %v22691_v19  ;;  %v22781_v9 = vld [vmem:[%s23910_s8 + $0x35ec] ss:$16 sps:$4 sm:$0xff]   ;;  %v22776_v19 = vld [vmem:[%s23910_s8 + $0x35e0] ss:$16 sps:$4 sm:$0xff]  }
 0x6d2   : > { %15424 = vmatmul.mubr.bf16.vlgmr.msra.gmra.mrb[0].mxu0 %v17475_v20  ;;  %16900 = vmatmul.mubr.bf16.vlgmr.msra.gmra.mrb[0].mxu1 %v17475_v20  ;;  %v22779_v20 = vld [vmem:[%s23910_s8 + $0x35e8] ss:$16 sps:$4 sm:$0xff]  }
 0x6d3   : > { %15433 = vmatpush1.bf16.msra.mxu0 %v22686_v13  ;;  %16909 = vmatpush1.bf16.msra.mxu1 %v22689_v22  ;;  %v22786_v13 = vld [vmem:[%s23910_s8 + $0x3604] ss:$16 sps:$4 sm:$0xff]   ;;  %v22789_v22 = vld [vmem:[%s23910_s8 + $0x360c] ss:$16 sps:$4 sm:$0xff]  }
 0x6d4   : > { %15434 = vmatprep.subr.bf16.mxu0 %v22694_v23  ;;  %16910 = vmatprep.subr.bf16.mxu1 %v22697_v17  ;;  %v17477_v23 = vcombine.low %v25819_v14, %v25819_v14  ;;  %v25892_v17 = vld [vmem:[%s26563_s0 + $0xd8] sm:$0xff] }
 0x6d5   : > { %15464 = vmatprep.mubr.bf16.mxu0 %v17478_v11  ;;  %16940 = vmatprep.mubr.bf16.mxu1 %v17478_v11  ;;  %v22784_v11 = vld [vmem:[%s23910_s8 + $0x3600] ss:$16 sps:$4 sm:$0xff]   ;;  %v17480_v14 = vcombine.high %v25892_v17, %v25892_v17 }
 0x6d7   : > { %15435 = vmatpush1.bf16.msra.mxu0 %v22692_v25  ;;  %16911 = vmatpush1.bf16.msra.mxu1 %v22695_v26  ;;  %v22787_v25 = vld [vmem:[%s23910_s8 + $0x3608] ss:$16 sps:$4 sm:$0xff]   ;;  %v22792_v26 = vld [vmem:[%s23910_s8 + $0x3624] ss:$16 sps:$4 sm:$0xff]  }
 0x6d8   : > { %15436 = vmatprep.subr.bf16.mxu0 %v22700_v18  ;;  %16912 = vmatprep.subr.bf16.mxu1 %v22703_v28  ;;  %v22795_v18 = vld [vmem:[%s23910_s8 + $0x362c] ss:$16 sps:$4 sm:$0xff]   ;;  %v22790_v28 = vld [vmem:[%s23910_s8 + $0x3620] ss:$16 sps:$4 sm:$0xff]  }
 0x6db   : > { %15437 = vmatpush1.bf16.msra.mxu0 %v22698_v29  ;;  %16913 = vmatpush1.bf16.msra.mxu1 %v22701_v21  ;;  %v22793_v29 = vld [vmem:[%s23910_s8 + $0x3628] ss:$16 sps:$4 sm:$0xff]   ;;  %v22798_v21 = vld [vmem:[%s23910_s8 + $0x3644] ss:$16 sps:$4 sm:$0xff]  }
 0x6dc   : > { %15438 = vmatprep.subr.bf16.mxu0 %v22706_v31  ;;  %16914 = vmatprep.subr.bf16.mxu1 %v22709_v32  ;;  %v22801_v31 = vld [vmem:[%s23910_s8 + $0x364c] ss:$16 sps:$4 sm:$0xff]   ;;  %v22796_v32 = vld [vmem:[%s23910_s8 + $0x3640] ss:$16 sps:$4 sm:$0xff]  }
 0x6df   : > { %15439 = vmatpush1.bf16.msra.mxu0 %v22704_v24  ;;  %16915 = vmatpush1.bf16.msra.mxu1 %v22707_v34  ;;  %v22799_v24 = vld [vmem:[%s23910_s8 + $0x3648] ss:$16 sps:$4 sm:$0xff]   ;;  %v22804_v34 = vld [vmem:[%s23910_s8 + $0x3664] ss:$16 sps:$4 sm:$0xff]  }
 0x6e0   : > { %15440 = vmatprep.subr.bf16.mxu0 %v22712_v35  ;;  %16916 = vmatprep.subr.bf16.mxu1 %v22715_v27  ;;  %v22807_v35 = vld [vmem:[%s23910_s8 + $0x366c] ss:$16 sps:$4 sm:$0xff]   ;;  %v22802_v27 = vld [vmem:[%s23910_s8 + $0x3660] ss:$16 sps:$4 sm:$0xff]  }
 0x6e3   : > { %15441 = vmatpush1.bf16.msra.mxu0 %v22710_v37  ;;  %16917 = vmatpush1.bf16.msra.mxu1 %v22713_v38  ;;  %v22805_v37 = vld [vmem:[%s23910_s8 + $0x3668] ss:$16 sps:$4 sm:$0xff]   ;;  %v22810_v38 = vld [vmem:[%s23910_s8 + $0x3684] ss:$16 sps:$4 sm:$0xff]  }
 0x6e4   : > { %15442 = vmatprep.subr.bf16.mxu0 %v22718_v30  ;;  %16918 = vmatprep.subr.bf16.mxu1 %v22721_v40  ;;  %v22813_v30 = vld [vmem:[%s23910_s8 + $0x368c] ss:$16 sps:$4 sm:$0xff]   ;;  %v22808_v40 = vld [vmem:[%s23910_s8 + $0x3680] ss:$16 sps:$4 sm:$0xff]  }
 0x6e7   : > { %15443 = vmatpush1.bf16.msra.mxu0 %v22716_v41  ;;  %16919 = vmatpush1.bf16.msra.mxu1 %v22719_v33  ;;  %v22811_v41 = vld [vmem:[%s23910_s8 + $0x3688] ss:$16 sps:$4 sm:$0xff]   ;;  %v22816_v33 = vld [vmem:[%s23910_s8 + $0x36a4] ss:$16 sps:$4 sm:$0xff]  }
 0x6e8   : > { %15444 = vmatprep.subr.bf16.mxu0 %v22724_v43  ;;  %16920 = vmatprep.subr.bf16.mxu1 %v22727_v44  ;;  %v22819_v43 = vld [vmem:[%s23910_s8 + $0x36ac] ss:$16 sps:$4 sm:$0xff]   ;;  %v22814_v44 = vld [vmem:[%s23910_s8 + $0x36a0] ss:$16 sps:$4 sm:$0xff]  }
 0x6eb   : > { %15445 = vmatpush1.bf16.msra.mxu0 %v22722_v36  ;;  %16921 = vmatpush1.bf16.msra.mxu1 %v22725_v46  ;;  %v22817_v36 = vld [vmem:[%s23910_s8 + $0x36a8] ss:$16 sps:$4 sm:$0xff]   ;;  %v22822_v46 = vld [vmem:[%s23910_s8 + $0x36c4] ss:$16 sps:$4 sm:$0xff]  }
 0x6ec   : > { %15446 = vmatprep.subr.bf16.mxu0 %v22730_v47  ;;  %16922 = vmatprep.subr.bf16.mxu1 %v22733_v39  ;;  %v22825_v47 = vld [vmem:[%s23910_s8 + $0x36cc] ss:$16 sps:$4 sm:$0xff]   ;;  %v22820_v39 = vld [vmem:[%s23910_s8 + $0x36c0] ss:$16 sps:$4 sm:$0xff]  }
 0x6ef   : > { %15447 = vmatpush1.bf16.msra.mxu0 %v22728_v49  ;;  %16923 = vmatpush1.bf16.msra.mxu1 %v22731_v50  ;;  %v22823_v49 = vld [vmem:[%s23910_s8 + $0x36c8] ss:$16 sps:$4 sm:$0xff]   ;;  %v22828_v50 = vld [vmem:[%s23910_s8 + $0x36e4] ss:$16 sps:$4 sm:$0xff]  }
 0x6f0   : > { %15448 = vmatprep.subr.bf16.mxu0 %v22736_v42  ;;  %16924 = vmatprep.subr.bf16.mxu1 %v22739_v52  ;;  %v22831_v42 = vld [vmem:[%s23910_s8 + $0x36ec] ss:$16 sps:$4 sm:$0xff]   ;;  %v22826_v52 = vld [vmem:[%s23910_s8 + $0x36e0] ss:$16 sps:$4 sm:$0xff]  }
 0x6f3   : > { %15449 = vmatpush1.bf16.msra.mxu0 %v22734_v53  ;;  %16925 = vmatpush1.bf16.msra.mxu1 %v22737_v45  ;;  %v22829_v53 = vld [vmem:[%s23910_s8 + $0x36e8] ss:$16 sps:$4 sm:$0xff]   ;;  %v22834_v45 = vld [vmem:[%s23910_s8 + $0x3704] ss:$16 sps:$4 sm:$0xff]  }
 0x6f4   : > { %15450 = vmatprep.subr.bf16.mxu0 %v22742_v55  ;;  %16926 = vmatprep.subr.bf16.mxu1 %v22745_v56  ;;  %v22837_v55 = vld [vmem:[%s23910_s8 + $0x370c] ss:$16 sps:$4 sm:$0xff]   ;;  %v22832_v56 = vld [vmem:[%s23910_s8 + $0x3700] ss:$16 sps:$4 sm:$0xff]  }
 0x6f7   : > { %15451 = vmatpush1.bf16.msra.mxu0 %v22740_v48  ;;  %16927 = vmatpush1.bf16.msra.mxu1 %v22743_v58  ;;  %v22835_v48 = vld [vmem:[%s23910_s8 + $0x3708] ss:$16 sps:$4 sm:$0xff]   ;;  %v22840_v58 = vld [vmem:[%s23910_s8 + $0x3724] ss:$16 sps:$4 sm:$0xff]  }
 0x6f8   : > { %15452 = vmatprep.subr.bf16.mxu0 %v22748_v59  ;;  %16928 = vmatprep.subr.bf16.mxu1 %v22751_v51  ;;  %v22843_v59 = vld [vmem:[%s23910_s8 + $0x372c] ss:$16 sps:$4 sm:$0xff]   ;;  %v22838_v51 = vld [vmem:[%s23910_s8 + $0x3720] ss:$16 sps:$4 sm:$0xff]  }
 0x6fb   : > { %15453 = vmatpush1.bf16.msra.mxu0 %v22746_v61  ;;  %16929 = vmatpush1.bf16.msra.mxu1 %v22749_v62  ;;  %v22841_v61 = vld [vmem:[%s23910_s8 + $0x3728] ss:$16 sps:$4 sm:$0xff]   ;;  %v22846_v62 = vld [vmem:[%s23910_s8 + $0x3744] ss:$16 sps:$4 sm:$0xff]  }
 0x6fc   : > { %15454 = vmatprep.subr.bf16.mxu0 %v22754_v54  ;;  %16930 = vmatprep.subr.bf16.mxu1 %v22757_v63  ;;  %v22849_v54 = vld [vmem:[%s23910_s8 + $0x374c] ss:$16 sps:$4 sm:$0xff]   ;;  %v22844_v63 = vld [vmem:[%s23910_s8 + $0x3740] ss:$16 sps:$4 sm:$0xff]  }
 0x6ff   : > { %15455 = vmatpush1.bf16.msra.mxu0 %v22752_v1  ;;  %16931 = vmatpush1.bf16.msra.mxu1 %v22755_v57  ;;  %v22847_v1 = vld [vmem:[%s23910_s8 + $0x3748] ss:$16 sps:$4 sm:$0xff]   ;;  %v22852_v57 = vld [vmem:[%s23910_s8 + $0x3764] ss:$16 sps:$4 sm:$0xff]  }
 0x700   : > { %15456 = vmatprep.subr.bf16.mxu0 %v22760_v2  ;;  %16932 = vmatprep.subr.bf16.mxu1 %v22763_v60  ;;  %v22855_v2 = vld [vmem:[%s23910_s8 + $0x376c] ss:$16 sps:$4 sm:$0xff]   ;;  %v22850_v60 = vld [vmem:[%s23910_s8 + $0x3760] ss:$16 sps:$4 sm:$0xff]  }
 0x703   : > { %15457 = vmatpush1.bf16.msra.mxu0 %v22758_v4  ;;  %16933 = vmatpush1.bf16.msra.mxu1 %v22761_v5  ;;  %v22853_v4 = vld [vmem:[%s23910_s8 + $0x3768] ss:$16 sps:$4 sm:$0xff]   ;;  %v22858_v5 = vld [vmem:[%s23910_s8 + $0x3784] ss:$16 sps:$4 sm:$0xff]  }
 0x704   : > { %15458 = vmatprep.subr.bf16.mxu0 %v22766_v0  ;;  %16934 = vmatprep.subr.bf16.mxu1 %v22769_v7  ;;  %v22861_v0 = vld [vmem:[%s23910_s8 + $0x378c] ss:$16 sps:$4 sm:$0xff]   ;;  %v22856_v7 = vld [vmem:[%s23910_s8 + $0x3780] ss:$16 sps:$4 sm:$0xff]  }
 0x707   : > { %15459 = vmatpush1.bf16.msra.mxu0 %v22764_v8  ;;  %16935 = vmatpush1.bf16.msra.mxu1 %v22767_v3  ;;  %v22859_v8 = vld [vmem:[%s23910_s8 + $0x3788] ss:$16 sps:$4 sm:$0xff]   ;;  %v22864_v3 = vld [vmem:[%s23910_s8 + $0x37a4] ss:$16 sps:$4 sm:$0xff]  }
 0x708   : > { %15460 = vmatprep.subr.bf16.mxu0 %v22772_v10  ;;  %16936 = vmatprep.subr.bf16.mxu1 %v22775_v12  ;;  %v22867_v10 = vld [vmem:[%s23910_s8 + $0x37ac] ss:$16 sps:$4 sm:$0xff]   ;;  %v22862_v12 = vld [vmem:[%s23910_s8 + $0x37a0] ss:$16 sps:$4 sm:$0xff]  }
 0x70b   : > { %15461 = vmatpush1.bf16.msra.mxu0 %v22770_v6  ;;  %16937 = vmatpush1.bf16.msra.mxu1 %v22773_v15  ;;  %v22865_v6 = vld [vmem:[%s23910_s8 + $0x37a8] ss:$16 sps:$4 sm:$0xff]   ;;  %v22870_v15 = vld [vmem:[%s23910_s8 + $0x37c4] ss:$16 sps:$4 sm:$0xff]  }
 0x70c   : > { %15462 = vmatprep.subr.bf16.mxu0 %v22778_v16  ;;  %16938 = vmatprep.subr.bf16.mxu1 %v22781_v9  ;;  %v22873_v16 = vld [vmem:[%s23910_s8 + $0x37cc] ss:$16 sps:$4 sm:$0xff]   ;;  %v22868_v9 = vld [vmem:[%s23910_s8 + $0x37c0] ss:$16 sps:$4 sm:$0xff]  }
 0x70f   : > { %15463 = vmatpush1.bf16.msra.mxu0 %v22776_v19  ;;  %16939 = vmatpush1.bf16.msra.mxu1 %v22779_v20  ;;  %v22871_v19 = vld [vmem:[%s23910_s8 + $0x37c8] ss:$16 sps:$4 sm:$0xff]   ;;  %v22876_v20 = vld [vmem:[%s23910_s8 + $0x37e4] ss:$16 sps:$4 sm:$0xff]  }
 0x710   : > { %15473 = vmatprep.subr.bf16.mxu0 %v22786_v13  ;;  %16949 = vmatprep.subr.bf16.mxu1 %v22789_v22  ;;  %v22879_v13 = vld [vmem:[%s23910_s8 + $0x37ec] ss:$16 sps:$4 sm:$0xff]   ;;  %v22874_v22 = vld [vmem:[%s23910_s8 + $0x37e0] ss:$16 sps:$4 sm:$0xff]  }
 0x712   : > { %15465 = vmatmul.mubr.bf16.vlgmr.msra.gmra.mrb[0].mxu0 %v17477_v23  ;;  %16941 = vmatmul.mubr.bf16.vlgmr.msra.gmra.mrb[0].mxu1 %v17477_v23  ;;  %v22877_v23 = vld [vmem:[%s23910_s8 + $0x37e8] ss:$16 sps:$4 sm:$0xff]  }
 0x713   : > { %15474 = vmatpush1.bf16.msra.mxu0 %v22784_v11  ;;  %16950 = vmatpush1.bf16.msra.mxu1 %v22787_v25  ;;  %v22884_v11 = vld [vmem:[%s23910_s8 + $0x3804] ss:$16 sps:$4 sm:$0xff]   ;;  %v22887_v25 = vld [vmem:[%s23910_s8 + $0x380c] ss:$16 sps:$4 sm:$0xff]  }
 0x714   : > { %15475 = vmatprep.subr.bf16.mxu0 %v22792_v26  ;;  %16951 = vmatprep.subr.bf16.mxu1 %v22795_v18  ;;  %v17479_v26 = vcombine.low %v25892_v17, %v25892_v17  ;;  %v25965_v18 = vld [vmem:[%s26563_s0 + $0xe0] sm:$0xff] }
 0x715   : > { %15505 = vmatprep.mubr.bf16.mxu0 %v17480_v14  ;;  %16981 = vmatprep.mubr.bf16.mxu1 %v17480_v14  ;;  %v22882_v14 = vld [vmem:[%s23910_s8 + $0x3800] ss:$16 sps:$4 sm:$0xff]   ;;  %v17482_v17 = vcombine.high %v25965_v18, %v25965_v18 }
 0x717   : > { %15476 = vmatpush1.bf16.msra.mxu0 %v22790_v28  ;;  %16952 = vmatpush1.bf16.msra.mxu1 %v22793_v29  ;;  %v22885_v28 = vld [vmem:[%s23910_s8 + $0x3808] ss:$16 sps:$4 sm:$0xff]   ;;  %v22890_v29 = vld [vmem:[%s23910_s8 + $0x3824] ss:$16 sps:$4 sm:$0xff]  }
 0x718   : > { %15477 = vmatprep.subr.bf16.mxu0 %v22798_v21  ;;  %16953 = vmatprep.subr.bf16.mxu1 %v22801_v31  ;;  %v22893_v21 = vld [vmem:[%s23910_s8 + $0x382c] ss:$16 sps:$4 sm:$0xff]   ;;  %v22888_v31 = vld [vmem:[%s23910_s8 + $0x3820] ss:$16 sps:$4 sm:$0xff]  }
 0x71b   : > { %15478 = vmatpush1.bf16.msra.mxu0 %v22796_v32  ;;  %16954 = vmatpush1.bf16.msra.mxu1 %v22799_v24  ;;  %v22891_v32 = vld [vmem:[%s23910_s8 + $0x3828] ss:$16 sps:$4 sm:$0xff]   ;;  %v22896_v24 = vld [vmem:[%s23910_s8 + $0x3844] ss:$16 sps:$4 sm:$0xff]  }
 0x71c   : > { %15479 = vmatprep.subr.bf16.mxu0 %v22804_v34  ;;  %16955 = vmatprep.subr.bf16.mxu1 %v22807_v35  ;;  %v22899_v34 = vld [vmem:[%s23910_s8 + $0x384c] ss:$16 sps:$4 sm:$0xff]   ;;  %v22894_v35 = vld [vmem:[%s23910_s8 + $0x3840] ss:$16 sps:$4 sm:$0xff]  }
 0x71f   : > { %15480 = vmatpush1.bf16.msra.mxu0 %v22802_v27  ;;  %16956 = vmatpush1.bf16.msra.mxu1 %v22805_v37  ;;  %v22897_v27 = vld [vmem:[%s23910_s8 + $0x3848] ss:$16 sps:$4 sm:$0xff]   ;;  %v22902_v37 = vld [vmem:[%s23910_s8 + $0x3864] ss:$16 sps:$4 sm:$0xff]  }
 0x720   : > { %15481 = vmatprep.subr.bf16.mxu0 %v22810_v38  ;;  %16957 = vmatprep.subr.bf16.mxu1 %v22813_v30  ;;  %v22905_v38 = vld [vmem:[%s23910_s8 + $0x386c] ss:$16 sps:$4 sm:$0xff]   ;;  %v22900_v30 = vld [vmem:[%s23910_s8 + $0x3860] ss:$16 sps:$4 sm:$0xff]  }
 0x723   : > { %15482 = vmatpush1.bf16.msra.mxu0 %v22808_v40  ;;  %16958 = vmatpush1.bf16.msra.mxu1 %v22811_v41  ;;  %v22903_v40 = vld [vmem:[%s23910_s8 + $0x3868] ss:$16 sps:$4 sm:$0xff]   ;;  %v22908_v41 = vld [vmem:[%s23910_s8 + $0x3884] ss:$16 sps:$4 sm:$0xff]  }
 0x724   : > { %15483 = vmatprep.subr.bf16.mxu0 %v22816_v33  ;;  %16959 = vmatprep.subr.bf16.mxu1 %v22819_v43  ;;  %v22911_v33 = vld [vmem:[%s23910_s8 + $0x388c] ss:$16 sps:$4 sm:$0xff]   ;;  %v22906_v43 = vld [vmem:[%s23910_s8 + $0x3880] ss:$16 sps:$4 sm:$0xff]  }
 0x727   : > { %15484 = vmatpush1.bf16.msra.mxu0 %v22814_v44  ;;  %16960 = vmatpush1.bf16.msra.mxu1 %v22817_v36  ;;  %v22909_v44 = vld [vmem:[%s23910_s8 + $0x3888] ss:$16 sps:$4 sm:$0xff]   ;;  %v22914_v36 = vld [vmem:[%s23910_s8 + $0x38a4] ss:$16 sps:$4 sm:$0xff]  }
 0x728   : > { %15485 = vmatprep.subr.bf16.mxu0 %v22822_v46  ;;  %16961 = vmatprep.subr.bf16.mxu1 %v22825_v47  ;;  %v22917_v46 = vld [vmem:[%s23910_s8 + $0x38ac] ss:$16 sps:$4 sm:$0xff]   ;;  %v22912_v47 = vld [vmem:[%s23910_s8 + $0x38a0] ss:$16 sps:$4 sm:$0xff]  }
 0x72b   : > { %15486 = vmatpush1.bf16.msra.mxu0 %v22820_v39  ;;  %16962 = vmatpush1.bf16.msra.mxu1 %v22823_v49  ;;  %v22915_v39 = vld [vmem:[%s23910_s8 + $0x38a8] ss:$16 sps:$4 sm:$0xff]   ;;  %v22920_v49 = vld [vmem:[%s23910_s8 + $0x38c4] ss:$16 sps:$4 sm:$0xff]  }
 0x72c   : > { %15487 = vmatprep.subr.bf16.mxu0 %v22828_v50  ;;  %16963 = vmatprep.subr.bf16.mxu1 %v22831_v42  ;;  %v22923_v50 = vld [vmem:[%s23910_s8 + $0x38cc] ss:$16 sps:$4 sm:$0xff]   ;;  %v22918_v42 = vld [vmem:[%s23910_s8 + $0x38c0] ss:$16 sps:$4 sm:$0xff]  }
 0x72f   : > { %15488 = vmatpush1.bf16.msra.mxu0 %v22826_v52  ;;  %16964 = vmatpush1.bf16.msra.mxu1 %v22829_v53  ;;  %v22921_v52 = vld [vmem:[%s23910_s8 + $0x38c8] ss:$16 sps:$4 sm:$0xff]   ;;  %v22926_v53 = vld [vmem:[%s23910_s8 + $0x38e4] ss:$16 sps:$4 sm:$0xff]  }
 0x730   : > { %15489 = vmatprep.subr.bf16.mxu0 %v22834_v45  ;;  %16965 = vmatprep.subr.bf16.mxu1 %v22837_v55  ;;  %v22929_v45 = vld [vmem:[%s23910_s8 + $0x38ec] ss:$16 sps:$4 sm:$0xff]   ;;  %v22924_v55 = vld [vmem:[%s23910_s8 + $0x38e0] ss:$16 sps:$4 sm:$0xff]  }
 0x733   : > { %15490 = vmatpush1.bf16.msra.mxu0 %v22832_v56  ;;  %16966 = vmatpush1.bf16.msra.mxu1 %v22835_v48  ;;  %v22927_v56 = vld [vmem:[%s23910_s8 + $0x38e8] ss:$16 sps:$4 sm:$0xff]   ;;  %v22932_v48 = vld [vmem:[%s23910_s8 + $0x3904] ss:$16 sps:$4 sm:$0xff]  }
 0x734   : > { %15491 = vmatprep.subr.bf16.mxu0 %v22840_v58  ;;  %16967 = vmatprep.subr.bf16.mxu1 %v22843_v59  ;;  %v22935_v58 = vld [vmem:[%s23910_s8 + $0x390c] ss:$16 sps:$4 sm:$0xff]   ;;  %v22930_v59 = vld [vmem:[%s23910_s8 + $0x3900] ss:$16 sps:$4 sm:$0xff]  }
 0x737   : > { %15492 = vmatpush1.bf16.msra.mxu0 %v22838_v51  ;;  %16968 = vmatpush1.bf16.msra.mxu1 %v22841_v61  ;;  %v22933_v51 = vld [vmem:[%s23910_s8 + $0x3908] ss:$16 sps:$4 sm:$0xff]   ;;  %v22938_v61 = vld [vmem:[%s23910_s8 + $0x3924] ss:$16 sps:$4 sm:$0xff]  }
 0x738   : > { %15493 = vmatprep.subr.bf16.mxu0 %v22846_v62  ;;  %16969 = vmatprep.subr.bf16.mxu1 %v22849_v54  ;;  %v22941_v62 = vld [vmem:[%s23910_s8 + $0x392c] ss:$16 sps:$4 sm:$0xff]   ;;  %v22936_v54 = vld [vmem:[%s23910_s8 + $0x3920] ss:$16 sps:$4 sm:$0xff]  }
 0x73b   : > { %15494 = vmatpush1.bf16.msra.mxu0 %v22844_v63  ;;  %16970 = vmatpush1.bf16.msra.mxu1 %v22847_v1  ;;  %v22939_v63 = vld [vmem:[%s23910_s8 + $0x3928] ss:$16 sps:$4 sm:$0xff]   ;;  %v22944_v1 = vld [vmem:[%s23910_s8 + $0x3944] ss:$16 sps:$4 sm:$0xff]  }
 0x73c   : > { %15495 = vmatprep.subr.bf16.mxu0 %v22852_v57  ;;  %16971 = vmatprep.subr.bf16.mxu1 %v22855_v2  ;;  %v22947_v57 = vld [vmem:[%s23910_s8 + $0x394c] ss:$16 sps:$4 sm:$0xff]   ;;  %v22942_v2 = vld [vmem:[%s23910_s8 + $0x3940] ss:$16 sps:$4 sm:$0xff]  }
 0x73f   : > { %15496 = vmatpush1.bf16.msra.mxu0 %v22850_v60  ;;  %16972 = vmatpush1.bf16.msra.mxu1 %v22853_v4  ;;  %v22945_v60 = vld [vmem:[%s23910_s8 + $0x3948] ss:$16 sps:$4 sm:$0xff]   ;;  %v22950_v4 = vld [vmem:[%s23910_s8 + $0x3964] ss:$16 sps:$4 sm:$0xff]  }
 0x740   : > { %15497 = vmatprep.subr.bf16.mxu0 %v22858_v5  ;;  %16973 = vmatprep.subr.bf16.mxu1 %v22861_v0  ;;  %v22953_v5 = vld [vmem:[%s23910_s8 + $0x396c] ss:$16 sps:$4 sm:$0xff]   ;;  %v22948_v0 = vld [vmem:[%s23910_s8 + $0x3960] ss:$16 sps:$4 sm:$0xff]  }
 0x743   : > { %15498 = vmatpush1.bf16.msra.mxu0 %v22856_v7  ;;  %16974 = vmatpush1.bf16.msra.mxu1 %v22859_v8  ;;  %v22951_v7 = vld [vmem:[%s23910_s8 + $0x3968] ss:$16 sps:$4 sm:$0xff]   ;;  %v22956_v8 = vld [vmem:[%s23910_s8 + $0x3984] ss:$16 sps:$4 sm:$0xff]  }
 0x744   : > { %15499 = vmatprep.subr.bf16.mxu0 %v22864_v3  ;;  %16975 = vmatprep.subr.bf16.mxu1 %v22867_v10  ;;  %v22959_v3 = vld [vmem:[%s23910_s8 + $0x398c] ss:$16 sps:$4 sm:$0xff]   ;;  %v22954_v10 = vld [vmem:[%s23910_s8 + $0x3980] ss:$16 sps:$4 sm:$0xff]  }
 0x747   : > { %15500 = vmatpush1.bf16.msra.mxu0 %v22862_v12  ;;  %16976 = vmatpush1.bf16.msra.mxu1 %v22865_v6  ;;  %v22957_v12 = vld [vmem:[%s23910_s8 + $0x3988] ss:$16 sps:$4 sm:$0xff]   ;;  %v22962_v6 = vld [vmem:[%s23910_s8 + $0x39a4] ss:$16 sps:$4 sm:$0xff]  }
 0x748   : > { %15501 = vmatprep.subr.bf16.mxu0 %v22870_v15  ;;  %16977 = vmatprep.subr.bf16.mxu1 %v22873_v16  ;;  %v22965_v15 = vld [vmem:[%s23910_s8 + $0x39ac] ss:$16 sps:$4 sm:$0xff]   ;;  %v22960_v16 = vld [vmem:[%s23910_s8 + $0x39a0] ss:$16 sps:$4 sm:$0xff]  }
 0x74b   : > { %15502 = vmatpush1.bf16.msra.mxu0 %v22868_v9  ;;  %16978 = vmatpush1.bf16.msra.mxu1 %v22871_v19  ;;  %v22963_v9 = vld [vmem:[%s23910_s8 + $0x39a8] ss:$16 sps:$4 sm:$0xff]   ;;  %v22968_v19 = vld [vmem:[%s23910_s8 + $0x39c4] ss:$16 sps:$4 sm:$0xff]  }
 0x74c   : > { %15503 = vmatprep.subr.bf16.mxu0 %v22876_v20  ;;  %16979 = vmatprep.subr.bf16.mxu1 %v22879_v13  ;;  %v22971_v20 = vld [vmem:[%s23910_s8 + $0x39cc] ss:$16 sps:$4 sm:$0xff]   ;;  %v22966_v13 = vld [vmem:[%s23910_s8 + $0x39c0] ss:$16 sps:$4 sm:$0xff]  }
 0x74f   : > { %15504 = vmatpush1.bf16.msra.mxu0 %v22874_v22  ;;  %16980 = vmatpush1.bf16.msra.mxu1 %v22877_v23  ;;  %v22969_v22 = vld [vmem:[%s23910_s8 + $0x39c8] ss:$16 sps:$4 sm:$0xff]   ;;  %v22974_v23 = vld [vmem:[%s23910_s8 + $0x39e4] ss:$16 sps:$4 sm:$0xff]  }
 0x750   : > { %15514 = vmatprep.subr.bf16.mxu0 %v22884_v11  ;;  %16990 = vmatprep.subr.bf16.mxu1 %v22887_v25  ;;  %v22977_v11 = vld [vmem:[%s23910_s8 + $0x39ec] ss:$16 sps:$4 sm:$0xff]   ;;  %v22972_v25 = vld [vmem:[%s23910_s8 + $0x39e0] ss:$16 sps:$4 sm:$0xff]  }
 0x752   : > { %15506 = vmatmul.mubr.bf16.vlgmr.msra.gmra.mrb[0].mxu0 %v17479_v26  ;;  %16982 = vmatmul.mubr.bf16.vlgmr.msra.gmra.mrb[0].mxu1 %v17479_v26  ;;  %v22975_v26 = vld [vmem:[%s23910_s8 + $0x39e8] ss:$16 sps:$4 sm:$0xff]  }
 0x753   : > { %15515 = vmatpush1.bf16.msra.mxu0 %v22882_v14  ;;  %16991 = vmatpush1.bf16.msra.mxu1 %v22885_v28  ;;  %v22982_v14 = vld [vmem:[%s23910_s8 + $0x3a04] ss:$16 sps:$4 sm:$0xff]   ;;  %v22985_v28 = vld [vmem:[%s23910_s8 + $0x3a0c] ss:$16 sps:$4 sm:$0xff]  }
 0x754   : > { %15516 = vmatprep.subr.bf16.mxu0 %v22890_v29  ;;  %16992 = vmatprep.subr.bf16.mxu1 %v22893_v21  ;;  %v17481_v29 = vcombine.low %v25965_v18, %v25965_v18  ;;  %v26038_v21 = vld [vmem:[%s26563_s0 + $0xe8] sm:$0xff] }
 0x755   : > { %15546 = vmatprep.mubr.bf16.mxu0 %v17482_v17  ;;  %17022 = vmatprep.mubr.bf16.mxu1 %v17482_v17  ;;  %v22980_v17 = vld [vmem:[%s23910_s8 + $0x3a00] ss:$16 sps:$4 sm:$0xff]   ;;  %v17484_v18 = vcombine.high %v26038_v21, %v26038_v21 }
 0x757   : > { %15517 = vmatpush1.bf16.msra.mxu0 %v22888_v31  ;;  %16993 = vmatpush1.bf16.msra.mxu1 %v22891_v32  ;;  %v22983_v31 = vld [vmem:[%s23910_s8 + $0x3a08] ss:$16 sps:$4 sm:$0xff]   ;;  %v22988_v32 = vld [vmem:[%s23910_s8 + $0x3a24] ss:$16 sps:$4 sm:$0xff]  }
 0x758   : > { %15518 = vmatprep.subr.bf16.mxu0 %v22896_v24  ;;  %16994 = vmatprep.subr.bf16.mxu1 %v22899_v34  ;;  %v22991_v24 = vld [vmem:[%s23910_s8 + $0x3a2c] ss:$16 sps:$4 sm:$0xff]   ;;  %v22986_v34 = vld [vmem:[%s23910_s8 + $0x3a20] ss:$16 sps:$4 sm:$0xff]  }
 0x75b   : > { %15519 = vmatpush1.bf16.msra.mxu0 %v22894_v35  ;;  %16995 = vmatpush1.bf16.msra.mxu1 %v22897_v27  ;;  %v22989_v35 = vld [vmem:[%s23910_s8 + $0x3a28] ss:$16 sps:$4 sm:$0xff]   ;;  %v22994_v27 = vld [vmem:[%s23910_s8 + $0x3a44] ss:$16 sps:$4 sm:$0xff]  }
 0x75c   : > { %15520 = vmatprep.subr.bf16.mxu0 %v22902_v37  ;;  %16996 = vmatprep.subr.bf16.mxu1 %v22905_v38  ;;  %v22997_v37 = vld [vmem:[%s23910_s8 + $0x3a4c] ss:$16 sps:$4 sm:$0xff]   ;;  %v22992_v38 = vld [vmem:[%s23910_s8 + $0x3a40] ss:$16 sps:$4 sm:$0xff]  }
 0x75f   : > { %15521 = vmatpush1.bf16.msra.mxu0 %v22900_v30  ;;  %16997 = vmatpush1.bf16.msra.mxu1 %v22903_v40  ;;  %v22995_v30 = vld [vmem:[%s23910_s8 + $0x3a48] ss:$16 sps:$4 sm:$0xff]   ;;  %v23000_v40 = vld [vmem:[%s23910_s8 + $0x3a64] ss:$16 sps:$4 sm:$0xff]  }
 0x760   : > { %15522 = vmatprep.subr.bf16.mxu0 %v22908_v41  ;;  %16998 = vmatprep.subr.bf16.mxu1 %v22911_v33  ;;  %v23003_v41 = vld [vmem:[%s23910_s8 + $0x3a6c] ss:$16 sps:$4 sm:$0xff]   ;;  %v22998_v33 = vld [vmem:[%s23910_s8 + $0x3a60] ss:$16 sps:$4 sm:$0xff]  }
 0x763   : > { %15523 = vmatpush1.bf16.msra.mxu0 %v22906_v43  ;;  %16999 = vmatpush1.bf16.msra.mxu1 %v22909_v44  ;;  %v23001_v43 = vld [vmem:[%s23910_s8 + $0x3a68] ss:$16 sps:$4 sm:$0xff]   ;;  %v23006_v44 = vld [vmem:[%s23910_s8 + $0x3a84] ss:$16 sps:$4 sm:$0xff]  }
 0x764   : > { %15524 = vmatprep.subr.bf16.mxu0 %v22914_v36  ;;  %17000 = vmatprep.subr.bf16.mxu1 %v22917_v46  ;;  %v23009_v36 = vld [vmem:[%s23910_s8 + $0x3a8c] ss:$16 sps:$4 sm:$0xff]   ;;  %v23004_v46 = vld [vmem:[%s23910_s8 + $0x3a80] ss:$16 sps:$4 sm:$0xff]  }
 0x767   : > { %15525 = vmatpush1.bf16.msra.mxu0 %v22912_v47  ;;  %17001 = vmatpush1.bf16.msra.mxu1 %v22915_v39  ;;  %v23007_v47 = vld [vmem:[%s23910_s8 + $0x3a88] ss:$16 sps:$4 sm:$0xff]   ;;  %v23012_v39 = vld [vmem:[%s23910_s8 + $0x3aa4] ss:$16 sps:$4 sm:$0xff]  }
 0x768   : > { %15526 = vmatprep.subr.bf16.mxu0 %v22920_v49  ;;  %17002 = vmatprep.subr.bf16.mxu1 %v22923_v50  ;;  %v23015_v49 = vld [vmem:[%s23910_s8 + $0x3aac] ss:$16 sps:$4 sm:$0xff]   ;;  %v23010_v50 = vld [vmem:[%s23910_s8 + $0x3aa0] ss:$16 sps:$4 sm:$0xff]  }
 0x76b   : > { %15527 = vmatpush1.bf16.msra.mxu0 %v22918_v42  ;;  %17003 = vmatpush1.bf16.msra.mxu1 %v22921_v52  ;;  %v23013_v42 = vld [vmem:[%s23910_s8 + $0x3aa8] ss:$16 sps:$4 sm:$0xff]   ;;  %v23018_v52 = vld [vmem:[%s23910_s8 + $0x3ac4] ss:$16 sps:$4 sm:$0xff]  }
 0x76c   : > { %15528 = vmatprep.subr.bf16.mxu0 %v22926_v53  ;;  %17004 = vmatprep.subr.bf16.mxu1 %v22929_v45  ;;  %v23021_v53 = vld [vmem:[%s23910_s8 + $0x3acc] ss:$16 sps:$4 sm:$0xff]   ;;  %v23016_v45 = vld [vmem:[%s23910_s8 + $0x3ac0] ss:$16 sps:$4 sm:$0xff]  }
 0x76f   : > { %15529 = vmatpush1.bf16.msra.mxu0 %v22924_v55  ;;  %17005 = vmatpush1.bf16.msra.mxu1 %v22927_v56  ;;  %v23019_v55 = vld [vmem:[%s23910_s8 + $0x3ac8] ss:$16 sps:$4 sm:$0xff]   ;;  %v23024_v56 = vld [vmem:[%s23910_s8 + $0x3ae4] ss:$16 sps:$4 sm:$0xff]  }
 0x770   : > { %15530 = vmatprep.subr.bf16.mxu0 %v22932_v48  ;;  %17006 = vmatprep.subr.bf16.mxu1 %v22935_v58  ;;  %v23027_v48 = vld [vmem:[%s23910_s8 + $0x3aec] ss:$16 sps:$4 sm:$0xff]   ;;  %v23022_v58 = vld [vmem:[%s23910_s8 + $0x3ae0] ss:$16 sps:$4 sm:$0xff]  }
 0x773   : > { %15531 = vmatpush1.bf16.msra.mxu0 %v22930_v59  ;;  %17007 = vmatpush1.bf16.msra.mxu1 %v22933_v51  ;;  %v23025_v59 = vld [vmem:[%s23910_s8 + $0x3ae8] ss:$16 sps:$4 sm:$0xff]   ;;  %v23030_v51 = vld [vmem:[%s23910_s8 + $0x3b04] ss:$16 sps:$4 sm:$0xff]  }
 0x774   : > { %15532 = vmatprep.subr.bf16.mxu0 %v22938_v61  ;;  %17008 = vmatprep.subr.bf16.mxu1 %v22941_v62  ;;  %v23033_v61 = vld [vmem:[%s23910_s8 + $0x3b0c] ss:$16 sps:$4 sm:$0xff]   ;;  %v23028_v62 = vld [vmem:[%s23910_s8 + $0x3b00] ss:$16 sps:$4 sm:$0xff]  }
 0x777   : > { %15533 = vmatpush1.bf16.msra.mxu0 %v22936_v54  ;;  %17009 = vmatpush1.bf16.msra.mxu1 %v22939_v63  ;;  %v23031_v54 = vld [vmem:[%s23910_s8 + $0x3b08] ss:$16 sps:$4 sm:$0xff]   ;;  %v23036_v63 = vld [vmem:[%s23910_s8 + $0x3b24] ss:$16 sps:$4 sm:$0xff]  }
 0x778   : > { %15534 = vmatprep.subr.bf16.mxu0 %v22944_v1  ;;  %17010 = vmatprep.subr.bf16.mxu1 %v22947_v57  ;;  %v23039_v1 = vld [vmem:[%s23910_s8 + $0x3b2c] ss:$16 sps:$4 sm:$0xff]   ;;  %v23034_v57 = vld [vmem:[%s23910_s8 + $0x3b20] ss:$16 sps:$4 sm:$0xff]  }
 0x77b   : > { %15535 = vmatpush1.bf16.msra.mxu0 %v22942_v2  ;;  %17011 = vmatpush1.bf16.msra.mxu1 %v22945_v60  ;;  %v23037_v2 = vld [vmem:[%s23910_s8 + $0x3b28] ss:$16 sps:$4 sm:$0xff]   ;;  %v23042_v60 = vld [vmem:[%s23910_s8 + $0x3b44] ss:$16 sps:$4 sm:$0xff]  }
 0x77c   : > { %15536 = vmatprep.subr.bf16.mxu0 %v22950_v4  ;;  %17012 = vmatprep.subr.bf16.mxu1 %v22953_v5  ;;  %v23045_v4 = vld [vmem:[%s23910_s8 + $0x3b4c] ss:$16 sps:$4 sm:$0xff]   ;;  %v23040_v5 = vld [vmem:[%s23910_s8 + $0x3b40] ss:$16 sps:$4 sm:$0xff]  }
 0x77f   : > { %15537 = vmatpush1.bf16.msra.mxu0 %v22948_v0  ;;  %17013 = vmatpush1.bf16.msra.mxu1 %v22951_v7  ;;  %v23043_v0 = vld [vmem:[%s23910_s8 + $0x3b48] ss:$16 sps:$4 sm:$0xff]   ;;  %v23048_v7 = vld [vmem:[%s23910_s8 + $0x3b64] ss:$16 sps:$4 sm:$0xff]  }
 0x780   : > { %15538 = vmatprep.subr.bf16.mxu0 %v22956_v8  ;;  %17014 = vmatprep.subr.bf16.mxu1 %v22959_v3  ;;  %v23051_v8 = vld [vmem:[%s23910_s8 + $0x3b6c] ss:$16 sps:$4 sm:$0xff]   ;;  %v23046_v3 = vld [vmem:[%s23910_s8 + $0x3b60] ss:$16 sps:$4 sm:$0xff]  }
 0x783   : > { %15539 = vmatpush1.bf16.msra.mxu0 %v22954_v10  ;;  %17015 = vmatpush1.bf16.msra.mxu1 %v22957_v12  ;;  %v23049_v10 = vld [vmem:[%s23910_s8 + $0x3b68] ss:$16 sps:$4 sm:$0xff]   ;;  %v23054_v12 = vld [vmem:[%s23910_s8 + $0x3b84] ss:$16 sps:$4 sm:$0xff]  }
 0x784   : > { %15540 = vmatprep.subr.bf16.mxu0 %v22962_v6  ;;  %17016 = vmatprep.subr.bf16.mxu1 %v22965_v15  ;;  %v23057_v6 = vld [vmem:[%s23910_s8 + $0x3b8c] ss:$16 sps:$4 sm:$0xff]   ;;  %v23052_v15 = vld [vmem:[%s23910_s8 + $0x3b80] ss:$16 sps:$4 sm:$0xff]  }
 0x787   : > { %15541 = vmatpush1.bf16.msra.mxu0 %v22960_v16  ;;  %17017 = vmatpush1.bf16.msra.mxu1 %v22963_v9  ;;  %v23055_v16 = vld [vmem:[%s23910_s8 + $0x3b88] ss:$16 sps:$4 sm:$0xff]   ;;  %v23060_v9 = vld [vmem:[%s23910_s8 + $0x3ba4] ss:$16 sps:$4 sm:$0xff]  }
 0x788   : > { %15542 = vmatprep.subr.bf16.mxu0 %v22968_v19  ;;  %17018 = vmatprep.subr.bf16.mxu1 %v22971_v20  ;;  %v23063_v19 = vld [vmem:[%s23910_s8 + $0x3bac] ss:$16 sps:$4 sm:$0xff]   ;;  %v23058_v20 = vld [vmem:[%s23910_s8 + $0x3ba0] ss:$16 sps:$4 sm:$0xff]  }
 0x78b   : > { %15543 = vmatpush1.bf16.msra.mxu0 %v22966_v13  ;;  %17019 = vmatpush1.bf16.msra.mxu1 %v22969_v22  ;;  %v23061_v13 = vld [vmem:[%s23910_s8 + $0x3ba8] ss:$16 sps:$4 sm:$0xff]   ;;  %v23066_v22 = vld [vmem:[%s23910_s8 + $0x3bc4] ss:$16 sps:$4 sm:$0xff]  }
 0x78c   : > { %15544 = vmatprep.subr.bf16.mxu0 %v22974_v23  ;;  %17020 = vmatprep.subr.bf16.mxu1 %v22977_v11  ;;  %v23069_v23 = vld [vmem:[%s23910_s8 + $0x3bcc] ss:$16 sps:$4 sm:$0xff]   ;;  %v23064_v11 = vld [vmem:[%s23910_s8 + $0x3bc0] ss:$16 sps:$4 sm:$0xff]  }
 0x78f   : > { %15545 = vmatpush1.bf16.msra.mxu0 %v22972_v25  ;;  %17021 = vmatpush1.bf16.msra.mxu1 %v22975_v26  ;;  %v23067_v25 = vld [vmem:[%s23910_s8 + $0x3bc8] ss:$16 sps:$4 sm:$0xff]   ;;  %v23072_v26 = vld [vmem:[%s23910_s8 + $0x3be4] ss:$16 sps:$4 sm:$0xff]  }
 0x790   : > { %15555 = vmatprep.subr.bf16.mxu0 %v22982_v14  ;;  %17031 = vmatprep.subr.bf16.mxu1 %v22985_v28  ;;  %v23075_v14 = vld [vmem:[%s23910_s8 + $0x3bec] ss:$16 sps:$4 sm:$0xff]   ;;  %v23070_v28 = vld [vmem:[%s23910_s8 + $0x3be0] ss:$16 sps:$4 sm:$0xff]  }
 0x792   : > { %15547 = vmatmul.mubr.bf16.vlgmr.msra.gmra.mrb[0].mxu0 %v17481_v29  ;;  %17023 = vmatmul.mubr.bf16.vlgmr.msra.gmra.mrb[0].mxu1 %v17481_v29  ;;  %v23073_v29 = vld [vmem:[%s23910_s8 + $0x3be8] ss:$16 sps:$4 sm:$0xff]  }
 0x793   : > { %15556 = vmatpush1.bf16.msra.mxu0 %v22980_v17  ;;  %17032 = vmatpush1.bf16.msra.mxu1 %v22983_v31  ;;  %v23080_v17 = vld [vmem:[%s23910_s8 + $0x3c04] ss:$16 sps:$4 sm:$0xff]   ;;  %v23083_v31 = vld [vmem:[%s23910_s8 + $0x3c0c] ss:$16 sps:$4 sm:$0xff]  }
 0x794   : > { %15557 = vmatprep.subr.bf16.mxu0 %v22988_v32  ;;  %17033 = vmatprep.subr.bf16.mxu1 %v22991_v24  ;;  %v17483_v32 = vcombine.low %v26038_v21, %v26038_v21  ;;  %v26111_v24 = vld [vmem:[%s26563_s0 + $0xf0] sm:$0xff] }
 0x795   : > { %15587 = vmatprep.mubr.bf16.mxu0 %v17484_v18  ;;  %17063 = vmatprep.mubr.bf16.mxu1 %v17484_v18  ;;  %v23078_v18 = vld [vmem:[%s23910_s8 + $0x3c00] ss:$16 sps:$4 sm:$0xff]   ;;  %v17486_v21 = vcombine.high %v26111_v24, %v26111_v24 }
 0x797   : > { %15558 = vmatpush1.bf16.msra.mxu0 %v22986_v34  ;;  %17034 = vmatpush1.bf16.msra.mxu1 %v22989_v35  ;;  %v23081_v34 = vld [vmem:[%s23910_s8 + $0x3c08] ss:$16 sps:$4 sm:$0xff]   ;;  %v23086_v35 = vld [vmem:[%s23910_s8 + $0x3c24] ss:$16 sps:$4 sm:$0xff]  }
 0x798   : > { %15559 = vmatprep.subr.bf16.mxu0 %v22994_v27  ;;  %17035 = vmatprep.subr.bf16.mxu1 %v22997_v37  ;;  %v23089_v27 = vld [vmem:[%s23910_s8 + $0x3c2c] ss:$16 sps:$4 sm:$0xff]   ;;  %v23084_v37 = vld [vmem:[%s23910_s8 + $0x3c20] ss:$16 sps:$4 sm:$0xff]  }
 0x79b   : > { %15560 = vmatpush1.bf16.msra.mxu0 %v22992_v38  ;;  %17036 = vmatpush1.bf16.msra.mxu1 %v22995_v30  ;;  %v23087_v38 = vld [vmem:[%s23910_s8 + $0x3c28] ss:$16 sps:$4 sm:$0xff]   ;;  %v23092_v30 = vld [vmem:[%s23910_s8 + $0x3c44] ss:$16 sps:$4 sm:$0xff]  }
 0x79c   : > { %15561 = vmatprep.subr.bf16.mxu0 %v23000_v40  ;;  %17037 = vmatprep.subr.bf16.mxu1 %v23003_v41  ;;  %v23095_v40 = vld [vmem:[%s23910_s8 + $0x3c4c] ss:$16 sps:$4 sm:$0xff]   ;;  %v23090_v41 = vld [vmem:[%s23910_s8 + $0x3c40] ss:$16 sps:$4 sm:$0xff]  }
 0x79f   : > { %15562 = vmatpush1.bf16.msra.mxu0 %v22998_v33  ;;  %17038 = vmatpush1.bf16.msra.mxu1 %v23001_v43  ;;  %v23093_v33 = vld [vmem:[%s23910_s8 + $0x3c48] ss:$16 sps:$4 sm:$0xff]   ;;  %v23098_v43 = vld [vmem:[%s23910_s8 + $0x3c64] ss:$16 sps:$4 sm:$0xff]  }
 0x7a0   : > { %15563 = vmatprep.subr.bf16.mxu0 %v23006_v44  ;;  %17039 = vmatprep.subr.bf16.mxu1 %v23009_v36  ;;  %v23101_v44 = vld [vmem:[%s23910_s8 + $0x3c6c] ss:$16 sps:$4 sm:$0xff]   ;;  %v23096_v36 = vld [vmem:[%s23910_s8 + $0x3c60] ss:$16 sps:$4 sm:$0xff]  }
 0x7a3   : > { %15564 = vmatpush1.bf16.msra.mxu0 %v23004_v46  ;;  %17040 = vmatpush1.bf16.msra.mxu1 %v23007_v47  ;;  %v23099_v46 = vld [vmem:[%s23910_s8 + $0x3c68] ss:$16 sps:$4 sm:$0xff]   ;;  %v23104_v47 = vld [vmem:[%s23910_s8 + $0x3c84] ss:$16 sps:$4 sm:$0xff]  }
 0x7a4   : > { %15565 = vmatprep.subr.bf16.mxu0 %v23012_v39  ;;  %17041 = vmatprep.subr.bf16.mxu1 %v23015_v49  ;;  %v23107_v39 = vld [vmem:[%s23910_s8 + $0x3c8c] ss:$16 sps:$4 sm:$0xff]   ;;  %v23102_v49 = vld [vmem:[%s23910_s8 + $0x3c80] ss:$16 sps:$4 sm:$0xff]  }
 0x7a7   : > { %15566 = vmatpush1.bf16.msra.mxu0 %v23010_v50  ;;  %17042 = vmatpush1.bf16.msra.mxu1 %v23013_v42  ;;  %v23105_v50 = vld [vmem:[%s23910_s8 + $0x3c88] ss:$16 sps:$4 sm:$0xff]   ;;  %v23110_v42 = vld [vmem:[%s23910_s8 + $0x3ca4] ss:$16 sps:$4 sm:$0xff]  }
 0x7a8   : > { %15567 = vmatprep.subr.bf16.mxu0 %v23018_v52  ;;  %17043 = vmatprep.subr.bf16.mxu1 %v23021_v53  ;;  %v23113_v52 = vld [vmem:[%s23910_s8 + $0x3cac] ss:$16 sps:$4 sm:$0xff]   ;;  %v23108_v53 = vld [vmem:[%s23910_s8 + $0x3ca0] ss:$16 sps:$4 sm:$0xff]  }
 0x7ab   : > { %15568 = vmatpush1.bf16.msra.mxu0 %v23016_v45  ;;  %17044 = vmatpush1.bf16.msra.mxu1 %v23019_v55  ;;  %v23111_v45 = vld [vmem:[%s23910_s8 + $0x3ca8] ss:$16 sps:$4 sm:$0xff]   ;;  %v23116_v55 = vld [vmem:[%s23910_s8 + $0x3cc4] ss:$16 sps:$4 sm:$0xff]  }
 0x7ac   : > { %15569 = vmatprep.subr.bf16.mxu0 %v23024_v56  ;;  %17045 = vmatprep.subr.bf16.mxu1 %v23027_v48  ;;  %v23119_v56 = vld [vmem:[%s23910_s8 + $0x3ccc] ss:$16 sps:$4 sm:$0xff]   ;;  %v23114_v48 = vld [vmem:[%s23910_s8 + $0x3cc0] ss:$16 sps:$4 sm:$0xff]  }
 0x7af   : > { %15570 = vmatpush1.bf16.msra.mxu0 %v23022_v58  ;;  %17046 = vmatpush1.bf16.msra.mxu1 %v23025_v59  ;;  %v23117_v58 = vld [vmem:[%s23910_s8 + $0x3cc8] ss:$16 sps:$4 sm:$0xff]   ;;  %v23122_v59 = vld [vmem:[%s23910_s8 + $0x3ce4] ss:$16 sps:$4 sm:$0xff]  }
 0x7b0   : > { %15571 = vmatprep.subr.bf16.mxu0 %v23030_v51  ;;  %17047 = vmatprep.subr.bf16.mxu1 %v23033_v61  ;;  %v23125_v51 = vld [vmem:[%s23910_s8 + $0x3cec] ss:$16 sps:$4 sm:$0xff]   ;;  %v23120_v61 = vld [vmem:[%s23910_s8 + $0x3ce0] ss:$16 sps:$4 sm:$0xff]  }
 0x7b3   : > { %15572 = vmatpush1.bf16.msra.mxu0 %v23028_v62  ;;  %17048 = vmatpush1.bf16.msra.mxu1 %v23031_v54  ;;  %v23123_v62 = vld [vmem:[%s23910_s8 + $0x3ce8] ss:$16 sps:$4 sm:$0xff]   ;;  %v23128_v54 = vld [vmem:[%s23910_s8 + $0x3d04] ss:$16 sps:$4 sm:$0xff]  }
 0x7b4   : > { %15573 = vmatprep.subr.bf16.mxu0 %v23036_v63  ;;  %17049 = vmatprep.subr.bf16.mxu1 %v23039_v1  ;;  %v23131_v63 = vld [vmem:[%s23910_s8 + $0x3d0c] ss:$16 sps:$4 sm:$0xff]   ;;  %v23126_v1 = vld [vmem:[%s23910_s8 + $0x3d00] ss:$16 sps:$4 sm:$0xff]  }
 0x7b7   : > { %15574 = vmatpush1.bf16.msra.mxu0 %v23034_v57  ;;  %17050 = vmatpush1.bf16.msra.mxu1 %v23037_v2  ;;  %v23129_v57 = vld [vmem:[%s23910_s8 + $0x3d08] ss:$16 sps:$4 sm:$0xff]   ;;  %v23134_v2 = vld [vmem:[%s23910_s8 + $0x3d24] ss:$16 sps:$4 sm:$0xff]  }
 0x7b8   : > { %15575 = vmatprep.subr.bf16.mxu0 %v23042_v60  ;;  %17051 = vmatprep.subr.bf16.mxu1 %v23045_v4  ;;  %v23137_v60 = vld [vmem:[%s23910_s8 + $0x3d2c] ss:$16 sps:$4 sm:$0xff]   ;;  %v23132_v4 = vld [vmem:[%s23910_s8 + $0x3d20] ss:$16 sps:$4 sm:$0xff]  }
 0x7bb   : > { %15576 = vmatpush1.bf16.msra.mxu0 %v23040_v5  ;;  %17052 = vmatpush1.bf16.msra.mxu1 %v23043_v0  ;;  %v23135_v5 = vld [vmem:[%s23910_s8 + $0x3d28] ss:$16 sps:$4 sm:$0xff]   ;;  %v23140_v0 = vld [vmem:[%s23910_s8 + $0x3d44] ss:$16 sps:$4 sm:$0xff]  }
 0x7bc   : > { %15577 = vmatprep.subr.bf16.mxu0 %v23048_v7  ;;  %17053 = vmatprep.subr.bf16.mxu1 %v23051_v8  ;;  %v23143_v7 = vld [vmem:[%s23910_s8 + $0x3d4c] ss:$16 sps:$4 sm:$0xff]   ;;  %v23138_v8 = vld [vmem:[%s23910_s8 + $0x3d40] ss:$16 sps:$4 sm:$0xff]  }
 0x7bf   : > { %15578 = vmatpush1.bf16.msra.mxu0 %v23046_v3  ;;  %17054 = vmatpush1.bf16.msra.mxu1 %v23049_v10  ;;  %v23141_v3 = vld [vmem:[%s23910_s8 + $0x3d48] ss:$16 sps:$4 sm:$0xff]   ;;  %v23146_v10 = vld [vmem:[%s23910_s8 + $0x3d64] ss:$16 sps:$4 sm:$0xff]  }
 0x7c0   : > { %15579 = vmatprep.subr.bf16.mxu0 %v23054_v12  ;;  %17055 = vmatprep.subr.bf16.mxu1 %v23057_v6  ;;  %v23149_v12 = vld [vmem:[%s23910_s8 + $0x3d6c] ss:$16 sps:$4 sm:$0xff]   ;;  %v23144_v6 = vld [vmem:[%s23910_s8 + $0x3d60] ss:$16 sps:$4 sm:$0xff]  }
 0x7c3   : > { %15580 = vmatpush1.bf16.msra.mxu0 %v23052_v15  ;;  %17056 = vmatpush1.bf16.msra.mxu1 %v23055_v16  ;;  %v23147_v15 = vld [vmem:[%s23910_s8 + $0x3d68] ss:$16 sps:$4 sm:$0xff]   ;;  %v23152_v16 = vld [vmem:[%s23910_s8 + $0x3d84] ss:$16 sps:$4 sm:$0xff]  }
 0x7c4   : > { %15581 = vmatprep.subr.bf16.mxu0 %v23060_v9  ;;  %17057 = vmatprep.subr.bf16.mxu1 %v23063_v19  ;;  %v23155_v9 = vld [vmem:[%s23910_s8 + $0x3d8c] ss:$16 sps:$4 sm:$0xff]   ;;  %v23150_v19 = vld [vmem:[%s23910_s8 + $0x3d80] ss:$16 sps:$4 sm:$0xff]  }
 0x7c7   : > { %15582 = vmatpush1.bf16.msra.mxu0 %v23058_v20  ;;  %17058 = vmatpush1.bf16.msra.mxu1 %v23061_v13  ;;  %v23153_v20 = vld [vmem:[%s23910_s8 + $0x3d88] ss:$16 sps:$4 sm:$0xff]   ;;  %v23158_v13 = vld [vmem:[%s23910_s8 + $0x3da4] ss:$16 sps:$4 sm:$0xff]  }
 0x7c8   : > { %15583 = vmatprep.subr.bf16.mxu0 %v23066_v22  ;;  %17059 = vmatprep.subr.bf16.mxu1 %v23069_v23  ;;  %v23161_v22 = vld [vmem:[%s23910_s8 + $0x3dac] ss:$16 sps:$4 sm:$0xff]   ;;  %v23156_v23 = vld [vmem:[%s23910_s8 + $0x3da0] ss:$16 sps:$4 sm:$0xff]  }
 0x7cb   : > { %15584 = vmatpush1.bf16.msra.mxu0 %v23064_v11  ;;  %17060 = vmatpush1.bf16.msra.mxu1 %v23067_v25  ;;  %v23159_v11 = vld [vmem:[%s23910_s8 + $0x3da8] ss:$16 sps:$4 sm:$0xff]   ;;  %v23164_v25 = vld [vmem:[%s23910_s8 + $0x3dc4] ss:$16 sps:$4 sm:$0xff]  }
 0x7cc   : > { %15585 = vmatprep.subr.bf16.mxu0 %v23072_v26  ;;  %17061 = vmatprep.subr.bf16.mxu1 %v23075_v14  ;;  %v23167_v26 = vld [vmem:[%s23910_s8 + $0x3dcc] ss:$16 sps:$4 sm:$0xff]   ;;  %v23162_v14 = vld [vmem:[%s23910_s8 + $0x3dc0] ss:$16 sps:$4 sm:$0xff]  }
 0x7cf   : > { %15586 = vmatpush1.bf16.msra.mxu0 %v23070_v28  ;;  %17062 = vmatpush1.bf16.msra.mxu1 %v23073_v29  ;;  %v23165_v28 = vld [vmem:[%s23910_s8 + $0x3dc8] ss:$16 sps:$4 sm:$0xff]   ;;  %v23170_v29 = vld [vmem:[%s23910_s8 + $0x3de4] ss:$16 sps:$4 sm:$0xff]  }
 0x7d0   : > { %15596 = vmatprep.subr.bf16.mxu0 %v23080_v17  ;;  %17072 = vmatprep.subr.bf16.mxu1 %v23083_v31  ;;  %v23173_v17 = vld [vmem:[%s23910_s8 + $0x3dec] ss:$16 sps:$4 sm:$0xff]   ;;  %v23168_v31 = vld [vmem:[%s23910_s8 + $0x3de0] ss:$16 sps:$4 sm:$0xff]  }
 0x7d2   : > { %15588 = vmatmul.mubr.bf16.vlgmr.msra.gmra.mrb[0].mxu0 %v17483_v32  ;;  %17064 = vmatmul.mubr.bf16.vlgmr.msra.gmra.mrb[0].mxu1 %v17483_v32  ;;  %v23171_v32 = vld [vmem:[%s23910_s8 + $0x3de8] ss:$16 sps:$4 sm:$0xff]  }
 0x7d3   : > { %15597 = vmatpush1.bf16.msra.mxu0 %v23078_v18  ;;  %17073 = vmatpush1.bf16.msra.mxu1 %v23081_v34  ;;  %v23178_v18 = vld [vmem:[%s23910_s8 + $0x3e04] ss:$16 sps:$4 sm:$0xff]   ;;  %v23181_v34 = vld [vmem:[%s23910_s8 + $0x3e0c] ss:$16 sps:$4 sm:$0xff]  }
 0x7d4   : > { %15598 = vmatprep.subr.bf16.mxu0 %v23086_v35  ;;  %17074 = vmatprep.subr.bf16.mxu1 %v23089_v27  ;;  %v17485_v35 = vcombine.low %v26111_v24, %v26111_v24  ;;  %v26184_v27 = vld [vmem:[%s26563_s0 + $0xf8] sm:$0xff] }
 0x7d5   : > { %15628 = vmatprep.mubr.bf16.mxu0 %v17486_v21  ;;  %17104 = vmatprep.mubr.bf16.mxu1 %v17486_v21  ;;  %v23176_v21 = vld [vmem:[%s23910_s8 + $0x3e00] ss:$16 sps:$4 sm:$0xff]   ;;  %v17488_v24 = vcombine.high %v26184_v27, %v26184_v27 }
 0x7d7   : > { %15599 = vmatpush1.bf16.msra.mxu0 %v23084_v37  ;;  %17075 = vmatpush1.bf16.msra.mxu1 %v23087_v38  ;;  %v23179_v37 = vld [vmem:[%s23910_s8 + $0x3e08] ss:$16 sps:$4 sm:$0xff]   ;;  %v23184_v38 = vld [vmem:[%s23910_s8 + $0x3e24] ss:$16 sps:$4 sm:$0xff]  }
 0x7d8   : > { %15600 = vmatprep.subr.bf16.mxu0 %v23092_v30  ;;  %17076 = vmatprep.subr.bf16.mxu1 %v23095_v40  ;;  %v23187_v30 = vld [vmem:[%s23910_s8 + $0x3e2c] ss:$16 sps:$4 sm:$0xff]   ;;  %v23182_v40 = vld [vmem:[%s23910_s8 + $0x3e20] ss:$16 sps:$4 sm:$0xff]  }
 0x7db   : > { %15601 = vmatpush1.bf16.msra.mxu0 %v23090_v41  ;;  %17077 = vmatpush1.bf16.msra.mxu1 %v23093_v33  ;;  %v23185_v41 = vld [vmem:[%s23910_s8 + $0x3e28] ss:$16 sps:$4 sm:$0xff]   ;;  %v23190_v33 = vld [vmem:[%s23910_s8 + $0x3e44] ss:$16 sps:$4 sm:$0xff]  }
 0x7dc   : > { %15602 = vmatprep.subr.bf16.mxu0 %v23098_v43  ;;  %17078 = vmatprep.subr.bf16.mxu1 %v23101_v44  ;;  %v23193_v43 = vld [vmem:[%s23910_s8 + $0x3e4c] ss:$16 sps:$4 sm:$0xff]   ;;  %v23188_v44 = vld [vmem:[%s23910_s8 + $0x3e40] ss:$16 sps:$4 sm:$0xff]  }
 0x7df   : > { %15603 = vmatpush1.bf16.msra.mxu0 %v23096_v36  ;;  %17079 = vmatpush1.bf16.msra.mxu1 %v23099_v46  ;;  %v23191_v36 = vld [vmem:[%s23910_s8 + $0x3e48] ss:$16 sps:$4 sm:$0xff]   ;;  %v23196_v46 = vld [vmem:[%s23910_s8 + $0x3e64] ss:$16 sps:$4 sm:$0xff]  }
 0x7e0   : > { %15604 = vmatprep.subr.bf16.mxu0 %v23104_v47  ;;  %17080 = vmatprep.subr.bf16.mxu1 %v23107_v39  ;;  %v23199_v47 = vld [vmem:[%s23910_s8 + $0x3e6c] ss:$16 sps:$4 sm:$0xff]   ;;  %v23194_v39 = vld [vmem:[%s23910_s8 + $0x3e60] ss:$16 sps:$4 sm:$0xff]  }
 0x7e3   : > { %15605 = vmatpush1.bf16.msra.mxu0 %v23102_v49  ;;  %17081 = vmatpush1.bf16.msra.mxu1 %v23105_v50  ;;  %v23197_v49 = vld [vmem:[%s23910_s8 + $0x3e68] ss:$16 sps:$4 sm:$0xff]   ;;  %v23202_v50 = vld [vmem:[%s23910_s8 + $0x3e84] ss:$16 sps:$4 sm:$0xff]  }
 0x7e4   : > { %15606 = vmatprep.subr.bf16.mxu0 %v23110_v42  ;;  %17082 = vmatprep.subr.bf16.mxu1 %v23113_v52  ;;  %v23205_v42 = vld [vmem:[%s23910_s8 + $0x3e8c] ss:$16 sps:$4 sm:$0xff]   ;;  %v23200_v52 = vld [vmem:[%s23910_s8 + $0x3e80] ss:$16 sps:$4 sm:$0xff]  }
 0x7e7   : > { %15607 = vmatpush1.bf16.msra.mxu0 %v23108_v53  ;;  %17083 = vmatpush1.bf16.msra.mxu1 %v23111_v45  ;;  %v23203_v53 = vld [vmem:[%s23910_s8 + $0x3e88] ss:$16 sps:$4 sm:$0xff]   ;;  %v23208_v45 = vld [vmem:[%s23910_s8 + $0x3ea4] ss:$16 sps:$4 sm:$0xff]  }
 0x7e8   : > { %15608 = vmatprep.subr.bf16.mxu0 %v23116_v55  ;;  %17084 = vmatprep.subr.bf16.mxu1 %v23119_v56  ;;  %v23211_v55 = vld [vmem:[%s23910_s8 + $0x3eac] ss:$16 sps:$4 sm:$0xff]   ;;  %v23206_v56 = vld [vmem:[%s23910_s8 + $0x3ea0] ss:$16 sps:$4 sm:$0xff]  }
 0x7eb   : > { %15609 = vmatpush1.bf16.msra.mxu0 %v23114_v48  ;;  %17085 = vmatpush1.bf16.msra.mxu1 %v23117_v58  ;;  %v23209_v48 = vld [vmem:[%s23910_s8 + $0x3ea8] ss:$16 sps:$4 sm:$0xff]   ;;  %v23214_v58 = vld [vmem:[%s23910_s8 + $0x3ec4] ss:$16 sps:$4 sm:$0xff]  }
 0x7ec   : > { %15610 = vmatprep.subr.bf16.mxu0 %v23122_v59  ;;  %17086 = vmatprep.subr.bf16.mxu1 %v23125_v51  ;;  %v23217_v59 = vld [vmem:[%s23910_s8 + $0x3ecc] ss:$16 sps:$4 sm:$0xff]   ;;  %v23212_v51 = vld [vmem:[%s23910_s8 + $0x3ec0] ss:$16 sps:$4 sm:$0xff]  }
 0x7ef   : > { %15611 = vmatpush1.bf16.msra.mxu0 %v23120_v61  ;;  %17087 = vmatpush1.bf16.msra.mxu1 %v23123_v62  ;;  %v23215_v61 = vld [vmem:[%s23910_s8 + $0x3ec8] ss:$16 sps:$4 sm:$0xff]   ;;  %v23220_v62 = vld [vmem:[%s23910_s8 + $0x3ee4] ss:$16 sps:$4 sm:$0xff]  }
 0x7f0   : > { %15612 = vmatprep.subr.bf16.mxu0 %v23128_v54  ;;  %17088 = vmatprep.subr.bf16.mxu1 %v23131_v63  ;;  %v23223_v54 = vld [vmem:[%s23910_s8 + $0x3eec] ss:$16 sps:$4 sm:$0xff]   ;;  %v23218_v63 = vld [vmem:[%s23910_s8 + $0x3ee0] ss:$16 sps:$4 sm:$0xff]  }
 0x7f3   : > { %15613 = vmatpush1.bf16.msra.mxu0 %v23126_v1  ;;  %17089 = vmatpush1.bf16.msra.mxu1 %v23129_v57  ;;  %v23221_v1 = vld [vmem:[%s23910_s8 + $0x3ee8] ss:$16 sps:$4 sm:$0xff]   ;;  %v23226_v57 = vld [vmem:[%s23910_s8 + $0x3f04] ss:$16 sps:$4 sm:$0xff]  }
 0x7f4   : > { %15614 = vmatprep.subr.bf16.mxu0 %v23134_v2  ;;  %17090 = vmatprep.subr.bf16.mxu1 %v23137_v60  ;;  %v23229_v2 = vld [vmem:[%s23910_s8 + $0x3f0c] ss:$16 sps:$4 sm:$0xff]   ;;  %v23224_v60 = vld [vmem:[%s23910_s8 + $0x3f00] ss:$16 sps:$4 sm:$0xff]  }
 0x7f7   : > { %15615 = vmatpush1.bf16.msra.mxu0 %v23132_v4  ;;  %17091 = vmatpush1.bf16.msra.mxu1 %v23135_v5  ;;  %v23227_v4 = vld [vmem:[%s23910_s8 + $0x3f08] ss:$16 sps:$4 sm:$0xff]   ;;  %v23232_v5 = vld [vmem:[%s23910_s8 + $0x3f24] ss:$16 sps:$4 sm:$0xff]  }
 0x7f8   : > { %15616 = vmatprep.subr.bf16.mxu0 %v23140_v0  ;;  %17092 = vmatprep.subr.bf16.mxu1 %v23143_v7  ;;  %v23235_v0 = vld [vmem:[%s23910_s8 + $0x3f2c] ss:$16 sps:$4 sm:$0xff]   ;;  %v23230_v7 = vld [vmem:[%s23910_s8 + $0x3f20] ss:$16 sps:$4 sm:$0xff]  }
 0x7fb   : > { %15617 = vmatpush1.bf16.msra.mxu0 %v23138_v8  ;;  %17093 = vmatpush1.bf16.msra.mxu1 %v23141_v3  ;;  %v23233_v8 = vld [vmem:[%s23910_s8 + $0x3f28] ss:$16 sps:$4 sm:$0xff]   ;;  %v23238_v3 = vld [vmem:[%s23910_s8 + $0x3f44] ss:$16 sps:$4 sm:$0xff]  }
 0x7fc   : > { %15618 = vmatprep.subr.bf16.mxu0 %v23146_v10  ;;  %17094 = vmatprep.subr.bf16.mxu1 %v23149_v12  ;;  %v23241_v10 = vld [vmem:[%s23910_s8 + $0x3f4c] ss:$16 sps:$4 sm:$0xff]   ;;  %v23236_v12 = vld [vmem:[%s23910_s8 + $0x3f40] ss:$16 sps:$4 sm:$0xff]  }
 0x7ff   : > { %15619 = vmatpush1.bf16.msra.mxu0 %v23144_v6  ;;  %17095 = vmatpush1.bf16.msra.mxu1 %v23147_v15  ;;  %v23239_v6 = vld [vmem:[%s23910_s8 + $0x3f48] ss:$16 sps:$4 sm:$0xff]   ;;  %v23244_v15 = vld [vmem:[%s23910_s8 + $0x3f64] ss:$16 sps:$4 sm:$0xff]  }
 0x800   : > { %15620 = vmatprep.subr.bf16.mxu0 %v23152_v16  ;;  %17096 = vmatprep.subr.bf16.mxu1 %v23155_v9  ;;  %v23247_v16 = vld [vmem:[%s23910_s8 + $0x3f6c] ss:$16 sps:$4 sm:$0xff]   ;;  %v23242_v9 = vld [vmem:[%s23910_s8 + $0x3f60] ss:$16 sps:$4 sm:$0xff]  }
 0x803   : > { %15621 = vmatpush1.bf16.msra.mxu0 %v23150_v19  ;;  %17097 = vmatpush1.bf16.msra.mxu1 %v23153_v20  ;;  %v23245_v19 = vld [vmem:[%s23910_s8 + $0x3f68] ss:$16 sps:$4 sm:$0xff]   ;;  %v23250_v20 = vld [vmem:[%s23910_s8 + $0x3f84] ss:$16 sps:$4 sm:$0xff]  }
 0x804   : > { %15622 = vmatprep.subr.bf16.mxu0 %v23158_v13  ;;  %17098 = vmatprep.subr.bf16.mxu1 %v23161_v22  ;;  %v23253_v13 = vld [vmem:[%s23910_s8 + $0x3f8c] ss:$16 sps:$4 sm:$0xff]   ;;  %v23248_v22 = vld [vmem:[%s23910_s8 + $0x3f80] ss:$16 sps:$4 sm:$0xff]  }
 0x807   : > { %15623 = vmatpush1.bf16.msra.mxu0 %v23156_v23  ;;  %17099 = vmatpush1.bf16.msra.mxu1 %v23159_v11  ;;  %v23251_v23 = vld [vmem:[%s23910_s8 + $0x3f88] ss:$16 sps:$4 sm:$0xff]   ;;  %v23256_v11 = vld [vmem:[%s23910_s8 + $0x3fa4] ss:$16 sps:$4 sm:$0xff]  }
 0x808   : > { %15624 = vmatprep.subr.bf16.mxu0 %v23164_v25  ;;  %17100 = vmatprep.subr.bf16.mxu1 %v23167_v26  ;;  %v23259_v25 = vld [vmem:[%s23910_s8 + $0x3fac] ss:$16 sps:$4 sm:$0xff]   ;;  %v23254_v26 = vld [vmem:[%s23910_s8 + $0x3fa0] ss:$16 sps:$4 sm:$0xff]  }
 0x80b   : > { %15625 = vmatpush1.bf16.msra.mxu0 %v23162_v14  ;;  %17101 = vmatpush1.bf16.msra.mxu1 %v23165_v28  ;;  %v23257_v14 = vld [vmem:[%s23910_s8 + $0x3fa8] ss:$16 sps:$4 sm:$0xff]   ;;  %v23262_v28 = vld [vmem:[%s23910_s8 + $0x3fc4] ss:$16 sps:$4 sm:$0xff]  }
 0x80c   : > { %15626 = vmatprep.subr.bf16.mxu0 %v23170_v29  ;;  %17102 = vmatprep.subr.bf16.mxu1 %v23173_v17  ;;  %v23265_v29 = vld [vmem:[%s23910_s8 + $0x3fcc] ss:$16 sps:$4 sm:$0xff]   ;;  %v23260_v17 = vld [vmem:[%s23910_s8 + $0x3fc0] ss:$16 sps:$4 sm:$0xff]  }
 0x80f   : > { %15627 = vmatpush1.bf16.msra.mxu0 %v23168_v31  ;;  %17103 = vmatpush1.bf16.msra.mxu1 %v23171_v32  ;;  %v23263_v31 = vld [vmem:[%s23910_s8 + $0x3fc8] ss:$16 sps:$4 sm:$0xff]   ;;  %v23268_v32 = vld [vmem:[%s23910_s8 + $0x3fe4] ss:$16 sps:$4 sm:$0xff]  }
 0x810   : > { %15637 = vmatprep.subr.bf16.mxu0 %v23178_v18  ;;  %17113 = vmatprep.subr.bf16.mxu1 %v23181_v34  ;;  %v23271_v18 = vld [vmem:[%s23910_s8 + $0x3fec] ss:$16 sps:$4 sm:$0xff]   ;;  %v23266_v34 = vld [vmem:[%s23910_s8 + $0x3fe0] ss:$16 sps:$4 sm:$0xff]  }
 0x812   : > { %15629 = vmatmul.mubr.bf16.vlgmr.msra.gmra.mrb[0].mxu0 %v17485_v35  ;;  %17105 = vmatmul.mubr.bf16.vlgmr.msra.gmra.mrb[0].mxu1 %v17485_v35  ;;  %v23269_v35 = vld [vmem:[%s23910_s8 + $0x3fe8] ss:$16 sps:$4 sm:$0xff]  }
 0x813   : > { %15638 = vmatpush1.bf16.msra.mxu0 %v23176_v21  ;;  %17114 = vmatpush1.bf16.msra.mxu1 %v23179_v37  ;;  %v23276_v21 = vld [vmem:[%s23910_s8 + $0x4004] ss:$16 sps:$4 sm:$0xff]   ;;  %v23279_v37 = vld [vmem:[%s23910_s8 + $0x400c] ss:$16 sps:$4 sm:$0xff]  }
 0x814   : > { %15639 = vmatprep.subr.bf16.mxu0 %v23184_v38  ;;  %17115 = vmatprep.subr.bf16.mxu1 %v23187_v30  ;;  %v17487_v38 = vcombine.low %v26184_v27, %v26184_v27  ;;  %v26257_v30 = vld [vmem:[%s26563_s0 + $0x100] sm:$0xff] }
 0x815   : > { %15669 = vmatprep.mubr.bf16.mxu0 %v17488_v24  ;;  %17145 = vmatprep.mubr.bf16.mxu1 %v17488_v24  ;;  %v23274_v24 = vld [vmem:[%s23910_s8 + $0x4000] ss:$16 sps:$4 sm:$0xff]   ;;  %v17490_v27 = vcombine.high %v26257_v30, %v26257_v30 }
 0x817   : > { %15640 = vmatpush1.bf16.msra.mxu0 %v23182_v40  ;;  %17116 = vmatpush1.bf16.msra.mxu1 %v23185_v41  ;;  %v23277_v40 = vld [vmem:[%s23910_s8 + $0x4008] ss:$16 sps:$4 sm:$0xff]   ;;  %v23282_v41 = vld [vmem:[%s23910_s8 + $0x4024] ss:$16 sps:$4 sm:$0xff]  }
 0x818   : > { %15641 = vmatprep.subr.bf16.mxu0 %v23190_v33  ;;  %17117 = vmatprep.subr.bf16.mxu1 %v23193_v43  ;;  %v23285_v33 = vld [vmem:[%s23910_s8 + $0x402c] ss:$16 sps:$4 sm:$0xff]   ;;  %v23280_v43 = vld [vmem:[%s23910_s8 + $0x4020] ss:$16 sps:$4 sm:$0xff]  }
 0x81b   : > { %15642 = vmatpush1.bf16.msra.mxu0 %v23188_v44  ;;  %17118 = vmatpush1.bf16.msra.mxu1 %v23191_v36  ;;  %v23283_v44 = vld [vmem:[%s23910_s8 + $0x4028] ss:$16 sps:$4 sm:$0xff]   ;;  %v23288_v36 = vld [vmem:[%s23910_s8 + $0x4044] ss:$16 sps:$4 sm:$0xff]  }
 0x81c   : > { %15643 = vmatprep.subr.bf16.mxu0 %v23196_v46  ;;  %17119 = vmatprep.subr.bf16.mxu1 %v23199_v47  ;;  %v23291_v46 = vld [vmem:[%s23910_s8 + $0x404c] ss:$16 sps:$4 sm:$0xff]   ;;  %v23286_v47 = vld [vmem:[%s23910_s8 + $0x4040] ss:$16 sps:$4 sm:$0xff]  }
 0x81f   : > { %15644 = vmatpush1.bf16.msra.mxu0 %v23194_v39  ;;  %17120 = vmatpush1.bf16.msra.mxu1 %v23197_v49  ;;  %v23289_v39 = vld [vmem:[%s23910_s8 + $0x4048] ss:$16 sps:$4 sm:$0xff]   ;;  %v23294_v49 = vld [vmem:[%s23910_s8 + $0x4064] ss:$16 sps:$4 sm:$0xff]  }
 0x820   : > { %15645 = vmatprep.subr.bf16.mxu0 %v23202_v50  ;;  %17121 = vmatprep.subr.bf16.mxu1 %v23205_v42  ;;  %v23297_v50 = vld [vmem:[%s23910_s8 + $0x406c] ss:$16 sps:$4 sm:$0xff]   ;;  %v23292_v42 = vld [vmem:[%s23910_s8 + $0x4060] ss:$16 sps:$4 sm:$0xff]  }
 0x823   : > { %15646 = vmatpush1.bf16.msra.mxu0 %v23200_v52  ;;  %17122 = vmatpush1.bf16.msra.mxu1 %v23203_v53  ;;  %v23295_v52 = vld [vmem:[%s23910_s8 + $0x4068] ss:$16 sps:$4 sm:$0xff]   ;;  %v23300_v53 = vld [vmem:[%s23910_s8 + $0x4084] ss:$16 sps:$4 sm:$0xff]  }
 0x824   : > { %15647 = vmatprep.subr.bf16.mxu0 %v23208_v45  ;;  %17123 = vmatprep.subr.bf16.mxu1 %v23211_v55  ;;  %v23303_v45 = vld [vmem:[%s23910_s8 + $0x408c] ss:$16 sps:$4 sm:$0xff]   ;;  %v23298_v55 = vld [vmem:[%s23910_s8 + $0x4080] ss:$16 sps:$4 sm:$0xff]  }
 0x827   : > { %15648 = vmatpush1.bf16.msra.mxu0 %v23206_v56  ;;  %17124 = vmatpush1.bf16.msra.mxu1 %v23209_v48  ;;  %v23301_v56 = vld [vmem:[%s23910_s8 + $0x4088] ss:$16 sps:$4 sm:$0xff]   ;;  %v23306_v48 = vld [vmem:[%s23910_s8 + $0x40a4] ss:$16 sps:$4 sm:$0xff]  }
 0x828   : > { %15649 = vmatprep.subr.bf16.mxu0 %v23214_v58  ;;  %17125 = vmatprep.subr.bf16.mxu1 %v23217_v59  ;;  %v23309_v58 = vld [vmem:[%s23910_s8 + $0x40ac] ss:$16 sps:$4 sm:$0xff]   ;;  %v23304_v59 = vld [vmem:[%s23910_s8 + $0x40a0] ss:$16 sps:$4 sm:$0xff]  }
 0x82b   : > { %15650 = vmatpush1.bf16.msra.mxu0 %v23212_v51  ;;  %17126 = vmatpush1.bf16.msra.mxu1 %v23215_v61  ;;  %v23307_v51 = vld [vmem:[%s23910_s8 + $0x40a8] ss:$16 sps:$4 sm:$0xff]   ;;  %v23312_v61 = vld [vmem:[%s23910_s8 + $0x40c4] ss:$16 sps:$4 sm:$0xff]  }
 0x82c   : > { %15651 = vmatprep.subr.bf16.mxu0 %v23220_v62  ;;  %17127 = vmatprep.subr.bf16.mxu1 %v23223_v54  ;;  %v23315_v62 = vld [vmem:[%s23910_s8 + $0x40cc] ss:$16 sps:$4 sm:$0xff]   ;;  %v23310_v54 = vld [vmem:[%s23910_s8 + $0x40c0] ss:$16 sps:$4 sm:$0xff]  }
 0x82f   : > { %15652 = vmatpush1.bf16.msra.mxu0 %v23218_v63  ;;  %17128 = vmatpush1.bf16.msra.mxu1 %v23221_v1  ;;  %v23313_v63 = vld [vmem:[%s23910_s8 + $0x40c8] ss:$16 sps:$4 sm:$0xff]   ;;  %v23318_v1 = vld [vmem:[%s23910_s8 + $0x40e4] ss:$16 sps:$4 sm:$0xff]  }
 0x830   : > { %15653 = vmatprep.subr.bf16.mxu0 %v23226_v57  ;;  %17129 = vmatprep.subr.bf16.mxu1 %v23229_v2  ;;  %v23321_v57 = vld [vmem:[%s23910_s8 + $0x40ec] ss:$16 sps:$4 sm:$0xff]   ;;  %v23316_v2 = vld [vmem:[%s23910_s8 + $0x40e0] ss:$16 sps:$4 sm:$0xff]  }
 0x833   : > { %15654 = vmatpush1.bf16.msra.mxu0 %v23224_v60  ;;  %17130 = vmatpush1.bf16.msra.mxu1 %v23227_v4  ;;  %v23319_v60 = vld [vmem:[%s23910_s8 + $0x40e8] ss:$16 sps:$4 sm:$0xff]   ;;  %v23324_v4 = vld [vmem:[%s23910_s8 + $0x4104] ss:$16 sps:$4 sm:$0xff]  }
 0x834   : > { %15655 = vmatprep.subr.bf16.mxu0 %v23232_v5  ;;  %17131 = vmatprep.subr.bf16.mxu1 %v23235_v0  ;;  %v23327_v5 = vld [vmem:[%s23910_s8 + $0x410c] ss:$16 sps:$4 sm:$0xff]   ;;  %v23322_v0 = vld [vmem:[%s23910_s8 + $0x4100] ss:$16 sps:$4 sm:$0xff]  }
 0x837   : > { %15656 = vmatpush1.bf16.msra.mxu0 %v23230_v7  ;;  %17132 = vmatpush1.bf16.msra.mxu1 %v23233_v8  ;;  %v23325_v7 = vld [vmem:[%s23910_s8 + $0x4108] ss:$16 sps:$4 sm:$0xff]   ;;  %v23330_v8 = vld [vmem:[%s23910_s8 + $0x4124] ss:$16 sps:$4 sm:$0xff]  }
 0x838   : > { %15657 = vmatprep.subr.bf16.mxu0 %v23238_v3  ;;  %17133 = vmatprep.subr.bf16.mxu1 %v23241_v10  ;;  %v23333_v3 = vld [vmem:[%s23910_s8 + $0x412c] ss:$16 sps:$4 sm:$0xff]   ;;  %v23328_v10 = vld [vmem:[%s23910_s8 + $0x4120] ss:$16 sps:$4 sm:$0xff]  }
 0x83b   : > { %15658 = vmatpush1.bf16.msra.mxu0 %v23236_v12  ;;  %17134 = vmatpush1.bf16.msra.mxu1 %v23239_v6  ;;  %v23331_v12 = vld [vmem:[%s23910_s8 + $0x4128] ss:$16 sps:$4 sm:$0xff]   ;;  %v23336_v6 = vld [vmem:[%s23910_s8 + $0x4144] ss:$16 sps:$4 sm:$0xff]  }
 0x83c   : > { %15659 = vmatprep.subr.bf16.mxu0 %v23244_v15  ;;  %17135 = vmatprep.subr.bf16.mxu1 %v23247_v16  ;;  %v23339_v15 = vld [vmem:[%s23910_s8 + $0x414c] ss:$16 sps:$4 sm:$0xff]   ;;  %v23334_v16 = vld [vmem:[%s23910_s8 + $0x4140] ss:$16 sps:$4 sm:$0xff]  }
 0x83f   : > { %15660 = vmatpush1.bf16.msra.mxu0 %v23242_v9  ;;  %17136 = vmatpush1.bf16.msra.mxu1 %v23245_v19  ;;  %v23337_v9 = vld [vmem:[%s23910_s8 + $0x4148] ss:$16 sps:$4 sm:$0xff]   ;;  %v23342_v19 = vld [vmem:[%s23910_s8 + $0x4164] ss:$16 sps:$4 sm:$0xff]  }
 0x840   : > { %15661 = vmatprep.subr.bf16.mxu0 %v23250_v20  ;;  %17137 = vmatprep.subr.bf16.mxu1 %v23253_v13  ;;  %v23345_v20 = vld [vmem:[%s23910_s8 + $0x416c] ss:$16 sps:$4 sm:$0xff]   ;;  %v23340_v13 = vld [vmem:[%s23910_s8 + $0x4160] ss:$16 sps:$4 sm:$0xff]  }
 0x843   : > { %15662 = vmatpush1.bf16.msra.mxu0 %v23248_v22  ;;  %17138 = vmatpush1.bf16.msra.mxu1 %v23251_v23  ;;  %v23343_v22 = vld [vmem:[%s23910_s8 + $0x4168] ss:$16 sps:$4 sm:$0xff]   ;;  %v23348_v23 = vld [vmem:[%s23910_s8 + $0x4184] ss:$16 sps:$4 sm:$0xff]  }
 0x844   : > { %15663 = vmatprep.subr.bf16.mxu0 %v23256_v11  ;;  %17139 = vmatprep.subr.bf16.mxu1 %v23259_v25  ;;  %v23351_v11 = vld [vmem:[%s23910_s8 + $0x418c] ss:$16 sps:$4 sm:$0xff]   ;;  %v23346_v25 = vld [vmem:[%s23910_s8 + $0x4180] ss:$16 sps:$4 sm:$0xff]  }
 0x847   : > { %15664 = vmatpush1.bf16.msra.mxu0 %v23254_v26  ;;  %17140 = vmatpush1.bf16.msra.mxu1 %v23257_v14  ;;  %v23349_v26 = vld [vmem:[%s23910_s8 + $0x4188] ss:$16 sps:$4 sm:$0xff]   ;;  %v23354_v14 = vld [vmem:[%s23910_s8 + $0x41a4] ss:$16 sps:$4 sm:$0xff]  }
 0x848   : > { %15665 = vmatprep.subr.bf16.mxu0 %v23262_v28  ;;  %17141 = vmatprep.subr.bf16.mxu1 %v23265_v29  ;;  %v23357_v28 = vld [vmem:[%s23910_s8 + $0x41ac] ss:$16 sps:$4 sm:$0xff]   ;;  %v23352_v29 = vld [vmem:[%s23910_s8 + $0x41a0] ss:$16 sps:$4 sm:$0xff]  }
 0x84b   : > { %15666 = vmatpush1.bf16.msra.mxu0 %v23260_v17  ;;  %17142 = vmatpush1.bf16.msra.mxu1 %v23263_v31  ;;  %v23355_v17 = vld [vmem:[%s23910_s8 + $0x41a8] ss:$16 sps:$4 sm:$0xff]   ;;  %v23360_v31 = vld [vmem:[%s23910_s8 + $0x41c4] ss:$16 sps:$4 sm:$0xff]  }
 0x84c   : > { %15667 = vmatprep.subr.bf16.mxu0 %v23268_v32  ;;  %17143 = vmatprep.subr.bf16.mxu1 %v23271_v18  ;;  %v23363_v32 = vld [vmem:[%s23910_s8 + $0x41cc] ss:$16 sps:$4 sm:$0xff]   ;;  %v23358_v18 = vld [vmem:[%s23910_s8 + $0x41c0] ss:$16 sps:$4 sm:$0xff]  }
 0x84f   : > { %15668 = vmatpush1.bf16.msra.mxu0 %v23266_v34  ;;  %17144 = vmatpush1.bf16.msra.mxu1 %v23269_v35  ;;  %v23361_v34 = vld [vmem:[%s23910_s8 + $0x41c8] ss:$16 sps:$4 sm:$0xff]   ;;  %v23366_v35 = vld [vmem:[%s23910_s8 + $0x41e4] ss:$16 sps:$4 sm:$0xff]  }
 0x850   : > { %15678 = vmatprep.subr.bf16.mxu0 %v23276_v21  ;;  %17154 = vmatprep.subr.bf16.mxu1 %v23279_v37  ;;  %v23369_v21 = vld [vmem:[%s23910_s8 + $0x41ec] ss:$16 sps:$4 sm:$0xff]   ;;  %v23364_v37 = vld [vmem:[%s23910_s8 + $0x41e0] ss:$16 sps:$4 sm:$0xff]  }
 0x852   : > { %15670 = vmatmul.mubr.bf16.vlgmr.msra.gmra.mrb[0].mxu0 %v17487_v38  ;;  %17146 = vmatmul.mubr.bf16.vlgmr.msra.gmra.mrb[0].mxu1 %v17487_v38  ;;  %v23367_v38 = vld [vmem:[%s23910_s8 + $0x41e8] ss:$16 sps:$4 sm:$0xff]  }
 0x853   : > { %15679 = vmatpush1.bf16.msra.mxu0 %v23274_v24  ;;  %17155 = vmatpush1.bf16.msra.mxu1 %v23277_v40  ;;  %v23374_v24 = vld [vmem:[%s23910_s8 + $0x4204] ss:$16 sps:$4 sm:$0xff]   ;;  %v23377_v40 = vld [vmem:[%s23910_s8 + $0x420c] ss:$16 sps:$4 sm:$0xff]  }
 0x854   : > { %15680 = vmatprep.subr.bf16.mxu0 %v23282_v41  ;;  %17156 = vmatprep.subr.bf16.mxu1 %v23285_v33  ;;  %v17489_v41 = vcombine.low %v26257_v30, %v26257_v30  ;;  %v26330_v33 = vld [vmem:[%s26563_s0 + $0x108] sm:$0xff] }
 0x855   : > { %15710 = vmatprep.mubr.bf16.mxu0 %v17490_v27  ;;  %17186 = vmatprep.mubr.bf16.mxu1 %v17490_v27  ;;  %v23372_v27 = vld [vmem:[%s23910_s8 + $0x4200] ss:$16 sps:$4 sm:$0xff]   ;;  %v17492_v30 = vcombine.high %v26330_v33, %v26330_v33 }
 0x857   : > { %15681 = vmatpush1.bf16.msra.mxu0 %v23280_v43  ;;  %17157 = vmatpush1.bf16.msra.mxu1 %v23283_v44  ;;  %v23375_v43 = vld [vmem:[%s23910_s8 + $0x4208] ss:$16 sps:$4 sm:$0xff]   ;;  %v23380_v44 = vld [vmem:[%s23910_s8 + $0x4224] ss:$16 sps:$4 sm:$0xff]  }
 0x858   : > { %15682 = vmatprep.subr.bf16.mxu0 %v23288_v36  ;;  %17158 = vmatprep.subr.bf16.mxu1 %v23291_v46  ;;  %v23383_v36 = vld [vmem:[%s23910_s8 + $0x422c] ss:$16 sps:$4 sm:$0xff]   ;;  %v23378_v46 = vld [vmem:[%s23910_s8 + $0x4220] ss:$16 sps:$4 sm:$0xff]  }
 0x85b   : > { %15683 = vmatpush1.bf16.msra.mxu0 %v23286_v47  ;;  %17159 = vmatpush1.bf16.msra.mxu1 %v23289_v39  ;;  %v23381_v47 = vld [vmem:[%s23910_s8 + $0x4228] ss:$16 sps:$4 sm:$0xff]   ;;  %v23386_v39 = vld [vmem:[%s23910_s8 + $0x4244] ss:$16 sps:$4 sm:$0xff]  }
 0x85c   : > { %15684 = vmatprep.subr.bf16.mxu0 %v23294_v49  ;;  %17160 = vmatprep.subr.bf16.mxu1 %v23297_v50  ;;  %v23389_v49 = vld [vmem:[%s23910_s8 + $0x424c] ss:$16 sps:$4 sm:$0xff]   ;;  %v23384_v50 = vld [vmem:[%s23910_s8 + $0x4240] ss:$16 sps:$4 sm:$0xff]  }
 0x85f   : > { %15685 = vmatpush1.bf16.msra.mxu0 %v23292_v42  ;;  %17161 = vmatpush1.bf16.msra.mxu1 %v23295_v52  ;;  %v23387_v42 = vld [vmem:[%s23910_s8 + $0x4248] ss:$16 sps:$4 sm:$0xff]   ;;  %v23392_v52 = vld [vmem:[%s23910_s8 + $0x4264] ss:$16 sps:$4 sm:$0xff]  }
 0x860   : > { %15686 = vmatprep.subr.bf16.mxu0 %v23300_v53  ;;  %17162 = vmatprep.subr.bf16.mxu1 %v23303_v45  ;;  %v23395_v53 = vld [vmem:[%s23910_s8 + $0x426c] ss:$16 sps:$4 sm:$0xff]   ;;  %v23390_v45 = vld [vmem:[%s23910_s8 + $0x4260] ss:$16 sps:$4 sm:$0xff]  }
 0x863   : > { %15687 = vmatpush1.bf16.msra.mxu0 %v23298_v55  ;;  %17163 = vmatpush1.bf16.msra.mxu1 %v23301_v56  ;;  %v23393_v55 = vld [vmem:[%s23910_s8 + $0x4268] ss:$16 sps:$4 sm:$0xff]   ;;  %v23398_v56 = vld [vmem:[%s23910_s8 + $0x4284] ss:$16 sps:$4 sm:$0xff]  }
 0x864   : > { %15688 = vmatprep.subr.bf16.mxu0 %v23306_v48  ;;  %17164 = vmatprep.subr.bf16.mxu1 %v23309_v58  ;;  %v23401_v48 = vld [vmem:[%s23910_s8 + $0x428c] ss:$16 sps:$4 sm:$0xff]   ;;  %v23396_v58 = vld [vmem:[%s23910_s8 + $0x4280] ss:$16 sps:$4 sm:$0xff]  }
 0x867   : > { %15689 = vmatpush1.bf16.msra.mxu0 %v23304_v59  ;;  %17165 = vmatpush1.bf16.msra.mxu1 %v23307_v51  ;;  %v23399_v59 = vld [vmem:[%s23910_s8 + $0x4288] ss:$16 sps:$4 sm:$0xff]   ;;  %v23404_v51 = vld [vmem:[%s23910_s8 + $0x42a4] ss:$16 sps:$4 sm:$0xff]  }
 0x868   : > { %15690 = vmatprep.subr.bf16.mxu0 %v23312_v61  ;;  %17166 = vmatprep.subr.bf16.mxu1 %v23315_v62  ;;  %v23407_v61 = vld [vmem:[%s23910_s8 + $0x42ac] ss:$16 sps:$4 sm:$0xff]   ;;  %v23402_v62 = vld [vmem:[%s23910_s8 + $0x42a0] ss:$16 sps:$4 sm:$0xff]  }
 0x86b   : > { %15691 = vmatpush1.bf16.msra.mxu0 %v23310_v54  ;;  %17167 = vmatpush1.bf16.msra.mxu1 %v23313_v63  ;;  %v23405_v54 = vld [vmem:[%s23910_s8 + $0x42a8] ss:$16 sps:$4 sm:$0xff]   ;;  %v23410_v63 = vld [vmem:[%s23910_s8 + $0x42c4] ss:$16 sps:$4 sm:$0xff]  }
 0x86c   : > { %15692 = vmatprep.subr.bf16.mxu0 %v23318_v1  ;;  %17168 = vmatprep.subr.bf16.mxu1 %v23321_v57  ;;  %v23413_v1 = vld [vmem:[%s23910_s8 + $0x42cc] ss:$16 sps:$4 sm:$0xff]   ;;  %v23408_v57 = vld [vmem:[%s23910_s8 + $0x42c0] ss:$16 sps:$4 sm:$0xff]  }
 0x86f   : > { %15693 = vmatpush1.bf16.msra.mxu0 %v23316_v2  ;;  %17169 = vmatpush1.bf16.msra.mxu1 %v23319_v60  ;;  %v23411_v2 = vld [vmem:[%s23910_s8 + $0x42c8] ss:$16 sps:$4 sm:$0xff]   ;;  %v23416_v60 = vld [vmem:[%s23910_s8 + $0x42e4] ss:$16 sps:$4 sm:$0xff]  }
 0x870   : > { %15694 = vmatprep.subr.bf16.mxu0 %v23324_v4  ;;  %17170 = vmatprep.subr.bf16.mxu1 %v23327_v5  ;;  %v23419_v4 = vld [vmem:[%s23910_s8 + $0x42ec] ss:$16 sps:$4 sm:$0xff]   ;;  %v23414_v5 = vld [vmem:[%s23910_s8 + $0x42e0] ss:$16 sps:$4 sm:$0xff]  }
 0x873   : > { %15695 = vmatpush1.bf16.msra.mxu0 %v23322_v0  ;;  %17171 = vmatpush1.bf16.msra.mxu1 %v23325_v7  ;;  %v23417_v0 = vld [vmem:[%s23910_s8 + $0x42e8] ss:$16 sps:$4 sm:$0xff]   ;;  %v23422_v7 = vld [vmem:[%s23910_s8 + $0x4304] ss:$16 sps:$4 sm:$0xff]  }
 0x874   : > { %15696 = vmatprep.subr.bf16.mxu0 %v23330_v8  ;;  %17172 = vmatprep.subr.bf16.mxu1 %v23333_v3  ;;  %v23425_v8 = vld [vmem:[%s23910_s8 + $0x430c] ss:$16 sps:$4 sm:$0xff]   ;;  %v23420_v3 = vld [vmem:[%s23910_s8 + $0x4300] ss:$16 sps:$4 sm:$0xff]  }
 0x877   : > { %15697 = vmatpush1.bf16.msra.mxu0 %v23328_v10  ;;  %17173 = vmatpush1.bf16.msra.mxu1 %v23331_v12  ;;  %v23423_v10 = vld [vmem:[%s23910_s8 + $0x4308] ss:$16 sps:$4 sm:$0xff]   ;;  %v23428_v12 = vld [vmem:[%s23910_s8 + $0x4324] ss:$16 sps:$4 sm:$0xff]  }
 0x878   : > { %15698 = vmatprep.subr.bf16.mxu0 %v23336_v6  ;;  %17174 = vmatprep.subr.bf16.mxu1 %v23339_v15  ;;  %v23431_v6 = vld [vmem:[%s23910_s8 + $0x432c] ss:$16 sps:$4 sm:$0xff]   ;;  %v23426_v15 = vld [vmem:[%s23910_s8 + $0x4320] ss:$16 sps:$4 sm:$0xff]  }
 0x87b   : > { %15699 = vmatpush1.bf16.msra.mxu0 %v23334_v16  ;;  %17175 = vmatpush1.bf16.msra.mxu1 %v23337_v9  ;;  %v23429_v16 = vld [vmem:[%s23910_s8 + $0x4328] ss:$16 sps:$4 sm:$0xff]   ;;  %v23434_v9 = vld [vmem:[%s23910_s8 + $0x4344] ss:$16 sps:$4 sm:$0xff]  }
 0x87c   : > { %15700 = vmatprep.subr.bf16.mxu0 %v23342_v19  ;;  %17176 = vmatprep.subr.bf16.mxu1 %v23345_v20  ;;  %v23437_v19 = vld [vmem:[%s23910_s8 + $0x434c] ss:$16 sps:$4 sm:$0xff]   ;;  %v23432_v20 = vld [vmem:[%s23910_s8 + $0x4340] ss:$16 sps:$4 sm:$0xff]  }
 0x87f   : > { %15701 = vmatpush1.bf16.msra.mxu0 %v23340_v13  ;;  %17177 = vmatpush1.bf16.msra.mxu1 %v23343_v22  ;;  %v23435_v13 = vld [vmem:[%s23910_s8 + $0x4348] ss:$16 sps:$4 sm:$0xff]   ;;  %v23440_v22 = vld [vmem:[%s23910_s8 + $0x4364] ss:$16 sps:$4 sm:$0xff]  }
 0x880   : > { %15702 = vmatprep.subr.bf16.mxu0 %v23348_v23  ;;  %17178 = vmatprep.subr.bf16.mxu1 %v23351_v11  ;;  %v23443_v23 = vld [vmem:[%s23910_s8 + $0x436c] ss:$16 sps:$4 sm:$0xff]   ;;  %v23438_v11 = vld [vmem:[%s23910_s8 + $0x4360] ss:$16 sps:$4 sm:$0xff]  }
 0x883   : > { %15703 = vmatpush1.bf16.msra.mxu0 %v23346_v25  ;;  %17179 = vmatpush1.bf16.msra.mxu1 %v23349_v26  ;;  %v23441_v25 = vld [vmem:[%s23910_s8 + $0x4368] ss:$16 sps:$4 sm:$0xff]   ;;  %v23446_v26 = vld [vmem:[%s23910_s8 + $0x4384] ss:$16 sps:$4 sm:$0xff]  }
 0x884   : > { %15704 = vmatprep.subr.bf16.mxu0 %v23354_v14  ;;  %17180 = vmatprep.subr.bf16.mxu1 %v23357_v28  ;;  %v23449_v14 = vld [vmem:[%s23910_s8 + $0x438c] ss:$16 sps:$4 sm:$0xff]   ;;  %v23444_v28 = vld [vmem:[%s23910_s8 + $0x4380] ss:$16 sps:$4 sm:$0xff]  }
 0x887   : > { %15705 = vmatpush1.bf16.msra.mxu0 %v23352_v29  ;;  %17181 = vmatpush1.bf16.msra.mxu1 %v23355_v17  ;;  %v23447_v29 = vld [vmem:[%s23910_s8 + $0x4388] ss:$16 sps:$4 sm:$0xff]   ;;  %v23452_v17 = vld [vmem:[%s23910_s8 + $0x43a4] ss:$16 sps:$4 sm:$0xff]  }
 0x888   : > { %15706 = vmatprep.subr.bf16.mxu0 %v23360_v31  ;;  %17182 = vmatprep.subr.bf16.mxu1 %v23363_v32  ;;  %v23455_v31 = vld [vmem:[%s23910_s8 + $0x43ac] ss:$16 sps:$4 sm:$0xff]   ;;  %v23450_v32 = vld [vmem:[%s23910_s8 + $0x43a0] ss:$16 sps:$4 sm:$0xff]  }
 0x88b   : > { %15707 = vmatpush1.bf16.msra.mxu0 %v23358_v18  ;;  %17183 = vmatpush1.bf16.msra.mxu1 %v23361_v34  ;;  %v23453_v18 = vld [vmem:[%s23910_s8 + $0x43a8] ss:$16 sps:$4 sm:$0xff]   ;;  %v23458_v34 = vld [vmem:[%s23910_s8 + $0x43c4] ss:$16 sps:$4 sm:$0xff]  }
 0x88c   : > { %15708 = vmatprep.subr.bf16.mxu0 %v23366_v35  ;;  %17184 = vmatprep.subr.bf16.mxu1 %v23369_v21  ;;  %v23461_v35 = vld [vmem:[%s23910_s8 + $0x43cc] ss:$16 sps:$4 sm:$0xff]   ;;  %v23456_v21 = vld [vmem:[%s23910_s8 + $0x43c0] ss:$16 sps:$4 sm:$0xff]  }
 0x88f   : > { %15709 = vmatpush1.bf16.msra.mxu0 %v23364_v37  ;;  %17185 = vmatpush1.bf16.msra.mxu1 %v23367_v38  ;;  %v23459_v37 = vld [vmem:[%s23910_s8 + $0x43c8] ss:$16 sps:$4 sm:$0xff]   ;;  %v23464_v38 = vld [vmem:[%s23910_s8 + $0x43e4] ss:$16 sps:$4 sm:$0xff]  }
 0x890   : > { %15719 = vmatprep.subr.bf16.mxu0 %v23374_v24  ;;  %17195 = vmatprep.subr.bf16.mxu1 %v23377_v40  ;;  %v23467_v24 = vld [vmem:[%s23910_s8 + $0x43ec] ss:$16 sps:$4 sm:$0xff]   ;;  %v23462_v40 = vld [vmem:[%s23910_s8 + $0x43e0] ss:$16 sps:$4 sm:$0xff]  }
 0x892   : > { %15711 = vmatmul.mubr.bf16.vlgmr.msra.gmra.mrb[0].mxu0 %v17489_v41  ;;  %17187 = vmatmul.mubr.bf16.vlgmr.msra.gmra.mrb[0].mxu1 %v17489_v41  ;;  %v23465_v41 = vld [vmem:[%s23910_s8 + $0x43e8] ss:$16 sps:$4 sm:$0xff]  }
 0x893   : > { %15720 = vmatpush1.bf16.msra.mxu0 %v23372_v27  ;;  %17196 = vmatpush1.bf16.msra.mxu1 %v23375_v43  ;;  %v23472_v27 = vld [vmem:[%s23910_s8 + $0x4404] ss:$16 sps:$4 sm:$0xff]   ;;  %v23475_v43 = vld [vmem:[%s23910_s8 + $0x440c] ss:$16 sps:$4 sm:$0xff]  }
 0x894   : > { %15721 = vmatprep.subr.bf16.mxu0 %v23380_v44  ;;  %17197 = vmatprep.subr.bf16.mxu1 %v23383_v36  ;;  %v17491_v44 = vcombine.low %v26330_v33, %v26330_v33  ;;  %v26403_v36 = vld [vmem:[%s26563_s0 + $0x110] sm:$0xff] }
 0x895   : > { %15751 = vmatprep.mubr.bf16.mxu0 %v17492_v30  ;;  %17227 = vmatprep.mubr.bf16.mxu1 %v17492_v30  ;;  %v23470_v30 = vld [vmem:[%s23910_s8 + $0x4400] ss:$16 sps:$4 sm:$0xff]   ;;  %v17494_v33 = vcombine.high %v26403_v36, %v26403_v36 }
 0x897   : > { %15722 = vmatpush1.bf16.msra.mxu0 %v23378_v46  ;;  %17198 = vmatpush1.bf16.msra.mxu1 %v23381_v47  ;;  %v23473_v46 = vld [vmem:[%s23910_s8 + $0x4408] ss:$16 sps:$4 sm:$0xff]   ;;  %v23478_v47 = vld [vmem:[%s23910_s8 + $0x4424] ss:$16 sps:$4 sm:$0xff]  }
 0x898   : > { %15723 = vmatprep.subr.bf16.mxu0 %v23386_v39  ;;  %17199 = vmatprep.subr.bf16.mxu1 %v23389_v49  ;;  %v23481_v39 = vld [vmem:[%s23910_s8 + $0x442c] ss:$16 sps:$4 sm:$0xff]   ;;  %v23476_v49 = vld [vmem:[%s23910_s8 + $0x4420] ss:$16 sps:$4 sm:$0xff]  }
 0x89b   : > { %15724 = vmatpush1.bf16.msra.mxu0 %v23384_v50  ;;  %17200 = vmatpush1.bf16.msra.mxu1 %v23387_v42  ;;  %v23479_v50 = vld [vmem:[%s23910_s8 + $0x4428] ss:$16 sps:$4 sm:$0xff]   ;;  %v23484_v42 = vld [vmem:[%s23910_s8 + $0x4444] ss:$16 sps:$4 sm:$0xff]  }
 0x89c   : > { %15725 = vmatprep.subr.bf16.mxu0 %v23392_v52  ;;  %17201 = vmatprep.subr.bf16.mxu1 %v23395_v53  ;;  %v23487_v52 = vld [vmem:[%s23910_s8 + $0x444c] ss:$16 sps:$4 sm:$0xff]   ;;  %v23482_v53 = vld [vmem:[%s23910_s8 + $0x4440] ss:$16 sps:$4 sm:$0xff]  }
 0x89f   : > { %15726 = vmatpush1.bf16.msra.mxu0 %v23390_v45  ;;  %17202 = vmatpush1.bf16.msra.mxu1 %v23393_v55  ;;  %v23485_v45 = vld [vmem:[%s23910_s8 + $0x4448] ss:$16 sps:$4 sm:$0xff]   ;;  %v23490_v55 = vld [vmem:[%s23910_s8 + $0x4464] ss:$16 sps:$4 sm:$0xff]  }
 0x8a0   : > { %15727 = vmatprep.subr.bf16.mxu0 %v23398_v56  ;;  %17203 = vmatprep.subr.bf16.mxu1 %v23401_v48  ;;  %v23493_v56 = vld [vmem:[%s23910_s8 + $0x446c] ss:$16 sps:$4 sm:$0xff]   ;;  %v23488_v48 = vld [vmem:[%s23910_s8 + $0x4460] ss:$16 sps:$4 sm:$0xff]  }
 0x8a3   : > { %15728 = vmatpush1.bf16.msra.mxu0 %v23396_v58  ;;  %17204 = vmatpush1.bf16.msra.mxu1 %v23399_v59  ;;  %v23491_v58 = vld [vmem:[%s23910_s8 + $0x4468] ss:$16 sps:$4 sm:$0xff]   ;;  %v23496_v59 = vld [vmem:[%s23910_s8 + $0x4484] ss:$16 sps:$4 sm:$0xff]  }
 0x8a4   : > { %15729 = vmatprep.subr.bf16.mxu0 %v23404_v51  ;;  %17205 = vmatprep.subr.bf16.mxu1 %v23407_v61  ;;  %v23499_v51 = vld [vmem:[%s23910_s8 + $0x448c] ss:$16 sps:$4 sm:$0xff]   ;;  %v23494_v61 = vld [vmem:[%s23910_s8 + $0x4480] ss:$16 sps:$4 sm:$0xff]  }
 0x8a7   : > { %15730 = vmatpush1.bf16.msra.mxu0 %v23402_v62  ;;  %17206 = vmatpush1.bf16.msra.mxu1 %v23405_v54  ;;  %v23497_v62 = vld [vmem:[%s23910_s8 + $0x4488] ss:$16 sps:$4 sm:$0xff]   ;;  %v23502_v54 = vld [vmem:[%s23910_s8 + $0x44a4] ss:$16 sps:$4 sm:$0xff]  }
 0x8a8   : > { %15731 = vmatprep.subr.bf16.mxu0 %v23410_v63  ;;  %17207 = vmatprep.subr.bf16.mxu1 %v23413_v1  ;;  %v23505_v63 = vld [vmem:[%s23910_s8 + $0x44ac] ss:$16 sps:$4 sm:$0xff]   ;;  %v23500_v1 = vld [vmem:[%s23910_s8 + $0x44a0] ss:$16 sps:$4 sm:$0xff]  }
 0x8ab   : > { %15732 = vmatpush1.bf16.msra.mxu0 %v23408_v57  ;;  %17208 = vmatpush1.bf16.msra.mxu1 %v23411_v2  ;;  %v23503_v57 = vld [vmem:[%s23910_s8 + $0x44a8] ss:$16 sps:$4 sm:$0xff]   ;;  %v23508_v2 = vld [vmem:[%s23910_s8 + $0x44c4] ss:$16 sps:$4 sm:$0xff]  }
 0x8ac   : > { %15733 = vmatprep.subr.bf16.mxu0 %v23416_v60  ;;  %17209 = vmatprep.subr.bf16.mxu1 %v23419_v4  ;;  %v23511_v60 = vld [vmem:[%s23910_s8 + $0x44cc] ss:$16 sps:$4 sm:$0xff]   ;;  %v23506_v4 = vld [vmem:[%s23910_s8 + $0x44c0] ss:$16 sps:$4 sm:$0xff]  }
 0x8af   : > { %15734 = vmatpush1.bf16.msra.mxu0 %v23414_v5  ;;  %17210 = vmatpush1.bf16.msra.mxu1 %v23417_v0  ;;  %v23509_v5 = vld [vmem:[%s23910_s8 + $0x44c8] ss:$16 sps:$4 sm:$0xff]   ;;  %v23514_v0 = vld [vmem:[%s23910_s8 + $0x44e4] ss:$16 sps:$4 sm:$0xff]  }
 0x8b0   : > { %15735 = vmatprep.subr.bf16.mxu0 %v23422_v7  ;;  %17211 = vmatprep.subr.bf16.mxu1 %v23425_v8  ;;  %v23517_v7 = vld [vmem:[%s23910_s8 + $0x44ec] ss:$16 sps:$4 sm:$0xff]   ;;  %v23512_v8 = vld [vmem:[%s23910_s8 + $0x44e0] ss:$16 sps:$4 sm:$0xff]  }
 0x8b3   : > { %15736 = vmatpush1.bf16.msra.mxu0 %v23420_v3  ;;  %17212 = vmatpush1.bf16.msra.mxu1 %v23423_v10  ;;  %v23515_v3 = vld [vmem:[%s23910_s8 + $0x44e8] ss:$16 sps:$4 sm:$0xff]   ;;  %v23520_v10 = vld [vmem:[%s23910_s8 + $0x4504] ss:$16 sps:$4 sm:$0xff]  }
 0x8b4   : > { %15737 = vmatprep.subr.bf16.mxu0 %v23428_v12  ;;  %17213 = vmatprep.subr.bf16.mxu1 %v23431_v6  ;;  %v23523_v12 = vld [vmem:[%s23910_s8 + $0x450c] ss:$16 sps:$4 sm:$0xff]   ;;  %v23518_v6 = vld [vmem:[%s23910_s8 + $0x4500] ss:$16 sps:$4 sm:$0xff]  }
 0x8b7   : > { %15738 = vmatpush1.bf16.msra.mxu0 %v23426_v15  ;;  %17214 = vmatpush1.bf16.msra.mxu1 %v23429_v16  ;;  %v23521_v15 = vld [vmem:[%s23910_s8 + $0x4508] ss:$16 sps:$4 sm:$0xff]   ;;  %v23526_v16 = vld [vmem:[%s23910_s8 + $0x4524] ss:$16 sps:$4 sm:$0xff]  }
 0x8b8   : > { %15739 = vmatprep.subr.bf16.mxu0 %v23434_v9  ;;  %17215 = vmatprep.subr.bf16.mxu1 %v23437_v19  ;;  %v23529_v9 = vld [vmem:[%s23910_s8 + $0x452c] ss:$16 sps:$4 sm:$0xff]   ;;  %v23524_v19 = vld [vmem:[%s23910_s8 + $0x4520] ss:$16 sps:$4 sm:$0xff]  }
 0x8bb   : > { %15740 = vmatpush1.bf16.msra.mxu0 %v23432_v20  ;;  %17216 = vmatpush1.bf16.msra.mxu1 %v23435_v13  ;;  %v23527_v20 = vld [vmem:[%s23910_s8 + $0x4528] ss:$16 sps:$4 sm:$0xff]   ;;  %v23532_v13 = vld [vmem:[%s23910_s8 + $0x4544] ss:$16 sps:$4 sm:$0xff]  }
 0x8bc   : > { %15741 = vmatprep.subr.bf16.mxu0 %v23440_v22  ;;  %17217 = vmatprep.subr.bf16.mxu1 %v23443_v23  ;;  %v23535_v22 = vld [vmem:[%s23910_s8 + $0x454c] ss:$16 sps:$4 sm:$0xff]   ;;  %v23530_v23 = vld [vmem:[%s23910_s8 + $0x4540] ss:$16 sps:$4 sm:$0xff]  }
 0x8bf   : > { %15742 = vmatpush1.bf16.msra.mxu0 %v23438_v11  ;;  %17218 = vmatpush1.bf16.msra.mxu1 %v23441_v25  ;;  %v23533_v11 = vld [vmem:[%s23910_s8 + $0x4548] ss:$16 sps:$4 sm:$0xff]   ;;  %v23538_v25 = vld [vmem:[%s23910_s8 + $0x4564] ss:$16 sps:$4 sm:$0xff]  }
 0x8c0   : > { %15743 = vmatprep.subr.bf16.mxu0 %v23446_v26  ;;  %17219 = vmatprep.subr.bf16.mxu1 %v23449_v14  ;;  %v23541_v26 = vld [vmem:[%s23910_s8 + $0x456c] ss:$16 sps:$4 sm:$0xff]   ;;  %v23536_v14 = vld [vmem:[%s23910_s8 + $0x4560] ss:$16 sps:$4 sm:$0xff]  }
 0x8c3   : > { %15744 = vmatpush1.bf16.msra.mxu0 %v23444_v28  ;;  %17220 = vmatpush1.bf16.msra.mxu1 %v23447_v29  ;;  %v23539_v28 = vld [vmem:[%s23910_s8 + $0x4568] ss:$16 sps:$4 sm:$0xff]   ;;  %v23544_v29 = vld [vmem:[%s23910_s8 + $0x4584] ss:$16 sps:$4 sm:$0xff]  }
 0x8c4   : > { %15745 = vmatprep.subr.bf16.mxu0 %v23452_v17  ;;  %17221 = vmatprep.subr.bf16.mxu1 %v23455_v31  ;;  %v23547_v17 = vld [vmem:[%s23910_s8 + $0x458c] ss:$16 sps:$4 sm:$0xff]   ;;  %v23542_v31 = vld [vmem:[%s23910_s8 + $0x4580] ss:$16 sps:$4 sm:$0xff]  }
 0x8c7   : > { %15746 = vmatpush1.bf16.msra.mxu0 %v23450_v32  ;;  %17222 = vmatpush1.bf16.msra.mxu1 %v23453_v18  ;;  %v23545_v32 = vld [vmem:[%s23910_s8 + $0x4588] ss:$16 sps:$4 sm:$0xff]   ;;  %v23550_v18 = vld [vmem:[%s23910_s8 + $0x45a4] ss:$16 sps:$4 sm:$0xff]  }
 0x8c8   : > { %15747 = vmatprep.subr.bf16.mxu0 %v23458_v34  ;;  %17223 = vmatprep.subr.bf16.mxu1 %v23461_v35  ;;  %v23553_v34 = vld [vmem:[%s23910_s8 + $0x45ac] ss:$16 sps:$4 sm:$0xff]   ;;  %v23548_v35 = vld [vmem:[%s23910_s8 + $0x45a0] ss:$16 sps:$4 sm:$0xff]  }
 0x8cb   : > { %15748 = vmatpush1.bf16.msra.mxu0 %v23456_v21  ;;  %17224 = vmatpush1.bf16.msra.mxu1 %v23459_v37  ;;  %v23551_v21 = vld [vmem:[%s23910_s8 + $0x45a8] ss:$16 sps:$4 sm:$0xff]   ;;  %v23556_v37 = vld [vmem:[%s23910_s8 + $0x45c4] ss:$16 sps:$4 sm:$0xff]  }
 0x8cc   : > { %15749 = vmatprep.subr.bf16.mxu0 %v23464_v38  ;;  %17225 = vmatprep.subr.bf16.mxu1 %v23467_v24  ;;  %v23559_v38 = vld [vmem:[%s23910_s8 + $0x45cc] ss:$16 sps:$4 sm:$0xff]   ;;  %v23554_v24 = vld [vmem:[%s23910_s8 + $0x45c0] ss:$16 sps:$4 sm:$0xff]  }
 0x8cf   : > { %15750 = vmatpush1.bf16.msra.mxu0 %v23462_v40  ;;  %17226 = vmatpush1.bf16.msra.mxu1 %v23465_v41  ;;  %v23557_v40 = vld [vmem:[%s23910_s8 + $0x45c8] ss:$16 sps:$4 sm:$0xff]   ;;  %v23562_v41 = vld [vmem:[%s23910_s8 + $0x45e4] ss:$16 sps:$4 sm:$0xff]  }
 0x8d0   : > { %15760 = vmatprep.subr.bf16.mxu0 %v23472_v27  ;;  %17236 = vmatprep.subr.bf16.mxu1 %v23475_v43  ;;  %v23565_v27 = vld [vmem:[%s23910_s8 + $0x45ec] ss:$16 sps:$4 sm:$0xff]   ;;  %v23560_v43 = vld [vmem:[%s23910_s8 + $0x45e0] ss:$16 sps:$4 sm:$0xff]  }
 0x8d2   : > { %15752 = vmatmul.mubr.bf16.vlgmr.msra.gmra.mrb[0].mxu0 %v17491_v44  ;;  %17228 = vmatmul.mubr.bf16.vlgmr.msra.gmra.mrb[0].mxu1 %v17491_v44  ;;  %v23563_v44 = vld [vmem:[%s23910_s8 + $0x45e8] ss:$16 sps:$4 sm:$0xff]  }
 0x8d3   : > { %15761 = vmatpush1.bf16.msra.mxu0 %v23470_v30  ;;  %17237 = vmatpush1.bf16.msra.mxu1 %v23473_v46  ;;  %v23570_v30 = vld [vmem:[%s23910_s8 + $0x4604] ss:$16 sps:$4 sm:$0xff]   ;;  %v23573_v46 = vld [vmem:[%s23910_s8 + $0x460c] ss:$16 sps:$4 sm:$0xff]  }
 0x8d4   : > { %15762 = vmatprep.subr.bf16.mxu0 %v23478_v47  ;;  %17238 = vmatprep.subr.bf16.mxu1 %v23481_v39  ;;  %v17493_v47 = vcombine.low %v26403_v36, %v26403_v36  ;;  %v26476_v39 = vld [vmem:[%s26563_s0 + $0x118] sm:$0xff] }
 0x8d5   : > { %15792 = vmatprep.mubr.bf16.mxu0 %v17494_v33  ;;  %17268 = vmatprep.mubr.bf16.mxu1 %v17494_v33  ;;  %v23568_v33 = vld [vmem:[%s23910_s8 + $0x4600] ss:$16 sps:$4 sm:$0xff]   ;;  %v17496_v36 = vcombine.high %v26476_v39, %v26476_v39 }
 0x8d7   : > { %15763 = vmatpush1.bf16.msra.mxu0 %v23476_v49  ;;  %17239 = vmatpush1.bf16.msra.mxu1 %v23479_v50  ;;  %v23571_v49 = vld [vmem:[%s23910_s8 + $0x4608] ss:$16 sps:$4 sm:$0xff]   ;;  %v23576_v50 = vld [vmem:[%s23910_s8 + $0x4624] ss:$16 sps:$4 sm:$0xff]  }
 0x8d8   : > { %15764 = vmatprep.subr.bf16.mxu0 %v23484_v42  ;;  %17240 = vmatprep.subr.bf16.mxu1 %v23487_v52  ;;  %v23579_v42 = vld [vmem:[%s23910_s8 + $0x462c] ss:$16 sps:$4 sm:$0xff]   ;;  %v23574_v52 = vld [vmem:[%s23910_s8 + $0x4620] ss:$16 sps:$4 sm:$0xff]  }
 0x8db   : > { %15765 = vmatpush1.bf16.msra.mxu0 %v23482_v53  ;;  %17241 = vmatpush1.bf16.msra.mxu1 %v23485_v45  ;;  %v23577_v53 = vld [vmem:[%s23910_s8 + $0x4628] ss:$16 sps:$4 sm:$0xff]   ;;  %v23582_v45 = vld [vmem:[%s23910_s8 + $0x4644] ss:$16 sps:$4 sm:$0xff]  }
 0x8dc   : > { %15766 = vmatprep.subr.bf16.mxu0 %v23490_v55  ;;  %17242 = vmatprep.subr.bf16.mxu1 %v23493_v56  ;;  %v23585_v55 = vld [vmem:[%s23910_s8 + $0x464c] ss:$16 sps:$4 sm:$0xff]   ;;  %v23580_v56 = vld [vmem:[%s23910_s8 + $0x4640] ss:$16 sps:$4 sm:$0xff]  }
 0x8df   : > { %15767 = vmatpush1.bf16.msra.mxu0 %v23488_v48  ;;  %17243 = vmatpush1.bf16.msra.mxu1 %v23491_v58  ;;  %v23583_v48 = vld [vmem:[%s23910_s8 + $0x4648] ss:$16 sps:$4 sm:$0xff]   ;;  %v23588_v58 = vld [vmem:[%s23910_s8 + $0x4664] ss:$16 sps:$4 sm:$0xff]  }
 0x8e0   : > { %15768 = vmatprep.subr.bf16.mxu0 %v23496_v59  ;;  %17244 = vmatprep.subr.bf16.mxu1 %v23499_v51  ;;  %v23591_v59 = vld [vmem:[%s23910_s8 + $0x466c] ss:$16 sps:$4 sm:$0xff]   ;;  %v23586_v51 = vld [vmem:[%s23910_s8 + $0x4660] ss:$16 sps:$4 sm:$0xff]  }
 0x8e3   : > { %15769 = vmatpush1.bf16.msra.mxu0 %v23494_v61  ;;  %17245 = vmatpush1.bf16.msra.mxu1 %v23497_v62  ;;  %v23589_v61 = vld [vmem:[%s23910_s8 + $0x4668] ss:$16 sps:$4 sm:$0xff]   ;;  %v23594_v62 = vld [vmem:[%s23910_s8 + $0x4684] ss:$16 sps:$4 sm:$0xff]  }
 0x8e4   : > { %15770 = vmatprep.subr.bf16.mxu0 %v23502_v54  ;;  %17246 = vmatprep.subr.bf16.mxu1 %v23505_v63  ;;  %v23597_v54 = vld [vmem:[%s23910_s8 + $0x468c] ss:$16 sps:$4 sm:$0xff]   ;;  %v23592_v63 = vld [vmem:[%s23910_s8 + $0x4680] ss:$16 sps:$4 sm:$0xff]  }
 0x8e7   : > { %15771 = vmatpush1.bf16.msra.mxu0 %v23500_v1  ;;  %17247 = vmatpush1.bf16.msra.mxu1 %v23503_v57  ;;  %v23595_v1 = vld [vmem:[%s23910_s8 + $0x4688] ss:$16 sps:$4 sm:$0xff]   ;;  %v23600_v57 = vld [vmem:[%s23910_s8 + $0x46a4] ss:$16 sps:$4 sm:$0xff]  }
 0x8e8   : > { %15772 = vmatprep.subr.bf16.mxu0 %v23508_v2  ;;  %17248 = vmatprep.subr.bf16.mxu1 %v23511_v60  ;;  %v23603_v2 = vld [vmem:[%s23910_s8 + $0x46ac] ss:$16 sps:$4 sm:$0xff]   ;;  %v23598_v60 = vld [vmem:[%s23910_s8 + $0x46a0] ss:$16 sps:$4 sm:$0xff]  }
 0x8eb   : > { %15773 = vmatpush1.bf16.msra.mxu0 %v23506_v4  ;;  %17249 = vmatpush1.bf16.msra.mxu1 %v23509_v5  ;;  %v23601_v4 = vld [vmem:[%s23910_s8 + $0x46a8] ss:$16 sps:$4 sm:$0xff]   ;;  %v23606_v5 = vld [vmem:[%s23910_s8 + $0x46c4] ss:$16 sps:$4 sm:$0xff]  }
 0x8ec   : > { %15774 = vmatprep.subr.bf16.mxu0 %v23514_v0  ;;  %17250 = vmatprep.subr.bf16.mxu1 %v23517_v7  ;;  %v23609_v0 = vld [vmem:[%s23910_s8 + $0x46cc] ss:$16 sps:$4 sm:$0xff]   ;;  %v23604_v7 = vld [vmem:[%s23910_s8 + $0x46c0] ss:$16 sps:$4 sm:$0xff]  }
 0x8ef   : > { %15775 = vmatpush1.bf16.msra.mxu0 %v23512_v8  ;;  %17251 = vmatpush1.bf16.msra.mxu1 %v23515_v3  ;;  %v23607_v8 = vld [vmem:[%s23910_s8 + $0x46c8] ss:$16 sps:$4 sm:$0xff]   ;;  %v23612_v3 = vld [vmem:[%s23910_s8 + $0x46e4] ss:$16 sps:$4 sm:$0xff]  }
 0x8f0   : > { %15776 = vmatprep.subr.bf16.mxu0 %v23520_v10  ;;  %17252 = vmatprep.subr.bf16.mxu1 %v23523_v12  ;;  %v23615_v10 = vld [vmem:[%s23910_s8 + $0x46ec] ss:$16 sps:$4 sm:$0xff]   ;;  %v23610_v12 = vld [vmem:[%s23910_s8 + $0x46e0] ss:$16 sps:$4 sm:$0xff]  }
 0x8f3   : > { %15777 = vmatpush1.bf16.msra.mxu0 %v23518_v6  ;;  %17253 = vmatpush1.bf16.msra.mxu1 %v23521_v15  ;;  %v23613_v6 = vld [vmem:[%s23910_s8 + $0x46e8] ss:$16 sps:$4 sm:$0xff]   ;;  %v23618_v15 = vld [vmem:[%s23910_s8 + $0x4704] ss:$16 sps:$4 sm:$0xff]  }
 0x8f4   : > { %15778 = vmatprep.subr.bf16.mxu0 %v23526_v16  ;;  %17254 = vmatprep.subr.bf16.mxu1 %v23529_v9  ;;  %v23621_v16 = vld [vmem:[%s23910_s8 + $0x470c] ss:$16 sps:$4 sm:$0xff]   ;;  %v23616_v9 = vld [vmem:[%s23910_s8 + $0x4700] ss:$16 sps:$4 sm:$0xff]  }
 0x8f7   : > { %15779 = vmatpush1.bf16.msra.mxu0 %v23524_v19  ;;  %17255 = vmatpush1.bf16.msra.mxu1 %v23527_v20  ;;  %v23619_v19 = vld [vmem:[%s23910_s8 + $0x4708] ss:$16 sps:$4 sm:$0xff]   ;;  %v23624_v20 = vld [vmem:[%s23910_s8 + $0x4724] ss:$16 sps:$4 sm:$0xff]  }
 0x8f8   : > { %15780 = vmatprep.subr.bf16.mxu0 %v23532_v13  ;;  %17256 = vmatprep.subr.bf16.mxu1 %v23535_v22  ;;  %v23627_v13 = vld [vmem:[%s23910_s8 + $0x472c] ss:$16 sps:$4 sm:$0xff]   ;;  %v23622_v22 = vld [vmem:[%s23910_s8 + $0x4720] ss:$16 sps:$4 sm:$0xff]  }
 0x8fb   : > { %15781 = vmatpush1.bf16.msra.mxu0 %v23530_v23  ;;  %17257 = vmatpush1.bf16.msra.mxu1 %v23533_v11  ;;  %v23625_v23 = vld [vmem:[%s23910_s8 + $0x4728] ss:$16 sps:$4 sm:$0xff]   ;;  %v23630_v11 = vld [vmem:[%s23910_s8 + $0x4744] ss:$16 sps:$4 sm:$0xff]  }
 0x8fc   : > { %15782 = vmatprep.subr.bf16.mxu0 %v23538_v25  ;;  %17258 = vmatprep.subr.bf16.mxu1 %v23541_v26  ;;  %v23633_v25 = vld [vmem:[%s23910_s8 + $0x474c] ss:$16 sps:$4 sm:$0xff]   ;;  %v23628_v26 = vld [vmem:[%s23910_s8 + $0x4740] ss:$16 sps:$4 sm:$0xff]  }
 0x8ff   : > { %15783 = vmatpush1.bf16.msra.mxu0 %v23536_v14  ;;  %17259 = vmatpush1.bf16.msra.mxu1 %v23539_v28  ;;  %v23631_v14 = vld [vmem:[%s23910_s8 + $0x4748] ss:$16 sps:$4 sm:$0xff]   ;;  %v23636_v28 = vld [vmem:[%s23910_s8 + $0x4764] ss:$16 sps:$4 sm:$0xff]  }
 0x900   : > { %15784 = vmatprep.subr.bf16.mxu0 %v23544_v29  ;;  %17260 = vmatprep.subr.bf16.mxu1 %v23547_v17  ;;  %v23639_v29 = vld [vmem:[%s23910_s8 + $0x476c] ss:$16 sps:$4 sm:$0xff]   ;;  %v23634_v17 = vld [vmem:[%s23910_s8 + $0x4760] ss:$16 sps:$4 sm:$0xff]  }
 0x903   : > { %15785 = vmatpush1.bf16.msra.mxu0 %v23542_v31  ;;  %17261 = vmatpush1.bf16.msra.mxu1 %v23545_v32  ;;  %v23637_v31 = vld [vmem:[%s23910_s8 + $0x4768] ss:$16 sps:$4 sm:$0xff]   ;;  %v23642_v32 = vld [vmem:[%s23910_s8 + $0x4784] ss:$16 sps:$4 sm:$0xff]  }
 0x904   : > { %15786 = vmatprep.subr.bf16.mxu0 %v23550_v18  ;;  %17262 = vmatprep.subr.bf16.mxu1 %v23553_v34  ;;  %v23645_v18 = vld [vmem:[%s23910_s8 + $0x478c] ss:$16 sps:$4 sm:$0xff]   ;;  %v23640_v34 = vld [vmem:[%s23910_s8 + $0x4780] ss:$16 sps:$4 sm:$0xff]  }
 0x907   : > { %15787 = vmatpush1.bf16.msra.mxu0 %v23548_v35  ;;  %17263 = vmatpush1.bf16.msra.mxu1 %v23551_v21  ;;  %v23643_v35 = vld [vmem:[%s23910_s8 + $0x4788] ss:$16 sps:$4 sm:$0xff]   ;;  %v23648_v21 = vld [vmem:[%s23910_s8 + $0x47a4] ss:$16 sps:$4 sm:$0xff]  }
 0x908   : > { %15788 = vmatprep.subr.bf16.mxu0 %v23556_v37  ;;  %17264 = vmatprep.subr.bf16.mxu1 %v23559_v38  ;;  %v23651_v37 = vld [vmem:[%s23910_s8 + $0x47ac] ss:$16 sps:$4 sm:$0xff]   ;;  %v23646_v38 = vld [vmem:[%s23910_s8 + $0x47a0] ss:$16 sps:$4 sm:$0xff]  }
 0x90b   : > { %15789 = vmatpush1.bf16.msra.mxu0 %v23554_v24  ;;  %17265 = vmatpush1.bf16.msra.mxu1 %v23557_v40  ;;  %v23649_v24 = vld [vmem:[%s23910_s8 + $0x47a8] ss:$16 sps:$4 sm:$0xff]   ;;  %v23654_v40 = vld [vmem:[%s23910_s8 + $0x47c4] ss:$16 sps:$4 sm:$0xff]  }
 0x90c   : > { %15790 = vmatprep.subr.bf16.mxu0 %v23562_v41  ;;  %17266 = vmatprep.subr.bf16.mxu1 %v23565_v27  ;;  %v23657_v41 = vld [vmem:[%s23910_s8 + $0x47cc] ss:$16 sps:$4 sm:$0xff]   ;;  %v23652_v27 = vld [vmem:[%s23910_s8 + $0x47c0] ss:$16 sps:$4 sm:$0xff]  }
 0x90f   : > { %15791 = vmatpush1.bf16.msra.mxu0 %v23560_v43  ;;  %17267 = vmatpush1.bf16.msra.mxu1 %v23563_v44  ;;  %v23655_v43 = vld [vmem:[%s23910_s8 + $0x47c8] ss:$16 sps:$4 sm:$0xff]   ;;  %v23660_v44 = vld [vmem:[%s23910_s8 + $0x47e4] ss:$16 sps:$4 sm:$0xff]  }
 0x910   : > { %15801 = vmatprep.subr.bf16.mxu0 %v23570_v30  ;;  %17277 = vmatprep.subr.bf16.mxu1 %v23573_v46  ;;  %v23663_v30 = vld [vmem:[%s23910_s8 + $0x47ec] ss:$16 sps:$4 sm:$0xff]   ;;  %v23658_v46 = vld [vmem:[%s23910_s8 + $0x47e0] ss:$16 sps:$4 sm:$0xff]  }
 0x912   : > { %15793 = vmatmul.mubr.bf16.vlgmr.msra.gmra.mrb[0].mxu0 %v17493_v47  ;;  %17269 = vmatmul.mubr.bf16.vlgmr.msra.gmra.mrb[0].mxu1 %v17493_v47  ;;  %v23661_v47 = vld [vmem:[%s23910_s8 + $0x47e8] ss:$16 sps:$4 sm:$0xff]   ;;  %s17424_s8 = sshll.u32 %s26578_s5, 3 }
 0x913   : > { %15802 = vmatpush1.bf16.msra.mxu0 %v23568_v33  ;;  %17278 = vmatpush1.bf16.msra.mxu1 %v23571_v49  ;;  %v17495_v33 = vcombine.low %v26476_v39, %v26476_v39  ;;  %v2574_v49 = vlaneseq  ;;  %s230_s25 = scalar_lea.vmem %s26566_s3, %s17424_s8 }
 0x914   : > { %15803 = vmatprep.subr.bf16.mxu0 %v23576_v50  ;;  %17279 = vmatprep.subr.bf16.mxu1 %v23579_v42 }
 0x915   : > { %15833 = vmatprep.mubr.bf16.mxu0 %v17496_v36  ;;  %17309 = vmatprep.mubr.bf16.mxu1 %v17496_v36  ;;  %v2575_v50 = vshrl.u32 %v2574_v49, 7  ;;  %v2572_v36 = vld [vmem:[%s23916_s30] sm:$0xf] }
 0x917   : > { %15804 = vmatpush1.bf16.msra.mxu0 %v23574_v52  ;;  %17280 = vmatpush1.bf16.msra.mxu1 %v23577_v53  ;;  %v2576_v42 = vsub.s32 0, %v2575_v50  ;;  %v2580_v52 = vsub.s32 1, %v2575_v50  ;;  %v2584_v53 = vsub.s32 2, %v2575_v50 }
 0x918   : > { %15805 = vmatprep.subr.bf16.mxu0 %v23582_v45  ;;  %17281 = vmatprep.subr.bf16.mxu1 %v23585_v55  ;;  %v2588_v45 = vsub.s32 3, %v2575_v50 }
 0x919   : > { %v2577_v55 = vrot.slane %v2572_v36, %v2576_v42 }
 0x91b   : > { %15806 = vmatpush1.bf16.msra.mxu0 %v23580_v56  ;;  %17282 = vmatpush1.bf16.msra.mxu1 %v23583_v48  ;;  %v2581_v56 = vrot.slane %v2572_v36, %v2580_v52  ;;  %v2585_v48 = vrot.slane %v2572_v36, %v2584_v53 }
 0x91c   : > { %15807 = vmatprep.subr.bf16.mxu0 %v23588_v58  ;;  %17283 = vmatprep.subr.bf16.mxu1 %v23591_v59  ;;  %v2589_v59 = vrot.slane %v2572_v36, %v2588_v45 }
 0x91f   : > { %15808 = vmatpush1.bf16.msra.mxu0 %v23586_v51  ;;  %17284 = vmatpush1.bf16.msra.mxu1 %v23589_v61 }
 0x920   : > { %15809 = vmatprep.subr.bf16.mxu0 %v23594_v62  ;;  %17285 = vmatprep.subr.bf16.mxu1 %v23597_v54 }
 0x923   : > { %15810 = vmatpush1.bf16.msra.mxu0 %v23592_v63  ;;  %17286 = vmatpush1.bf16.msra.mxu1 %v23595_v1 }
 0x924   : > { %15811 = vmatprep.subr.bf16.mxu0 %v23600_v57  ;;  %17287 = vmatprep.subr.bf16.mxu1 %v23603_v2 }
 0x927   : > { %15812 = vmatpush1.bf16.msra.mxu0 %v23598_v60  ;;  %17288 = vmatpush1.bf16.msra.mxu1 %v23601_v4 }
 0x928   : > { %15813 = vmatprep.subr.bf16.mxu0 %v23606_v5  ;;  %17289 = vmatprep.subr.bf16.mxu1 %v23609_v0 }
 0x92b   : > { %15814 = vmatpush1.bf16.msra.mxu0 %v23604_v7  ;;  %17290 = vmatpush1.bf16.msra.mxu1 %v23607_v8 }
 0x92c   : > { %15815 = vmatprep.subr.bf16.mxu0 %v23612_v3  ;;  %17291 = vmatprep.subr.bf16.mxu1 %v23615_v10 }
 0x92f   : > { %15816 = vmatpush1.bf16.msra.mxu0 %v23610_v12  ;;  %17292 = vmatpush1.bf16.msra.mxu1 %v23613_v6 }
 0x930   : > { %15817 = vmatprep.subr.bf16.mxu0 %v23618_v15  ;;  %17293 = vmatprep.subr.bf16.mxu1 %v23621_v16 }
 0x933   : > { %15818 = vmatpush1.bf16.msra.mxu0 %v23616_v9  ;;  %17294 = vmatpush1.bf16.msra.mxu1 %v23619_v19 }
 0x934   : > { %15819 = vmatprep.subr.bf16.mxu0 %v23624_v20  ;;  %17295 = vmatprep.subr.bf16.mxu1 %v23627_v13 }
 0x937   : > { %15820 = vmatpush1.bf16.msra.mxu0 %v23622_v22  ;;  %17296 = vmatpush1.bf16.msra.mxu1 %v23625_v23 }
 0x938   : > { %15821 = vmatprep.subr.bf16.mxu0 %v23630_v11  ;;  %17297 = vmatprep.subr.bf16.mxu1 %v23633_v25 }
 0x93b   : > { %15822 = vmatpush1.bf16.msra.mxu0 %v23628_v26  ;;  %17298 = vmatpush1.bf16.msra.mxu1 %v23631_v14 }
 0x93c   : > { %15823 = vmatprep.subr.bf16.mxu0 %v23636_v28  ;;  %17299 = vmatprep.subr.bf16.mxu1 %v23639_v29 }
 0x93f   : > { %15824 = vmatpush1.bf16.msra.mxu0 %v23634_v17  ;;  %17300 = vmatpush1.bf16.msra.mxu1 %v23637_v31 }
 0x940   : > { %15825 = vmatprep.subr.bf16.mxu0 %v23642_v32  ;;  %17301 = vmatprep.subr.bf16.mxu1 %v23645_v18 }
 0x943   : > { %15826 = vmatpush1.bf16.msra.mxu0 %v23640_v34  ;;  %17302 = vmatpush1.bf16.msra.mxu1 %v23643_v35 }
 0x944   : > { %15827 = vmatprep.subr.bf16.mxu0 %v23648_v21  ;;  %17303 = vmatprep.subr.bf16.mxu1 %v23651_v37 }
 0x947   : > { %15828 = vmatpush1.bf16.msra.mxu0 %v23646_v38  ;;  %17304 = vmatpush1.bf16.msra.mxu1 %v23649_v24 }
 0x948   : > { %15829 = vmatprep.subr.bf16.mxu0 %v23654_v40  ;;  %17305 = vmatprep.subr.bf16.mxu1 %v23657_v41 }
 0x94b   : > { %15830 = vmatpush1.bf16.msra.mxu0 %v23652_v27  ;;  %17306 = vmatpush1.bf16.msra.mxu1 %v23655_v43 }
 0x94c   : > { %15831 = vmatprep.subr.bf16.mxu0 %v23660_v44  ;;  %17307 = vmatprep.subr.bf16.mxu1 %v23663_v30 }
 0x94f   : > { %15832 = vmatpush1.bf16.msra.mxu0 %v23658_v46  ;;  %17308 = vmatpush1.bf16.msra.mxu1 %v23661_v47 }
 0x952   : > { %15834 = vmatmul.mubr.bf16.vlgmr.msra.gmra.mrb[0].mxu0 %v17495_v33  ;;  %17310 = vmatmul.mubr.bf16.vlgmr.msra.gmra.mrb[0].mxu1 %v17495_v33 }
 0xa25   : > { %v15835_v39 = vpop.f32.mrb[0].mxu0  ;;  %v17311_v58 = vpop.f32.mrb[0].mxu1 }
 0xa26   : > { %v19805_v51 = vadd.f32 %v15835_v39, %v2577_v55  ;;  %v15837_v61 = vpop.f32.mrb[1].mxu0  ;;  %v17313_v62 = vpop.f32.mrb[1].mxu1  ;;  %v19807_v57 = vadd.f32 %v17311_v58, %v2585_v48 }
 0xa27   : > { %v19806_v54 = vadd.f32 %v15837_v61, %v2581_v56  ;;  %v15839_v63 = vpop.f32.mrb[2].mxu0  ;;  %v17315_v1 = vpop.f32.mrb[2].mxu1  ;;  %v19808_v4 = vadd.f32 %v17313_v62, %v2589_v59 }
 0xa28   : > { %17318 = vst [vmem:[%s230_s25] sm:$0xff] %v19805_v51  ;;  %v15840_v2 = vpop.f32.mrb[3].mxu0  ;;  %v17316_v60 = vpop.f32.mrb[3].mxu1  ;;  %17320 = vst [vmem:[%s230_s25 + $0x10] sm:$0xff] %v19807_v57 }
 0xa29   : > { %17319 = vst [vmem:[%s230_s25 + $0x8] sm:$0xff] %v19806_v54  ;;  %17321 = vst [vmem:[%s230_s25 + $0x18] sm:$0xff] %v19808_v4 }
 0xa2a PF: > { %p16_p8 = scmp.ge.s32.totalorder %s23811_s17, 4   ;;  %s26573_s12 = smov %s23756_s13 }
 0xa2b   : > { %s26574_s13 = smov %s23760_s14  ;;  %s26575_s14 = smov %s23821_s20 }
 0xa2c   : > { %s26576_s15 = smov %s23811_s17  ;;  %18 = sbr.rel (!%p16_p8) target bundleno = 5 (0x5), region = 85 }
 0xa33   :  { %17344 = vsyncpa [#allocation3], 1 }
 0xa34   :  { %17346 = vsyncpa [#allocation3 + $0x1], 1 }
 0xa35   :  { %17347 = vsyncpa [#allocation5], 1 }
 0xa36   :  { %17349 = vsyncpa [#allocation5 + $0x1], 1 }

</bundles_post_ra>
